<compile_context>
chip_gen: v6e
topology: v6e:2x2x1
jax: 0.10.0
libtpu: 0.0.40
codegen_flags: <defaults>
</compile_context>

<pallas_src>
import functools

import jax
import jax.numpy as jnp
from jax.experimental import pallas as pl
from jax.experimental.pallas import tpu as pltpu


def _round_up(x, m):
    return ((x + m - 1) // m) * m


# ----------------------------------------------------------------------------
# Pallas matmul with fused bias epilogue (the hot path for every conv)
#   A (im2col patches) : (M, K)   bf16
#   B (packed weights) : (K, Np)  bf16, Np multiple of 128
#   bias               : (Np,)    f32
# ----------------------------------------------------------------------------
def _mm_bias_kernel(a_ref, b_ref, bias_ref, o_ref):
    o_ref[...] = jnp.dot(a_ref[...], b_ref[...],
                         preferred_element_type=jnp.float32) + bias_ref[...]


def pallas_matmul_bias(a, b, bias):
    """a: (M, K) bf16, b: (K, Np) bf16, bias: (Np,) f32 -> (M, Np) f32."""
    M, K = a.shape
    Kb, Np = b.shape
    assert K == Kb and Np % 128 == 0, (a.shape, b.shape)

    # M tiling: full block for small M, 256-row tiles otherwise.
    if M <= 256:
        Mp = _round_up(M, 8)
        tm = Mp
    else:
        tm = 256
        Mp = _round_up(M, tm)
    if Mp != M:
        a = jnp.pad(a, ((0, Mp - M), (0, 0)))

    # N tiling: keep the whole (tiny) weight matrix resident when possible.
    if Np <= 512:
        tn = Np
    elif Np % 256 == 0:
        tn = 256
    else:
        tn = 128

    grid = (Mp // tm, Np // tn)
    bias2 = bias.reshape(1, Np).astype(jnp.float32)

    out = pl.pallas_call(
        _mm_bias_kernel,
        out_shape=jax.ShapeDtypeStruct((Mp, Np), jnp.float32),
        grid_spec=pltpu.PrefetchScalarGridSpec(
            num_scalar_prefetch=0,
            grid=grid,
            in_specs=[
                pl.BlockSpec((tm, K), lambda i, j: (i, 0)),   # full-K block
                pl.BlockSpec((K, tn), lambda i, j: (0, j)),   # weight resident
                pl.BlockSpec((1, tn), lambda i, j: (0, j)),   # fused bias
            ],
            out_specs=pl.BlockSpec((tm, tn), lambda i, j: (i, j)),
        ),
        compiler_params=pltpu.CompilerParams(
            dimension_semantics=("parallel", "parallel"),
            vmem_limit_bytes=32 * 1024 * 1024,
        ),
    )(a.astype(jnp.bfloat16), b, bias2)

    if Mp != M:
        out = out[:M]
    return out


# ----------------------------------------------------------------------------
# Conv building blocks (im2col + Pallas matmul)
# ----------------------------------------------------------------------------
def _im2col(x, kh, kw, stride):
    """x: (N, C, H, W) already padded. Returns (N*OH*OW, C*kh*kw), OH, OW.
    K ordering is (C, i, j) with i over kh, j over kw."""
    N, C, H, W = x.shape
    OH = (H - kh) // stride + 1
    OW = (W - kw) // stride + 1
    cols = []
    for i in range(kh):
        for j in range(kw):
            cols.append(x[:, :, i:i + stride * OH:stride, j:j + stride * OW:stride])
    # (kh*kw, N, C, OH, OW) -> (N, OH, OW, C, kh*kw)
    col = jnp.stack(cols, axis=0).transpose(1, 3, 4, 2, 0)
    return col.reshape(N * OH * OW, C * kh * kw), OH, OW


def conv2d_packed(x, wmat, bias, kh, kw, cout, stride=1, padding=0):
    """x: (N,Cin,H,W) f32; wmat: (Kp, Np) bf16 packed; bias: (Np,) f32."""
    N = x.shape[0]
    xb = x.astype(jnp.bfloat16)
    if padding > 0:
        xb = jnp.pad(xb, ((0, 0), (0, 0), (padding, padding), (padding, padding)))
    col, OH, OW = _im2col(xb, kh, kw, stride)
    Kp = wmat.shape[0]
    if col.shape[1] != Kp:                      # small pad to a multiple of 16
        col = jnp.pad(col, ((0, 0), (0, Kp - col.shape[1])))
    out = pallas_matmul_bias(col, wmat, bias)   # (M, Np) f32, bias fused
    if out.shape[1] != cout:
        out = out[:, :cout]
    return out.reshape(N, OH, OW, cout).transpose(0, 3, 1, 2)


def conv_transpose2d_subpixel(x, wmat, bias, cout):
    """ConvTranspose2d(k=3, stride=2, padding=1, output_padding=1) via
    sub-pixel phase decomposition: one 2x2-patch matmul on the un-dilated
    input producing all 4 output phases, then interleave."""
    N, Cin, H, W = x.shape
    xb = jnp.pad(x.astype(jnp.bfloat16), ((0, 0), (0, 0), (0, 1), (0, 1)))
    col, _, _ = _im2col(xb, 2, 2, 1)            # (N*H*W, Cin*4)
    Kp = wmat.shape[0]
    if col.shape[1] != Kp:
        col = jnp.pad(col, ((0, 0), (0, Kp - col.shape[1])))
    out = pallas_matmul_bias(col, wmat, bias)   # (M, Np) f32
    out = out[:, :cout * 4].reshape(N, H, W, cout, 2, 2)
    return out.transpose(0, 3, 1, 4, 2, 5).reshape(N, cout, 2 * H, 2 * W)


def max_pool2d(x, k, stride, padding):
    return jax.lax.reduce_window(
        x, -jnp.inf, jax.lax.max,
        window_dimensions=(1, 1, k, k),
        window_strides=(1, 1, stride, stride),
        padding=((0, 0), (0, 0), (padding, padding), (padding, padding)))


def sum_pool2d(x, k, stride, padding):
    return jax.lax.reduce_window(
        x, 0.0, jax.lax.add,
        window_dimensions=(1, 1, k, k),
        window_strides=(1, 1, stride, stride),
        padding=((0, 0), (0, 0), (padding, padding), (padding, padding)))


def batchnorm2d(x, eps=1e-5):
    # nn.BatchNorm2d in training mode with default affine init (gamma=1, beta=0)
    mean = jnp.mean(x, axis=(0, 2, 3), keepdims=True)
    var = jnp.var(x, axis=(0, 2, 3), keepdims=True)
    return (x - mean) * jax.lax.rsqrt(var + eps)


def relu(x):
    return jnp.maximum(x, 0.0)


def sparse_conv(x, mask, pk, bias_post, k, cout, stride, padding):
    """Sparsity-invariant conv. x:(N,C,H,W), mask:(N,1,H,W)."""
    feat = conv2d_packed(x * mask, pk["w"], pk["b"], k, k, cout, stride, padding)
    norm = sum_pool2d(mask, k, stride, padding)          # VPU, not MXU
    feat = feat * (1.0 / (norm + 1e-8)) + bias_post[None, :, None, None]
    new_mask = max_pool2d(mask, k, stride, padding)
    return feat, new_mask


def full_conv(input_a, input_c, mask, pk, kh, cout, stride, padding):
    combined = jnp.concatenate([input_a, input_c * mask], axis=1)
    return conv2d_packed(combined, pk["w"], pk["b"], kh, kh, cout, stride, padding)


# ----------------------------------------------------------------------------
# GenerateA parameters (PyTorch layout) + packing + forward
# ----------------------------------------------------------------------------
def init_params(key, input_nc=3, input_sparse_nc=1, output_nc=1,
                n_base_filters=64, n_sparse_filters=16):
    nb, ns = n_base_filters, n_sparse_filters
    specs = {
        "conv1_w": (nb, input_nc + input_sparse_nc, 7, 7), "conv1_b": (nb,),
        "conv2_w": (2 * nb, nb + ns, 3, 3), "conv2_b": (2 * nb,),
        "conv3_w": (4 * nb, 2 * nb + ns, 3, 3), "conv3_b": (4 * nb,),
        "conv4_w": (8 * nb, 4 * nb + ns, 3, 3), "conv4_b": (8 * nb,),
        "sconv1_w": (ns, input_sparse_nc, 7, 7), "sconv1_b": (ns,),
        "sconv2_w": (ns, ns, 3, 3), "sconv2_b": (ns,),
        "sconv3_w": (ns, ns, 3, 3), "sconv3_b": (ns,),
        "sconv4_w": (ns, ns, 3, 3), "sconv4_b": (ns,),
        "rconv1_w": (8 * nb, 8 * nb + ns, 3, 3), "rconv1_b": (8 * nb,),
        "rconv2_w": (8 * nb, 8 * nb + ns, 3, 3), "rconv2_b": (8 * nb,),
        "rsconv1_w": (16, ns, 3, 3), "rsconv1_b": (16,),
        "rsconv2_w": (16, ns, 3, 3), "rsconv2_b": (16,),
        # ConvTranspose2d weights: (in, out, k, k); bias=False (BatchNorm case)
        "ct1_w": (8 * nb, 4 * nb, 3, 3),
        "ct2_w": (4 * nb, 2 * nb, 3, 3),
        "ct3_w": (2 * nb, nb, 3, 3),
        "final_w": (output_nc, nb, 7, 7), "final_b": (output_nc,),
    }
    params = {}
    keys = jax.random.split(key, len(specs))
    for (name, shape), k in zip(sorted(specs.items()), keys):
        if name.endswith("_b"):
            params[name] = jnp.zeros(shape, jnp.float32)
        else:
            params[name] = 0.02 * jax.random.normal(k, shape, jnp.float32)
    return params


def prepare_params(p):
    """Pack every weight once: reshape to (K, Cout), pad K->mult of 16,
    Cout->mult of 128, cast to bf16, pad bias to (Np,) f32."""

    def pack_conv(w, b=None):
        cout, cin, kh, kw = w.shape
        K = cin * kh * kw
        Kp = _round_up(K, 16)
        Np = _round_up(cout, 128)
        wmat = jnp.zeros((Kp, Np), jnp.float32)
        wmat = wmat.at[:K, :cout].set(w.reshape(cout, K).T)
        bias = jnp.zeros((Np,), jnp.float32)
        if b is not None:
            bias = bias.at[:cout].set(b)
        return {"w": wmat.astype(jnp.bfloat16), "b": bias}

    def pack_deconv(w):
        # w: (Cin, Cout, 3, 3) torch ConvTranspose2d weight.
        cin, cout = w.shape[0], w.shape[1]
        wf = jnp.flip(w, axis=(2, 3)).transpose(1, 0, 2, 3)  # (Cout, Cin, 3, 3)

        def tap(a, b):
            return wf[:, :, a, b].T                          # (Cin, Cout)

        # W2[cin, dy, dx, cout, ry, rx]: 2x2 input patch taps per output phase.
        w2 = jnp.zeros((cin, 2, 2, cout, 2, 2), jnp.float32)
        # phase (0,0): o[2p,2q]     = wf[1,1] x[p,q]
        w2 = w2.at[:, 0, 0, :, 0, 0].set(tap(1, 1))
        # phase (0,1): o[2p,2q+1]   = wf[1,0] x[p,q]   + wf[1,2] x[p,q+1]
        w2 = w2.at[:, 0, 0, :, 0, 1].set(tap(1, 0))
        w2 = w2.at[:, 0, 1, :, 0, 1].set(tap(1, 2))
        # phase (1,0): o[2p+1,2q]   = wf[0,1] x[p,q]   + wf[2,1] x[p+1,q]
        w2 = w2.at[:, 0, 0, :, 1, 0].set(tap(0, 1))
        w2 = w2.at[:, 1, 0, :, 1, 0].set(tap(2, 1))
        # phase (1,1): o[2p+1,2q+1] = wf[0,0] x[p,q]   + wf[0,2] x[p,q+1]
        #                           + wf[2,0] x[p+1,q] + wf[2,2] x[p+1,q+1]
        w2 = w2.at[:, 0, 0, :, 1, 1].set(tap(0, 0))
        w2 = w2.at[:, 0, 1, :, 1, 1].set(tap(0, 2))
        w2 = w2.at[:, 1, 0, :, 1, 1].set(tap(2, 0))
        w2 = w2.at[:, 1, 1, :, 1, 1].set(tap(2, 2))

        K = cin * 4
        Kp = _round_up(K, 16)
        ncols = cout * 4
        Np = _round_up(ncols, 128)
        wmat = jnp.zeros((Kp, Np), jnp.float32)
        wmat = wmat.at[:K, :ncols].set(w2.reshape(K, ncols))
        return {"w": wmat.astype(jnp.bfloat16),
                "b": jnp.zeros((Np,), jnp.float32)}

    packed = {
        "conv1": pack_conv(p["conv1_w"], p["conv1_b"]),
        "conv2": pack_conv(p["conv2_w"], p["conv2_b"]),
        "conv3": pack_conv(p["conv3_w"], p["conv3_b"]),
        "conv4": pack_conv(p["conv4_w"], p["conv4_b"]),
        "sconv1": pack_conv(p["sconv1_w"]),
        "sconv2": pack_conv(p["sconv2_w"]),
        "sconv3": pack_conv(p["sconv3_w"]),
        "sconv4": pack_conv(p["sconv4_w"]),
        "rconv1": pack_conv(p["rconv1_w"], p["rconv1_b"]),
        "rconv2": pack_conv(p["rconv2_w"], p["rconv2_b"]),
        "rsconv1": pack_conv(p["rsconv1_w"]),
        "rsconv2": pack_conv(p["rsconv2_w"]),
        "ct1": pack_deconv(p["ct1_w"]),
        "ct2": pack_deconv(p["ct2_w"]),
        "ct3": pack_deconv(p["ct3_w"]),
        "final": pack_conv(p["final_w"], p["final_b"]),
        # sparse-conv biases are applied AFTER mask normalization
        "sconv1_bias": p["sconv1_b"], "sconv2_bias": p["sconv2_b"],
        "sconv3_bias": p["sconv3_b"], "sconv4_bias": p["sconv4_b"],
        "rsconv1_bias": p["rsconv1_b"], "rsconv2_bias": p["rsconv2_b"],
    }
    return packed


def generate_a_forward(pk, input_a, input_c, mask, n_blocks=9,
                       n_base_filters=64, n_sparse_filters=16, output_nc=1):
    nb, ns = n_base_filters, n_sparse_filters

    # --- stem ---------------------------------------------------------------
    a = jnp.pad(input_a, ((0, 0), (0, 0), (3, 3), (3, 3)), mode="reflect")
    c = jnp.pad(input_c, ((0, 0), (0, 0), (3, 3), (3, 3)))
    m = jnp.pad(mask, ((0, 0), (0, 0), (3, 3), (3, 3)))

    fa = full_conv(a, c, m, pk["conv1"], 7, nb, 1, 0)
    fc, fm = sparse_conv(c, m, pk["sconv1"], pk["sconv1_bias"], 7, ns, 1, 0)
    fa, fc = relu(batchnorm2d(fa)), relu(batchnorm2d(fc))

    fa = full_conv(fa, fc, fm, pk["conv2"], 3, 2 * nb, 2, 1)
    fc, fm = sparse_conv(fc, fm, pk["sconv2"], pk["sconv2_bias"], 3, ns, 2, 1)
    fa, fc = relu(batchnorm2d(fa)), relu(batchnorm2d(fc))

    fa = full_conv(fa, fc, fm, pk["conv3"], 3, 4 * nb, 2, 1)
    fc, fm = sparse_conv(fc, fm, pk["sconv3"], pk["sconv3_bias"], 3, ns, 2, 1)
    fa, fc = relu(batchnorm2d(fa)), relu(batchnorm2d(fc))

    fa = full_conv(fa, fc, fm, pk["conv4"], 3, 8 * nb, 2, 1)
    fc, fm = sparse_conv(fc, fm, pk["sconv4"], pk["sconv4_bias"], 3, ns, 2, 1)
    fa, fc = relu(batchnorm2d(fa)), relu(batchnorm2d(fc))

    # --- resnet blocks ------------------------------------------------------
    for _ in range(n_blocks):
        fa_tmp, fm_tmp = fa, fm

        ap = jnp.pad(fa, ((0, 0), (0, 0), (1, 1), (1, 1)), mode="reflect")
        cp = jnp.pad(fc, ((0, 0), (0, 0), (1, 1), (1, 1)))
        mp = jnp.pad(fm, ((0, 0), (0, 0), (1, 1), (1, 1)))
        fa = full_conv(ap, cp, mp, pk["rconv1"], 3, 8 * nb, 1, 0)
        fc, fm = sparse_conv(cp, mp, pk["rsconv1"], pk["rsconv1_bias"], 3, 16, 1, 0)
        fa, fc = relu(batchnorm2d(fa)), relu(batchnorm2d(fc))

        ap = jnp.pad(fa, ((0, 0), (0, 0), (1, 1), (1, 1)), mode="reflect")
        cp = jnp.pad(fc, ((0, 0), (0, 0), (1, 1), (1, 1)))
        mp = jnp.pad(fm, ((0, 0), (0, 0), (1, 1), (1, 1)))
        fa = full_conv(ap, cp, mp, pk["rconv2"], 3, 8 * nb, 1, 0)
        fc, fm = sparse_conv(cp, mp, pk["rsconv2"], pk["rsconv2_bias"], 3, 16, 1, 0)
        fa, fc = batchnorm2d(fa), batchnorm2d(fc)

        fa = fa_tmp + fa
        fm = fm_tmp + fm

    # --- decoder (convTran) ---------------------------------------------------
    x = relu(batchnorm2d(conv_transpose2d_subpixel(
        fa, pk["ct1"]["w"], pk["ct1"]["b"], 4 * nb)))
    x = relu(batchnorm2d(conv_transpose2d_subpixel(
        x, pk["ct2"]["w"], pk["ct2"]["b"], 2 * nb)))
    x = relu(batchnorm2d(conv_transpose2d_subpixel(
        x, pk["ct3"]["w"], pk["ct3"]["b"], nb)))
    x = jnp.pad(x, ((0, 0), (0, 0), (3, 3), (3, 3)), mode="reflect")
    x = conv2d_packed(x, pk["final"]["w"], pk["final"]["b"], 7, 7, output_nc, 1, 0)
    return jnp.tanh(x)


# ----------------------------------------------------------------------------
if __name__ == "__main__":
    # Small-but-faithful configuration.
    INPUT_NC, SPARSE_NC, OUTPUT_NC = 3, 1, 1
    N_BASE, N_SPARSE, N_BLOCKS = 16, 16, 2   # n_sparse must be 16 (hardcoded resnet sparse conv)
    B, H, W = 2, 32, 32

    key = jax.random.PRNGKey(0)
    k_p, k_a, k_c, k_m = jax.random.split(key, 4)

    raw_params = init_params(k_p, INPUT_NC, SPARSE_NC, OUTPUT_NC, N_BASE, N_SPARSE)
    packed_params = prepare_params(raw_params)   # one-time weight packing

    input_a = jax.random.normal(k_a, (B, INPUT_NC, H, W), jnp.float32)
    input_c = jax.random.normal(k_c, (B, SPARSE_NC, H, W), jnp.float32)
    mask = (jax.random.uniform(k_m, (B, SPARSE_NC, H, W)) > 0.5).astype(jnp.float32)

    fwd = jax.jit(functools.partial(
        generate_a_forward, n_blocks=N_BLOCKS,
        n_base_filters=N_BASE, n_sparse_filters=N_SPARSE, output_nc=OUTPUT_NC))
    out = fwd(packed_params, input_a, input_c, mask)
    out = jax.block_until_ready(out)

    assert out.shape == (B, OUTPUT_NC, H, W), out.shape
    assert bool(jnp.all(jnp.isfinite(out)))
    print("KERNEL_OK")
</pallas_src>

<mosaic_0001>
module attributes {stable_mosaic.version = 11 : i64} {
  func.func @_mm_bias_kernel(%arg0: i32, %arg1: i32, %arg2: memref<256x64xbf16, #tpu.memory_space<vmem>>, %arg3: memref<64x128xbf16, #tpu.memory_space<vmem>>, %arg4: memref<1x128xf32, #tpu.memory_space<vmem>>, %arg5: memref<256x128xf32, #tpu.memory_space<vmem>>) attributes {dimension_semantics = [#tpu.dimension_semantics<parallel>, #tpu.dimension_semantics<parallel>], iteration_bounds = array<i64: 8, 1>, scalar_prefetch = 0 : i64, scratch_operands = 0 : i64, tpu.core_type = #tpu.core_type<tc>, window_params = [{transform_indices = @transform_0, window_bounds = array<i64: 256, 64>}, {transform_indices = @transform_1, window_bounds = array<i64: 64, 128>}, {transform_indices = @transform_2, window_bounds = array<i64: 1, 128>}, {transform_indices = @transform_3, window_bounds = array<i64: 256, 128>}]} {
    %c0 = arith.constant 0 : index
    %c0_0 = arith.constant 0 : index
    %0 = vector.load %arg2[%c0, %c0_0] : memref<256x64xbf16, #tpu.memory_space<vmem>>, vector<256x64xbf16>
    %c0_1 = arith.constant 0 : index
    %c0_2 = arith.constant 0 : index
    %1 = vector.load %arg3[%c0_1, %c0_2] : memref<64x128xbf16, #tpu.memory_space<vmem>>, vector<64x128xbf16>
    %cst = arith.constant dense<0.000000e+00> : vector<256x128xf32>
    %2 = tpu.matmul %0, %1, %cst {dimension_numbers = #tpu.dot_dimension_numbers<[1], [0], [0], [1], [0, 0, 1, 1], [], []>} : vector<256x64xbf16>, vector<64x128xbf16>, vector<256x128xf32> -> vector<256x128xf32>
    %c0_3 = arith.constant 0 : index
    %c0_4 = arith.constant 0 : index
    %3 = vector.load %arg4[%c0_3, %c0_4] : memref<1x128xf32, #tpu.memory_space<vmem>>, vector<1x128xf32>
    %4 = vector.broadcast %3 : vector<1x128xf32> to vector<256x128xf32>
    %5 = arith.addf %2, %4 : vector<256x128xf32>
    %c0_5 = arith.constant 0 : index
    %c0_6 = arith.constant 0 : index
    %6 = vector.load %arg5[%c0_5, %c0_6] : memref<256x128xf32, #tpu.memory_space<vmem>>, vector<256x128xf32>
    tpu.vector_store %arg5[%c0_5, %c0_6], %5 {strides = array<i32>} : memref<256x128xf32, #tpu.memory_space<vmem>>, vector<256x128xf32>,
    return
  }
  func.func @transform_0(%arg0: i32, %arg1: i32) -> (i32, i32) {
    %c0_i32 = arith.constant 0 : i32
    %c0_i32_0 = arith.constant 0 : i32
    return %arg0, %c0_i32 : i32, i32
  }
  func.func @transform_1(%arg0: i32, %arg1: i32) -> (i32, i32) {
    %c0_i32 = arith.constant 0 : i32
    %c0_i32_0 = arith.constant 0 : i32
    return %c0_i32, %arg1 : i32, i32
  }
  func.func @transform_2(%arg0: i32, %arg1: i32) -> (i32, i32) {
    %c0_i32 = arith.constant 0 : i32
    %c0_i32_0 = arith.constant 0 : i32
    return %c0_i32, %arg1 : i32, i32
  }
  func.func @transform_3(%arg0: i32, %arg1: i32) -> (i32, i32) {
    %c0_i32 = arith.constant 0 : i32
    return %arg0, %arg1 : i32, i32
  }
}

module attributes {stable_mosaic.version = 11 : i64} {
  func.func @_mm_bias_kernel(%arg0: i32, %arg1: i32, %arg2: memref<256x208xbf16, #tpu.memory_space<vmem>>, %arg3: memref<208x128xbf16, #tpu.memory_space<vmem>>, %arg4: memref<1x128xf32, #tpu.memory_space<vmem>>, %arg5: memref<256x128xf32, #tpu.memory_space<vmem>>) attributes {dimension_semantics = [#tpu.dimension_semantics<parallel>, #tpu.dimension_semantics<parallel>], iteration_bounds = array<i64: 8, 1>, scalar_prefetch = 0 : i64, scratch_operands = 0 : i64, tpu.core_type = #tpu.core_type<tc>, window_params = [{transform_indices = @transform_0, window_bounds = array<i64: 256, 208>}, {transform_indices = @transform_1, window_bounds = array<i64: 208, 128>}, {transform_indices = @transform_2, window_bounds = array<i64: 1, 128>}, {transform_indices = @transform_3, window_bounds = array<i64: 256, 128>}]} {
    %c0 = arith.constant 0 : index
    %c0_0 = arith.constant 0 : index
    %0 = vector.load %arg2[%c0, %c0_0] : memref<256x208xbf16, #tpu.memory_space<vmem>>, vector<256x208xbf16>
    %c0_1 = arith.constant 0 : index
    %c0_2 = arith.constant 0 : index
    %1 = vector.load %arg3[%c0_1, %c0_2] : memref<208x128xbf16, #tpu.memory_space<vmem>>, vector<208x128xbf16>
    %cst = arith.constant dense<0.000000e+00> : vector<256x128xf32>
    %2 = tpu.matmul %0, %1, %cst {dimension_numbers = #tpu.dot_dimension_numbers<[1], [0], [0], [1], [0, 0, 1, 1], [], []>} : vector<256x208xbf16>, vector<208x128xbf16>, vector<256x128xf32> -> vector<256x128xf32>
    %c0_3 = arith.constant 0 : index
    %c0_4 = arith.constant 0 : index
    %3 = vector.load %arg4[%c0_3, %c0_4] : memref<1x128xf32, #tpu.memory_space<vmem>>, vector<1x128xf32>
    %4 = vector.broadcast %3 : vector<1x128xf32> to vector<256x128xf32>
    %5 = arith.addf %2, %4 : vector<256x128xf32>
    %c0_5 = arith.constant 0 : index
    %c0_6 = arith.constant 0 : index
    %6 = vector.load %arg5[%c0_5, %c0_6] : memref<256x128xf32, #tpu.memory_space<vmem>>, vector<256x128xf32>
    tpu.vector_store %arg5[%c0_5, %c0_6], %5 {strides = array<i32>} : memref<256x128xf32, #tpu.memory_space<vmem>>, vector<256x128xf32>,
    return
  }
  func.func @transform_0(%arg0: i32, %arg1: i32) -> (i32, i32) {
    %c0_i32 = arith.constant 0 : i32
    %c0_i32_0 = arith.constant 0 : i32
    return %arg0, %c0_i32 : i32, i32
  }
  func.func @transform_1(%arg0: i32, %arg1: i32) -> (i32, i32) {
    %c0_i32 = arith.constant 0 : i32
    %c0_i32_0 = arith.constant 0 : i32
    return %c0_i32, %arg1 : i32, i32
  }
  func.func @transform_2(%arg0: i32, %arg1: i32) -> (i32, i32) {
    %c0_i32 = arith.constant 0 : i32
    %c0_i32_0 = arith.constant 0 : i32
    return %c0_i32, %arg1 : i32, i32
  }
  func.func @transform_3(%arg0: i32, %arg1: i32) -> (i32, i32) {
    %c0_i32 = arith.constant 0 : i32
    return %arg0, %arg1 : i32, i32
  }
}

module attributes {stable_mosaic.version = 11 : i64} {
  func.func @_mm_bias_kernel(%arg0: i32, %arg1: i32, %arg2: memref<256x144xbf16, #tpu.memory_space<vmem>>, %arg3: memref<144x128xbf16, #tpu.memory_space<vmem>>, %arg4: memref<1x128xf32, #tpu.memory_space<vmem>>, %arg5: memref<256x128xf32, #tpu.memory_space<vmem>>) attributes {dimension_semantics = [#tpu.dimension_semantics<parallel>, #tpu.dimension_semantics<parallel>], iteration_bounds = array<i64: 2, 1>, scalar_prefetch = 0 : i64, scratch_operands = 0 : i64, tpu.core_type = #tpu.core_type<tc>, window_params = [{transform_indices = @transform_0, window_bounds = array<i64: 256, 144>}, {transform_indices = @transform_1, window_bounds = array<i64: 144, 128>}, {transform_indices = @transform_2, window_bounds = array<i64: 1, 128>}, {transform_indices = @transform_3, window_bounds = array<i64: 256, 128>}]} {
    %c0 = arith.constant 0 : index
    %c0_0 = arith.constant 0 : index
    %0 = vector.load %arg2[%c0, %c0_0] : memref<256x144xbf16, #tpu.memory_space<vmem>>, vector<256x144xbf16>
    %c0_1 = arith.constant 0 : index
    %c0_2 = arith.constant 0 : index
    %1 = vector.load %arg3[%c0_1, %c0_2] : memref<144x128xbf16, #tpu.memory_space<vmem>>, vector<144x128xbf16>
    %cst = arith.constant dense<0.000000e+00> : vector<256x128xf32>
    %2 = tpu.matmul %0, %1, %cst {dimension_numbers = #tpu.dot_dimension_numbers<[1], [0], [0], [1], [0, 0, 1, 1], [], []>} : vector<256x144xbf16>, vector<144x128xbf16>, vector<256x128xf32> -> vector<256x128xf32>
    %c0_3 = arith.constant 0 : index
    %c0_4 = arith.constant 0 : index
    %3 = vector.load %arg4[%c0_3, %c0_4] : memref<1x128xf32, #tpu.memory_space<vmem>>, vector<1x128xf32>
    %4 = vector.broadcast %3 : vector<1x128xf32> to vector<256x128xf32>
    %5 = arith.addf %2, %4 : vector<256x128xf32>
    %c0_5 = arith.constant 0 : index
    %c0_6 = arith.constant 0 : index
    %6 = vector.load %arg5[%c0_5, %c0_6] : memref<256x128xf32, #tpu.memory_space<vmem>>, vector<256x128xf32>
    tpu.vector_store %arg5[%c0_5, %c0_6], %5 {strides = array<i32>} : memref<256x128xf32, #tpu.memory_space<vmem>>, vector<256x128xf32>,
    return
  }
  func.func @transform_0(%arg0: i32, %arg1: i32) -> (i32, i32) {
    %c0_i32 = arith.constant 0 : i32
    %c0_i32_0 = arith.constant 0 : i32
    return %arg0, %c0_i32 : i32, i32
  }
  func.func @transform_1(%arg0: i32, %arg1: i32) -> (i32, i32) {
    %c0_i32 = arith.constant 0 : i32
    %c0_i32_0 = arith.constant 0 : i32
    return %c0_i32, %arg1 : i32, i32
  }
  func.func @transform_2(%arg0: i32, %arg1: i32) -> (i32, i32) {
    %c0_i32 = arith.constant 0 : i32
    %c0_i32_0 = arith.constant 0 : i32
    return %c0_i32, %arg1 : i32, i32
  }
  func.func @transform_3(%arg0: i32, %arg1: i32) -> (i32, i32) {
    %c0_i32 = arith.constant 0 : i32
    return %arg0, %arg1 : i32, i32
  }
}

module attributes {stable_mosaic.version = 11 : i64} {
  func.func @_mm_bias_kernel(%arg0: i32, %arg1: i32, %arg2: memref<128x144xbf16, #tpu.memory_space<vmem>>, %arg3: memref<144x128xbf16, #tpu.memory_space<vmem>>, %arg4: memref<1x128xf32, #tpu.memory_space<vmem>>, %arg5: memref<128x128xf32, #tpu.memory_space<vmem>>) attributes {dimension_semantics = [#tpu.dimension_semantics<parallel>, #tpu.dimension_semantics<parallel>], iteration_bounds = array<i64: 1, 1>, scalar_prefetch = 0 : i64, scratch_operands = 0 : i64, tpu.core_type = #tpu.core_type<tc>, window_params = [{transform_indices = @transform_0, window_bounds = array<i64: 128, 144>}, {transform_indices = @transform_1, window_bounds = array<i64: 144, 128>}, {transform_indices = @transform_2, window_bounds = array<i64: 1, 128>}, {transform_indices = @transform_3, window_bounds = array<i64: 128, 128>}]} {
    %c0 = arith.constant 0 : index
    %c0_0 = arith.constant 0 : index
    %0 = vector.load %arg2[%c0, %c0_0] : memref<128x144xbf16, #tpu.memory_space<vmem>>, vector<128x144xbf16>
    %c0_1 = arith.constant 0 : index
    %c0_2 = arith.constant 0 : index
    %1 = vector.load %arg3[%c0_1, %c0_2] : memref<144x128xbf16, #tpu.memory_space<vmem>>, vector<144x128xbf16>
    %cst = arith.constant dense<0.000000e+00> : vector<128x128xf32>
    %2 = tpu.matmul %0, %1, %cst {dimension_numbers = #tpu.dot_dimension_numbers<[1], [0], [0], [1], [0, 0, 1, 1], [], []>} : vector<128x144xbf16>, vector<144x128xbf16>, vector<128x128xf32> -> vector<128x128xf32>
    %c0_3 = arith.constant 0 : index
    %c0_4 = arith.constant 0 : index
    %3 = vector.load %arg4[%c0_3, %c0_4] : memref<1x128xf32, #tpu.memory_space<vmem>>, vector<1x128xf32>
    %4 = vector.broadcast %3 : vector<1x128xf32> to vector<128x128xf32>
    %5 = arith.addf %2, %4 : vector<128x128xf32>
    %c0_5 = arith.constant 0 : index
    %c0_6 = arith.constant 0 : index
    %6 = vector.load %arg5[%c0_5, %c0_6] : memref<128x128xf32, #tpu.memory_space<vmem>>, vector<128x128xf32>
    tpu.vector_store %arg5[%c0_5, %c0_6], %5 {strides = array<i32>} : memref<128x128xf32, #tpu.memory_space<vmem>>, vector<128x128xf32>,
    return
  }
  func.func @transform_0(%arg0: i32, %arg1: i32) -> (i32, i32) {
    %c0_i32 = arith.constant 0 : i32
    %c0_i32_0 = arith.constant 0 : i32
    return %arg0, %c0_i32 : i32, i32
  }
  func.func @transform_1(%arg0: i32, %arg1: i32) -> (i32, i32) {
    %c0_i32 = arith.constant 0 : i32
    %c0_i32_0 = arith.constant 0 : i32
    return %c0_i32, %arg1 : i32, i32
  }
  func.func @transform_2(%arg0: i32, %arg1: i32) -> (i32, i32) {
    %c0_i32 = arith.constant 0 : i32
    %c0_i32_0 = arith.constant 0 : i32
    return %c0_i32, %arg1 : i32, i32
  }
  func.func @transform_3(%arg0: i32, %arg1: i32) -> (i32, i32) {
    %c0_i32 = arith.constant 0 : i32
    return %arg0, %arg1 : i32, i32
  }
}

module attributes {stable_mosaic.version = 11 : i64} {
  func.func @_mm_bias_kernel(%arg0: i32, %arg1: i32, %arg2: memref<32x144xbf16, #tpu.memory_space<vmem>>, %arg3: memref<144x128xbf16, #tpu.memory_space<vmem>>, %arg4: memref<1x128xf32, #tpu.memory_space<vmem>>, %arg5: memref<32x128xf32, #tpu.memory_space<vmem>>) attributes {dimension_semantics = [#tpu.dimension_semantics<parallel>, #tpu.dimension_semantics<parallel>], iteration_bounds = array<i64: 1, 1>, scalar_prefetch = 0 : i64, scratch_operands = 0 : i64, tpu.core_type = #tpu.core_type<tc>, window_params = [{transform_indices = @transform_0, window_bounds = array<i64: 32, 144>}, {transform_indices = @transform_1, window_bounds = array<i64: 144, 128>}, {transform_indices = @transform_2, window_bounds = array<i64: 1, 128>}, {transform_indices = @transform_3, window_bounds = array<i64: 32, 128>}]} {
    %c0 = arith.constant 0 : index
    %c0_0 = arith.constant 0 : index
    %0 = vector.load %arg2[%c0, %c0_0] : memref<32x144xbf16, #tpu.memory_space<vmem>>, vector<32x144xbf16>
    %c0_1 = arith.constant 0 : index
    %c0_2 = arith.constant 0 : index
    %1 = vector.load %arg3[%c0_1, %c0_2] : memref<144x128xbf16, #tpu.memory_space<vmem>>, vector<144x128xbf16>
    %cst = arith.constant dense<0.000000e+00> : vector<32x128xf32>
    %2 = tpu.matmul %0, %1, %cst {dimension_numbers = #tpu.dot_dimension_numbers<[1], [0], [0], [1], [0, 0, 1, 1], [], []>} : vector<32x144xbf16>, vector<144x128xbf16>, vector<32x128xf32> -> vector<32x128xf32>
    %c0_3 = arith.constant 0 : index
    %c0_4 = arith.constant 0 : index
    %3 = vector.load %arg4[%c0_3, %c0_4] : memref<1x128xf32, #tpu.memory_space<vmem>>, vector<1x128xf32>
    %4 = vector.broadcast %3 : vector<1x128xf32> to vector<32x128xf32>
    %5 = arith.addf %2, %4 : vector<32x128xf32>
    %c0_5 = arith.constant 0 : index
    %c0_6 = arith.constant 0 : index
    %6 = vector.load %arg5[%c0_5, %c0_6] : memref<32x128xf32, #tpu.memory_space<vmem>>, vector<32x128xf32>
    tpu.vector_store %arg5[%c0_5, %c0_6], %5 {strides = array<i32>} : memref<32x128xf32, #tpu.memory_space<vmem>>, vector<32x128xf32>,
    return
  }
  func.func @transform_0(%arg0: i32, %arg1: i32) -> (i32, i32) {
    %c0_i32 = arith.constant 0 : i32
    %c0_i32_0 = arith.constant 0 : i32
    return %arg0, %c0_i32 : i32, i32
  }
  func.func @transform_1(%arg0: i32, %arg1: i32) -> (i32, i32) {
    %c0_i32 = arith.constant 0 : i32
    %c0_i32_0 = arith.constant 0 : i32
    return %c0_i32, %arg1 : i32, i32
  }
  func.func @transform_2(%arg0: i32, %arg1: i32) -> (i32, i32) {
    %c0_i32 = arith.constant 0 : i32
    %c0_i32_0 = arith.constant 0 : i32
    return %c0_i32, %arg1 : i32, i32
  }
  func.func @transform_3(%arg0: i32, %arg1: i32) -> (i32, i32) {
    %c0_i32 = arith.constant 0 : i32
    return %arg0, %arg1 : i32, i32
  }
}

module attributes {stable_mosaic.version = 11 : i64} {
  func.func @_mm_bias_kernel(%arg0: i32, %arg1: i32, %arg2: memref<256x288xbf16, #tpu.memory_space<vmem>>, %arg3: memref<288x128xbf16, #tpu.memory_space<vmem>>, %arg4: memref<1x128xf32, #tpu.memory_space<vmem>>, %arg5: memref<256x128xf32, #tpu.memory_space<vmem>>) attributes {dimension_semantics = [#tpu.dimension_semantics<parallel>, #tpu.dimension_semantics<parallel>], iteration_bounds = array<i64: 2, 1>, scalar_prefetch = 0 : i64, scratch_operands = 0 : i64, tpu.core_type = #tpu.core_type<tc>, window_params = [{transform_indices = @transform_0, window_bounds = array<i64: 256, 288>}, {transform_indices = @transform_1, window_bounds = array<i64: 288, 128>}, {transform_indices = @transform_2, window_bounds = array<i64: 1, 128>}, {transform_indices = @transform_3, window_bounds = array<i64: 256, 128>}]} {
    %c0 = arith.constant 0 : index
    %c0_0 = arith.constant 0 : index
    %0 = vector.load %arg2[%c0, %c0_0] : memref<256x288xbf16, #tpu.memory_space<vmem>>, vector<256x288xbf16>
    %c0_1 = arith.constant 0 : index
    %c0_2 = arith.constant 0 : index
    %1 = vector.load %arg3[%c0_1, %c0_2] : memref<288x128xbf16, #tpu.memory_space<vmem>>, vector<288x128xbf16>
    %cst = arith.constant dense<0.000000e+00> : vector<256x128xf32>
    %2 = tpu.matmul %0, %1, %cst {dimension_numbers = #tpu.dot_dimension_numbers<[1], [0], [0], [1], [0, 0, 1, 1], [], []>} : vector<256x288xbf16>, vector<288x128xbf16>, vector<256x128xf32> -> vector<256x128xf32>
    %c0_3 = arith.constant 0 : index
    %c0_4 = arith.constant 0 : index
    %3 = vector.load %arg4[%c0_3, %c0_4] : memref<1x128xf32, #tpu.memory_space<vmem>>, vector<1x128xf32>
    %4 = vector.broadcast %3 : vector<1x128xf32> to vector<256x128xf32>
    %5 = arith.addf %2, %4 : vector<256x128xf32>
    %c0_5 = arith.constant 0 : index
    %c0_6 = arith.constant 0 : index
    %6 = vector.load %arg5[%c0_5, %c0_6] : memref<256x128xf32, #tpu.memory_space<vmem>>, vector<256x128xf32>
    tpu.vector_store %arg5[%c0_5, %c0_6], %5 {strides = array<i32>} : memref<256x128xf32, #tpu.memory_space<vmem>>, vector<256x128xf32>,
    return
  }
  func.func @transform_0(%arg0: i32, %arg1: i32) -> (i32, i32) {
    %c0_i32 = arith.constant 0 : i32
    %c0_i32_0 = arith.constant 0 : i32
    return %arg0, %c0_i32 : i32, i32
  }
  func.func @transform_1(%arg0: i32, %arg1: i32) -> (i32, i32) {
    %c0_i32 = arith.constant 0 : i32
    %c0_i32_0 = arith.constant 0 : i32
    return %c0_i32, %arg1 : i32, i32
  }
  func.func @transform_2(%arg0: i32, %arg1: i32) -> (i32, i32) {
    %c0_i32 = arith.constant 0 : i32
    %c0_i32_0 = arith.constant 0 : i32
    return %c0_i32, %arg1 : i32, i32
  }
  func.func @transform_3(%arg0: i32, %arg1: i32) -> (i32, i32) {
    %c0_i32 = arith.constant 0 : i32
    return %arg0, %arg1 : i32, i32
  }
}

module attributes {stable_mosaic.version = 11 : i64} {
  func.func @_mm_bias_kernel(%arg0: i32, %arg1: i32, %arg2: memref<128x432xbf16, #tpu.memory_space<vmem>>, %arg3: memref<432x128xbf16, #tpu.memory_space<vmem>>, %arg4: memref<1x128xf32, #tpu.memory_space<vmem>>, %arg5: memref<128x128xf32, #tpu.memory_space<vmem>>) attributes {dimension_semantics = [#tpu.dimension_semantics<parallel>, #tpu.dimension_semantics<parallel>], iteration_bounds = array<i64: 1, 1>, scalar_prefetch = 0 : i64, scratch_operands = 0 : i64, tpu.core_type = #tpu.core_type<tc>, window_params = [{transform_indices = @transform_0, window_bounds = array<i64: 128, 432>}, {transform_indices = @transform_1, window_bounds = array<i64: 432, 128>}, {transform_indices = @transform_2, window_bounds = array<i64: 1, 128>}, {transform_indices = @transform_3, window_bounds = array<i64: 128, 128>}]} {
    %c0 = arith.constant 0 : index
    %c0_0 = arith.constant 0 : index
    %0 = vector.load %arg2[%c0, %c0_0] : memref<128x432xbf16, #tpu.memory_space<vmem>>, vector<128x432xbf16>
    %c0_1 = arith.constant 0 : index
    %c0_2 = arith.constant 0 : index
    %1 = vector.load %arg3[%c0_1, %c0_2] : memref<432x128xbf16, #tpu.memory_space<vmem>>, vector<432x128xbf16>
    %cst = arith.constant dense<0.000000e+00> : vector<128x128xf32>
    %2 = tpu.matmul %0, %1, %cst {dimension_numbers = #tpu.dot_dimension_numbers<[1], [0], [0], [1], [0, 0, 1, 1], [], []>} : vector<128x432xbf16>, vector<432x128xbf16>, vector<128x128xf32> -> vector<128x128xf32>
    %c0_3 = arith.constant 0 : index
    %c0_4 = arith.constant 0 : index
    %3 = vector.load %arg4[%c0_3, %c0_4] : memref<1x128xf32, #tpu.memory_space<vmem>>, vector<1x128xf32>
    %4 = vector.broadcast %3 : vector<1x128xf32> to vector<128x128xf32>
    %5 = arith.addf %2, %4 : vector<128x128xf32>
    %c0_5 = arith.constant 0 : index
    %c0_6 = arith.constant 0 : index
    %6 = vector.load %arg5[%c0_5, %c0_6] : memref<128x128xf32, #tpu.memory_space<vmem>>, vector<128x128xf32>
    tpu.vector_store %arg5[%c0_5, %c0_6], %5 {strides = array<i32>} : memref<128x128xf32, #tpu.memory_space<vmem>>, vector<128x128xf32>,
    return
  }
  func.func @transform_0(%arg0: i32, %arg1: i32) -> (i32, i32) {
    %c0_i32 = arith.constant 0 : i32
    %c0_i32_0 = arith.constant 0 : i32
    return %arg0, %c0_i32 : i32, i32
  }
  func.func @transform_1(%arg0: i32, %arg1: i32) -> (i32, i32) {
    %c0_i32 = arith.constant 0 : i32
    %c0_i32_0 = arith.constant 0 : i32
    return %c0_i32, %arg1 : i32, i32
  }
  func.func @transform_2(%arg0: i32, %arg1: i32) -> (i32, i32) {
    %c0_i32 = arith.constant 0 : i32
    %c0_i32_0 = arith.constant 0 : i32
    return %c0_i32, %arg1 : i32, i32
  }
  func.func @transform_3(%arg0: i32, %arg1: i32) -> (i32, i32) {
    %c0_i32 = arith.constant 0 : i32
    return %arg0, %arg1 : i32, i32
  }
}

module attributes {stable_mosaic.version = 11 : i64} {
  func.func @_mm_bias_kernel(%arg0: i32, %arg1: i32, %arg2: memref<32x720xbf16, #tpu.memory_space<vmem>>, %arg3: memref<720x128xbf16, #tpu.memory_space<vmem>>, %arg4: memref<1x128xf32, #tpu.memory_space<vmem>>, %arg5: memref<32x128xf32, #tpu.memory_space<vmem>>) attributes {dimension_semantics = [#tpu.dimension_semantics<parallel>, #tpu.dimension_semantics<parallel>], iteration_bounds = array<i64: 1, 1>, scalar_prefetch = 0 : i64, scratch_operands = 0 : i64, tpu.core_type = #tpu.core_type<tc>, window_params = [{transform_indices = @transform_0, window_bounds = array<i64: 32, 720>}, {transform_indices = @transform_1, window_bounds = array<i64: 720, 128>}, {transform_indices = @transform_2, window_bounds = array<i64: 1, 128>}, {transform_indices = @transform_3, window_bounds = array<i64: 32, 128>}]} {
    %c0 = arith.constant 0 : index
    %c0_0 = arith.constant 0 : index
    %0 = vector.load %arg2[%c0, %c0_0] : memref<32x720xbf16, #tpu.memory_space<vmem>>, vector<32x720xbf16>
    %c0_1 = arith.constant 0 : index
    %c0_2 = arith.constant 0 : index
    %1 = vector.load %arg3[%c0_1, %c0_2] : memref<720x128xbf16, #tpu.memory_space<vmem>>, vector<720x128xbf16>
    %cst = arith.constant dense<0.000000e+00> : vector<32x128xf32>
    %2 = tpu.matmul %0, %1, %cst {dimension_numbers = #tpu.dot_dimension_numbers<[1], [0], [0], [1], [0, 0, 1, 1], [], []>} : vector<32x720xbf16>, vector<720x128xbf16>, vector<32x128xf32> -> vector<32x128xf32>
    %c0_3 = arith.constant 0 : index
    %c0_4 = arith.constant 0 : index
    %3 = vector.load %arg4[%c0_3, %c0_4] : memref<1x128xf32, #tpu.memory_space<vmem>>, vector<1x128xf32>
    %4 = vector.broadcast %3 : vector<1x128xf32> to vector<32x128xf32>
    %5 = arith.addf %2, %4 : vector<32x128xf32>
    %c0_5 = arith.constant 0 : index
    %c0_6 = arith.constant 0 : index
    %6 = vector.load %arg5[%c0_5, %c0_6] : memref<32x128xf32, #tpu.memory_space<vmem>>, vector<32x128xf32>
    tpu.vector_store %arg5[%c0_5, %c0_6], %5 {strides = array<i32>} : memref<32x128xf32, #tpu.memory_space<vmem>>, vector<32x128xf32>,
    return
  }
  func.func @transform_0(%arg0: i32, %arg1: i32) -> (i32, i32) {
    %c0_i32 = arith.constant 0 : i32
    %c0_i32_0 = arith.constant 0 : i32
    return %arg0, %c0_i32 : i32, i32
  }
  func.func @transform_1(%arg0: i32, %arg1: i32) -> (i32, i32) {
    %c0_i32 = arith.constant 0 : i32
    %c0_i32_0 = arith.constant 0 : i32
    return %c0_i32, %arg1 : i32, i32
  }
  func.func @transform_2(%arg0: i32, %arg1: i32) -> (i32, i32) {
    %c0_i32 = arith.constant 0 : i32
    %c0_i32_0 = arith.constant 0 : i32
    return %c0_i32, %arg1 : i32, i32
  }
  func.func @transform_3(%arg0: i32, %arg1: i32) -> (i32, i32) {
    %c0_i32 = arith.constant 0 : i32
    return %arg0, %arg1 : i32, i32
  }
}

module attributes {stable_mosaic.version = 11 : i64} {
  func.func @_mm_bias_kernel(%arg0: i32, %arg1: i32, %arg2: memref<32x1296xbf16, #tpu.memory_space<vmem>>, %arg3: memref<1296x128xbf16, #tpu.memory_space<vmem>>, %arg4: memref<1x128xf32, #tpu.memory_space<vmem>>, %arg5: memref<32x128xf32, #tpu.memory_space<vmem>>) attributes {dimension_semantics = [#tpu.dimension_semantics<parallel>, #tpu.dimension_semantics<parallel>], iteration_bounds = array<i64: 1, 1>, scalar_prefetch = 0 : i64, scratch_operands = 0 : i64, tpu.core_type = #tpu.core_type<tc>, window_params = [{transform_indices = @transform_0, window_bounds = array<i64: 32, 1296>}, {transform_indices = @transform_1, window_bounds = array<i64: 1296, 128>}, {transform_indices = @transform_2, window_bounds = array<i64: 1, 128>}, {transform_indices = @transform_3, window_bounds = array<i64: 32, 128>}]} {
    %c0 = arith.constant 0 : index
    %c0_0 = arith.constant 0 : index
    %0 = vector.load %arg2[%c0, %c0_0] : memref<32x1296xbf16, #tpu.memory_space<vmem>>, vector<32x1296xbf16>
    %c0_1 = arith.constant 0 : index
    %c0_2 = arith.constant 0 : index
    %1 = vector.load %arg3[%c0_1, %c0_2] : memref<1296x128xbf16, #tpu.memory_space<vmem>>, vector<1296x128xbf16>
    %cst = arith.constant dense<0.000000e+00> : vector<32x128xf32>
    %2 = tpu.matmul %0, %1, %cst {dimension_numbers = #tpu.dot_dimension_numbers<[1], [0], [0], [1], [0, 0, 1, 1], [], []>} : vector<32x1296xbf16>, vector<1296x128xbf16>, vector<32x128xf32> -> vector<32x128xf32>
    %c0_3 = arith.constant 0 : index
    %c0_4 = arith.constant 0 : index
    %3 = vector.load %arg4[%c0_3, %c0_4] : memref<1x128xf32, #tpu.memory_space<vmem>>, vector<1x128xf32>
    %4 = vector.broadcast %3 : vector<1x128xf32> to vector<32x128xf32>
    %5 = arith.addf %2, %4 : vector<32x128xf32>
    %c0_5 = arith.constant 0 : index
    %c0_6 = arith.constant 0 : index
    %6 = vector.load %arg5[%c0_5, %c0_6] : memref<32x128xf32, #tpu.memory_space<vmem>>, vector<32x128xf32>
    tpu.vector_store %arg5[%c0_5, %c0_6], %5 {strides = array<i32>} : memref<32x128xf32, #tpu.memory_space<vmem>>, vector<32x128xf32>,
    return
  }
  func.func @transform_0(%arg0: i32, %arg1: i32) -> (i32, i32) {
    %c0_i32 = arith.constant 0 : i32
    %c0_i32_0 = arith.constant 0 : i32
    return %arg0, %c0_i32 : i32, i32
  }
  func.func @transform_1(%arg0: i32, %arg1: i32) -> (i32, i32) {
    %c0_i32 = arith.constant 0 : i32
    %c0_i32_0 = arith.constant 0 : i32
    return %c0_i32, %arg1 : i32, i32
  }
  func.func @transform_2(%arg0: i32, %arg1: i32) -> (i32, i32) {
    %c0_i32 = arith.constant 0 : i32
    %c0_i32_0 = arith.constant 0 : i32
    return %c0_i32, %arg1 : i32, i32
  }
  func.func @transform_3(%arg0: i32, %arg1: i32) -> (i32, i32) {
    %c0_i32 = arith.constant 0 : i32
    return %arg0, %arg1 : i32, i32
  }
}

module attributes {stable_mosaic.version = 11 : i64} {
  func.func @_mm_bias_kernel(%arg0: i32, %arg1: i32, %arg2: memref<32x512xbf16, #tpu.memory_space<vmem>>, %arg3: memref<512x256xbf16, #tpu.memory_space<vmem>>, %arg4: memref<1x256xf32, #tpu.memory_space<vmem>>, %arg5: memref<32x256xf32, #tpu.memory_space<vmem>>) attributes {dimension_semantics = [#tpu.dimension_semantics<parallel>, #tpu.dimension_semantics<parallel>], iteration_bounds = array<i64: 1, 1>, scalar_prefetch = 0 : i64, scratch_operands = 0 : i64, tpu.core_type = #tpu.core_type<tc>, window_params = [{transform_indices = @transform_0, window_bounds = array<i64: 32, 512>}, {transform_indices = @transform_1, window_bounds = array<i64: 512, 256>}, {transform_indices = @transform_2, window_bounds = array<i64: 1, 256>}, {transform_indices = @transform_3, window_bounds = array<i64: 32, 256>}]} {
    %c0 = arith.constant 0 : index
    %c0_0 = arith.constant 0 : index
    %0 = vector.load %arg2[%c0, %c0_0] : memref<32x512xbf16, #tpu.memory_space<vmem>>, vector<32x512xbf16>
    %c0_1 = arith.constant 0 : index
    %c0_2 = arith.constant 0 : index
    %1 = vector.load %arg3[%c0_1, %c0_2] : memref<512x256xbf16, #tpu.memory_space<vmem>>, vector<512x256xbf16>
    %cst = arith.constant dense<0.000000e+00> : vector<32x256xf32>
    %2 = tpu.matmul %0, %1, %cst {dimension_numbers = #tpu.dot_dimension_numbers<[1], [0], [0], [1], [0, 0, 1, 1], [], []>} : vector<32x512xbf16>, vector<512x256xbf16>, vector<32x256xf32> -> vector<32x256xf32>
    %c0_3 = arith.constant 0 : index
    %c0_4 = arith.constant 0 : index
    %3 = vector.load %arg4[%c0_3, %c0_4] : memref<1x256xf32, #tpu.memory_space<vmem>>, vector<1x256xf32>
    %4 = vector.broadcast %3 : vector<1x256xf32> to vector<32x256xf32>
    %5 = arith.addf %2, %4 : vector<32x256xf32>
    %c0_5 = arith.constant 0 : index
    %c0_6 = arith.constant 0 : index
    %6 = vector.load %arg5[%c0_5, %c0_6] : memref<32x256xf32, #tpu.memory_space<vmem>>, vector<32x256xf32>
    tpu.vector_store %arg5[%c0_5, %c0_6], %5 {strides = array<i32>} : memref<32x256xf32, #tpu.memory_space<vmem>>, vector<32x256xf32>,
    return
  }
  func.func @transform_0(%arg0: i32, %arg1: i32) -> (i32, i32) {
    %c0_i32 = arith.constant 0 : i32
    %c0_i32_0 = arith.constant 0 : i32
    return %arg0, %c0_i32 : i32, i32
  }
  func.func @transform_1(%arg0: i32, %arg1: i32) -> (i32, i32) {
    %c0_i32 = arith.constant 0 : i32
    %c0_i32_0 = arith.constant 0 : i32
    return %c0_i32, %arg1 : i32, i32
  }
  func.func @transform_2(%arg0: i32, %arg1: i32) -> (i32, i32) {
    %c0_i32 = arith.constant 0 : i32
    %c0_i32_0 = arith.constant 0 : i32
    return %c0_i32, %arg1 : i32, i32
  }
  func.func @transform_3(%arg0: i32, %arg1: i32) -> (i32, i32) {
    %c0_i32 = arith.constant 0 : i32
    return %arg0, %arg1 : i32, i32
  }
}

module attributes {stable_mosaic.version = 11 : i64} {
  func.func @_mm_bias_kernel(%arg0: i32, %arg1: i32, %arg2: memref<128x256xbf16, #tpu.memory_space<vmem>>, %arg3: memref<256x128xbf16, #tpu.memory_space<vmem>>, %arg4: memref<1x128xf32, #tpu.memory_space<vmem>>, %arg5: memref<128x128xf32, #tpu.memory_space<vmem>>) attributes {dimension_semantics = [#tpu.dimension_semantics<parallel>, #tpu.dimension_semantics<parallel>], iteration_bounds = array<i64: 1, 1>, scalar_prefetch = 0 : i64, scratch_operands = 0 : i64, tpu.core_type = #tpu.core_type<tc>, window_params = [{transform_indices = @transform_0, window_bounds = array<i64: 128, 256>}, {transform_indices = @transform_1, window_bounds = array<i64: 256, 128>}, {transform_indices = @transform_2, window_bounds = array<i64: 1, 128>}, {transform_indices = @transform_3, window_bounds = array<i64: 128, 128>}]} {
    %c0 = arith.constant 0 : index
    %c0_0 = arith.constant 0 : index
    %0 = vector.load %arg2[%c0, %c0_0] : memref<128x256xbf16, #tpu.memory_space<vmem>>, vector<128x256xbf16>
    %c0_1 = arith.constant 0 : index
    %c0_2 = arith.constant 0 : index
    %1 = vector.load %arg3[%c0_1, %c0_2] : memref<256x128xbf16, #tpu.memory_space<vmem>>, vector<256x128xbf16>
    %cst = arith.constant dense<0.000000e+00> : vector<128x128xf32>
    %2 = tpu.matmul %0, %1, %cst {dimension_numbers = #tpu.dot_dimension_numbers<[1], [0], [0], [1], [0, 0, 1, 1], [], []>} : vector<128x256xbf16>, vector<256x128xbf16>, vector<128x128xf32> -> vector<128x128xf32>
    %c0_3 = arith.constant 0 : index
    %c0_4 = arith.constant 0 : index
    %3 = vector.load %arg4[%c0_3, %c0_4] : memref<1x128xf32, #tpu.memory_space<vmem>>, vector<1x128xf32>
    %4 = vector.broadcast %3 : vector<1x128xf32> to vector<128x128xf32>
    %5 = arith.addf %2, %4 : vector<128x128xf32>
    %c0_5 = arith.constant 0 : index
    %c0_6 = arith.constant 0 : index
    %6 = vector.load %arg5[%c0_5, %c0_6] : memref<128x128xf32, #tpu.memory_space<vmem>>, vector<128x128xf32>
    tpu.vector_store %arg5[%c0_5, %c0_6], %5 {strides = array<i32>} : memref<128x128xf32, #tpu.memory_space<vmem>>, vector<128x128xf32>,
    return
  }
  func.func @transform_0(%arg0: i32, %arg1: i32) -> (i32, i32) {
    %c0_i32 = arith.constant 0 : i32
    %c0_i32_0 = arith.constant 0 : i32
    return %arg0, %c0_i32 : i32, i32
  }
  func.func @transform_1(%arg0: i32, %arg1: i32) -> (i32, i32) {
    %c0_i32 = arith.constant 0 : i32
    %c0_i32_0 = arith.constant 0 : i32
    return %c0_i32, %arg1 : i32, i32
  }
  func.func @transform_2(%arg0: i32, %arg1: i32) -> (i32, i32) {
    %c0_i32 = arith.constant 0 : i32
    %c0_i32_0 = arith.constant 0 : i32
    return %c0_i32, %arg1 : i32, i32
  }
  func.func @transform_3(%arg0: i32, %arg1: i32) -> (i32, i32) {
    %c0_i32 = arith.constant 0 : i32
    return %arg0, %arg1 : i32, i32
  }
}

module attributes {stable_mosaic.version = 11 : i64} {
  func.func @_mm_bias_kernel(%arg0: i32, %arg1: i32, %arg2: memref<256x128xbf16, #tpu.memory_space<vmem>>, %arg3: memref<128x128xbf16, #tpu.memory_space<vmem>>, %arg4: memref<1x128xf32, #tpu.memory_space<vmem>>, %arg5: memref<256x128xf32, #tpu.memory_space<vmem>>) attributes {dimension_semantics = [#tpu.dimension_semantics<parallel>, #tpu.dimension_semantics<parallel>], iteration_bounds = array<i64: 2, 1>, scalar_prefetch = 0 : i64, scratch_operands = 0 : i64, tpu.core_type = #tpu.core_type<tc>, window_params = [{transform_indices = @transform_0, window_bounds = array<i64: 256, 128>}, {transform_indices = @transform_1, window_bounds = array<i64: 128, 128>}, {transform_indices = @transform_2, window_bounds = array<i64: 1, 128>}, {transform_indices = @transform_3, window_bounds = array<i64: 256, 128>}]} {
    %c0 = arith.constant 0 : index
    %c0_0 = arith.constant 0 : index
    %0 = vector.load %arg2[%c0, %c0_0] : memref<256x128xbf16, #tpu.memory_space<vmem>>, vector<256x128xbf16>
    %c0_1 = arith.constant 0 : index
    %c0_2 = arith.constant 0 : index
    %1 = vector.load %arg3[%c0_1, %c0_2] : memref<128x128xbf16, #tpu.memory_space<vmem>>, vector<128x128xbf16>
    %cst = arith.constant dense<0.000000e+00> : vector<256x128xf32>
    %2 = tpu.matmul %0, %1, %cst {dimension_numbers = #tpu.dot_dimension_numbers<[1], [0], [0], [1], [0, 0, 1, 1], [], []>} : vector<256x128xbf16>, vector<128x128xbf16>, vector<256x128xf32> -> vector<256x128xf32>
    %c0_3 = arith.constant 0 : index
    %c0_4 = arith.constant 0 : index
    %3 = vector.load %arg4[%c0_3, %c0_4] : memref<1x128xf32, #tpu.memory_space<vmem>>, vector<1x128xf32>
    %4 = vector.broadcast %3 : vector<1x128xf32> to vector<256x128xf32>
    %5 = arith.addf %2, %4 : vector<256x128xf32>
    %c0_5 = arith.constant 0 : index
    %c0_6 = arith.constant 0 : index
    %6 = vector.load %arg5[%c0_5, %c0_6] : memref<256x128xf32, #tpu.memory_space<vmem>>, vector<256x128xf32>
    tpu.vector_store %arg5[%c0_5, %c0_6], %5 {strides = array<i32>} : memref<256x128xf32, #tpu.memory_space<vmem>>, vector<256x128xf32>,
    return
  }
  func.func @transform_0(%arg0: i32, %arg1: i32) -> (i32, i32) {
    %c0_i32 = arith.constant 0 : i32
    %c0_i32_0 = arith.constant 0 : i32
    return %arg0, %c0_i32 : i32, i32
  }
  func.func @transform_1(%arg0: i32, %arg1: i32) -> (i32, i32) {
    %c0_i32 = arith.constant 0 : i32
    %c0_i32_0 = arith.constant 0 : i32
    return %c0_i32, %arg1 : i32, i32
  }
  func.func @transform_2(%arg0: i32, %arg1: i32) -> (i32, i32) {
    %c0_i32 = arith.constant 0 : i32
    %c0_i32_0 = arith.constant 0 : i32
    return %c0_i32, %arg1 : i32, i32
  }
  func.func @transform_3(%arg0: i32, %arg1: i32) -> (i32, i32) {
    %c0_i32 = arith.constant 0 : i32
    return %arg0, %arg1 : i32, i32
  }
}

module attributes {stable_mosaic.version = 11 : i64} {
  func.func @_mm_bias_kernel(%arg0: i32, %arg1: i32, %arg2: memref<256x784xbf16, #tpu.memory_space<vmem>>, %arg3: memref<784x128xbf16, #tpu.memory_space<vmem>>, %arg4: memref<1x128xf32, #tpu.memory_space<vmem>>, %arg5: memref<256x128xf32, #tpu.memory_space<vmem>>) attributes {dimension_semantics = [#tpu.dimension_semantics<parallel>, #tpu.dimension_semantics<parallel>], iteration_bounds = array<i64: 8, 1>, scalar_prefetch = 0 : i64, scratch_operands = 0 : i64, tpu.core_type = #tpu.core_type<tc>, window_params = [{transform_indices = @transform_0, window_bounds = array<i64: 256, 784>}, {transform_indices = @transform_1, window_bounds = array<i64: 784, 128>}, {transform_indices = @transform_2, window_bounds = array<i64: 1, 128>}, {transform_indices = @transform_3, window_bounds = array<i64: 256, 128>}]} {
    %c0 = arith.constant 0 : index
    %c0_0 = arith.constant 0 : index
    %0 = vector.load %arg2[%c0, %c0_0] : memref<256x784xbf16, #tpu.memory_space<vmem>>, vector<256x784xbf16>
    %c0_1 = arith.constant 0 : index
    %c0_2 = arith.constant 0 : index
    %1 = vector.load %arg3[%c0_1, %c0_2] : memref<784x128xbf16, #tpu.memory_space<vmem>>, vector<784x128xbf16>
    %cst = arith.constant dense<0.000000e+00> : vector<256x128xf32>
    %2 = tpu.matmul %0, %1, %cst {dimension_numbers = #tpu.dot_dimension_numbers<[1], [0], [0], [1], [0, 0, 1, 1], [], []>} : vector<256x784xbf16>, vector<784x128xbf16>, vector<256x128xf32> -> vector<256x128xf32>
    %c0_3 = arith.constant 0 : index
    %c0_4 = arith.constant 0 : index
    %3 = vector.load %arg4[%c0_3, %c0_4] : memref<1x128xf32, #tpu.memory_space<vmem>>, vector<1x128xf32>
    %4 = vector.broadcast %3 : vector<1x128xf32> to vector<256x128xf32>
    %5 = arith.addf %2, %4 : vector<256x128xf32>
    %c0_5 = arith.constant 0 : index
    %c0_6 = arith.constant 0 : index
    %6 = vector.load %arg5[%c0_5, %c0_6] : memref<256x128xf32, #tpu.memory_space<vmem>>, vector<256x128xf32>
    tpu.vector_store %arg5[%c0_5, %c0_6], %5 {strides = array<i32>} : memref<256x128xf32, #tpu.memory_space<vmem>>, vector<256x128xf32>,
    return
  }
  func.func @transform_0(%arg0: i32, %arg1: i32) -> (i32, i32) {
    %c0_i32 = arith.constant 0 : i32
    %c0_i32_0 = arith.constant 0 : i32
    return %arg0, %c0_i32 : i32, i32
  }
  func.func @transform_1(%arg0: i32, %arg1: i32) -> (i32, i32) {
    %c0_i32 = arith.constant 0 : i32
    %c0_i32_0 = arith.constant 0 : i32
    return %c0_i32, %arg1 : i32, i32
  }
  func.func @transform_2(%arg0: i32, %arg1: i32) -> (i32, i32) {
    %c0_i32 = arith.constant 0 : i32
    %c0_i32_0 = arith.constant 0 : i32
    return %c0_i32, %arg1 : i32, i32
  }
  func.func @transform_3(%arg0: i32, %arg1: i32) -> (i32, i32) {
    %c0_i32 = arith.constant 0 : i32
    return %arg0, %arg1 : i32, i32
  }
}

</mosaic_0001>

<bundles_post_ra>
// kernel: generate_a_forward.20
= control target key start
LH: loop header
LB: loop body
LE: loop exit
PB: predicated region body
PF: predicated region fallthrough
CT: control target
= control target key end

     0   :  { %s927_s12 = smov 0   ;;  %s929_s13 = smov 0   ;;  %s1081_s0 = inlined_call_operand.vmem [shape: bf16[2048,64], index: 0, kind: input, shape index: {}]   ;;  %s1082_s1 = inlined_call_operand.vmem [shape: bf16[64,128], index: 1, kind: input, shape index: {}]   ;;  %s1083_s2 = inlined_call_operand.vmem [shape: f32[1,128], index: 2, kind: input, shape index: {}]   ;;  %s1084_s3 = inlined_call_operand.vmem [shape: f32[2048,128], index: 3, kind: output, shape index: {}]  }
   0x1   :  { %s931_s14 = smov 0  }
   0x2 LB: > { %s25_s15 = sadd.s32 1, %s901_s13  ;;  %p727_p0 = scmp.ge.s32.totalorder %s905_s14, 1  ;;  %s905_s14 = sphi %s931_s14, %s13_s14   ;;  %s901_s13 = sphi %s929_s13, %s1086_s13   ;;  %s897_s12 = sphi %s927_s12, %s1085_s12  }
   0x3   : > { %p27_p1 = scmp.ge.s32.totalorder %s25_s15, 8  ;;  %p169_p2 = scmp.lt.s32.totalorder %s905_s14, 9 }
   0x5   : > { %s1088_s15 = smov (%p27_p1, %s25_s15), 0  ;;  %p170_p3 = pnand %p727_p0, %p169_p2 }
   0x6   : > { %s728_s18 = sshll.u32 (!%p170_p3), %s897_s12, 5 }
   0x7   : > { %173 = sbr.rel (%p170_p3) target bundleno = 255 (0xff), region = 32  ;;  %p204_p4 = scmp.lt.s32.totalorder (!%p170_p3), %s728_s18, 255 }
   0xc   : > { %v863_v0 = vld [vmem:[%s1082_s1 + $0x18] sm:$0xff]   ;;  %v864_v1 = vld [vmem:[%s1082_s1 + $0x10] sm:$0xff]   ;;  %s1090_s18 = smov (!%p204_p4, %s728_s18), 255  ;;  %v865_v2 = vld [vmem:[%s1082_s1 + $0x8] sm:$0xff]   ;;  %vm377_vm0 = vcmask 523264  }
   0xd   : > { %791 = vmatprep.subr.bf16.mxu0 %v863_v0  ;;  %831 = vmatprep.subr.bf16.mxu1 %v863_v0  ;;  %s729_s23 = sshll.u32 %s1090_s18, 2  ;;  %v866_v3 = vld [vmem:[%s1082_s1] sm:$0xff]   ;;  %s731_s29 = sshll.u32 %s1090_s18, 3 }
   0xe   : > { %792 = vmatpush3.bf16.msra.mxu0 %v863_v0  ;;  %835 = vmatpush3.bf16.msra.mxu1 %v863_v0  ;;  %s963_s28 = scalar_lea.vmem %s1081_s0, %s729_s23  ;;  %v1001_v20 = vld [vmem:[%s1083_s2] ss:$0 sm:$0xff]  ;;  %s1006_s7 = scalar_lea.vmem %s1084_s3, %s731_s29 }
   0xf   : > { %793 = vmatprep.subr.bf16.mxu0 %v864_v1  ;;  %832 = vmatprep.subr.bf16.mxu1 %v864_v1  ;;  %v867_v4 = vld [vmem:[%s963_s28] sm:$0xff]   ;;  %v869_v6 = vld [vmem:[%s963_s28 + $0x8] sm:$0xff]   ;;  %v871_v8 = vld [vmem:[%s963_s28 + $0x10] sm:$0xff]  }
  0x10   : > { %v868_v5 = vld [vmem:[%s963_s28 + $0x40] sm:$0xff]   ;;  %799 = vmatprep.mubr.msk.bf16.mxu0 %vm377_vm0, %v867_v4  ;;  %v870_v7 = vld [vmem:[%s963_s28 + $0x48] sm:$0xff]   ;;  %v872_v9 = vld [vmem:[%s963_s28 + $0x50] sm:$0xff]  }
  0x11   : > { %815 = vmatprep.mubr.msk.bf16.mxu1 %vm377_vm0, %v868_v5  ;;  %v873_v10 = vld [vmem:[%s963_s28 + $0x18] sm:$0xff]   ;;  %v875_v12 = vld [vmem:[%s963_s28 + $0x20] sm:$0xff]   ;;  %v877_v14 = vld [vmem:[%s963_s28 + $0x28] sm:$0xff]  }
  0x12   : > { %794 = vmatpush3.bf16.msra.mxu0 %v864_v1  ;;  %836 = vmatpush3.bf16.msra.mxu1 %v864_v1  ;;  %v874_v11 = vld [vmem:[%s963_s28 + $0x58] sm:$0xff]   ;;  %v876_v13 = vld [vmem:[%s963_s28 + $0x60] sm:$0xff]   ;;  %v878_v15 = vld [vmem:[%s963_s28 + $0x68] sm:$0xff]  }
  0x13   : > { %795 = vmatprep.subr.bf16.mxu0 %v865_v2  ;;  %833 = vmatprep.subr.bf16.mxu1 %v865_v2  ;;  %v879_v16 = vld [vmem:[%s963_s28 + $0x30] sm:$0xff]   ;;  %v881_v18 = vld [vmem:[%s963_s28 + $0x38] sm:$0xff]  }
  0x14   : > { %v880_v17 = vld [vmem:[%s963_s28 + $0x70] sm:$0xff]   ;;  %v882_v19 = vld [vmem:[%s963_s28 + $0x78] sm:$0xff]  }
  0x16   : > { %796 = vmatpush3.bf16.msra.mxu0 %v865_v2  ;;  %837 = vmatpush3.bf16.msra.mxu1 %v865_v2 }
  0x17   : > { %797 = vmatprep.subr.bf16.mxu0 %v866_v3  ;;  %834 = vmatprep.subr.bf16.mxu1 %v866_v3 }
  0x1a   : > { %798 = vmatpush3.bf16.msra.mxu0 %v866_v3  ;;  %838 = vmatpush3.bf16.msra.mxu1 %v866_v3 }
  0x1d   : > { %800 = vmatmul.mubr.msk.bf16.vlgmr.msra.gmra.mxu0 %vm377_vm0, %v869_v6  ;;  %816 = vmatmul.mubr.msk.bf16.vlgmr.msra.gmra.mxu1 %vm377_vm0, %v870_v7 }
  0x1e   : > { %803 = vmatprep.mubr.msk.bf16.mxu0 %vm377_vm0, %v871_v8  ;;  %819 = vmatprep.mubr.msk.bf16.mxu1 %vm377_vm0, %v872_v9 }
  0x25   : > { %804 = vmatmul.mubr.msk.bf16.gmra.mxu0 %vm377_vm0, %v873_v10  ;;  %820 = vmatmul.mubr.msk.bf16.gmra.mxu1 %vm377_vm0, %v874_v11 }
  0x26   : > { %807 = vmatprep.mubr.msk.bf16.mxu0 %vm377_vm0, %v875_v12  ;;  %823 = vmatprep.mubr.msk.bf16.mxu1 %vm377_vm0, %v876_v13 }
  0x2d   : > { %808 = vmatmul.mubr.msk.bf16.gmra.mxu0 %vm377_vm0, %v877_v14  ;;  %824 = vmatmul.mubr.msk.bf16.gmra.mxu1 %vm377_vm0, %v878_v15 }
  0x2e   : > { %811 = vmatprep.mubr.msk.bf16.mxu0 %vm377_vm0, %v879_v16  ;;  %827 = vmatprep.mubr.msk.bf16.mxu1 %vm377_vm0, %v880_v17 }
  0x35   : > { %812 = vmatmul.mubr.msk.bf16.gmra.mxu0 %vm377_vm0, %v881_v18  ;;  %828 = vmatmul.mubr.msk.bf16.gmra.mxu1 %vm377_vm0, %v882_v19 }
  0xdd   : > { %v801_v21 = vpop.f32.mrf.mxu0  ;;  %v817_v22 = vpop.f32.mrf.mxu1 }
  0xde   : > { %v469_v23 = vadd.f32 %v801_v21, %v1001_v20  ;;  %v533_v24 = vadd.f32 %v817_v22, %v1001_v20 }
  0xdf   : > { %v460_v25 = vpop.f32.mrf.mxu0  ;;  %v524_v26 = vpop.f32.mrf.mxu1 }
  0xe0   : > { %589 = vst [vmem:[%s1006_s7 + $0x10] sm:$0xff] %v469_v23  ;;  %605 = vst [vmem:[%s1006_s7 + $0x90] sm:$0xff] %v533_v24  ;;  %v461_v27 = vadd.f32 %v1001_v20, %v460_v25  ;;  %v525_v28 = vadd.f32 %v1001_v20, %v524_v26 }
  0xe1   : > { %v802_v29 = vpop.f32.mrf.mxu0  ;;  %v818_v30 = vpop.f32.mrf.mxu1 }
  0xe2   : > { %587 = vst [vmem:[%s1006_s7] sm:$0xff] %v461_v27  ;;  %603 = vst [vmem:[%s1006_s7 + $0x80] sm:$0xff] %v525_v28  ;;  %v472_v31 = vadd.f32 %v802_v29, %v1001_v20  ;;  %v536_v32 = vadd.f32 %v818_v30, %v1001_v20 }
  0xe3   : > { %v463_v33 = vpop.f32.mrf.mxu0  ;;  %v527_v34 = vpop.f32.mrf.mxu1 }
  0xe4   : > { %590 = vst [vmem:[%s1006_s7 + $0x18] sm:$0xff] %v472_v31  ;;  %606 = vst [vmem:[%s1006_s7 + $0x98] sm:$0xff] %v536_v32  ;;  %v464_v35 = vadd.f32 %v1001_v20, %v463_v33  ;;  %v528_v36 = vadd.f32 %v1001_v20, %v527_v34 }
  0xe5   : > { %v805_v37 = vpop.f32.mrf.mxu0  ;;  %v821_v38 = vpop.f32.mrf.mxu1 }
  0xe6   : > { %588 = vst [vmem:[%s1006_s7 + $0x8] sm:$0xff] %v464_v35  ;;  %604 = vst [vmem:[%s1006_s7 + $0x88] sm:$0xff] %v528_v36  ;;  %v485_v39 = vadd.f32 %v805_v37, %v1001_v20  ;;  %v549_v40 = vadd.f32 %v821_v38, %v1001_v20 }
  0xe7   : > { %v476_v41 = vpop.f32.mrf.mxu0  ;;  %v540_v42 = vpop.f32.mrf.mxu1 }
  0xe8   : > { %593 = vst [vmem:[%s1006_s7 + $0x30] sm:$0xff] %v485_v39  ;;  %609 = vst [vmem:[%s1006_s7 + $0xb0] sm:$0xff] %v549_v40  ;;  %v477_v43 = vadd.f32 %v1001_v20, %v476_v41  ;;  %v541_v44 = vadd.f32 %v1001_v20, %v540_v42 }
  0xe9   : > { %v806_v45 = vpop.f32.mrf.mxu0  ;;  %v822_v46 = vpop.f32.mrf.mxu1 }
  0xea   : > { %591 = vst [vmem:[%s1006_s7 + $0x20] sm:$0xff] %v477_v43  ;;  %607 = vst [vmem:[%s1006_s7 + $0xa0] sm:$0xff] %v541_v44  ;;  %v488_v47 = vadd.f32 %v806_v45, %v1001_v20  ;;  %v552_v48 = vadd.f32 %v822_v46, %v1001_v20 }
  0xeb   : > { %v479_v49 = vpop.f32.mrf.mxu0  ;;  %v543_v50 = vpop.f32.mrf.mxu1 }
  0xec   : > { %594 = vst [vmem:[%s1006_s7 + $0x38] sm:$0xff] %v488_v47  ;;  %610 = vst [vmem:[%s1006_s7 + $0xb8] sm:$0xff] %v552_v48  ;;  %v480_v51 = vadd.f32 %v1001_v20, %v479_v49  ;;  %v544_v52 = vadd.f32 %v1001_v20, %v543_v50 }
  0xed   : > { %v809_v53 = vpop.f32.mrf.mxu0  ;;  %v825_v54 = vpop.f32.mrf.mxu1 }
  0xee   : > { %592 = vst [vmem:[%s1006_s7 + $0x28] sm:$0xff] %v480_v51  ;;  %608 = vst [vmem:[%s1006_s7 + $0xa8] sm:$0xff] %v544_v52  ;;  %v501_v55 = vadd.f32 %v809_v53, %v1001_v20  ;;  %v565_v56 = vadd.f32 %v825_v54, %v1001_v20 }
  0xef   : > { %v492_v57 = vpop.f32.mrf.mxu0  ;;  %v556_v58 = vpop.f32.mrf.mxu1 }
  0xf0   : > { %597 = vst [vmem:[%s1006_s7 + $0x50] sm:$0xff] %v501_v55  ;;  %613 = vst [vmem:[%s1006_s7 + $0xd0] sm:$0xff] %v565_v56  ;;  %v493_v59 = vadd.f32 %v1001_v20, %v492_v57  ;;  %v557_v60 = vadd.f32 %v1001_v20, %v556_v58 }
  0xf1   : > { %v810_v61 = vpop.f32.mrf.mxu0  ;;  %v826_v62 = vpop.f32.mrf.mxu1 }
  0xf2   : > { %595 = vst [vmem:[%s1006_s7 + $0x40] sm:$0xff] %v493_v59  ;;  %611 = vst [vmem:[%s1006_s7 + $0xc0] sm:$0xff] %v557_v60  ;;  %v504_v63 = vadd.f32 %v810_v61, %v1001_v20  ;;  %v568_v0 = vadd.f32 %v826_v62, %v1001_v20 }
  0xf3   : > { %v495_v1 = vpop.f32.mrf.mxu0  ;;  %v559_v2 = vpop.f32.mrf.mxu1 }
  0xf4   : > { %598 = vst [vmem:[%s1006_s7 + $0x58] sm:$0xff] %v504_v63  ;;  %614 = vst [vmem:[%s1006_s7 + $0xd8] sm:$0xff] %v568_v0  ;;  %v496_v3 = vadd.f32 %v1001_v20, %v495_v1  ;;  %v560_v4 = vadd.f32 %v1001_v20, %v559_v2 }
  0xf5   : > { %v813_v5 = vpop.f32.mrf.mxu0  ;;  %v829_v6 = vpop.f32.mrf.mxu1 }
  0xf6   : > { %596 = vst [vmem:[%s1006_s7 + $0x48] sm:$0xff] %v496_v3  ;;  %612 = vst [vmem:[%s1006_s7 + $0xc8] sm:$0xff] %v560_v4  ;;  %v517_v7 = vadd.f32 %v813_v5, %v1001_v20  ;;  %v581_v8 = vadd.f32 %v829_v6, %v1001_v20 }
  0xf7   : > { %v508_v9 = vpop.f32.mrf.mxu0  ;;  %v572_v10 = vpop.f32.mrf.mxu1 }
  0xf8   : > { %601 = vst [vmem:[%s1006_s7 + $0x70] sm:$0xff] %v517_v7  ;;  %617 = vst [vmem:[%s1006_s7 + $0xf0] sm:$0xff] %v581_v8  ;;  %v509_v11 = vadd.f32 %v1001_v20, %v508_v9  ;;  %v573_v12 = vadd.f32 %v1001_v20, %v572_v10 }
  0xf9   : > { %v814_v13 = vpop.f32.mrf.mxu0  ;;  %v830_v14 = vpop.f32.mrf.mxu1 }
  0xfa   : > { %599 = vst [vmem:[%s1006_s7 + $0x60] sm:$0xff] %v509_v11  ;;  %615 = vst [vmem:[%s1006_s7 + $0xe0] sm:$0xff] %v573_v12  ;;  %v520_v15 = vadd.f32 %v814_v13, %v1001_v20  ;;  %v584_v16 = vadd.f32 %v830_v14, %v1001_v20 }
  0xfb   : > { %v511_v17 = vpop.f32.mrf.mxu0  ;;  %v575_v18 = vpop.f32.mrf.mxu1 }
  0xfc   : > { %602 = vst [vmem:[%s1006_s7 + $0x78] sm:$0xff] %v520_v15  ;;  %618 = vst [vmem:[%s1006_s7 + $0xf8] sm:$0xff] %v584_v16  ;;  %v512_v19 = vadd.f32 %v1001_v20, %v511_v17  ;;  %v576_v21 = vadd.f32 %v1001_v20, %v575_v18 }
  0xfe   : > { %600 = vst [vmem:[%s1006_s7 + $0x68] sm:$0xff] %v512_v19  ;;  %616 = vst [vmem:[%s1006_s7 + $0xe8] sm:$0xff] %v576_v21 }
  0xff PF: > { %s13_s14 = sadd.s32 1, %s905_s14   ;;  %s1085_s12 = smov %s901_s13 }
 0x100   : > { %p10_p5 = scmp.ge.s32.totalorder %s13_s14, 10   ;;  %s1086_s13 = smov %s1088_s15 }
 0x102   :  { %12 = sbr.rel (!%p10_p5) target bundleno = 2 (0x2), region = 68 }

// kernel: generate_a_forward.19
= control target key start
LH: loop header
LB: loop body
LE: loop exit
PB: predicated region body
PF: predicated region fallthrough
CT: control target
= control target key end

     0   :  { %s1094_s12 = smov 0   ;;  %s1096_s13 = smov 0   ;;  %s1320_s0 = inlined_call_operand.vmem [shape: bf16[2048,208], index: 0, kind: input, shape index: {}]   ;;  %s1321_s1 = inlined_call_operand.vmem [shape: bf16[208,128], index: 1, kind: input, shape index: {}]   ;;  %s1322_s2 = inlined_call_operand.vmem [shape: f32[1,128], index: 2, kind: input, shape index: {}]   ;;  %s1323_s3 = inlined_call_operand.vmem [shape: f32[2048,128], index: 3, kind: output, shape index: {}]  }
   0x1   :  { %s1098_s14 = smov 0  }
   0x2 LB: > { %s25_s15 = sadd.s32 1, %s1067_s13  ;;  %p866_p0 = scmp.ge.s32.totalorder %s1071_s14, 1  ;;  %s1071_s14 = sphi %s1098_s14, %s13_s14   ;;  %s1067_s13 = sphi %s1096_s13, %s1325_s13   ;;  %s1063_s12 = sphi %s1094_s12, %s1324_s12  }
   0x3   : > { %p27_p1 = scmp.ge.s32.totalorder %s25_s15, 8  ;;  %p170_p2 = scmp.lt.s32.totalorder %s1071_s14, 9 }
   0x5   : > { %s1327_s15 = smov (%p27_p1, %s25_s15), 0  ;;  %p171_p3 = pnand %p866_p0, %p170_p2 }
   0x6   : > { %s867_s18 = sshll.u32 (!%p171_p3), %s1063_s12, 5 }
   0x7   : > { %174 = sbr.rel (%p171_p3) target bundleno = 321 (0x141), region = 32  ;;  %p206_p4 = scmp.lt.s32.totalorder (!%p171_p3), %s867_s18, 255 }
   0xc   : > { %v988_v0 = vld [vmem:[%s1321_s1 + $0x38] sm:$0xff]   ;;  %v1073_v1 = vmov 0   ;;  %v989_v2 = vld [vmem:[%s1321_s1 + $0x30] sm:$0xff]   ;;  %s1329_s18 = smov (!%p206_p4, %s867_s18), 255  ;;  %v990_v3 = vld [vmem:[%s1321_s1 + $0x28] sm:$0xff]   ;;  %vm516_vm0 = vcmask 654336  }
   0xd   : > { %565 = vmatprep.subr.bf16.mxu0 %v1073_v1  ;;  %937 = vmatprep.subr.bf16.mxu1 %v1073_v1  ;;  %s936_s23 = sshll.u32 %s1329_s18, 3  ;;  %v991_v4 = vld [vmem:[%s1321_s1 + $0x20] sm:$0xff]   ;;  %v992_v5 = vld [vmem:[%s1321_s1 + $0x18] sm:$0xff]   ;;  %v993_v8 = vld [vmem:[%s1321_s1 + $0x10] sm:$0xff]  }
   0xe   : > { %566 = vmatpush1.bf16.msra.mxu0 %v988_v0  ;;  %950 = vmatpush1.bf16.msra.mxu1 %v988_v0  ;;  %s1140_s28 = scalar_lea.vmem %s1320_s0, %s936_s23  ;;  %v994_v9 = vld [vmem:[%s1321_s1 + $0x8] sm:$0xff]   ;;  %v995_v10 = vld [vmem:[%s1321_s1] sm:$0xff]   ;;  %v997_v12 = vld [vmem:[%s1321_s1 + $0x58] sm:$0xff]   ;;  %s1245_s30 = scalar_lea.vmem %s1323_s3, %s936_s23 }
   0xf   : > { %567 = vmatprep.subr.bf16.mxu0 %v1073_v1  ;;  %938 = vmatprep.subr.bf16.mxu1 %v1073_v1  ;;  %v1003_v6 = vld [vmem:[%s1140_s28 + $0x4] ss:$8 sps:$4 sm:$0xff]   ;;  %v998_v13 = vld [vmem:[%s1321_s1 + $0x50] sm:$0xff]   ;;  %v1001_v16 = vld [vmem:[%s1140_s28] ss:$8 sps:$4 sm:$0xff]  }
  0x10   : > { %v1006_v7 = vld [vmem:[%s1140_s28 + $0x84] ss:$8 sps:$4 sm:$0xff]   ;;  %918 = vmatprep.mubr.msk.bf16.mxu0 %vm516_vm0, %v1003_v6  ;;  %v1004_v17 = vld [vmem:[%s1140_s28 + $0x80] ss:$8 sps:$4 sm:$0xff]   ;;  %v1007_v18 = vld [vmem:[%s1140_s28 + $0x14] ss:$8 sps:$4 sm:$0xff]  }
  0x11   : > { %926 = vmatprep.mubr.msk.bf16.mxu1 %vm516_vm0, %v1006_v7  ;;  %v996_v11 = vld [vmem:[%s1321_s1 + $0x60] sm:$0xff]   ;;  %v999_v14 = vld [vmem:[%s1321_s1 + $0x48] sm:$0xff]   ;;  %v1009_v19 = vld [vmem:[%s1140_s28 + $0x94] ss:$8 sps:$4 sm:$0xff]  }
  0x12   : > { %568 = vmatpush1.bf16.msra.mxu0 %v989_v2  ;;  %951 = vmatpush1.bf16.msra.mxu1 %v989_v2  ;;  %v1000_v15 = vld [vmem:[%s1321_s1 + $0x40] sm:$0xff]   ;;  %v1011_v20 = vld [vmem:[%s1140_s28 + $0x10] ss:$8 sps:$4 sm:$0xff]   ;;  %v1019_v26 = vld [vmem:[%s1140_s28 + $0x34] ss:$8 sps:$4 sm:$0xff]  }
  0x13   : > { %569 = vmatprep.subr.bf16.mxu0 %v1073_v1  ;;  %939 = vmatprep.subr.bf16.mxu1 %v1073_v1  ;;  %v1012_v21 = vld [vmem:[%s1140_s28 + $0x90] ss:$8 sps:$4 sm:$0xff]   ;;  %v1013_v22 = vld [vmem:[%s1140_s28 + $0x24] ss:$8 sps:$4 sm:$0xff]   ;;  %v1017_v24 = vld [vmem:[%s1140_s28 + $0x20] ss:$8 sps:$4 sm:$0xff]  }
  0x14   : > { %v1015_v23 = vld [vmem:[%s1140_s28 + $0xa4] ss:$8 sps:$4 sm:$0xff]   ;;  %v1018_v25 = vld [vmem:[%s1140_s28 + $0xa0] ss:$8 sps:$4 sm:$0xff]   ;;  %v1021_v27 = vld [vmem:[%s1140_s28 + $0xb4] ss:$8 sps:$4 sm:$0xff]  }
  0x15   : > { %v1023_v28 = vld [vmem:[%s1140_s28 + $0x30] ss:$8 sps:$4 sm:$0xff]   ;;  %v1025_v30 = vld [vmem:[%s1140_s28 + $0x44] ss:$8 sps:$4 sm:$0xff]   ;;  %v1029_v32 = vld [vmem:[%s1140_s28 + $0x40] ss:$8 sps:$4 sm:$0xff]  }
  0x16   : > { %570 = vmatpush1.bf16.msra.mxu0 %v990_v3  ;;  %952 = vmatpush1.bf16.msra.mxu1 %v990_v3  ;;  %v1024_v29 = vld [vmem:[%s1140_s28 + $0xb0] ss:$8 sps:$4 sm:$0xff]   ;;  %v1027_v31 = vld [vmem:[%s1140_s28 + $0xc4] ss:$8 sps:$4 sm:$0xff]   ;;  %v1030_v33 = vld [vmem:[%s1140_s28 + $0xc0] ss:$8 sps:$4 sm:$0xff]  }
  0x17   : > { %571 = vmatprep.subr.bf16.mxu0 %v1073_v1  ;;  %940 = vmatprep.subr.bf16.mxu1 %v1073_v1  ;;  %v1031_v34 = vld [vmem:[%s1140_s28 + $0x54] ss:$8 sps:$4 sm:$0xff]   ;;  %v1035_v36 = vld [vmem:[%s1140_s28 + $0x50] ss:$8 sps:$4 sm:$0xff]   ;;  %v1037_v38 = vld [vmem:[%s1140_s28 + $0x64] ss:$8 sps:$4 sm:$0xff]  }
  0x18   : > { %v1033_v35 = vld [vmem:[%s1140_s28 + $0xd4] ss:$8 sps:$4 sm:$0xff]   ;;  %v1036_v37 = vld [vmem:[%s1140_s28 + $0xd0] ss:$8 sps:$4 sm:$0xff]   ;;  %v1039_v39 = vld [vmem:[%s1140_s28 + $0xe4] ss:$8 sps:$4 sm:$0xff]  }
  0x19   : > { %v1041_v40 = vld [vmem:[%s1140_s28 + $0x60] ss:$8 sps:$4 sm:$0xff]   ;;  %v1043_v42 = vld [vmem:[%s1140_s28 + $0x74] ss:$8 sps:$4 sm:$0xff]   ;;  %v1047_v44 = vld [vmem:[%s1140_s28 + $0x70] ss:$8 sps:$4 sm:$0xff]  }
  0x1a   : > { %572 = vmatpush1.bf16.msra.mxu0 %v991_v4  ;;  %953 = vmatpush1.bf16.msra.mxu1 %v991_v4  ;;  %v1042_v41 = vld [vmem:[%s1140_s28 + $0xe0] ss:$8 sps:$4 sm:$0xff]   ;;  %v1045_v43 = vld [vmem:[%s1140_s28 + $0xf4] ss:$8 sps:$4 sm:$0xff]   ;;  %v1048_v45 = vld [vmem:[%s1140_s28 + $0xf0] ss:$8 sps:$4 sm:$0xff]  }
  0x1b   : > { %573 = vmatprep.subr.bf16.mxu0 %v1073_v1  ;;  %941 = vmatprep.subr.bf16.mxu1 %v1073_v1  ;;  %v1238_v46 = vld [vmem:[%s1322_s2] ss:$0 sm:$0xff] }
  0x1e   : > { %574 = vmatpush1.bf16.msra.mxu0 %v992_v5  ;;  %954 = vmatpush1.bf16.msra.mxu1 %v992_v5 }
  0x1f   : > { %575 = vmatprep.subr.bf16.mxu0 %v1073_v1  ;;  %942 = vmatprep.subr.bf16.mxu1 %v1073_v1 }
  0x22   : > { %576 = vmatpush1.bf16.msra.mxu0 %v993_v8  ;;  %955 = vmatpush1.bf16.msra.mxu1 %v993_v8 }
  0x23   : > { %577 = vmatprep.subr.bf16.mxu0 %v1073_v1  ;;  %943 = vmatprep.subr.bf16.mxu1 %v1073_v1 }
  0x26   : > { %578 = vmatpush1.bf16.msra.mxu0 %v994_v9  ;;  %956 = vmatpush1.bf16.msra.mxu1 %v994_v9 }
  0x27   : > { %579 = vmatprep.subr.bf16.mxu0 %v1073_v1  ;;  %944 = vmatprep.subr.bf16.mxu1 %v1073_v1 }
  0x2a   : > { %580 = vmatpush1.bf16.msra.mxu0 %v995_v10  ;;  %957 = vmatpush1.bf16.msra.mxu1 %v995_v10 }
  0x2b   : > { %587 = vmatprep.subr.bf16.mxu0 %v1073_v1  ;;  %945 = vmatprep.subr.bf16.mxu1 %v1073_v1 }
  0x2e   : > { %588 = vmatpush2.bf16.msra.mxu0 %v996_v11  ;;  %958 = vmatpush2.bf16.msra.mxu1 %v996_v11 }
  0x2f   : > { %589 = vmatprep.subr.bf16.mxu0 %v1073_v1  ;;  %946 = vmatprep.subr.bf16.mxu1 %v1073_v1 }
  0x32   : > { %590 = vmatpush2.bf16.msra.mxu0 %v997_v12  ;;  %959 = vmatpush2.bf16.msra.mxu1 %v997_v12 }
  0x33   : > { %591 = vmatprep.subr.bf16.mxu0 %v1073_v1  ;;  %947 = vmatprep.subr.bf16.mxu1 %v1073_v1 }
  0x36   : > { %592 = vmatpush2.bf16.msra.mxu0 %v998_v13  ;;  %960 = vmatpush2.bf16.msra.mxu1 %v998_v13 }
  0x37   : > { %593 = vmatprep.subr.bf16.mxu0 %v1073_v1  ;;  %948 = vmatprep.subr.bf16.mxu1 %v1073_v1 }
  0x3a   : > { %594 = vmatpush2.bf16.msra.mxu0 %v999_v14  ;;  %961 = vmatpush2.bf16.msra.mxu1 %v999_v14 }
  0x3b   : > { %595 = vmatprep.subr.bf16.mxu0 %v1073_v1  ;;  %949 = vmatprep.subr.bf16.mxu1 %v1073_v1 }
  0x3e   : > { %596 = vmatpush2.bf16.msra.mxu0 %v1000_v15  ;;  %962 = vmatpush2.bf16.msra.mxu1 %v1000_v15 }
  0x41   : > { %598 = vmatmul.mubr.bf16.vlgmr.msra.gmra.mxu0 %v1001_v16  ;;  %662 = vmatmul.mubr.bf16.vlgmr.msra.gmra.mxu1 %v1004_v17 }
  0x42   : > { %919 = vmatprep.mubr.msk.bf16.mxu0 %vm516_vm0, %v1007_v18  ;;  %927 = vmatprep.mubr.msk.bf16.mxu1 %vm516_vm0, %v1009_v19 }
  0x49   : > { %606 = vmatmul.mubr.bf16.gmra.mxu0 %v1011_v20  ;;  %670 = vmatmul.mubr.bf16.gmra.mxu1 %v1012_v21 }
  0x4a   : > { %920 = vmatprep.mubr.msk.bf16.mxu0 %vm516_vm0, %v1013_v22  ;;  %928 = vmatprep.mubr.msk.bf16.mxu1 %vm516_vm0, %v1015_v23 }
  0x51   : > { %614 = vmatmul.mubr.bf16.gmra.mxu0 %v1017_v24  ;;  %678 = vmatmul.mubr.bf16.gmra.mxu1 %v1018_v25 }
  0x52   : > { %921 = vmatprep.mubr.msk.bf16.mxu0 %vm516_vm0, %v1019_v26  ;;  %929 = vmatprep.mubr.msk.bf16.mxu1 %vm516_vm0, %v1021_v27 }
  0x59   : > { %622 = vmatmul.mubr.bf16.gmra.mxu0 %v1023_v28  ;;  %686 = vmatmul.mubr.bf16.gmra.mxu1 %v1024_v29 }
  0x5a   : > { %922 = vmatprep.mubr.msk.bf16.mxu0 %vm516_vm0, %v1025_v30  ;;  %930 = vmatprep.mubr.msk.bf16.mxu1 %vm516_vm0, %v1027_v31 }
  0x61   : > { %630 = vmatmul.mubr.bf16.gmra.mxu0 %v1029_v32  ;;  %694 = vmatmul.mubr.bf16.gmra.mxu1 %v1030_v33 }
  0x62   : > { %923 = vmatprep.mubr.msk.bf16.mxu0 %vm516_vm0, %v1031_v34  ;;  %931 = vmatprep.mubr.msk.bf16.mxu1 %vm516_vm0, %v1033_v35 }
  0x69   : > { %638 = vmatmul.mubr.bf16.gmra.mxu0 %v1035_v36  ;;  %702 = vmatmul.mubr.bf16.gmra.mxu1 %v1036_v37 }
  0x6a   : > { %924 = vmatprep.mubr.msk.bf16.mxu0 %vm516_vm0, %v1037_v38  ;;  %932 = vmatprep.mubr.msk.bf16.mxu1 %vm516_vm0, %v1039_v39 }
  0x71   : > { %646 = vmatmul.mubr.bf16.gmra.mxu0 %v1041_v40  ;;  %710 = vmatmul.mubr.bf16.gmra.mxu1 %v1042_v41 }
  0x72   : > { %925 = vmatprep.mubr.msk.bf16.mxu0 %vm516_vm0, %v1043_v42  ;;  %933 = vmatprep.mubr.msk.bf16.mxu1 %vm516_vm0, %v1045_v43 }
  0x79   : > { %654 = vmatmul.mubr.bf16.gmra.mxu0 %v1047_v44  ;;  %718 = vmatmul.mubr.bf16.gmra.mxu1 %v1048_v45 }
 0x101   : > { %v599_v47 = vpop.f32.mrf.mxu0  ;;  %v663_v48 = vpop.f32.mrf.mxu1 }
 0x102   : > { %v600_v49 = vadd.f32 %v1238_v46, %v599_v47  ;;  %v664_v50 = vadd.f32 %v1238_v46, %v663_v48 }
 0x103   : > { %v601_v51 = vpop.f32.mrf.mxu0  ;;  %v665_v52 = vpop.f32.mrf.mxu1 }
 0x104   : > { %726 = vst [vmem:[%s1245_s30] sm:$0xff] %v600_v49  ;;  %742 = vst [vmem:[%s1245_s30 + $0x80] sm:$0xff] %v664_v50 }
 0x105   : > { %v602_v53 = vpop.f32.mrf.mxu0  ;;  %v666_v54 = vpop.f32.mrf.mxu1 }
 0x106   : > { %v603_v55 = vadd.f32 %v1238_v46, %v602_v53  ;;  %v667_v56 = vadd.f32 %v1238_v46, %v666_v54 }
 0x107   : > { %v604_v57 = vpop.f32.mrf.mxu0  ;;  %v668_v58 = vpop.f32.mrf.mxu1 }
 0x108   : > { %727 = vst [vmem:[%s1245_s30 + $0x8] sm:$0xff] %v603_v55  ;;  %743 = vst [vmem:[%s1245_s30 + $0x88] sm:$0xff] %v667_v56 }
 0x109   : > { %v607_v59 = vpop.f32.mrf.mxu0  ;;  %v671_v60 = vpop.f32.mrf.mxu1 }
 0x10a   : > { %v608_v61 = vadd.f32 %v1238_v46, %v607_v59  ;;  %v672_v62 = vadd.f32 %v1238_v46, %v671_v60 }
 0x10b   : > { %v609_v63 = vpop.f32.mrf.mxu0  ;;  %v673_v0 = vpop.f32.mrf.mxu1 }
 0x10c   : > { %728 = vst [vmem:[%s1245_s30 + $0x10] sm:$0xff] %v608_v61  ;;  %744 = vst [vmem:[%s1245_s30 + $0x90] sm:$0xff] %v672_v62 }
 0x10d   : > { %v610_v1 = vpop.f32.mrf.mxu0  ;;  %v674_v2 = vpop.f32.mrf.mxu1 }
 0x10e   : > { %v611_v3 = vadd.f32 %v1238_v46, %v610_v1  ;;  %v675_v4 = vadd.f32 %v1238_v46, %v674_v2 }
 0x10f   : > { %v612_v5 = vpop.f32.mrf.mxu0  ;;  %v676_v6 = vpop.f32.mrf.mxu1 }
 0x110   : > { %729 = vst [vmem:[%s1245_s30 + $0x18] sm:$0xff] %v611_v3  ;;  %745 = vst [vmem:[%s1245_s30 + $0x98] sm:$0xff] %v675_v4 }
 0x111   : > { %v615_v7 = vpop.f32.mrf.mxu0  ;;  %v679_v8 = vpop.f32.mrf.mxu1 }
 0x112   : > { %v616_v9 = vadd.f32 %v1238_v46, %v615_v7  ;;  %v680_v10 = vadd.f32 %v1238_v46, %v679_v8 }
 0x113   : > { %v617_v11 = vpop.f32.mrf.mxu0  ;;  %v681_v12 = vpop.f32.mrf.mxu1 }
 0x114   : > { %730 = vst [vmem:[%s1245_s30 + $0x20] sm:$0xff] %v616_v9  ;;  %746 = vst [vmem:[%s1245_s30 + $0xa0] sm:$0xff] %v680_v10 }
 0x115   : > { %v618_v13 = vpop.f32.mrf.mxu0  ;;  %v682_v14 = vpop.f32.mrf.mxu1 }
 0x116   : > { %v619_v15 = vadd.f32 %v1238_v46, %v618_v13  ;;  %v683_v16 = vadd.f32 %v1238_v46, %v682_v14 }
 0x117   : > { %v620_v17 = vpop.f32.mrf.mxu0  ;;  %v684_v18 = vpop.f32.mrf.mxu1 }
 0x118   : > { %731 = vst [vmem:[%s1245_s30 + $0x28] sm:$0xff] %v619_v15  ;;  %747 = vst [vmem:[%s1245_s30 + $0xa8] sm:$0xff] %v683_v16 }
 0x119   : > { %v623_v19 = vpop.f32.mrf.mxu0  ;;  %v687_v20 = vpop.f32.mrf.mxu1 }
 0x11a   : > { %v624_v21 = vadd.f32 %v1238_v46, %v623_v19  ;;  %v688_v22 = vadd.f32 %v1238_v46, %v687_v20 }
 0x11b   : > { %v625_v23 = vpop.f32.mrf.mxu0  ;;  %v689_v24 = vpop.f32.mrf.mxu1 }
 0x11c   : > { %732 = vst [vmem:[%s1245_s30 + $0x30] sm:$0xff] %v624_v21  ;;  %748 = vst [vmem:[%s1245_s30 + $0xb0] sm:$0xff] %v688_v22 }
 0x11d   : > { %v626_v25 = vpop.f32.mrf.mxu0  ;;  %v690_v26 = vpop.f32.mrf.mxu1 }
 0x11e   : > { %v627_v27 = vadd.f32 %v1238_v46, %v626_v25  ;;  %v691_v28 = vadd.f32 %v1238_v46, %v690_v26 }
 0x11f   : > { %v628_v29 = vpop.f32.mrf.mxu0  ;;  %v692_v30 = vpop.f32.mrf.mxu1 }
 0x120   : > { %733 = vst [vmem:[%s1245_s30 + $0x38] sm:$0xff] %v627_v27  ;;  %749 = vst [vmem:[%s1245_s30 + $0xb8] sm:$0xff] %v691_v28 }
 0x121   : > { %v631_v31 = vpop.f32.mrf.mxu0  ;;  %v695_v32 = vpop.f32.mrf.mxu1 }
 0x122   : > { %v632_v33 = vadd.f32 %v1238_v46, %v631_v31  ;;  %v696_v34 = vadd.f32 %v1238_v46, %v695_v32 }
 0x123   : > { %v633_v35 = vpop.f32.mrf.mxu0  ;;  %v697_v36 = vpop.f32.mrf.mxu1 }
 0x124   : > { %734 = vst [vmem:[%s1245_s30 + $0x40] sm:$0xff] %v632_v33  ;;  %750 = vst [vmem:[%s1245_s30 + $0xc0] sm:$0xff] %v696_v34 }
 0x125   : > { %v634_v37 = vpop.f32.mrf.mxu0  ;;  %v698_v38 = vpop.f32.mrf.mxu1 }
 0x126   : > { %v635_v39 = vadd.f32 %v1238_v46, %v634_v37  ;;  %v699_v40 = vadd.f32 %v1238_v46, %v698_v38 }
 0x127   : > { %v636_v41 = vpop.f32.mrf.mxu0  ;;  %v700_v42 = vpop.f32.mrf.mxu1 }
 0x128   : > { %735 = vst [vmem:[%s1245_s30 + $0x48] sm:$0xff] %v635_v39  ;;  %751 = vst [vmem:[%s1245_s30 + $0xc8] sm:$0xff] %v699_v40 }
 0x129   : > { %v639_v43 = vpop.f32.mrf.mxu0  ;;  %v703_v44 = vpop.f32.mrf.mxu1 }
 0x12a   : > { %v640_v45 = vadd.f32 %v1238_v46, %v639_v43  ;;  %v704_v47 = vadd.f32 %v1238_v46, %v703_v44 }
 0x12b   : > { %v641_v48 = vpop.f32.mrf.mxu0  ;;  %v705_v49 = vpop.f32.mrf.mxu1 }
 0x12c   : > { %736 = vst [vmem:[%s1245_s30 + $0x50] sm:$0xff] %v640_v45  ;;  %752 = vst [vmem:[%s1245_s30 + $0xd0] sm:$0xff] %v704_v47 }
 0x12d   : > { %v642_v50 = vpop.f32.mrf.mxu0  ;;  %v706_v51 = vpop.f32.mrf.mxu1 }
 0x12e   : > { %v643_v52 = vadd.f32 %v1238_v46, %v642_v50  ;;  %v707_v53 = vadd.f32 %v1238_v46, %v706_v51 }
 0x12f   : > { %v644_v54 = vpop.f32.mrf.mxu0  ;;  %v708_v55 = vpop.f32.mrf.mxu1 }
 0x130   : > { %737 = vst [vmem:[%s1245_s30 + $0x58] sm:$0xff] %v643_v52  ;;  %753 = vst [vmem:[%s1245_s30 + $0xd8] sm:$0xff] %v707_v53 }
 0x131   : > { %v647_v56 = vpop.f32.mrf.mxu0  ;;  %v711_v57 = vpop.f32.mrf.mxu1 }
 0x132   : > { %v648_v58 = vadd.f32 %v1238_v46, %v647_v56  ;;  %v712_v59 = vadd.f32 %v1238_v46, %v711_v57 }
 0x133   : > { %v649_v60 = vpop.f32.mrf.mxu0  ;;  %v713_v61 = vpop.f32.mrf.mxu1 }
 0x134   : > { %738 = vst [vmem:[%s1245_s30 + $0x60] sm:$0xff] %v648_v58  ;;  %754 = vst [vmem:[%s1245_s30 + $0xe0] sm:$0xff] %v712_v59 }
 0x135   : > { %v650_v62 = vpop.f32.mrf.mxu0  ;;  %v714_v63 = vpop.f32.mrf.mxu1 }
 0x136   : > { %v651_v0 = vadd.f32 %v1238_v46, %v650_v62  ;;  %v715_v1 = vadd.f32 %v1238_v46, %v714_v63 }
 0x137   : > { %v652_v2 = vpop.f32.mrf.mxu0  ;;  %v716_v3 = vpop.f32.mrf.mxu1 }
 0x138   : > { %739 = vst [vmem:[%s1245_s30 + $0x68] sm:$0xff] %v651_v0  ;;  %755 = vst [vmem:[%s1245_s30 + $0xe8] sm:$0xff] %v715_v1 }
 0x139   : > { %v655_v4 = vpop.f32.mrf.mxu0  ;;  %v719_v5 = vpop.f32.mrf.mxu1 }
 0x13a   : > { %v656_v6 = vadd.f32 %v1238_v46, %v655_v4  ;;  %v720_v7 = vadd.f32 %v1238_v46, %v719_v5 }
 0x13b   : > { %v657_v8 = vpop.f32.mrf.mxu0  ;;  %v721_v9 = vpop.f32.mrf.mxu1 }
 0x13c   : > { %740 = vst [vmem:[%s1245_s30 + $0x70] sm:$0xff] %v656_v6  ;;  %756 = vst [vmem:[%s1245_s30 + $0xf0] sm:$0xff] %v720_v7 }
 0x13d   : > { %v658_v10 = vpop.f32.mrf.mxu0  ;;  %v722_v11 = vpop.f32.mrf.mxu1 }
 0x13e   : > { %v659_v12 = vadd.f32 %v1238_v46, %v658_v10  ;;  %v723_v13 = vadd.f32 %v1238_v46, %v722_v11 }
 0x13f   : > { %v660_v14 = vpop.f32.mrf.mxu0  ;;  %v724_v15 = vpop.f32.mrf.mxu1 }
 0x140   : > { %741 = vst [vmem:[%s1245_s30 + $0x78] sm:$0xff] %v659_v12  ;;  %757 = vst [vmem:[%s1245_s30 + $0xf8] sm:$0xff] %v723_v13 }
 0x141 PF: > { %s13_s14 = sadd.s32 1, %s1071_s14   ;;  %s1324_s12 = smov %s1067_s13 }
 0x142   : > { %p10_p5 = scmp.ge.s32.totalorder %s13_s14, 10   ;;  %s1325_s13 = smov %s1327_s15 }
 0x144   :  { %12 = sbr.rel (!%p10_p5) target bundleno = 2 (0x2), region = 68 }

// kernel: generate_a_forward.22
= control target key start
LH: loop header
LB: loop body
LE: loop exit
PB: predicated region body
PF: predicated region fallthrough
CT: control target
= control target key end

     0   :  { %s1046_s12 = smov 0   ;;  %s1048_s13 = smov 0   ;;  %s1234_s0 = inlined_call_operand.vmem [shape: bf16[512,144], index: 0, kind: input, shape index: {}]   ;;  %s1235_s1 = inlined_call_operand.vmem [shape: bf16[144,128], index: 1, kind: input, shape index: {}]   ;;  %s1236_s2 = inlined_call_operand.vmem [shape: f32[1,128], index: 2, kind: input, shape index: {}]   ;;  %s1237_s3 = inlined_call_operand.vmem [shape: f32[512,128], index: 3, kind: output, shape index: {}]  }
   0x1   :  { %s1050_s14 = smov 0  }
   0x2 LB: > { %s25_s15 = sadd.s32 1, %s1019_s13  ;;  %p834_p0 = scmp.ge.s32.totalorder %s1023_s14, 1  ;;  %s1023_s14 = sphi %s1050_s14, %s13_s14   ;;  %s1019_s13 = sphi %s1048_s13, %s1239_s13   ;;  %s1015_s12 = sphi %s1046_s12, %s1238_s12  }
   0x3   : > { %p27_p1 = scmp.ge.s32.totalorder %s25_s15, 2  ;;  %p170_p2 = scmp.lt.s32.totalorder %s1023_s14, 3 }
   0x5   : > { %s1241_s15 = smov (%p27_p1, %s25_s15), 0  ;;  %p171_p3 = pnand %p834_p0, %p170_p2 }
   0x6   : > { %s835_s18 = sshll.u32 (!%p171_p3), %s1015_s12, 5 }
   0x7   : > { %174 = sbr.rel (%p171_p3) target bundleno = 305 (0x131), region = 32  ;;  %p206_p4 = scmp.lt.s32.totalorder (!%p171_p3), %s835_s18, 63 }
   0xc   : > { %v944_v0 = vld [vmem:[%s1235_s1 + $0x38] sm:$0xff]   ;;  %v1025_v1 = vmov 0   ;;  %v945_v2 = vld [vmem:[%s1235_s1 + $0x30] sm:$0xff]   ;;  %s1243_s18 = smov (!%p206_p4, %s835_s18), 63  ;;  %v946_v3 = vld [vmem:[%s1235_s1 + $0x28] sm:$0xff]   ;;  %vm484_vm0 = vcmask 130048  }
   0xd   : > { %533 = vmatprep.subr.bf16.mxu0 %v1025_v1  ;;  %901 = vmatprep.subr.bf16.mxu1 %v1025_v1  ;;  %s900_s23 = sshll.u32 %s1243_s18, 3  ;;  %v947_v4 = vld [vmem:[%s1235_s1 + $0x20] sm:$0xff]   ;;  %v948_v7 = vld [vmem:[%s1235_s1 + $0x18] sm:$0xff]   ;;  %v949_v8 = vld [vmem:[%s1235_s1 + $0x10] sm:$0xff]  }
   0xe   : > { %534 = vmatpush1.bf16.msra.mxu0 %v944_v0  ;;  %910 = vmatpush1.bf16.msra.mxu1 %v944_v0  ;;  %s1081_s26 = scalar_lea.vmem %s1234_s0, %s900_s23  ;;  %v950_v9 = vld [vmem:[%s1235_s1 + $0x8] sm:$0xff]   ;;  %v951_v10 = vld [vmem:[%s1235_s1] sm:$0xff]   ;;  %s1159_s20 = scalar_lea.vmem %s1237_s3, %s900_s23 }
   0xf   : > { %535 = vmatprep.subr.bf16.mxu0 %v1025_v1  ;;  %902 = vmatprep.subr.bf16.mxu1 %v1025_v1  ;;  %v955_v5 = vld [vmem:[%s1081_s26 + $0x4] ss:$8 sps:$4 sm:$0xff]   ;;  %v953_v12 = vld [vmem:[%s1081_s26] ss:$8 sps:$4 sm:$0xff]   ;;  %v959_v14 = vld [vmem:[%s1081_s26 + $0x14] ss:$8 sps:$4 sm:$0xff]  }
  0x10   : > { %v958_v6 = vld [vmem:[%s1081_s26 + $0x84] ss:$8 sps:$4 sm:$0xff]   ;;  %882 = vmatprep.mubr.msk.bf16.mxu0 %vm484_vm0, %v955_v5  ;;  %v956_v13 = vld [vmem:[%s1081_s26 + $0x80] ss:$8 sps:$4 sm:$0xff]   ;;  %v961_v15 = vld [vmem:[%s1081_s26 + $0x94] ss:$8 sps:$4 sm:$0xff]  }
  0x11   : > { %890 = vmatprep.mubr.msk.bf16.mxu1 %vm484_vm0, %v958_v6  ;;  %v952_v11 = vld [vmem:[%s1235_s1 + $0x40] sm:$0xff]   ;;  %v963_v16 = vld [vmem:[%s1081_s26 + $0x10] ss:$8 sps:$4 sm:$0xff]   ;;  %v971_v22 = vld [vmem:[%s1081_s26 + $0x34] ss:$8 sps:$4 sm:$0xff]  }
  0x12   : > { %536 = vmatpush1.bf16.msra.mxu0 %v945_v2  ;;  %911 = vmatpush1.bf16.msra.mxu1 %v945_v2  ;;  %v964_v17 = vld [vmem:[%s1081_s26 + $0x90] ss:$8 sps:$4 sm:$0xff]   ;;  %v965_v18 = vld [vmem:[%s1081_s26 + $0x24] ss:$8 sps:$4 sm:$0xff]   ;;  %v969_v20 = vld [vmem:[%s1081_s26 + $0x20] ss:$8 sps:$4 sm:$0xff]  }
  0x13   : > { %537 = vmatprep.subr.bf16.mxu0 %v1025_v1  ;;  %903 = vmatprep.subr.bf16.mxu1 %v1025_v1  ;;  %v967_v19 = vld [vmem:[%s1081_s26 + $0xa4] ss:$8 sps:$4 sm:$0xff]   ;;  %v970_v21 = vld [vmem:[%s1081_s26 + $0xa0] ss:$8 sps:$4 sm:$0xff]   ;;  %v973_v23 = vld [vmem:[%s1081_s26 + $0xb4] ss:$8 sps:$4 sm:$0xff]  }
  0x14   : > { %v975_v24 = vld [vmem:[%s1081_s26 + $0x30] ss:$8 sps:$4 sm:$0xff]   ;;  %v977_v26 = vld [vmem:[%s1081_s26 + $0x44] ss:$8 sps:$4 sm:$0xff]   ;;  %v981_v28 = vld [vmem:[%s1081_s26 + $0x40] ss:$8 sps:$4 sm:$0xff]  }
  0x15   : > { %v976_v25 = vld [vmem:[%s1081_s26 + $0xb0] ss:$8 sps:$4 sm:$0xff]   ;;  %v979_v27 = vld [vmem:[%s1081_s26 + $0xc4] ss:$8 sps:$4 sm:$0xff]   ;;  %v982_v29 = vld [vmem:[%s1081_s26 + $0xc0] ss:$8 sps:$4 sm:$0xff]  }
  0x16   : > { %538 = vmatpush1.bf16.msra.mxu0 %v946_v3  ;;  %912 = vmatpush1.bf16.msra.mxu1 %v946_v3  ;;  %v983_v30 = vld [vmem:[%s1081_s26 + $0x54] ss:$8 sps:$4 sm:$0xff]   ;;  %v987_v32 = vld [vmem:[%s1081_s26 + $0x50] ss:$8 sps:$4 sm:$0xff]   ;;  %v989_v34 = vld [vmem:[%s1081_s26 + $0x64] ss:$8 sps:$4 sm:$0xff]  }
  0x17   : > { %539 = vmatprep.subr.bf16.mxu0 %v1025_v1  ;;  %904 = vmatprep.subr.bf16.mxu1 %v1025_v1  ;;  %v985_v31 = vld [vmem:[%s1081_s26 + $0xd4] ss:$8 sps:$4 sm:$0xff]   ;;  %v988_v33 = vld [vmem:[%s1081_s26 + $0xd0] ss:$8 sps:$4 sm:$0xff]   ;;  %v991_v35 = vld [vmem:[%s1081_s26 + $0xe4] ss:$8 sps:$4 sm:$0xff]  }
  0x18   : > { %v993_v36 = vld [vmem:[%s1081_s26 + $0x60] ss:$8 sps:$4 sm:$0xff]   ;;  %v995_v38 = vld [vmem:[%s1081_s26 + $0x74] ss:$8 sps:$4 sm:$0xff]   ;;  %v999_v40 = vld [vmem:[%s1081_s26 + $0x70] ss:$8 sps:$4 sm:$0xff]  }
  0x19   : > { %v994_v37 = vld [vmem:[%s1081_s26 + $0xe0] ss:$8 sps:$4 sm:$0xff]   ;;  %v997_v39 = vld [vmem:[%s1081_s26 + $0xf4] ss:$8 sps:$4 sm:$0xff]   ;;  %v1000_v41 = vld [vmem:[%s1081_s26 + $0xf0] ss:$8 sps:$4 sm:$0xff]  }
  0x1a   : > { %540 = vmatpush1.bf16.msra.mxu0 %v947_v4  ;;  %913 = vmatpush1.bf16.msra.mxu1 %v947_v4  ;;  %v1152_v42 = vld [vmem:[%s1236_s2] ss:$0 sm:$0xff] }
  0x1b   : > { %541 = vmatprep.subr.bf16.mxu0 %v1025_v1  ;;  %905 = vmatprep.subr.bf16.mxu1 %v1025_v1 }
  0x1e   : > { %542 = vmatpush1.bf16.msra.mxu0 %v948_v7  ;;  %914 = vmatpush1.bf16.msra.mxu1 %v948_v7 }
  0x1f   : > { %543 = vmatprep.subr.bf16.mxu0 %v1025_v1  ;;  %906 = vmatprep.subr.bf16.mxu1 %v1025_v1 }
  0x22   : > { %544 = vmatpush1.bf16.msra.mxu0 %v949_v8  ;;  %915 = vmatpush1.bf16.msra.mxu1 %v949_v8 }
  0x23   : > { %545 = vmatprep.subr.bf16.mxu0 %v1025_v1  ;;  %907 = vmatprep.subr.bf16.mxu1 %v1025_v1 }
  0x26   : > { %546 = vmatpush1.bf16.msra.mxu0 %v950_v9  ;;  %916 = vmatpush1.bf16.msra.mxu1 %v950_v9 }
  0x27   : > { %547 = vmatprep.subr.bf16.mxu0 %v1025_v1  ;;  %908 = vmatprep.subr.bf16.mxu1 %v1025_v1 }
  0x2a   : > { %548 = vmatpush1.bf16.msra.mxu0 %v951_v10  ;;  %917 = vmatpush1.bf16.msra.mxu1 %v951_v10 }
  0x2b   : > { %563 = vmatprep.subr.bf16.mxu0 %v1025_v1  ;;  %909 = vmatprep.subr.bf16.mxu1 %v1025_v1 }
  0x2e   : > { %564 = vmatpush2.bf16.msra.mxu0 %v952_v11  ;;  %918 = vmatpush2.bf16.msra.mxu1 %v952_v11 }
  0x31   : > { %566 = vmatmul.mubr.bf16.vlgmr.msra.gmra.mxu0 %v953_v12  ;;  %630 = vmatmul.mubr.bf16.vlgmr.msra.gmra.mxu1 %v956_v13 }
  0x32   : > { %883 = vmatprep.mubr.msk.bf16.mxu0 %vm484_vm0, %v959_v14  ;;  %891 = vmatprep.mubr.msk.bf16.mxu1 %vm484_vm0, %v961_v15 }
  0x39   : > { %574 = vmatmul.mubr.bf16.gmra.mxu0 %v963_v16  ;;  %638 = vmatmul.mubr.bf16.gmra.mxu1 %v964_v17 }
  0x3a   : > { %884 = vmatprep.mubr.msk.bf16.mxu0 %vm484_vm0, %v965_v18  ;;  %892 = vmatprep.mubr.msk.bf16.mxu1 %vm484_vm0, %v967_v19 }
  0x41   : > { %582 = vmatmul.mubr.bf16.gmra.mxu0 %v969_v20  ;;  %646 = vmatmul.mubr.bf16.gmra.mxu1 %v970_v21 }
  0x42   : > { %885 = vmatprep.mubr.msk.bf16.mxu0 %vm484_vm0, %v971_v22  ;;  %893 = vmatprep.mubr.msk.bf16.mxu1 %vm484_vm0, %v973_v23 }
  0x49   : > { %590 = vmatmul.mubr.bf16.gmra.mxu0 %v975_v24  ;;  %654 = vmatmul.mubr.bf16.gmra.mxu1 %v976_v25 }
  0x4a   : > { %886 = vmatprep.mubr.msk.bf16.mxu0 %vm484_vm0, %v977_v26  ;;  %894 = vmatprep.mubr.msk.bf16.mxu1 %vm484_vm0, %v979_v27 }
  0x51   : > { %598 = vmatmul.mubr.bf16.gmra.mxu0 %v981_v28  ;;  %662 = vmatmul.mubr.bf16.gmra.mxu1 %v982_v29 }
  0x52   : > { %887 = vmatprep.mubr.msk.bf16.mxu0 %vm484_vm0, %v983_v30  ;;  %895 = vmatprep.mubr.msk.bf16.mxu1 %vm484_vm0, %v985_v31 }
  0x59   : > { %606 = vmatmul.mubr.bf16.gmra.mxu0 %v987_v32  ;;  %670 = vmatmul.mubr.bf16.gmra.mxu1 %v988_v33 }
  0x5a   : > { %888 = vmatprep.mubr.msk.bf16.mxu0 %vm484_vm0, %v989_v34  ;;  %896 = vmatprep.mubr.msk.bf16.mxu1 %vm484_vm0, %v991_v35 }
  0x61   : > { %614 = vmatmul.mubr.bf16.gmra.mxu0 %v993_v36  ;;  %678 = vmatmul.mubr.bf16.gmra.mxu1 %v994_v37 }
  0x62   : > { %889 = vmatprep.mubr.msk.bf16.mxu0 %vm484_vm0, %v995_v38  ;;  %897 = vmatprep.mubr.msk.bf16.mxu1 %vm484_vm0, %v997_v39 }
  0x69   : > { %622 = vmatmul.mubr.bf16.gmra.mxu0 %v999_v40  ;;  %686 = vmatmul.mubr.bf16.gmra.mxu1 %v1000_v41 }
  0xf1   : > { %v567_v43 = vpop.f32.mrf.mxu0  ;;  %v631_v44 = vpop.f32.mrf.mxu1 }
  0xf2   : > { %v568_v45 = vadd.f32 %v1152_v42, %v567_v43  ;;  %v632_v46 = vadd.f32 %v1152_v42, %v631_v44 }
  0xf3   : > { %v569_v47 = vpop.f32.mrf.mxu0  ;;  %v633_v48 = vpop.f32.mrf.mxu1 }
  0xf4   : > { %694 = vst [vmem:[%s1159_s20] sm:$0xff] %v568_v45  ;;  %710 = vst [vmem:[%s1159_s20 + $0x80] sm:$0xff] %v632_v46 }
  0xf5   : > { %v570_v49 = vpop.f32.mrf.mxu0  ;;  %v634_v50 = vpop.f32.mrf.mxu1 }
  0xf6   : > { %v571_v51 = vadd.f32 %v1152_v42, %v570_v49  ;;  %v635_v52 = vadd.f32 %v1152_v42, %v634_v50 }
  0xf7   : > { %v572_v53 = vpop.f32.mrf.mxu0  ;;  %v636_v54 = vpop.f32.mrf.mxu1 }
  0xf8   : > { %695 = vst [vmem:[%s1159_s20 + $0x8] sm:$0xff] %v571_v51  ;;  %711 = vst [vmem:[%s1159_s20 + $0x88] sm:$0xff] %v635_v52 }
  0xf9   : > { %v575_v55 = vpop.f32.mrf.mxu0  ;;  %v639_v56 = vpop.f32.mrf.mxu1 }
  0xfa   : > { %v576_v57 = vadd.f32 %v1152_v42, %v575_v55  ;;  %v640_v58 = vadd.f32 %v1152_v42, %v639_v56 }
  0xfb   : > { %v577_v59 = vpop.f32.mrf.mxu0  ;;  %v641_v60 = vpop.f32.mrf.mxu1 }
  0xfc   : > { %696 = vst [vmem:[%s1159_s20 + $0x10] sm:$0xff] %v576_v57  ;;  %712 = vst [vmem:[%s1159_s20 + $0x90] sm:$0xff] %v640_v58 }
  0xfd   : > { %v578_v61 = vpop.f32.mrf.mxu0  ;;  %v642_v62 = vpop.f32.mrf.mxu1 }
  0xfe   : > { %v579_v63 = vadd.f32 %v1152_v42, %v578_v61  ;;  %v643_v0 = vadd.f32 %v1152_v42, %v642_v62 }
  0xff   : > { %v580_v1 = vpop.f32.mrf.mxu0  ;;  %v644_v2 = vpop.f32.mrf.mxu1 }
 0x100   : > { %697 = vst [vmem:[%s1159_s20 + $0x18] sm:$0xff] %v579_v63  ;;  %713 = vst [vmem:[%s1159_s20 + $0x98] sm:$0xff] %v643_v0 }
 0x101   : > { %v583_v3 = vpop.f32.mrf.mxu0  ;;  %v647_v4 = vpop.f32.mrf.mxu1 }
 0x102   : > { %v584_v5 = vadd.f32 %v1152_v42, %v583_v3  ;;  %v648_v6 = vadd.f32 %v1152_v42, %v647_v4 }
 0x103   : > { %v585_v7 = vpop.f32.mrf.mxu0  ;;  %v649_v8 = vpop.f32.mrf.mxu1 }
 0x104   : > { %698 = vst [vmem:[%s1159_s20 + $0x20] sm:$0xff] %v584_v5  ;;  %714 = vst [vmem:[%s1159_s20 + $0xa0] sm:$0xff] %v648_v6 }
 0x105   : > { %v586_v9 = vpop.f32.mrf.mxu0  ;;  %v650_v10 = vpop.f32.mrf.mxu1 }
 0x106   : > { %v587_v11 = vadd.f32 %v1152_v42, %v586_v9  ;;  %v651_v12 = vadd.f32 %v1152_v42, %v650_v10 }
 0x107   : > { %v588_v13 = vpop.f32.mrf.mxu0  ;;  %v652_v14 = vpop.f32.mrf.mxu1 }
 0x108   : > { %699 = vst [vmem:[%s1159_s20 + $0x28] sm:$0xff] %v587_v11  ;;  %715 = vst [vmem:[%s1159_s20 + $0xa8] sm:$0xff] %v651_v12 }
 0x109   : > { %v591_v15 = vpop.f32.mrf.mxu0  ;;  %v655_v16 = vpop.f32.mrf.mxu1 }
 0x10a   : > { %v592_v17 = vadd.f32 %v1152_v42, %v591_v15  ;;  %v656_v18 = vadd.f32 %v1152_v42, %v655_v16 }
 0x10b   : > { %v593_v19 = vpop.f32.mrf.mxu0  ;;  %v657_v20 = vpop.f32.mrf.mxu1 }
 0x10c   : > { %700 = vst [vmem:[%s1159_s20 + $0x30] sm:$0xff] %v592_v17  ;;  %716 = vst [vmem:[%s1159_s20 + $0xb0] sm:$0xff] %v656_v18 }
 0x10d   : > { %v594_v21 = vpop.f32.mrf.mxu0  ;;  %v658_v22 = vpop.f32.mrf.mxu1 }
 0x10e   : > { %v595_v23 = vadd.f32 %v1152_v42, %v594_v21  ;;  %v659_v24 = vadd.f32 %v1152_v42, %v658_v22 }
 0x10f   : > { %v596_v25 = vpop.f32.mrf.mxu0  ;;  %v660_v26 = vpop.f32.mrf.mxu1 }
 0x110   : > { %701 = vst [vmem:[%s1159_s20 + $0x38] sm:$0xff] %v595_v23  ;;  %717 = vst [vmem:[%s1159_s20 + $0xb8] sm:$0xff] %v659_v24 }
 0x111   : > { %v599_v27 = vpop.f32.mrf.mxu0  ;;  %v663_v28 = vpop.f32.mrf.mxu1 }
 0x112   : > { %v600_v29 = vadd.f32 %v1152_v42, %v599_v27  ;;  %v664_v30 = vadd.f32 %v1152_v42, %v663_v28 }
 0x113   : > { %v601_v31 = vpop.f32.mrf.mxu0  ;;  %v665_v32 = vpop.f32.mrf.mxu1 }
 0x114   : > { %702 = vst [vmem:[%s1159_s20 + $0x40] sm:$0xff] %v600_v29  ;;  %718 = vst [vmem:[%s1159_s20 + $0xc0] sm:$0xff] %v664_v30 }
 0x115   : > { %v602_v33 = vpop.f32.mrf.mxu0  ;;  %v666_v34 = vpop.f32.mrf.mxu1 }
 0x116   : > { %v603_v35 = vadd.f32 %v1152_v42, %v602_v33  ;;  %v667_v36 = vadd.f32 %v1152_v42, %v666_v34 }
 0x117   : > { %v604_v37 = vpop.f32.mrf.mxu0  ;;  %v668_v38 = vpop.f32.mrf.mxu1 }
 0x118   : > { %703 = vst [vmem:[%s1159_s20 + $0x48] sm:$0xff] %v603_v35  ;;  %719 = vst [vmem:[%s1159_s20 + $0xc8] sm:$0xff] %v667_v36 }
 0x119   : > { %v607_v39 = vpop.f32.mrf.mxu0  ;;  %v671_v40 = vpop.f32.mrf.mxu1 }
 0x11a   : > { %v608_v41 = vadd.f32 %v1152_v42, %v607_v39  ;;  %v672_v43 = vadd.f32 %v1152_v42, %v671_v40 }
 0x11b   : > { %v609_v44 = vpop.f32.mrf.mxu0  ;;  %v673_v45 = vpop.f32.mrf.mxu1 }
 0x11c   : > { %704 = vst [vmem:[%s1159_s20 + $0x50] sm:$0xff] %v608_v41  ;;  %720 = vst [vmem:[%s1159_s20 + $0xd0] sm:$0xff] %v672_v43 }
 0x11d   : > { %v610_v46 = vpop.f32.mrf.mxu0  ;;  %v674_v47 = vpop.f32.mrf.mxu1 }
 0x11e   : > { %v611_v48 = vadd.f32 %v1152_v42, %v610_v46  ;;  %v675_v49 = vadd.f32 %v1152_v42, %v674_v47 }
 0x11f   : > { %v612_v50 = vpop.f32.mrf.mxu0  ;;  %v676_v51 = vpop.f32.mrf.mxu1 }
 0x120   : > { %705 = vst [vmem:[%s1159_s20 + $0x58] sm:$0xff] %v611_v48  ;;  %721 = vst [vmem:[%s1159_s20 + $0xd8] sm:$0xff] %v675_v49 }
 0x121   : > { %v615_v52 = vpop.f32.mrf.mxu0  ;;  %v679_v53 = vpop.f32.mrf.mxu1 }
 0x122   : > { %v616_v54 = vadd.f32 %v1152_v42, %v615_v52  ;;  %v680_v55 = vadd.f32 %v1152_v42, %v679_v53 }
 0x123   : > { %v617_v56 = vpop.f32.mrf.mxu0  ;;  %v681_v57 = vpop.f32.mrf.mxu1 }
 0x124   : > { %706 = vst [vmem:[%s1159_s20 + $0x60] sm:$0xff] %v616_v54  ;;  %722 = vst [vmem:[%s1159_s20 + $0xe0] sm:$0xff] %v680_v55 }
 0x125   : > { %v618_v58 = vpop.f32.mrf.mxu0  ;;  %v682_v59 = vpop.f32.mrf.mxu1 }
 0x126   : > { %v619_v60 = vadd.f32 %v1152_v42, %v618_v58  ;;  %v683_v61 = vadd.f32 %v1152_v42, %v682_v59 }
 0x127   : > { %v620_v62 = vpop.f32.mrf.mxu0  ;;  %v684_v63 = vpop.f32.mrf.mxu1 }
 0x128   : > { %707 = vst [vmem:[%s1159_s20 + $0x68] sm:$0xff] %v619_v60  ;;  %723 = vst [vmem:[%s1159_s20 + $0xe8] sm:$0xff] %v683_v61 }
 0x129   : > { %v623_v0 = vpop.f32.mrf.mxu0  ;;  %v687_v1 = vpop.f32.mrf.mxu1 }
 0x12a   : > { %v624_v2 = vadd.f32 %v1152_v42, %v623_v0  ;;  %v688_v3 = vadd.f32 %v1152_v42, %v687_v1 }
 0x12b   : > { %v625_v4 = vpop.f32.mrf.mxu0  ;;  %v689_v5 = vpop.f32.mrf.mxu1 }
 0x12c   : > { %708 = vst [vmem:[%s1159_s20 + $0x70] sm:$0xff] %v624_v2  ;;  %724 = vst [vmem:[%s1159_s20 + $0xf0] sm:$0xff] %v688_v3 }
 0x12d   : > { %v626_v6 = vpop.f32.mrf.mxu0  ;;  %v690_v7 = vpop.f32.mrf.mxu1 }
 0x12e   : > { %v627_v8 = vadd.f32 %v1152_v42, %v626_v6  ;;  %v691_v9 = vadd.f32 %v1152_v42, %v690_v7 }
 0x12f   : > { %v628_v10 = vpop.f32.mrf.mxu0  ;;  %v692_v11 = vpop.f32.mrf.mxu1 }
 0x130   : > { %709 = vst [vmem:[%s1159_s20 + $0x78] sm:$0xff] %v627_v8  ;;  %725 = vst [vmem:[%s1159_s20 + $0xf8] sm:$0xff] %v691_v9 }
 0x131 PF: > { %s13_s14 = sadd.s32 1, %s1023_s14   ;;  %s1238_s12 = smov %s1019_s13 }
 0x132   : > { %p10_p5 = scmp.ge.s32.totalorder %s13_s14, 4   ;;  %s1239_s13 = smov %s1241_s15 }
 0x134   :  { %12 = sbr.rel (!%p10_p5) target bundleno = 2 (0x2), region = 68 }

// kernel: generate_a_forward.24
= control target key start
LH: loop header
LB: loop body
LE: loop exit
PB: predicated region body
PF: predicated region fallthrough
CT: control target
= control target key end

     0   :  { %v410_v0 = vmov 0   ;;  %vm182_vm0 = vcmask 130048   ;;  %s565_s1 = inlined_call_operand.vmem [shape: bf16[144,128], index: 1, kind: input, shape index: {}]   ;;  %s566_s0 = inlined_call_operand.vmem [shape: bf16[128,144], index: 0, kind: input, shape index: {}]   ;;  %s567_s2 = inlined_call_operand.vmem [shape: f32[1,128], index: 2, kind: input, shape index: {}]   ;;  %s568_s3 = inlined_call_operand.vmem [shape: f32[128,128], index: 3, kind: output, shape index: {}]  }
   0x1   :  { %207 = vmatprep.subr.bf16.mxu0 %v410_v0  ;;  %358 = vmatprep.subr.bf16.mxu1 %v410_v0  ;;  %v377_v1 = vld [vmem:[%s565_s1 + $0x38] sm:$0xff]   ;;  %v378_v2 = vld [vmem:[%s565_s1 + $0x30] sm:$0xff]   ;;  %v379_v3 = vld [vmem:[%s565_s1 + $0x28] sm:$0xff]  }
   0x2   :  { %208 = vmatpush1.bf16.msra.mxu0 %v377_v1  ;;  %367 = vmatpush1.bf16.msra.mxu1 %v377_v1  ;;  %v380_v4 = vld [vmem:[%s565_s1 + $0x20] sm:$0xff]   ;;  %v381_v7 = vld [vmem:[%s565_s1 + $0x18] sm:$0xff]   ;;  %v382_v8 = vld [vmem:[%s565_s1 + $0x10] sm:$0xff]  }
   0x3   :  { %209 = vmatprep.subr.bf16.mxu0 %v410_v0  ;;  %359 = vmatprep.subr.bf16.mxu1 %v410_v0  ;;  %v388_v5 = vld [vmem:[%s566_s0 + $0x4] ss:$8 sps:$4 sm:$0xff]   ;;  %v386_v12 = vld [vmem:[%s566_s0] ss:$8 sps:$4 sm:$0xff]   ;;  %v392_v14 = vld [vmem:[%s566_s0 + $0x14] ss:$8 sps:$4 sm:$0xff]  }
   0x4   :  { %v391_v6 = vld [vmem:[%s566_s0 + $0x44] ss:$8 sps:$4 sm:$0xff]   ;;  %350 = vmatprep.mubr.msk.bf16.mxu0 %vm182_vm0, %v388_v5  ;;  %v389_v13 = vld [vmem:[%s566_s0 + $0x40] ss:$8 sps:$4 sm:$0xff]   ;;  %v394_v15 = vld [vmem:[%s566_s0 + $0x54] ss:$8 sps:$4 sm:$0xff]  }
   0x5   :  { %354 = vmatprep.mubr.msk.bf16.mxu1 %vm182_vm0, %v391_v6  ;;  %v383_v9 = vld [vmem:[%s565_s1 + $0x8] sm:$0xff]   ;;  %v384_v10 = vld [vmem:[%s565_s1] sm:$0xff]   ;;  %v396_v16 = vld [vmem:[%s566_s0 + $0x10] ss:$8 sps:$4 sm:$0xff]  }
   0x6   :  { %210 = vmatpush1.bf16.msra.mxu0 %v378_v2  ;;  %368 = vmatpush1.bf16.msra.mxu1 %v378_v2  ;;  %v385_v11 = vld [vmem:[%s565_s1 + $0x40] sm:$0xff]   ;;  %v397_v17 = vld [vmem:[%s566_s0 + $0x50] ss:$8 sps:$4 sm:$0xff]   ;;  %v404_v22 = vld [vmem:[%s566_s0 + $0x34] ss:$8 sps:$4 sm:$0xff]  }
   0x7   :  { %211 = vmatprep.subr.bf16.mxu0 %v410_v0  ;;  %360 = vmatprep.subr.bf16.mxu1 %v410_v0  ;;  %v398_v18 = vld [vmem:[%s566_s0 + $0x24] ss:$8 sps:$4 sm:$0xff]   ;;  %v402_v20 = vld [vmem:[%s566_s0 + $0x20] ss:$8 sps:$4 sm:$0xff]   ;;  %v406_v23 = vld [vmem:[%s566_s0 + $0x74] ss:$8 sps:$4 sm:$0xff]  }
   0x8   :  { %v400_v19 = vld [vmem:[%s566_s0 + $0x64] ss:$8 sps:$4 sm:$0xff]   ;;  %v403_v21 = vld [vmem:[%s566_s0 + $0x60] ss:$8 sps:$4 sm:$0xff]   ;;  %v408_v24 = vld [vmem:[%s566_s0 + $0x30] ss:$8 sps:$4 sm:$0xff]  }
   0x9   :  { %v409_v25 = vld [vmem:[%s566_s0 + $0x70] ss:$8 sps:$4 sm:$0xff]   ;;  %v324_v26 = vld [vmem:[%s567_s2] ss:$0 sm:$0xff] }
   0xa   :  { %212 = vmatpush1.bf16.msra.mxu0 %v379_v3  ;;  %369 = vmatpush1.bf16.msra.mxu1 %v379_v3 }
   0xb   :  { %213 = vmatprep.subr.bf16.mxu0 %v410_v0  ;;  %361 = vmatprep.subr.bf16.mxu1 %v410_v0 }
   0xe   :  { %214 = vmatpush1.bf16.msra.mxu0 %v380_v4  ;;  %370 = vmatpush1.bf16.msra.mxu1 %v380_v4 }
   0xf   :  { %215 = vmatprep.subr.bf16.mxu0 %v410_v0  ;;  %362 = vmatprep.subr.bf16.mxu1 %v410_v0 }
  0x12   :  { %216 = vmatpush1.bf16.msra.mxu0 %v381_v7  ;;  %371 = vmatpush1.bf16.msra.mxu1 %v381_v7 }
  0x13   :  { %217 = vmatprep.subr.bf16.mxu0 %v410_v0  ;;  %363 = vmatprep.subr.bf16.mxu1 %v410_v0 }
  0x16   :  { %218 = vmatpush1.bf16.msra.mxu0 %v382_v8  ;;  %372 = vmatpush1.bf16.msra.mxu1 %v382_v8 }
  0x17   :  { %219 = vmatprep.subr.bf16.mxu0 %v410_v0  ;;  %364 = vmatprep.subr.bf16.mxu1 %v410_v0 }
  0x1a   :  { %220 = vmatpush1.bf16.msra.mxu0 %v383_v9  ;;  %373 = vmatpush1.bf16.msra.mxu1 %v383_v9 }
  0x1b   :  { %221 = vmatprep.subr.bf16.mxu0 %v410_v0  ;;  %365 = vmatprep.subr.bf16.mxu1 %v410_v0 }
  0x1e   :  { %222 = vmatpush1.bf16.msra.mxu0 %v384_v10  ;;  %374 = vmatpush1.bf16.msra.mxu1 %v384_v10 }
  0x1f   :  { %237 = vmatprep.subr.bf16.mxu0 %v410_v0  ;;  %366 = vmatprep.subr.bf16.mxu1 %v410_v0 }
  0x22   :  { %238 = vmatpush2.bf16.msra.mxu0 %v385_v11  ;;  %375 = vmatpush2.bf16.msra.mxu1 %v385_v11 }
  0x25   :  { %240 = vmatmul.mubr.bf16.vlgmr.msra.gmra.mxu0 %v386_v12  ;;  %272 = vmatmul.mubr.bf16.vlgmr.msra.gmra.mxu1 %v389_v13 }
  0x26   :  { %351 = vmatprep.mubr.msk.bf16.mxu0 %vm182_vm0, %v392_v14  ;;  %355 = vmatprep.mubr.msk.bf16.mxu1 %vm182_vm0, %v394_v15 }
  0x2d   :  { %248 = vmatmul.mubr.bf16.gmra.mxu0 %v396_v16  ;;  %280 = vmatmul.mubr.bf16.gmra.mxu1 %v397_v17 }
  0x2e   :  { %352 = vmatprep.mubr.msk.bf16.mxu0 %vm182_vm0, %v398_v18  ;;  %356 = vmatprep.mubr.msk.bf16.mxu1 %vm182_vm0, %v400_v19 }
  0x35   :  { %256 = vmatmul.mubr.bf16.gmra.mxu0 %v402_v20  ;;  %288 = vmatmul.mubr.bf16.gmra.mxu1 %v403_v21 }
  0x36   :  { %353 = vmatprep.mubr.msk.bf16.mxu0 %vm182_vm0, %v404_v22  ;;  %357 = vmatprep.mubr.msk.bf16.mxu1 %vm182_vm0, %v406_v23 }
  0x3d   :  { %264 = vmatmul.mubr.bf16.gmra.mxu0 %v408_v24  ;;  %296 = vmatmul.mubr.bf16.gmra.mxu1 %v409_v25 }
  0xe5   :  { %v241_v27 = vpop.f32.mrf.mxu0  ;;  %v273_v28 = vpop.f32.mrf.mxu1 }
  0xe6   :  { %v242_v29 = vadd.f32 %v324_v26, %v241_v27  ;;  %v274_v30 = vadd.f32 %v324_v26, %v273_v28 }
  0xe7   :  { %v243_v31 = vpop.f32.mrf.mxu0  ;;  %v275_v32 = vpop.f32.mrf.mxu1 }
  0xe8   :  { %304 = vst [vmem:[%s568_s3] sm:$0xff] %v242_v29  ;;  %312 = vst [vmem:[%s568_s3 + $0x40] sm:$0xff] %v274_v30 }
  0xe9   :  { %v244_v33 = vpop.f32.mrf.mxu0  ;;  %v276_v34 = vpop.f32.mrf.mxu1 }
  0xea   :  { %v245_v35 = vadd.f32 %v324_v26, %v244_v33  ;;  %v277_v36 = vadd.f32 %v324_v26, %v276_v34 }
  0xeb   :  { %v246_v37 = vpop.f32.mrf.mxu0  ;;  %v278_v38 = vpop.f32.mrf.mxu1 }
  0xec   :  { %305 = vst [vmem:[%s568_s3 + $0x8] sm:$0xff] %v245_v35  ;;  %313 = vst [vmem:[%s568_s3 + $0x48] sm:$0xff] %v277_v36 }
  0xed   :  { %v249_v39 = vpop.f32.mrf.mxu0  ;;  %v281_v40 = vpop.f32.mrf.mxu1 }
  0xee   :  { %v250_v41 = vadd.f32 %v324_v26, %v249_v39  ;;  %v282_v42 = vadd.f32 %v324_v26, %v281_v40 }
  0xef   :  { %v251_v43 = vpop.f32.mrf.mxu0  ;;  %v283_v44 = vpop.f32.mrf.mxu1 }
  0xf0   :  { %306 = vst [vmem:[%s568_s3 + $0x10] sm:$0xff] %v250_v41  ;;  %314 = vst [vmem:[%s568_s3 + $0x50] sm:$0xff] %v282_v42 }
  0xf1   :  { %v252_v45 = vpop.f32.mrf.mxu0  ;;  %v284_v46 = vpop.f32.mrf.mxu1 }
  0xf2   :  { %v253_v47 = vadd.f32 %v324_v26, %v252_v45  ;;  %v285_v48 = vadd.f32 %v324_v26, %v284_v46 }
  0xf3   :  { %v254_v49 = vpop.f32.mrf.mxu0  ;;  %v286_v50 = vpop.f32.mrf.mxu1 }
  0xf4   :  { %307 = vst [vmem:[%s568_s3 + $0x18] sm:$0xff] %v253_v47  ;;  %315 = vst [vmem:[%s568_s3 + $0x58] sm:$0xff] %v285_v48 }
  0xf5   :  { %v257_v51 = vpop.f32.mrf.mxu0  ;;  %v289_v52 = vpop.f32.mrf.mxu1 }
  0xf6   :  { %v258_v53 = vadd.f32 %v324_v26, %v257_v51  ;;  %v290_v54 = vadd.f32 %v324_v26, %v289_v52 }
  0xf7   :  { %v259_v55 = vpop.f32.mrf.mxu0  ;;  %v291_v56 = vpop.f32.mrf.mxu1 }
  0xf8   :  { %308 = vst [vmem:[%s568_s3 + $0x20] sm:$0xff] %v258_v53  ;;  %316 = vst [vmem:[%s568_s3 + $0x60] sm:$0xff] %v290_v54 }
  0xf9   :  { %v260_v57 = vpop.f32.mrf.mxu0  ;;  %v292_v58 = vpop.f32.mrf.mxu1 }
  0xfa   :  { %v261_v59 = vadd.f32 %v324_v26, %v260_v57  ;;  %v293_v60 = vadd.f32 %v324_v26, %v292_v58 }
  0xfb   :  { %v262_v61 = vpop.f32.mrf.mxu0  ;;  %v294_v62 = vpop.f32.mrf.mxu1 }
  0xfc   :  { %309 = vst [vmem:[%s568_s3 + $0x28] sm:$0xff] %v261_v59  ;;  %317 = vst [vmem:[%s568_s3 + $0x68] sm:$0xff] %v293_v60 }
  0xfd   :  { %v265_v63 = vpop.f32.mrf.mxu0  ;;  %v297_v0 = vpop.f32.mrf.mxu1 }
  0xfe   :  { %v266_v1 = vadd.f32 %v324_v26, %v265_v63  ;;  %v298_v2 = vadd.f32 %v324_v26, %v297_v0 }
  0xff   :  { %v267_v3 = vpop.f32.mrf.mxu0  ;;  %v299_v4 = vpop.f32.mrf.mxu1 }
 0x100   :  { %310 = vst [vmem:[%s568_s3 + $0x30] sm:$0xff] %v266_v1  ;;  %318 = vst [vmem:[%s568_s3 + $0x70] sm:$0xff] %v298_v2 }
 0x101   :  { %v268_v5 = vpop.f32.mrf.mxu0  ;;  %v300_v6 = vpop.f32.mrf.mxu1 }
 0x102   :  { %v269_v7 = vadd.f32 %v324_v26, %v268_v5  ;;  %v301_v8 = vadd.f32 %v324_v26, %v300_v6 }
 0x103   :  { %v270_v9 = vpop.f32.mrf.mxu0  ;;  %v302_v10 = vpop.f32.mrf.mxu1 }
 0x104   :  { %311 = vst [vmem:[%s568_s3 + $0x38] sm:$0xff] %v269_v7  ;;  %319 = vst [vmem:[%s568_s3 + $0x78] sm:$0xff] %v301_v8 }

// kernel: generate_a_forward.26
= control target key start
LH: loop header
LB: loop body
LE: loop exit
PB: predicated region body
PF: predicated region fallthrough
CT: control target
= control target key end

     0   :  { %v230_v0 = vmov 0   ;;  %vm116_vm0 = vcmask 130048   ;;  %s305_s1 = inlined_call_operand.vmem [shape: bf16[144,128], index: 1, kind: input, shape index: {}]   ;;  %s306_s0 = inlined_call_operand.vmem [shape: bf16[32,144], index: 0, kind: input, shape index: {}]   ;;  %s307_s2 = inlined_call_operand.vmem [shape: f32[1,128], index: 2, kind: input, shape index: {}]   ;;  %s308_s3 = inlined_call_operand.vmem [shape: f32[32,128], index: 3, kind: output, shape index: {}]  }
   0x1   :  { %123 = vmatprep.subr.bf16.mxu0 %v230_v0  ;;  %196 = vmatprep.subr.bf16.mxu1 %v230_v0  ;;  %v215_v1 = vld [vmem:[%s305_s1 + $0x38] sm:$0xff]   ;;  %v216_v2 = vld [vmem:[%s305_s1 + $0x30] sm:$0xff]   ;;  %v217_v3 = vld [vmem:[%s305_s1 + $0x28] sm:$0xff]  }
   0x2   :  { %124 = vmatpush1.bf16.msra.mxu0 %v215_v1  ;;  %205 = vmatpush1.bf16.msra.mxu1 %v215_v1  ;;  %v218_v4 = vld [vmem:[%s305_s1 + $0x20] sm:$0xff]   ;;  %v229_v6 = vld [vmem:[%s306_s0 + $0x14] ss:$8 sps:$4 sm:$0xff]   ;;  %v221_v9 = vld [vmem:[%s305_s1 + $0x8] sm:$0xff]  }
   0x3   :  { %125 = vmatprep.subr.bf16.mxu0 %v230_v0  ;;  %197 = vmatprep.subr.bf16.mxu1 %v230_v0  ;;  %v226_v5 = vld [vmem:[%s306_s0 + $0x4] ss:$8 sps:$4 sm:$0xff]   ;;  %v219_v7 = vld [vmem:[%s305_s1 + $0x18] sm:$0xff]   ;;  %v220_v8 = vld [vmem:[%s305_s1 + $0x10] sm:$0xff]  }
   0x4   :  { %194 = vmatprep.mubr.msk.bf16.mxu0 %vm116_vm0, %v226_v5  ;;  %195 = vmatprep.mubr.msk.bf16.mxu1 %vm116_vm0, %v229_v6  ;;  %v222_v10 = vld [vmem:[%s305_s1] sm:$0xff]   ;;  %v227_v13 = vld [vmem:[%s306_s0 + $0x10] ss:$8 sps:$4 sm:$0xff]  }
   0x5   :  { %v223_v11 = vld [vmem:[%s305_s1 + $0x40] sm:$0xff]  }
   0x6   :  { %126 = vmatpush1.bf16.msra.mxu0 %v216_v2  ;;  %206 = vmatpush1.bf16.msra.mxu1 %v216_v2  ;;  %v224_v12 = vld [vmem:[%s306_s0] ss:$8 sps:$4 sm:$0xff]  }
   0x7   :  { %127 = vmatprep.subr.bf16.mxu0 %v230_v0  ;;  %198 = vmatprep.subr.bf16.mxu1 %v230_v0  ;;  %v180_v14 = vld [vmem:[%s307_s2] ss:$0 sm:$0xff] }
   0xa   :  { %128 = vmatpush1.bf16.msra.mxu0 %v217_v3  ;;  %207 = vmatpush1.bf16.msra.mxu1 %v217_v3 }
   0xb   :  { %129 = vmatprep.subr.bf16.mxu0 %v230_v0  ;;  %199 = vmatprep.subr.bf16.mxu1 %v230_v0 }
   0xe   :  { %130 = vmatpush1.bf16.msra.mxu0 %v218_v4  ;;  %208 = vmatpush1.bf16.msra.mxu1 %v218_v4 }
   0xf   :  { %131 = vmatprep.subr.bf16.mxu0 %v230_v0  ;;  %200 = vmatprep.subr.bf16.mxu1 %v230_v0 }
  0x12   :  { %132 = vmatpush1.bf16.msra.mxu0 %v219_v7  ;;  %209 = vmatpush1.bf16.msra.mxu1 %v219_v7 }
  0x13   :  { %133 = vmatprep.subr.bf16.mxu0 %v230_v0  ;;  %201 = vmatprep.subr.bf16.mxu1 %v230_v0 }
  0x16   :  { %134 = vmatpush1.bf16.msra.mxu0 %v220_v8  ;;  %210 = vmatpush1.bf16.msra.mxu1 %v220_v8 }
  0x17   :  { %135 = vmatprep.subr.bf16.mxu0 %v230_v0  ;;  %202 = vmatprep.subr.bf16.mxu1 %v230_v0 }
  0x1a   :  { %136 = vmatpush1.bf16.msra.mxu0 %v221_v9  ;;  %211 = vmatpush1.bf16.msra.mxu1 %v221_v9 }
  0x1b   :  { %137 = vmatprep.subr.bf16.mxu0 %v230_v0  ;;  %203 = vmatprep.subr.bf16.mxu1 %v230_v0 }
  0x1e   :  { %138 = vmatpush1.bf16.msra.mxu0 %v222_v10  ;;  %212 = vmatpush1.bf16.msra.mxu1 %v222_v10 }
  0x1f   :  { %153 = vmatprep.subr.bf16.mxu0 %v230_v0  ;;  %204 = vmatprep.subr.bf16.mxu1 %v230_v0 }
  0x22   :  { %154 = vmatpush2.bf16.msra.mxu0 %v223_v11  ;;  %213 = vmatpush2.bf16.msra.mxu1 %v223_v11 }
  0x25   :  { %156 = vmatmul.mubr.bf16.vlgmr.msra.gmra.mxu0 %v224_v12  ;;  %164 = vmatmul.mubr.bf16.vlgmr.msra.gmra.mxu1 %v227_v13 }
  0xe5   :  { %v157_v15 = vpop.f32.mrf.mxu0  ;;  %v165_v16 = vpop.f32.mrf.mxu1 }
  0xe6   :  { %v158_v17 = vadd.f32 %v180_v14, %v157_v15  ;;  %v166_v18 = vadd.f32 %v180_v14, %v165_v16 }
  0xe7   :  { %v159_v19 = vpop.f32.mrf.mxu0  ;;  %v167_v20 = vpop.f32.mrf.mxu1 }
  0xe8   :  { %172 = vst [vmem:[%s308_s3] sm:$0xff] %v158_v17  ;;  %174 = vst [vmem:[%s308_s3 + $0x10] sm:$0xff] %v166_v18 }
  0xe9   :  { %v160_v21 = vpop.f32.mrf.mxu0  ;;  %v168_v22 = vpop.f32.mrf.mxu1 }
  0xea   :  { %v161_v23 = vadd.f32 %v180_v14, %v160_v21  ;;  %v169_v24 = vadd.f32 %v180_v14, %v168_v22 }
  0xeb   :  { %v162_v25 = vpop.f32.mrf.mxu0  ;;  %v170_v26 = vpop.f32.mrf.mxu1 }
  0xec   :  { %173 = vst [vmem:[%s308_s3 + $0x8] sm:$0xff] %v161_v23  ;;  %175 = vst [vmem:[%s308_s3 + $0x18] sm:$0xff] %v169_v24 }

// kernel: generate_a_forward.21
= control target key start
LH: loop header
LB: loop body
LE: loop exit
PB: predicated region body
PF: predicated region fallthrough
CT: control target
= control target key end

     0   :  { %s1618_s12 = smov 0   ;;  %s1620_s13 = smov 0   ;;  %s1882_s0 = inlined_call_operand.vmem [shape: bf16[512,288], index: 0, kind: input, shape index: {}]   ;;  %s1883_s1 = inlined_call_operand.vmem [shape: bf16[288,128], index: 1, kind: input, shape index: {}]   ;;  %s1884_s2 = inlined_call_operand.vmem [shape: f32[1,128], index: 2, kind: input, shape index: {}]   ;;  %s1885_s3 = inlined_call_operand.vmem [shape: f32[512,128], index: 3, kind: output, shape index: {}]  }
   0x1   :  { %s1622_s14 = smov 0  }
   0x2 LB: > { %s25_s15 = sadd.s32 1, %s1592_s13  ;;  %p1195_p0 = scmp.ge.s32.totalorder %s1596_s14, 1  ;;  %s1596_s14 = sphi %s1622_s14, %s13_s14   ;;  %s1592_s13 = sphi %s1620_s13, %s1887_s13   ;;  %s1588_s12 = sphi %s1618_s12, %s1886_s12  }
   0x3   : > { %p27_p1 = scmp.ge.s32.totalorder %s25_s15, 2  ;;  %p170_p2 = scmp.lt.s32.totalorder %s1596_s14, 3 }
   0x5   : > { %s1889_s15 = smov (%p27_p1, %s25_s15), 0  ;;  %p171_p3 = pnand %p1195_p0, %p170_p2 }
   0x6   : > { %s1196_s18 = sshll.u32 (!%p171_p3), %s1588_s12, 5 }
   0x7   : > { %174 = sbr.rel (%p171_p3) target bundleno = 339 (0x153), region = 32  ;;  %p206_p4 = scmp.lt.s32.totalorder (!%p171_p3), %s1196_s18, 63 }
   0xc   : > { %v1492_v0 = vld [vmem:[%s1883_s1 + $0x78] sm:$0xff]   ;;  %v1494_v2 = vld [vmem:[%s1883_s1 + $0x70] sm:$0xff]   ;;  %v1496_v4 = vld [vmem:[%s1883_s1 + $0x68] sm:$0xff]   ;;  %s1891_s18 = smov (!%p206_p4, %s1196_s18), 63  ;;  %vm684_vm0 = vcmask 261120  }
   0xd   : > { %v1493_v1 = vld [vmem:[%s1883_s1 + $0x38] sm:$0xff]   ;;  %1285 = vmatprep.subr.bf16.mxu0 %v1492_v0  ;;  %1451 = vmatprep.subr.bf16.mxu1 %v1492_v0  ;;  %v1495_v3 = vld [vmem:[%s1883_s1 + $0x30] sm:$0xff]   ;;  %v1497_v5 = vld [vmem:[%s1883_s1 + $0x28] sm:$0xff]   ;;  %s1467_s4 = smul.u32 12, %s1891_s18  ;;  %s1199_s7 = sshll.u32 %s1891_s18, 3 }
   0xe   : > { %1286 = vmatpush3.bf16.msra.mxu0 %v1493_v1  ;;  %1459 = vmatpush3.bf16.msra.mxu1 %v1493_v1  ;;  %v1498_v6 = vld [vmem:[%s1883_s1 + $0x60] sm:$0xff]   ;;  %v1500_v8 = vld [vmem:[%s1883_s1 + $0x58] sm:$0xff]   ;;  %v1502_v10 = vld [vmem:[%s1883_s1 + $0x50] sm:$0xff]   ;;  %s1792_s12 = scalar_lea.vmem %s1885_s3, %s1199_s7 }
   0xf   : > { %1287 = vmatprep.subr.bf16.mxu0 %v1494_v2  ;;  %1452 = vmatprep.subr.bf16.mxu1 %v1494_v2  ;;  %v1499_v7 = vld [vmem:[%s1883_s1 + $0x20] sm:$0xff]   ;;  %s1669_s11 = scalar_lea.vmem %s1882_s0, %s1467_s4  ;;  %v1501_v9 = vld [vmem:[%s1883_s1 + $0x18] sm:$0xff]   ;;  %v1503_v13 = vld [vmem:[%s1883_s1 + $0x10] sm:$0xff]  }
  0x10   : > { %v1510_v11 = vld [vmem:[%s1669_s11 + $0x4] ss:$12 sps:$4 sm:$0xff]   ;;  %v1504_v14 = vld [vmem:[%s1883_s1 + $0x48] sm:$0xff]   ;;  %v1521_v26 = vld [vmem:[%s1669_s11 + $0x34] ss:$12 sps:$4 sm:$0xff]  }
  0x11   : > { %v1513_v12 = vld [vmem:[%s1669_s11 + $0x124] ss:$12 sps:$4 sm:$0xff]   ;;  %765 = vmatprep.mubr.bf16.mxu0 %v1510_v11  ;;  %v1505_v15 = vld [vmem:[%s1883_s1 + $0x8] sm:$0xff]   ;;  %v1523_v27 = vld [vmem:[%s1669_s11 + $0x154] ss:$12 sps:$4 sm:$0xff]  }
  0x12   : > { %1288 = vmatpush3.bf16.msra.mxu0 %v1495_v3  ;;  %1460 = vmatpush3.bf16.msra.mxu1 %v1495_v3  ;;  %v1506_v16 = vld [vmem:[%s1883_s1 + $0x40] sm:$0xff]   ;;  %v1514_v18 = vld [vmem:[%s1883_s1 + $0x88] sm:$0xff]   ;;  %v1525_v28 = vld [vmem:[%s1669_s11 + $0x30] ss:$12 sps:$4 sm:$0xff]  }
  0x13   : > { %1289 = vmatprep.subr.bf16.mxu0 %v1496_v4  ;;  %1453 = vmatprep.subr.bf16.mxu1 %v1496_v4  ;;  %v1507_v17 = vld [vmem:[%s1883_s1] sm:$0xff]   ;;  %v1515_v21 = vld [vmem:[%s1669_s11 + $0x1c] ss:$12 sps:$4 sm:$0xff]   ;;  %v1528_v30 = vld [vmem:[%s1669_s11 + $0x4c] ss:$12 sps:$4 sm:$0xff]  }
  0x14   : > { %861 = vmatprep.mubr.bf16.mxu1 %v1513_v12  ;;  %v1508_v19 = vld [vmem:[%s1669_s11] ss:$12 sps:$4 sm:$0xff]   ;;  %v1517_v22 = vld [vmem:[%s1669_s11 + $0x13c] ss:$12 sps:$4 sm:$0xff]   ;;  %v1519_v24 = vld [vmem:[%s1669_s11 + $0x18] ss:$12 sps:$4 sm:$0xff]  }
  0x15   : > { %v1511_v20 = vld [vmem:[%s1669_s11 + $0x120] ss:$12 sps:$4 sm:$0xff]   ;;  %v1520_v25 = vld [vmem:[%s1669_s11 + $0x138] ss:$12 sps:$4 sm:$0xff]   ;;  %v1526_v29 = vld [vmem:[%s1669_s11 + $0x150] ss:$12 sps:$4 sm:$0xff]  }
  0x16   : > { %1290 = vmatpush3.bf16.msra.mxu0 %v1497_v5  ;;  %1461 = vmatpush3.bf16.msra.mxu1 %v1497_v5  ;;  %v1527_v23 = vld [vmem:[%s1883_s1 + $0x80] sm:$0xff]   ;;  %v1530_v31 = vld [vmem:[%s1669_s11 + $0x16c] ss:$12 sps:$4 sm:$0xff]   ;;  %v1532_v32 = vld [vmem:[%s1669_s11 + $0x48] ss:$12 sps:$4 sm:$0xff]  }
  0x17   : > { %1291 = vmatprep.subr.bf16.mxu0 %v1498_v6  ;;  %1454 = vmatprep.subr.bf16.mxu1 %v1498_v6  ;;  %v1533_v33 = vld [vmem:[%s1669_s11 + $0x168] ss:$12 sps:$4 sm:$0xff]   ;;  %v1534_v34 = vld [vmem:[%s1669_s11 + $0x64] ss:$12 sps:$4 sm:$0xff]   ;;  %v1537_v36 = vld [vmem:[%s1669_s11 + $0x60] ss:$12 sps:$4 sm:$0xff]  }
  0x18   : > { %v1536_v35 = vld [vmem:[%s1669_s11 + $0x8] ss:$12 sps:$4 sm:$0xff]   ;;  %v1538_v37 = vld [vmem:[%s1669_s11 + $0x20] ss:$12 sps:$4 sm:$0xff]   ;;  %v1541_v39 = vld [vmem:[%s1669_s11 + $0x38] ss:$12 sps:$4 sm:$0xff]  }
  0x19   : > { %v1539_v38 = vld [vmem:[%s1669_s11 + $0x7c] ss:$12 sps:$4 sm:$0xff]   ;;  %v1542_v40 = vld [vmem:[%s1669_s11 + $0x78] ss:$12 sps:$4 sm:$0xff]   ;;  %v1544_v42 = vld [vmem:[%s1669_s11 + $0x94] ss:$12 sps:$4 sm:$0xff]  }
  0x1a   : > { %1292 = vmatpush3.bf16.msra.mxu0 %v1499_v7  ;;  %1462 = vmatpush3.bf16.msra.mxu1 %v1499_v7  ;;  %v1543_v41 = vld [vmem:[%s1669_s11 + $0x50] ss:$12 sps:$4 sm:$0xff]   ;;  %v1546_v43 = vld [vmem:[%s1669_s11 + $0x68] ss:$12 sps:$4 sm:$0xff]   ;;  %v1548_v45 = vld [vmem:[%s1669_s11 + $0x80] ss:$12 sps:$4 sm:$0xff]  }
  0x1b   : > { %1293 = vmatprep.subr.bf16.mxu0 %v1500_v8  ;;  %1455 = vmatprep.subr.bf16.mxu1 %v1500_v8  ;;  %v1547_v44 = vld [vmem:[%s1669_s11 + $0x90] ss:$12 sps:$4 sm:$0xff]   ;;  %v1549_v46 = vld [vmem:[%s1669_s11 + $0xac] ss:$12 sps:$4 sm:$0xff]   ;;  %v1552_v48 = vld [vmem:[%s1669_s11 + $0xa8] ss:$12 sps:$4 sm:$0xff]  }
  0x1c   : > { %v1551_v47 = vld [vmem:[%s1669_s11 + $0x98] ss:$12 sps:$4 sm:$0xff]   ;;  %v1553_v49 = vld [vmem:[%s1669_s11 + $0xb0] ss:$12 sps:$4 sm:$0xff]   ;;  %v1556_v51 = vld [vmem:[%s1669_s11 + $0xc8] ss:$12 sps:$4 sm:$0xff]  }
  0x1d   : > { %v1554_v50 = vld [vmem:[%s1669_s11 + $0xc4] ss:$12 sps:$4 sm:$0xff]   ;;  %v1557_v52 = vld [vmem:[%s1669_s11 + $0xc0] ss:$12 sps:$4 sm:$0xff]   ;;  %v1559_v54 = vld [vmem:[%s1669_s11 + $0xdc] ss:$12 sps:$4 sm:$0xff]  }
  0x1e   : > { %1294 = vmatpush3.bf16.msra.mxu0 %v1501_v9  ;;  %1463 = vmatpush3.bf16.msra.mxu1 %v1501_v9  ;;  %v1558_v53 = vld [vmem:[%s1669_s11 + $0xe0] ss:$12 sps:$4 sm:$0xff]   ;;  %v1561_v55 = vld [vmem:[%s1669_s11 + $0xf8] ss:$12 sps:$4 sm:$0xff]   ;;  %v1563_v57 = vld [vmem:[%s1669_s11 + $0x110] ss:$12 sps:$4 sm:$0xff]  }
  0x1f   : > { %1295 = vmatprep.subr.bf16.mxu0 %v1502_v10  ;;  %1456 = vmatprep.subr.bf16.mxu1 %v1502_v10  ;;  %v1562_v56 = vld [vmem:[%s1669_s11 + $0xd8] ss:$12 sps:$4 sm:$0xff]   ;;  %v1564_v58 = vld [vmem:[%s1669_s11 + $0xf4] ss:$12 sps:$4 sm:$0xff]   ;;  %v1567_v60 = vld [vmem:[%s1669_s11 + $0xf0] ss:$12 sps:$4 sm:$0xff]  }
  0x20   : > { %v1566_v59 = vld [vmem:[%s1669_s11 + $0x128] ss:$12 sps:$4 sm:$0xff]   ;;  %v1568_v61 = vld [vmem:[%s1669_s11 + $0x140] ss:$12 sps:$4 sm:$0xff]   ;;  %v1571_v63 = vld [vmem:[%s1669_s11 + $0x158] ss:$12 sps:$4 sm:$0xff]  }
  0x21   : > { %v1569_v62 = vld [vmem:[%s1669_s11 + $0x10c] ss:$12 sps:$4 sm:$0xff]   ;;  %v1572_v0 = vld [vmem:[%s1669_s11 + $0x108] ss:$12 sps:$4 sm:$0xff]   ;;  %v1573_v1 = vld [vmem:[%s1669_s11 + $0x170] ss:$12 sps:$4 sm:$0xff]  }
  0x22   : > { %1296 = vmatpush3.bf16.msra.mxu0 %v1503_v13  ;;  %1464 = vmatpush3.bf16.msra.mxu1 %v1503_v13 }
  0x23   : > { %1297 = vmatprep.subr.bf16.mxu0 %v1504_v14  ;;  %1457 = vmatprep.subr.bf16.mxu1 %v1504_v14 }
  0x26   : > { %1298 = vmatpush3.bf16.msra.mxu0 %v1505_v15  ;;  %1465 = vmatpush3.bf16.msra.mxu1 %v1505_v15 }
  0x27   : > { %1299 = vmatprep.subr.bf16.mxu0 %v1506_v16  ;;  %1458 = vmatprep.subr.bf16.mxu1 %v1506_v16 }
  0x2a   : > { %1300 = vmatpush3.bf16.msra.mxu0 %v1507_v17  ;;  %1466 = vmatpush3.bf16.msra.mxu1 %v1507_v17 }
  0x2b   : > { %1415 = vmatprep.subr.bf16.mxu1 %v1514_v18 }
  0x2d   : > { %766 = vmatmul.mubr.bf16.vlgmr.msra.gmra.mxu0 %v1508_v19  ;;  %862 = vmatmul.mubr.bf16.vlgmr.msra.gmra.mxu1 %v1511_v20 }
  0x2e   : > { %1416 = vmatpush3.bf16.msra.mxu1 %v1514_v18  ;;  %773 = vmatprep.mubr.bf16.mxu0 %v1515_v21 }
  0x2f   : > { %869 = vmatprep.mubr.bf16.mxu1 %v1517_v22  ;;  %1417 = vmatprep.subr.bf16.mxu1 %v1527_v23 }
  0x32   : > { %1418 = vmatpush3.bf16.msra.mxu1 %v1527_v23 }
  0x35   : > { %774 = vmatmul.mubr.bf16.gmra.mxu0 %v1519_v24  ;;  %870 = vmatmul.mubr.bf16.gmra.mxu1 %v1520_v25 }
  0x36   : > { %781 = vmatprep.mubr.bf16.mxu0 %v1521_v26  ;;  %877 = vmatprep.mubr.bf16.mxu1 %v1523_v27 }
  0x3d   : > { %782 = vmatmul.mubr.bf16.gmra.mxu0 %v1525_v28  ;;  %878 = vmatmul.mubr.bf16.gmra.mxu1 %v1526_v29 }
  0x3e   : > { %789 = vmatprep.mubr.bf16.mxu0 %v1528_v30  ;;  %885 = vmatprep.mubr.bf16.mxu1 %v1530_v31 }
  0x45   : > { %790 = vmatmul.mubr.bf16.gmra.mxu0 %v1532_v32  ;;  %886 = vmatmul.mubr.bf16.gmra.mxu1 %v1533_v33 }
  0x46   : > { %797 = vmatprep.mubr.bf16.mxu0 %v1534_v34  ;;  %1419 = vmatprep.mubr.msk.bf16.mxu1 %vm684_vm0, %v1536_v35 }
  0x4d   : > { %798 = vmatmul.mubr.bf16.gmra.mxu0 %v1537_v36  ;;  %1420 = vmatmul.mubr.msk.bf16.vlgmr.msra.gmra.mxu1 %vm684_vm0, %v1538_v37 }
  0x4e   : > { %805 = vmatprep.mubr.bf16.mxu0 %v1539_v38  ;;  %1423 = vmatprep.mubr.msk.bf16.mxu1 %vm684_vm0, %v1541_v39 }
  0x55   : > { %806 = vmatmul.mubr.bf16.gmra.mxu0 %v1542_v40  ;;  %1424 = vmatmul.mubr.msk.bf16.gmra.mxu1 %vm684_vm0, %v1543_v41 }
  0x56   : > { %813 = vmatprep.mubr.bf16.mxu0 %v1544_v42  ;;  %1427 = vmatprep.mubr.msk.bf16.mxu1 %vm684_vm0, %v1546_v43  ;;  %v1786_v42 = vld [vmem:[%s1884_s2] ss:$0 sm:$0xff] }
  0x5d   : > { %814 = vmatmul.mubr.bf16.gmra.mxu0 %v1547_v44  ;;  %1428 = vmatmul.mubr.msk.bf16.gmra.mxu1 %vm684_vm0, %v1548_v45 }
  0x5e   : > { %821 = vmatprep.mubr.bf16.mxu0 %v1549_v46  ;;  %1431 = vmatprep.mubr.msk.bf16.mxu1 %vm684_vm0, %v1551_v47 }
  0x65   : > { %822 = vmatmul.mubr.bf16.gmra.mxu0 %v1552_v48  ;;  %1432 = vmatmul.mubr.msk.bf16.gmra.mxu1 %vm684_vm0, %v1553_v49 }
  0x66   : > { %829 = vmatprep.mubr.bf16.mxu0 %v1554_v50  ;;  %1435 = vmatprep.mubr.msk.bf16.mxu1 %vm684_vm0, %v1556_v51 }
  0x6d   : > { %830 = vmatmul.mubr.bf16.gmra.mxu0 %v1557_v52  ;;  %1436 = vmatmul.mubr.msk.bf16.gmra.mxu1 %vm684_vm0, %v1558_v53 }
  0x6e   : > { %837 = vmatprep.mubr.bf16.mxu0 %v1559_v54  ;;  %1439 = vmatprep.mubr.msk.bf16.mxu1 %vm684_vm0, %v1561_v55 }
  0x75   : > { %838 = vmatmul.mubr.bf16.gmra.mxu0 %v1562_v56  ;;  %1440 = vmatmul.mubr.msk.bf16.gmra.mxu1 %vm684_vm0, %v1563_v57 }
  0x76   : > { %845 = vmatprep.mubr.bf16.mxu0 %v1564_v58  ;;  %1443 = vmatprep.mubr.msk.bf16.mxu1 %vm684_vm0, %v1566_v59 }
  0x7d   : > { %846 = vmatmul.mubr.bf16.gmra.mxu0 %v1567_v60  ;;  %1444 = vmatmul.mubr.msk.bf16.gmra.mxu1 %vm684_vm0, %v1568_v61 }
  0x7e   : > { %853 = vmatprep.mubr.bf16.mxu0 %v1569_v62  ;;  %1447 = vmatprep.mubr.msk.bf16.mxu1 %vm684_vm0, %v1571_v63 }
  0x85   : > { %854 = vmatmul.mubr.bf16.gmra.mxu0 %v1572_v0  ;;  %1448 = vmatmul.mubr.msk.bf16.gmra.mxu1 %vm684_vm0, %v1573_v1 }
  0xed   : > { %v1301_v2 = vpop.f32.mrf.mxu0  ;;  %v1373_v3 = vpop.f32.mrf.mxu1 }
  0xef   : > { %v1302_v4 = vpop.f32.mrf.mxu0  ;;  %v1374_v5 = vpop.f32.mrf.mxu1 }
  0xf0   : > { %v1762_v6 = vadd.f32 %v1374_v5, %v1373_v3  ;;  %v1303_v39 = vadd.f32 %v1302_v4, %v1301_v2 }
  0xf1   : > { %v1304_v7 = vpop.f32.mrf.mxu0  ;;  %v1376_v8 = vpop.f32.mrf.mxu1 }
  0xf2   : > { %v768_v49 = vadd.f32 %v1303_v39, %v1786_v42 }
  0xf3   : > { %v1305_v9 = vpop.f32.mrf.mxu0  ;;  %v1377_v10 = vpop.f32.mrf.mxu1 }
  0xf4   : > { %v1764_v11 = vadd.f32 %v1377_v10, %v1376_v8  ;;  %v1306_v47 = vadd.f32 %v1305_v9, %v1304_v7 }
  0xf5   : > { %v1307_v12 = vpop.f32.mrf.mxu0  ;;  %v1379_v13 = vpop.f32.mrf.mxu1 }
  0xf6   : > { %v771_v59 = vadd.f32 %v1306_v47, %v1786_v42 }
  0xf7   : > { %v1308_v14 = vpop.f32.mrf.mxu0  ;;  %v1380_v15 = vpop.f32.mrf.mxu1 }
  0xf8   : > { %v1766_v16 = vadd.f32 %v1380_v15, %v1379_v13  ;;  %v1309_v36 = vadd.f32 %v1308_v14, %v1307_v12 }
  0xf9   : > { %v1310_v17 = vpop.f32.mrf.mxu0  ;;  %v1382_v18 = vpop.f32.mrf.mxu1 }
  0xfa   : > { %v776_v44 = vadd.f32 %v1309_v36, %v1786_v42 }
  0xfb   : > { %v1311_v19 = vpop.f32.mrf.mxu0  ;;  %v1383_v20 = vpop.f32.mrf.mxu1 }
  0xfc   : > { %v1768_v21 = vadd.f32 %v1383_v20, %v1382_v18  ;;  %v1312_v43 = vadd.f32 %v1311_v19, %v1310_v17 }
  0xfd   : > { %v1313_v22 = vpop.f32.mrf.mxu0  ;;  %v1385_v23 = vpop.f32.mrf.mxu1 }
  0xfe   : > { %v779_v54 = vadd.f32 %v1312_v43, %v1786_v42 }
  0xff   : > { %v1314_v24 = vpop.f32.mrf.mxu0  ;;  %v1386_v25 = vpop.f32.mrf.mxu1 }
 0x100   : > { %v1770_v26 = vadd.f32 %v1386_v25, %v1385_v23  ;;  %v1315_v57 = vadd.f32 %v1314_v24, %v1313_v22 }
 0x101   : > { %v1316_v27 = vpop.f32.mrf.mxu0  ;;  %v1388_v28 = vpop.f32.mrf.mxu1 }
 0x102   : > { %v784_v5 = vadd.f32 %v1315_v57, %v1786_v42 }
 0x103   : > { %v1317_v29 = vpop.f32.mrf.mxu0  ;;  %v1389_v30 = vpop.f32.mrf.mxu1 }
 0x104   : > { %v1772_v31 = vadd.f32 %v1389_v30, %v1388_v28  ;;  %v1318_v3 = vadd.f32 %v1317_v29, %v1316_v27 }
 0x105   : > { %v1319_v32 = vpop.f32.mrf.mxu0  ;;  %v1774_v33 = vpop.f32.mrf.mxu1 }
 0x106   : > { %v787_v18 = vadd.f32 %v1318_v3, %v1786_v42 }
 0x107   : > { %v1320_v34 = vpop.f32.mrf.mxu0  ;;  %v1776_v35 = vpop.f32.mrf.mxu1 }
 0x108   : > { %v1321_v52 = vadd.f32 %v1320_v34, %v1319_v32 }
 0x109   : > { %v1322_v37 = vpop.f32.mrf.mxu0  ;;  %v1778_v38 = vpop.f32.mrf.mxu1 }
 0x10a   : > { %v792_v0 = vadd.f32 %v1321_v52, %v1786_v42 }
 0x10b   : > { %v1323_v40 = vpop.f32.mrf.mxu0  ;;  %v1781_v41 = vpop.f32.mrf.mxu1 }
 0x10c   : > { %v1324_v62 = vadd.f32 %v1323_v40, %v1322_v37 }
 0x10d   : > { %v1325_v45 = vpop.f32.mrf.mxu0  ;;  %v1421_v46 = vpop.f32.mrf.mxu1 }
 0x10e   : > { %v937_v48 = vadd.f32 %v1421_v46, %v776_v44  ;;  %v795_v12 = vadd.f32 %v1324_v62, %v1786_v42 }
 0x10f   : > { %v1326_v50 = vpop.f32.mrf.mxu0  ;;  %v928_v51 = vpop.f32.mrf.mxu1 }
 0x110   : > { %1057 = vst [vmem:[%s1792_s12 + $0x10] sm:$0xff] %v937_v48  ;;  %v929_v53 = vadd.f32 %v928_v51, %v768_v49  ;;  %v1327_v15 = vadd.f32 %v1326_v50, %v1325_v45 }
 0x111   : > { %v1328_v55 = vpop.f32.mrf.mxu0  ;;  %v1422_v56 = vpop.f32.mrf.mxu1 }
 0x112   : > { %1055 = vst [vmem:[%s1792_s12] sm:$0xff] %v929_v53  ;;  %v940_v58 = vadd.f32 %v1422_v56, %v779_v54  ;;  %v800_v30 = vadd.f32 %v1327_v15, %v1786_v42 }
 0x113   : > { %v1329_v60 = vpop.f32.mrf.mxu0  ;;  %v931_v61 = vpop.f32.mrf.mxu1 }
 0x114   : > { %1058 = vst [vmem:[%s1792_s12 + $0x18] sm:$0xff] %v940_v58  ;;  %v932_v63 = vadd.f32 %v931_v61, %v771_v59  ;;  %v1330_v28 = vadd.f32 %v1329_v60, %v1328_v55 }
 0x115   : > { %v1331_v1 = vpop.f32.mrf.mxu0  ;;  %v1425_v2 = vpop.f32.mrf.mxu1 }
 0x116   : > { %1056 = vst [vmem:[%s1792_s12 + $0x8] sm:$0xff] %v932_v63  ;;  %v953_v4 = vadd.f32 %v1425_v2, %v792_v0  ;;  %v803_v45 = vadd.f32 %v1330_v28, %v1786_v42 }
 0x117   : > { %v1332_v7 = vpop.f32.mrf.mxu0  ;;  %v944_v8 = vpop.f32.mrf.mxu1 }
 0x118   : > { %1061 = vst [vmem:[%s1792_s12 + $0x30] sm:$0xff] %v953_v4  ;;  %v1333_v9 = vadd.f32 %v1332_v7, %v1331_v1  ;;  %v945_v10 = vadd.f32 %v944_v8, %v784_v5 }
 0x119   : > { %v1334_v13 = vpop.f32.mrf.mxu0  ;;  %v1426_v14 = vpop.f32.mrf.mxu1 }
 0x11a   : > { %1059 = vst [vmem:[%s1792_s12 + $0x20] sm:$0xff] %v945_v10  ;;  %v956_v17 = vadd.f32 %v1426_v14, %v795_v12  ;;  %v808_v24 = vadd.f32 %v1333_v9, %v1786_v42 }
 0x11b   : > { %v1335_v19 = vpop.f32.mrf.mxu0  ;;  %v947_v20 = vpop.f32.mrf.mxu1 }
 0x11c   : > { %1062 = vst [vmem:[%s1792_s12 + $0x38] sm:$0xff] %v956_v17  ;;  %v1336_v22 = vadd.f32 %v1335_v19, %v1334_v13  ;;  %v948_v23 = vadd.f32 %v947_v20, %v787_v18 }
 0x11d   : > { %v1337_v25 = vpop.f32.mrf.mxu0  ;;  %v1429_v27 = vpop.f32.mrf.mxu1 }
 0x11e   : > { %1060 = vst [vmem:[%s1792_s12 + $0x28] sm:$0xff] %v948_v23  ;;  %v969_v29 = vadd.f32 %v1429_v27, %v808_v24  ;;  %v811_v37 = vadd.f32 %v1336_v22, %v1786_v42 }
 0x11f   : > { %v1338_v32 = vpop.f32.mrf.mxu0  ;;  %v960_v34 = vpop.f32.mrf.mxu1 }
 0x120   : > { %1065 = vst [vmem:[%s1792_s12 + $0x50] sm:$0xff] %v969_v29  ;;  %v961_v36 = vadd.f32 %v960_v34, %v800_v30  ;;  %v1339_v43 = vadd.f32 %v1338_v32, %v1337_v25 }
 0x121   : > { %v1340_v39 = vpop.f32.mrf.mxu0  ;;  %v1430_v40 = vpop.f32.mrf.mxu1 }
 0x122   : > { %1063 = vst [vmem:[%s1792_s12 + $0x40] sm:$0xff] %v961_v36  ;;  %v972_v44 = vadd.f32 %v1430_v40, %v811_v37  ;;  %v816_v52 = vadd.f32 %v1339_v43, %v1786_v42 }
 0x123   : > { %v1341_v46 = vpop.f32.mrf.mxu0  ;;  %v963_v47 = vpop.f32.mrf.mxu1 }
 0x124   : > { %1066 = vst [vmem:[%s1792_s12 + $0x58] sm:$0xff] %v972_v44  ;;  %v964_v48 = vadd.f32 %v963_v47, %v803_v45  ;;  %v1342_v51 = vadd.f32 %v1341_v46, %v1340_v39  ;;  %v872_v39 = vadd.f32 %v1766_v16, %v1786_v42  ;;  %v864_v46 = vadd.f32 %v1762_v6, %v1786_v42 }
 0x125   : > { %v1343_v49 = vpop.f32.mrf.mxu0  ;;  %v1433_v50 = vpop.f32.mrf.mxu1  ;;  %v1393_v47 = vadd.f32 %v1776_v35, %v1774_v33  ;;  %v867_v33 = vadd.f32 %v1764_v11, %v1786_v42 }
 0x126   : > { %1064 = vst [vmem:[%s1792_s12 + $0x48] sm:$0xff] %v964_v48  ;;  %v819_v60 = vadd.f32 %v1342_v51, %v1786_v42 }
 0x127   : > { %v1344_v53 = vpop.f32.mrf.mxu0  ;;  %v976_v54 = vpop.f32.mrf.mxu1 }
 0x128   : > { %v1345_v55 = vadd.f32 %v1344_v53, %v1343_v49  ;;  %v977_v56 = vadd.f32 %v976_v54, %v816_v52  ;;  %v875_v52 = vadd.f32 %v1768_v21, %v1786_v42  ;;  %v1396_v21 = vadd.f32 %v1781_v41, %v1778_v38 }
 0x129   : > { %v1346_v57 = vpop.f32.mrf.mxu0  ;;  %v1434_v58 = vpop.f32.mrf.mxu1 }
 0x12a   : > { %v824_v59 = vadd.f32 %v1345_v55, %v1786_v42  ;;  %1067 = vst [vmem:[%s1792_s12 + $0x60] sm:$0xff] %v977_v56 }
 0x12b   : > { %v1347_v61 = vpop.f32.mrf.mxu0  ;;  %v979_v62 = vpop.f32.mrf.mxu1 }
 0x12c   : > { %v985_v63 = vadd.f32 %v1433_v50, %v824_v59  ;;  %v1348_v0 = vadd.f32 %v1347_v61, %v1346_v57  ;;  %v980_v1 = vadd.f32 %v979_v62, %v819_v60  ;;  %v888_v57 = vadd.f32 %v1393_v47, %v1786_v42 }
 0x12d   : > { %v1349_v2 = vpop.f32.mrf.mxu0  ;;  %v1437_v3 = vpop.f32.mrf.mxu1 }
 0x12e   : > { %1069 = vst [vmem:[%s1792_s12 + $0x70] sm:$0xff] %v985_v63  ;;  %v827_v4 = vadd.f32 %v1348_v0, %v1786_v42  ;;  %1068 = vst [vmem:[%s1792_s12 + $0x68] sm:$0xff] %v980_v1  ;;  %v880_v0 = vadd.f32 %v1770_v26, %v1786_v42  ;;  %v883_v26 = vadd.f32 %v1772_v31, %v1786_v42 }
 0x12f   : > { %v1350_v5 = vpop.f32.mrf.mxu0  ;;  %v992_v7 = vpop.f32.mrf.mxu1 }
 0x130   : > { %v988_v8 = vadd.f32 %v1434_v58, %v827_v4  ;;  %v1351_v9 = vadd.f32 %v1350_v5, %v1349_v2  ;;  %v891_v4 = vadd.f32 %v1396_v21, %v1786_v42 }
 0x131   : > { %v1352_v10 = vpop.f32.mrf.mxu0  ;;  %v1438_v12 = vpop.f32.mrf.mxu1 }
 0x132   : > { %1070 = vst [vmem:[%s1792_s12 + $0x78] sm:$0xff] %v988_v8  ;;  %v832_v13 = vadd.f32 %v1351_v9, %v1786_v42 }
 0x133   : > { %v1353_v14 = vpop.f32.mrf.mxu0  ;;  %v995_v15 = vpop.f32.mrf.mxu1 }
 0x134   : > { %v993_v17 = vadd.f32 %v992_v7, %v832_v13  ;;  %v1354_v18 = vadd.f32 %v1353_v14, %v1352_v10 }
 0x135   : > { %v1355_v19 = vpop.f32.mrf.mxu0  ;;  %v1826_v20 = vpop.f32.mrf.mxu1 }
 0x136   : > { %1071 = vst [vmem:[%s1792_s12 + $0x80] sm:$0xff] %v993_v17  ;;  %v835_v22 = vadd.f32 %v1354_v18, %v1786_v42 }
 0x137   : > { %v1356_v23 = vpop.f32.mrf.mxu0  ;;  %v1008_v24 = vpop.f32.mrf.mxu1 }
 0x138   : > { %v996_v25 = vadd.f32 %v995_v15, %v835_v22  ;;  %v1357_v27 = vadd.f32 %v1356_v23, %v1355_v19 }
 0x139   : > { %v1358_v28 = vpop.f32.mrf.mxu0  ;;  %v1830_v29 = vpop.f32.mrf.mxu1 }
 0x13a   : > { %1072 = vst [vmem:[%s1792_s12 + $0x88] sm:$0xff] %v996_v25  ;;  %v840_v30 = vadd.f32 %v1357_v27, %v1786_v42 }
 0x13b   : > { %v1359_v32 = vpop.f32.mrf.mxu0  ;;  %v1011_v34 = vpop.f32.mrf.mxu1 }
 0x13c   : > { %v1001_v36 = vadd.f32 %v1437_v3, %v840_v30  ;;  %v1360_v37 = vadd.f32 %v1359_v32, %v1358_v28 }
 0x13d   : > { %v1361_v40 = vpop.f32.mrf.mxu0  ;;  %v1445_v43 = vpop.f32.mrf.mxu1 }
 0x13e   : > { %1073 = vst [vmem:[%s1792_s12 + $0x90] sm:$0xff] %v1001_v36  ;;  %v843_v44 = vadd.f32 %v1360_v37, %v1786_v42  ;;  %v1033_v45 = vadd.f32 %v1445_v43, %v872_v39 }
 0x13f   : > { %v1362_v48 = vpop.f32.mrf.mxu0  ;;  %v1024_v49 = vpop.f32.mrf.mxu1 }
 0x140   : > { %v1004_v50 = vadd.f32 %v1438_v12, %v843_v44  ;;  %1081 = vst [vmem:[%s1792_s12 + $0xd0] sm:$0xff] %v1033_v45  ;;  %v1363_v16 = vadd.f32 %v1362_v48, %v1361_v40  ;;  %v1025_v51 = vadd.f32 %v1024_v49, %v864_v46 }
 0x141   : > { %v1364_v53 = vpop.f32.mrf.mxu0  ;;  %v1446_v54 = vpop.f32.mrf.mxu1 }
 0x142   : > { %1074 = vst [vmem:[%s1792_s12 + $0x98] sm:$0xff] %v1004_v50  ;;  %v848_v55 = vadd.f32 %v1363_v16, %v1786_v42  ;;  %1079 = vst [vmem:[%s1792_s12 + $0xc0] sm:$0xff] %v1025_v51  ;;  %v1036_v6 = vadd.f32 %v1446_v54, %v875_v52 }
 0x143   : > { %v1365_v35 = vpop.f32.mrf.mxu0  ;;  %v1027_v56 = vpop.f32.mrf.mxu1 }
 0x144   : > { %v1009_v58 = vadd.f32 %v1008_v24, %v848_v55  ;;  %1082 = vst [vmem:[%s1792_s12 + $0xd8] sm:$0xff] %v1036_v6  ;;  %v1366_v59 = vadd.f32 %v1365_v35, %v1364_v53  ;;  %v1028_v60 = vadd.f32 %v1027_v56, %v867_v33 }
 0x145   : > { %v1367_v61 = vpop.f32.mrf.mxu0  ;;  %v1449_v62 = vpop.f32.mrf.mxu1 }
 0x146   : > { %1075 = vst [vmem:[%s1792_s12 + $0xa0] sm:$0xff] %v1009_v58  ;;  %v851_v63 = vadd.f32 %v1366_v59, %v1786_v42  ;;  %1080 = vst [vmem:[%s1792_s12 + $0xc8] sm:$0xff] %v1028_v60  ;;  %v1049_v11 = vadd.f32 %v1449_v62, %v888_v57 }
 0x147   : > { %v1368_v1 = vpop.f32.mrf.mxu0  ;;  %v1040_v2 = vpop.f32.mrf.mxu1 }
 0x148   : > { %v1012_v38 = vadd.f32 %v1011_v34, %v851_v63  ;;  %1085 = vst [vmem:[%s1792_s12 + $0xf0] sm:$0xff] %v1049_v11  ;;  %v1369_v41 = vadd.f32 %v1368_v1, %v1367_v61  ;;  %v1041_v3 = vadd.f32 %v1040_v2, %v880_v0 }
 0x149   : > { %v1370_v5 = vpop.f32.mrf.mxu0  ;;  %v1450_v7 = vpop.f32.mrf.mxu1 }
 0x14a   : > { %1076 = vst [vmem:[%s1792_s12 + $0xa8] sm:$0xff] %v1012_v38  ;;  %v856_v8 = vadd.f32 %v1369_v41, %v1786_v42  ;;  %1083 = vst [vmem:[%s1792_s12 + $0xe0] sm:$0xff] %v1041_v3  ;;  %v1052_v9 = vadd.f32 %v1450_v7, %v891_v4 }
 0x14b   : > { %v1371_v10 = vpop.f32.mrf.mxu0  ;;  %v1043_v12 = vpop.f32.mrf.mxu1 }
 0x14c   : > { %v1017_v13 = vadd.f32 %v1826_v20, %v856_v8  ;;  %1086 = vst [vmem:[%s1792_s12 + $0xf8] sm:$0xff] %v1052_v9  ;;  %v1372_v14 = vadd.f32 %v1371_v10, %v1370_v5  ;;  %v1044_v15 = vadd.f32 %v1043_v12, %v883_v26 }
 0x14e   : > { %1077 = vst [vmem:[%s1792_s12 + $0xb0] sm:$0xff] %v1017_v13  ;;  %v859_v17 = vadd.f32 %v1372_v14, %v1786_v42  ;;  %1084 = vst [vmem:[%s1792_s12 + $0xe8] sm:$0xff] %v1044_v15 }
 0x150   : > { %v1020_v18 = vadd.f32 %v1830_v29, %v859_v17 }
 0x152   : > { %1078 = vst [vmem:[%s1792_s12 + $0xb8] sm:$0xff] %v1020_v18 }
 0x153 PF: > { %s13_s14 = sadd.s32 1, %s1596_s14   ;;  %s1886_s12 = smov %s1592_s13 }
 0x154   : > { %p10_p5 = scmp.ge.s32.totalorder %s13_s14, 4   ;;  %s1887_s13 = smov %s1889_s15 }
 0x156   :  { %12 = sbr.rel (!%p10_p5) target bundleno = 2 (0x2), region = 68 }

// kernel: generate_a_forward.23
= control target key start
LH: loop header
LB: loop body
LE: loop exit
PB: predicated region body
PF: predicated region fallthrough
CT: control target
= control target key end

     0   :  { %v869_v0 = vmov 0   ;;  %vm422_vm0 = vcmask 392192   ;;  %s1155_s1 = inlined_call_operand.vmem [shape: bf16[432,128], index: 1, kind: input, shape index: {}]   ;;  %s1156_s0 = inlined_call_operand.vmem [shape: bf16[128,432], index: 0, kind: input, shape index: {}]   ;;  %s1157_s2 = inlined_call_operand.vmem [shape: f32[1,128], index: 2, kind: input, shape index: {}]   ;;  %s1158_s3 = inlined_call_operand.vmem [shape: f32[128,128], index: 3, kind: output, shape index: {}]  }
   0x1   :  { %544 = vmatprep.subr.bf16.mxu1 %v869_v0  ;;  %v794_v1 = vld [vmem:[%s1155_s1 + $0x78] sm:$0xff]   ;;  %v797_v4 = vld [vmem:[%s1155_s1 + $0x70] sm:$0xff]   ;;  %v800_v7 = vld [vmem:[%s1155_s1 + $0x68] sm:$0xff]  }
   0x2   :  { %v795_v2 = vld [vmem:[%s1155_s1 + $0xb8] sm:$0xff]   ;;  %729 = vmatprep.subr.bf16.mxu0 %v794_v1  ;;  %v798_v5 = vld [vmem:[%s1155_s1 + $0xb0] sm:$0xff]   ;;  %v801_v8 = vld [vmem:[%s1155_s1 + $0xa8] sm:$0xff]  }
   0x3   :  { %v796_v3 = vld [vmem:[%s1155_s1 + $0x38] sm:$0xff]   ;;  %545 = vmatpush1.bf16.msra.mxu1 %v795_v2  ;;  %v799_v6 = vld [vmem:[%s1155_s1 + $0x30] sm:$0xff]   ;;  %v802_v9 = vld [vmem:[%s1155_s1 + $0x28] sm:$0xff]  }
   0x4   :  { %730 = vmatpush3.bf16.msra.mxu0 %v796_v3  ;;  %546 = vmatprep.subr.bf16.mxu1 %v869_v0  ;;  %v803_v10 = vld [vmem:[%s1155_s1 + $0x60] sm:$0xff]   ;;  %v806_v13 = vld [vmem:[%s1155_s1 + $0x58] sm:$0xff]   ;;  %v809_v16 = vld [vmem:[%s1155_s1 + $0x50] sm:$0xff]  }
   0x5   :  { %731 = vmatprep.subr.bf16.mxu0 %v797_v4  ;;  %v804_v11 = vld [vmem:[%s1155_s1 + $0xa0] sm:$0xff]   ;;  %v807_v14 = vld [vmem:[%s1155_s1 + $0x98] sm:$0xff]   ;;  %v810_v17 = vld [vmem:[%s1155_s1 + $0x90] sm:$0xff]  }
   0x6   :  { %v805_v12 = vld [vmem:[%s1155_s1 + $0x20] sm:$0xff]   ;;  %v808_v15 = vld [vmem:[%s1155_s1 + $0x18] sm:$0xff]   ;;  %v811_v18 = vld [vmem:[%s1155_s1 + $0x10] sm:$0xff]  }
   0x7   :  { %547 = vmatpush1.bf16.msra.mxu1 %v798_v5  ;;  %v812_v19 = vld [vmem:[%s1155_s1 + $0x48] sm:$0xff]   ;;  %v815_v22 = vld [vmem:[%s1155_s1 + $0x40] sm:$0xff]   ;;  %v821_v28 = vld [vmem:[%s1155_s1 + $0xd0] sm:$0xff]  }
   0x8   :  { %732 = vmatpush3.bf16.msra.mxu0 %v799_v6  ;;  %548 = vmatprep.subr.bf16.mxu1 %v869_v0  ;;  %v813_v20 = vld [vmem:[%s1155_s1 + $0x88] sm:$0xff]   ;;  %v820_v23 = vld [vmem:[%s1156_s0 + $0x4] ss:$16 sps:$4 sm:$0xff]   ;;  %v818_v26 = vld [vmem:[%s1156_s0] ss:$16 sps:$4 sm:$0xff]  }
   0x9   :  { %733 = vmatprep.subr.bf16.mxu0 %v800_v7  ;;  %v814_v21 = vld [vmem:[%s1155_s1 + $0x8] sm:$0xff]   ;;  %v816_v24 = vld [vmem:[%s1155_s1 + $0x80] sm:$0xff]   ;;  %479 = vmatprep.mubr.bf16.mxu0 %v820_v23 }
   0xa   :  { %v817_v25 = vld [vmem:[%s1155_s1] sm:$0xff]   ;;  %v829_v27 = vld [vmem:[%s1156_s0 + $0xc] ss:$16 sps:$4 sm:$0xff]   ;;  %v827_v34 = vld [vmem:[%s1156_s0 + $0x8] ss:$16 sps:$4 sm:$0xff]  }
   0xb   :  { %549 = vmatpush1.bf16.msra.mxu1 %v801_v8  ;;  %v823_v29 = vld [vmem:[%s1156_s0 + $0x24] ss:$16 sps:$4 sm:$0xff]   ;;  %721 = vmatprep.mubr.msk.bf16.mxu1 %vm422_vm0, %v829_v27  ;;  %v822_v30 = vld [vmem:[%s1155_s1 + $0xc8] sm:$0xff]   ;;  %v825_v31 = vld [vmem:[%s1156_s0 + $0x20] ss:$16 sps:$4 sm:$0xff]  }
   0xc   :  { %734 = vmatpush3.bf16.msra.mxu0 %v802_v9  ;;  %550 = vmatprep.subr.bf16.mxu1 %v869_v0  ;;  %v826_v32 = vld [vmem:[%s1155_s1 + $0xc0] sm:$0xff]   ;;  %v833_v35 = vld [vmem:[%s1156_s0 + $0x2c] ss:$16 sps:$4 sm:$0xff]   ;;  %v835_v38 = vld [vmem:[%s1156_s0 + $0x28] ss:$16 sps:$4 sm:$0xff]  }
   0xd   :  { %735 = vmatprep.subr.bf16.mxu0 %v803_v10  ;;  %v830_v33 = vld [vmem:[%s1156_s0 + $0x44] ss:$16 sps:$4 sm:$0xff]   ;;  %v832_v36 = vld [vmem:[%s1156_s0 + $0x40] ss:$16 sps:$4 sm:$0xff]   ;;  %v839_v39 = vld [vmem:[%s1156_s0 + $0x4c] ss:$16 sps:$4 sm:$0xff]  }
   0xe   :  { %v836_v37 = vld [vmem:[%s1156_s0 + $0x64] ss:$16 sps:$4 sm:$0xff]   ;;  %v838_v40 = vld [vmem:[%s1156_s0 + $0x60] ss:$16 sps:$4 sm:$0xff]   ;;  %v841_v42 = vld [vmem:[%s1156_s0 + $0x48] ss:$16 sps:$4 sm:$0xff]  }
   0xf   :  { %551 = vmatpush1.bf16.msra.mxu1 %v804_v11  ;;  %v842_v41 = vld [vmem:[%s1156_s0 + $0x84] ss:$16 sps:$4 sm:$0xff]   ;;  %v845_v43 = vld [vmem:[%s1156_s0 + $0x6c] ss:$16 sps:$4 sm:$0xff]   ;;  %v844_v44 = vld [vmem:[%s1156_s0 + $0x80] ss:$16 sps:$4 sm:$0xff]  }
  0x10   :  { %736 = vmatpush3.bf16.msra.mxu0 %v805_v12  ;;  %552 = vmatprep.subr.bf16.mxu1 %v869_v0  ;;  %v848_v45 = vld [vmem:[%s1156_s0 + $0xa4] ss:$16 sps:$4 sm:$0xff]   ;;  %v847_v46 = vld [vmem:[%s1156_s0 + $0x68] ss:$16 sps:$4 sm:$0xff]   ;;  %v851_v47 = vld [vmem:[%s1156_s0 + $0x8c] ss:$16 sps:$4 sm:$0xff]  }
  0x11   :  { %737 = vmatprep.subr.bf16.mxu0 %v806_v13  ;;  %v850_v48 = vld [vmem:[%s1156_s0 + $0xa0] ss:$16 sps:$4 sm:$0xff]   ;;  %v854_v49 = vld [vmem:[%s1156_s0 + $0xc4] ss:$16 sps:$4 sm:$0xff]   ;;  %v853_v50 = vld [vmem:[%s1156_s0 + $0x88] ss:$16 sps:$4 sm:$0xff]  }
  0x12   :  { %v857_v51 = vld [vmem:[%s1156_s0 + $0xac] ss:$16 sps:$4 sm:$0xff]   ;;  %v856_v52 = vld [vmem:[%s1156_s0 + $0xc0] ss:$16 sps:$4 sm:$0xff]   ;;  %v860_v53 = vld [vmem:[%s1156_s0 + $0xe4] ss:$16 sps:$4 sm:$0xff]  }
  0x13   :  { %553 = vmatpush1.bf16.msra.mxu1 %v807_v14  ;;  %v859_v54 = vld [vmem:[%s1156_s0 + $0xa8] ss:$16 sps:$4 sm:$0xff]   ;;  %v863_v55 = vld [vmem:[%s1156_s0 + $0xcc] ss:$16 sps:$4 sm:$0xff]   ;;  %v862_v56 = vld [vmem:[%s1156_s0 + $0xe0] ss:$16 sps:$4 sm:$0xff]  }
  0x14   :  { %738 = vmatpush3.bf16.msra.mxu0 %v808_v15  ;;  %554 = vmatprep.subr.bf16.mxu1 %v869_v0  ;;  %v865_v57 = vld [vmem:[%s1156_s0 + $0xc8] ss:$16 sps:$4 sm:$0xff]   ;;  %v866_v58 = vld [vmem:[%s1156_s0 + $0xec] ss:$16 sps:$4 sm:$0xff]   ;;  %v1089_v1 = vld [vmem:[%s1157_s2] ss:$0 sm:$0xff] }
  0x15   :  { %739 = vmatprep.subr.bf16.mxu0 %v809_v16  ;;  %v868_v59 = vld [vmem:[%s1156_s0 + $0xe8] ss:$16 sps:$4 sm:$0xff]  }
  0x17   :  { %555 = vmatpush1.bf16.msra.mxu1 %v810_v17 }
  0x18   :  { %740 = vmatpush3.bf16.msra.mxu0 %v811_v18  ;;  %556 = vmatprep.subr.bf16.mxu1 %v869_v0 }
  0x19   :  { %741 = vmatprep.subr.bf16.mxu0 %v812_v19 }
  0x1b   :  { %557 = vmatpush1.bf16.msra.mxu1 %v813_v20 }
  0x1c   :  { %742 = vmatpush3.bf16.msra.mxu0 %v814_v21  ;;  %558 = vmatprep.subr.bf16.mxu1 %v869_v0 }
  0x1d   :  { %743 = vmatprep.subr.bf16.mxu0 %v815_v22 }
  0x1f   :  { %559 = vmatpush1.bf16.msra.mxu1 %v816_v24 }
  0x20   :  { %744 = vmatpush3.bf16.msra.mxu0 %v817_v25  ;;  %570 = vmatprep.subr.bf16.mxu1 %v869_v0 }
  0x23   :  { %480 = vmatmul.mubr.bf16.vlgmr.msra.gmra.mxu0 %v818_v26  ;;  %571 = vmatpush2.bf16.msra.mxu1 %v821_v28 }
  0x24   :  { %572 = vmatprep.subr.bf16.mxu1 %v869_v0  ;;  %487 = vmatprep.mubr.bf16.mxu0 %v823_v29 }
  0x27   :  { %573 = vmatpush2.bf16.msra.mxu1 %v822_v30 }
  0x28   :  { %574 = vmatprep.subr.bf16.mxu1 %v869_v0 }
  0x2b   :  { %488 = vmatmul.mubr.bf16.gmra.mxu0 %v825_v31  ;;  %575 = vmatpush2.bf16.msra.mxu1 %v826_v32 }
  0x2c   :  { %495 = vmatprep.mubr.bf16.mxu0 %v830_v33 }
  0x2e   :  { %577 = vmatmul.mubr.bf16.vlgmr.msra.gmra.mxu1 %v827_v34 }
  0x2f   :  { %722 = vmatprep.mubr.msk.bf16.mxu1 %vm422_vm0, %v833_v35 }
  0x33   :  { %496 = vmatmul.mubr.bf16.gmra.mxu0 %v832_v36 }
  0x34   :  { %503 = vmatprep.mubr.bf16.mxu0 %v836_v37 }
  0x36   :  { %585 = vmatmul.mubr.bf16.gmra.mxu1 %v835_v38 }
  0x37   :  { %723 = vmatprep.mubr.msk.bf16.mxu1 %vm422_vm0, %v839_v39 }
  0x3b   :  { %504 = vmatmul.mubr.bf16.gmra.mxu0 %v838_v40 }
  0x3c   :  { %511 = vmatprep.mubr.bf16.mxu0 %v842_v41 }
  0x3e   :  { %593 = vmatmul.mubr.bf16.gmra.mxu1 %v841_v42 }
  0x3f   :  { %724 = vmatprep.mubr.msk.bf16.mxu1 %vm422_vm0, %v845_v43 }
  0x43   :  { %512 = vmatmul.mubr.bf16.gmra.mxu0 %v844_v44 }
  0x44   :  { %519 = vmatprep.mubr.bf16.mxu0 %v848_v45 }
  0x46   :  { %601 = vmatmul.mubr.bf16.gmra.mxu1 %v847_v46 }
  0x47   :  { %725 = vmatprep.mubr.msk.bf16.mxu1 %vm422_vm0, %v851_v47 }
  0x4b   :  { %520 = vmatmul.mubr.bf16.gmra.mxu0 %v850_v48 }
  0x4c   :  { %527 = vmatprep.mubr.bf16.mxu0 %v854_v49 }
  0x4e   :  { %609 = vmatmul.mubr.bf16.gmra.mxu1 %v853_v50 }
  0x4f   :  { %726 = vmatprep.mubr.msk.bf16.mxu1 %vm422_vm0, %v857_v51 }
  0x53   :  { %528 = vmatmul.mubr.bf16.gmra.mxu0 %v856_v52 }
  0x54   :  { %535 = vmatprep.mubr.bf16.mxu0 %v860_v53 }
  0x56   :  { %617 = vmatmul.mubr.bf16.gmra.mxu1 %v859_v54 }
  0x57   :  { %727 = vmatprep.mubr.msk.bf16.mxu1 %vm422_vm0, %v863_v55 }
  0x5b   :  { %536 = vmatmul.mubr.bf16.gmra.mxu0 %v862_v56 }
  0x5e   :  { %625 = vmatmul.mubr.bf16.gmra.mxu1 %v865_v57 }
  0x5f   :  { %728 = vmatprep.mubr.msk.bf16.mxu1 %vm422_vm0, %v866_v58 }
  0x66   :  { %633 = vmatmul.mubr.bf16.gmra.mxu1 %v868_v59 }
  0xe3   :  { %v745_v60 = vpop.f32.mrf.mxu0 }
  0xe5   :  { %v746_v61 = vpop.f32.mrf.mxu0 }
  0xe6   :  { %v747_v63 = vadd.f32 %v746_v61, %v745_v60 }
  0xe7   :  { %v748_v62 = vpop.f32.mrf.mxu0 }
  0xe8   :  { %v482_v5 = vadd.f32 %v747_v63, %v1089_v1 }
  0xe9   :  { %v749_v0 = vpop.f32.mrf.mxu0 }
  0xea   :  { %v750_v3 = vadd.f32 %v749_v0, %v748_v62 }
  0xeb   :  { %v751_v2 = vpop.f32.mrf.mxu0 }
  0xec   :  { %v485_v12 = vadd.f32 %v750_v3, %v1089_v1 }
  0xed   :  { %v752_v4 = vpop.f32.mrf.mxu0 }
  0xee   :  { %v578_v6 = vpop.f32.mrf.mxu1  ;;  %v753_v10 = vadd.f32 %v752_v4, %v751_v2 }
  0xef   :  { %v579_v7 = vadd.f32 %v578_v6, %v482_v5  ;;  %v754_v8 = vpop.f32.mrf.mxu0 }
  0xf0   :  { %v580_v9 = vpop.f32.mrf.mxu1  ;;  %v490_v19 = vadd.f32 %v753_v10, %v1089_v1 }
  0xf1   :  { %641 = vst [vmem:[%s1158_s3] sm:$0xff] %v579_v7  ;;  %v755_v11 = vpop.f32.mrf.mxu0 }
  0xf2   :  { %v581_v13 = vpop.f32.mrf.mxu1  ;;  %v756_v17 = vadd.f32 %v755_v11, %v754_v8 }
  0xf3   :  { %v582_v14 = vadd.f32 %v581_v13, %v485_v12  ;;  %v757_v15 = vpop.f32.mrf.mxu0 }
  0xf4   :  { %v583_v16 = vpop.f32.mrf.mxu1  ;;  %v493_v26 = vadd.f32 %v756_v17, %v1089_v1 }
  0xf5   :  { %642 = vst [vmem:[%s1158_s3 + $0x8] sm:$0xff] %v582_v14  ;;  %v758_v18 = vpop.f32.mrf.mxu0 }
  0xf6   :  { %v586_v20 = vpop.f32.mrf.mxu1  ;;  %v759_v24 = vadd.f32 %v758_v18, %v757_v15 }
  0xf7   :  { %v587_v21 = vadd.f32 %v586_v20, %v490_v19  ;;  %v760_v22 = vpop.f32.mrf.mxu0 }
  0xf8   :  { %v588_v23 = vpop.f32.mrf.mxu1  ;;  %v498_v33 = vadd.f32 %v759_v24, %v1089_v1 }
  0xf9   :  { %643 = vst [vmem:[%s1158_s3 + $0x10] sm:$0xff] %v587_v21  ;;  %v761_v25 = vpop.f32.mrf.mxu0 }
  0xfa   :  { %v589_v27 = vpop.f32.mrf.mxu1  ;;  %v762_v31 = vadd.f32 %v761_v25, %v760_v22 }
  0xfb   :  { %v590_v28 = vadd.f32 %v589_v27, %v493_v26  ;;  %v763_v29 = vpop.f32.mrf.mxu0 }
  0xfc   :  { %v591_v30 = vpop.f32.mrf.mxu1  ;;  %v501_v40 = vadd.f32 %v762_v31, %v1089_v1 }
  0xfd   :  { %644 = vst [vmem:[%s1158_s3 + $0x18] sm:$0xff] %v590_v28  ;;  %v764_v32 = vpop.f32.mrf.mxu0 }
  0xfe   :  { %v594_v34 = vpop.f32.mrf.mxu1  ;;  %v765_v38 = vadd.f32 %v764_v32, %v763_v29 }
  0xff   :  { %v595_v35 = vadd.f32 %v594_v34, %v498_v33  ;;  %v766_v36 = vpop.f32.mrf.mxu0 }
 0x100   :  { %v596_v37 = vpop.f32.mrf.mxu1  ;;  %v506_v47 = vadd.f32 %v765_v38, %v1089_v1 }
 0x101   :  { %645 = vst [vmem:[%s1158_s3 + $0x20] sm:$0xff] %v595_v35  ;;  %v767_v39 = vpop.f32.mrf.mxu0 }
 0x102   :  { %v597_v41 = vpop.f32.mrf.mxu1  ;;  %v768_v45 = vadd.f32 %v767_v39, %v766_v36 }
 0x103   :  { %v598_v42 = vadd.f32 %v597_v41, %v501_v40  ;;  %v769_v43 = vpop.f32.mrf.mxu0 }
 0x104   :  { %v599_v44 = vpop.f32.mrf.mxu1  ;;  %v509_v54 = vadd.f32 %v768_v45, %v1089_v1 }
 0x105   :  { %646 = vst [vmem:[%s1158_s3 + $0x28] sm:$0xff] %v598_v42  ;;  %v770_v46 = vpop.f32.mrf.mxu0 }
 0x106   :  { %v602_v48 = vpop.f32.mrf.mxu1  ;;  %v771_v52 = vadd.f32 %v770_v46, %v769_v43 }
 0x107   :  { %v603_v49 = vadd.f32 %v602_v48, %v506_v47  ;;  %v772_v50 = vpop.f32.mrf.mxu0 }
 0x108   :  { %v604_v51 = vpop.f32.mrf.mxu1  ;;  %v514_v61 = vadd.f32 %v771_v52, %v1089_v1 }
 0x109   :  { %647 = vst [vmem:[%s1158_s3 + $0x30] sm:$0xff] %v603_v49  ;;  %v773_v53 = vpop.f32.mrf.mxu0 }
 0x10a   :  { %v605_v55 = vpop.f32.mrf.mxu1  ;;  %v774_v59 = vadd.f32 %v773_v53, %v772_v50 }
 0x10b   :  { %v606_v56 = vadd.f32 %v605_v55, %v509_v54  ;;  %v775_v57 = vpop.f32.mrf.mxu0 }
 0x10c   :  { %v607_v58 = vpop.f32.mrf.mxu1  ;;  %v517_v5 = vadd.f32 %v774_v59, %v1089_v1 }
 0x10d   :  { %648 = vst [vmem:[%s1158_s3 + $0x38] sm:$0xff] %v606_v56  ;;  %v776_v60 = vpop.f32.mrf.mxu0 }
 0x10e   :  { %v610_v62 = vpop.f32.mrf.mxu1  ;;  %v777_v3 = vadd.f32 %v776_v60, %v775_v57 }
 0x10f   :  { %v611_v63 = vadd.f32 %v610_v62, %v514_v61  ;;  %v778_v0 = vpop.f32.mrf.mxu0 }
 0x110   :  { %v612_v2 = vpop.f32.mrf.mxu1  ;;  %v522_v12 = vadd.f32 %v777_v3, %v1089_v1 }
 0x111   :  { %649 = vst [vmem:[%s1158_s3 + $0x40] sm:$0xff] %v611_v63  ;;  %v779_v4 = vpop.f32.mrf.mxu0 }
 0x112   :  { %v613_v6 = vpop.f32.mrf.mxu1  ;;  %v780_v10 = vadd.f32 %v779_v4, %v778_v0 }
 0x113   :  { %v614_v7 = vadd.f32 %v613_v6, %v517_v5  ;;  %v781_v8 = vpop.f32.mrf.mxu0 }
 0x114   :  { %v615_v9 = vpop.f32.mrf.mxu1  ;;  %v525_v19 = vadd.f32 %v780_v10, %v1089_v1 }
 0x115   :  { %650 = vst [vmem:[%s1158_s3 + $0x48] sm:$0xff] %v614_v7  ;;  %v782_v11 = vpop.f32.mrf.mxu0 }
 0x116   :  { %v618_v13 = vpop.f32.mrf.mxu1  ;;  %v783_v17 = vadd.f32 %v782_v11, %v781_v8 }
 0x117   :  { %v619_v14 = vadd.f32 %v618_v13, %v522_v12  ;;  %v784_v15 = vpop.f32.mrf.mxu0 }
 0x118   :  { %v620_v16 = vpop.f32.mrf.mxu1  ;;  %v530_v26 = vadd.f32 %v783_v17, %v1089_v1 }
 0x119   :  { %651 = vst [vmem:[%s1158_s3 + $0x50] sm:$0xff] %v619_v14  ;;  %v785_v18 = vpop.f32.mrf.mxu0 }
 0x11a   :  { %v621_v20 = vpop.f32.mrf.mxu1  ;;  %v786_v24 = vadd.f32 %v785_v18, %v784_v15 }
 0x11b   :  { %v622_v21 = vadd.f32 %v621_v20, %v525_v19  ;;  %v787_v22 = vpop.f32.mrf.mxu0 }
 0x11c   :  { %v623_v23 = vpop.f32.mrf.mxu1  ;;  %v533_v32 = vadd.f32 %v786_v24, %v1089_v1 }
 0x11d   :  { %652 = vst [vmem:[%s1158_s3 + $0x58] sm:$0xff] %v622_v21  ;;  %v788_v25 = vpop.f32.mrf.mxu0 }
 0x11e   :  { %v626_v27 = vpop.f32.mrf.mxu1  ;;  %v789_v31 = vadd.f32 %v788_v25, %v787_v22 }
 0x11f   :  { %v627_v28 = vadd.f32 %v626_v27, %v530_v26  ;;  %v790_v29 = vpop.f32.mrf.mxu0 }
 0x120   :  { %v628_v30 = vpop.f32.mrf.mxu1  ;;  %v538_v38 = vadd.f32 %v789_v31, %v1089_v1 }
 0x121   :  { %653 = vst [vmem:[%s1158_s3 + $0x60] sm:$0xff] %v627_v28  ;;  %v791_v33 = vpop.f32.mrf.mxu0 }
 0x122   :  { %v629_v34 = vpop.f32.mrf.mxu1  ;;  %v792_v37 = vadd.f32 %v791_v33, %v790_v29 }
 0x123   :  { %v630_v35 = vadd.f32 %v629_v34, %v533_v32 }
 0x124   :  { %v631_v36 = vpop.f32.mrf.mxu1  ;;  %v541_v42 = vadd.f32 %v792_v37, %v1089_v1 }
 0x125   :  { %654 = vst [vmem:[%s1158_s3 + $0x68] sm:$0xff] %v630_v35 }
 0x126   :  { %v634_v39 = vpop.f32.mrf.mxu1 }
 0x127   :  { %v635_v40 = vadd.f32 %v634_v39, %v538_v38 }
 0x128   :  { %v636_v41 = vpop.f32.mrf.mxu1 }
 0x129   :  { %655 = vst [vmem:[%s1158_s3 + $0x70] sm:$0xff] %v635_v40 }
 0x12a   :  { %v637_v43 = vpop.f32.mrf.mxu1 }
 0x12b   :  { %v638_v44 = vadd.f32 %v637_v43, %v541_v42 }
 0x12c   :  { %v639_v45 = vpop.f32.mrf.mxu1 }
 0x12d   :  { %656 = vst [vmem:[%s1158_s3 + $0x78] sm:$0xff] %v638_v44 }

// kernel: generate_a_forward.25
= control target key start
LH: loop header
LB: loop body
LE: loop exit
PB: predicated region body
PF: predicated region fallthrough
CT: control target
= control target key end

     0   :  { %v794_v1 = vmov 0   ;;  %vm452_vm0 = vcmask 654336   ;;  %s1016_s1 = inlined_call_operand.vmem [shape: bf16[720,128], index: 1, kind: input, shape index: {}]   ;;  %s1017_s0 = inlined_call_operand.vmem [shape: bf16[32,720], index: 0, kind: input, shape index: {}]   ;;  %s1018_s2 = inlined_call_operand.vmem [shape: f32[1,128], index: 2, kind: input, shape index: {}]   ;;  %s1019_s3 = inlined_call_operand.vmem [shape: f32[32,128], index: 3, kind: output, shape index: {}]  }
   0x1   :  { %v731_v0 = vld [vmem:[%s1016_s1 + $0x78] sm:$0xff]   ;;  %557 = vmatprep.subr.bf16.mxu0 %v794_v1  ;;  %v733_v3 = vld [vmem:[%s1016_s1 + $0x70] sm:$0xff]   ;;  %v735_v5 = vld [vmem:[%s1016_s1 + $0x68] sm:$0xff]  }
   0x2   :  { %v732_v2 = vld [vmem:[%s1016_s1 + $0x38] sm:$0xff]   ;;  %674 = vmatprep.subr.bf16.mxu1 %v731_v0  ;;  %v734_v4 = vld [vmem:[%s1016_s1 + $0x30] sm:$0xff]   ;;  %v736_v6 = vld [vmem:[%s1016_s1 + $0x28] sm:$0xff]  }
   0x3   :  { %675 = vmatpush3.bf16.msra.mxu1 %v732_v2  ;;  %v737_v7 = vld [vmem:[%s1016_s1 + $0x60] sm:$0xff]   ;;  %v739_v8 = vld [vmem:[%s1016_s1 + $0x138] sm:$0xff]   ;;  %v742_v10 = vld [vmem:[%s1016_s1 + $0x130] sm:$0xff]  }
   0x4   :  { %676 = vmatprep.subr.bf16.mxu1 %v733_v3  ;;  %v738_v9 = vld [vmem:[%s1016_s1 + $0x20] sm:$0xff]   ;;  %558 = vmatpush1.bf16.msra.mxu0 %v739_v8  ;;  %v740_v11 = vld [vmem:[%s1016_s1 + $0x58] sm:$0xff]   ;;  %v745_v12 = vld [vmem:[%s1016_s1 + $0x128] sm:$0xff]  }
   0x5   :  { %559 = vmatprep.subr.bf16.mxu0 %v794_v1  ;;  %v741_v13 = vld [vmem:[%s1016_s1 + $0x18] sm:$0xff]   ;;  %v743_v14 = vld [vmem:[%s1016_s1 + $0x50] sm:$0xff]   ;;  %v748_v15 = vld [vmem:[%s1016_s1 + $0x120] sm:$0xff]  }
   0x6   :  { %v744_v16 = vld [vmem:[%s1016_s1 + $0x10] sm:$0xff]   ;;  %v746_v17 = vld [vmem:[%s1016_s1 + $0x48] sm:$0xff]   ;;  %v751_v18 = vld [vmem:[%s1016_s1 + $0x118] sm:$0xff]  }
   0x7   :  { %677 = vmatpush3.bf16.msra.mxu1 %v734_v4  ;;  %v754_v19 = vld [vmem:[%s1017_s0 + $0x4] ss:$24 sps:$4 sm:$0xff]   ;;  %v747_v20 = vld [vmem:[%s1016_s1 + $0x8] sm:$0xff]   ;;  %v757_v22 = vld [vmem:[%s1016_s1 + $0x110] sm:$0xff]  }
   0x8   :  { %678 = vmatprep.subr.bf16.mxu1 %v735_v5  ;;  %560 = vmatpush1.bf16.msra.mxu0 %v742_v10  ;;  %v749_v21 = vld [vmem:[%s1016_s1 + $0x40] sm:$0xff]   ;;  %v755_v24 = vld [vmem:[%s1016_s1 + $0xf8] sm:$0xff]   ;;  %v760_v26 = vld [vmem:[%s1016_s1 + $0x108] sm:$0xff]  }
   0x9   :  { %561 = vmatprep.subr.bf16.mxu0 %v794_v1  ;;  %491 = vmatprep.mubr.bf16.mxu1 %v754_v19  ;;  %v750_v23 = vld [vmem:[%s1016_s1] sm:$0xff]   ;;  %v756_v27 = vld [vmem:[%s1016_s1 + $0xb8] sm:$0xff]   ;;  %v758_v28 = vld [vmem:[%s1016_s1 + $0xf0] sm:$0xff]  }
   0xa   :  { %v752_v25 = vld [vmem:[%s1017_s0] ss:$24 sps:$4 sm:$0xff]   ;;  %v759_v29 = vld [vmem:[%s1016_s1 + $0xb0] sm:$0xff]   ;;  %v761_v31 = vld [vmem:[%s1016_s1 + $0xe8] sm:$0xff]  }
   0xb   :  { %679 = vmatpush3.bf16.msra.mxu1 %v736_v6  ;;  %v763_v30 = vld [vmem:[%s1016_s1 + $0x100] sm:$0xff]   ;;  %v768_v32 = vld [vmem:[%s1017_s0 + $0x34] ss:$24 sps:$4 sm:$0xff]   ;;  %v772_v34 = vld [vmem:[%s1017_s0 + $0x30] ss:$24 sps:$4 sm:$0xff]  }
   0xc   :  { %680 = vmatprep.subr.bf16.mxu1 %v737_v7  ;;  %562 = vmatpush1.bf16.msra.mxu0 %v745_v12  ;;  %v766_v33 = vld [vmem:[%s1016_s1 + $0x160] sm:$0xff]   ;;  %v762_v35 = vld [vmem:[%s1016_s1 + $0xa8] sm:$0xff]   ;;  %v771_v37 = vld [vmem:[%s1016_s1 + $0x158] sm:$0xff]  }
   0xd   :  { %563 = vmatprep.subr.bf16.mxu0 %v794_v1  ;;  %v764_v36 = vld [vmem:[%s1016_s1 + $0xe0] sm:$0xff]   ;;  %v767_v39 = vld [vmem:[%s1016_s1 + $0xd8] sm:$0xff]   ;;  %v775_v40 = vld [vmem:[%s1016_s1 + $0x150] sm:$0xff]  }
   0xe   :  { %v765_v38 = vld [vmem:[%s1016_s1 + $0xa0] sm:$0xff]   ;;  %v770_v41 = vld [vmem:[%s1016_s1 + $0x98] sm:$0xff]   ;;  %v773_v42 = vld [vmem:[%s1016_s1 + $0xd0] sm:$0xff]  }
   0xf   :  { %681 = vmatpush3.bf16.msra.mxu1 %v738_v9  ;;  %v784_v43 = vld [vmem:[%s1017_s0 + $0xc] ss:$24 sps:$4 sm:$0xff]   ;;  %v774_v46 = vld [vmem:[%s1016_s1 + $0x90] sm:$0xff]   ;;  %v782_v54 = vld [vmem:[%s1017_s0 + $0x8] ss:$24 sps:$4 sm:$0xff]  }
  0x10   :  { %682 = vmatprep.subr.bf16.mxu1 %v740_v11  ;;  %564 = vmatpush1.bf16.msra.mxu0 %v748_v15  ;;  %v778_v44 = vld [vmem:[%s1016_s1 + $0x148] sm:$0xff]   ;;  %v781_v48 = vld [vmem:[%s1016_s1 + $0x140] sm:$0xff]   ;;  %v788_v55 = vld [vmem:[%s1017_s0 + $0x3c] ss:$24 sps:$4 sm:$0xff]  }
  0x11   :  { %565 = vmatprep.subr.bf16.mxu0 %v794_v1  ;;  %v787_v45 = vld [vmem:[%s1017_s0 + $0x14] ss:$24 sps:$4 sm:$0xff]   ;;  %v779_v50 = vld [vmem:[%s1016_s1 + $0xc0] sm:$0xff]   ;;  %v785_v51 = vld [vmem:[%s1017_s0 + $0x10] ss:$24 sps:$4 sm:$0xff]  }
  0x12   :  { %v776_v47 = vld [vmem:[%s1016_s1 + $0xc8] sm:$0xff]   ;;  %672 = vmatprep.mubr.msk.bf16.mxu0 %vm452_vm0, %v787_v45  ;;  %v790_v52 = vld [vmem:[%s1017_s0 + $0x44] ss:$24 sps:$4 sm:$0xff]   ;;  %v793_v56 = vld [vmem:[%s1017_s0 + $0x40] ss:$24 sps:$4 sm:$0xff]  }
  0x13   :  { %683 = vmatpush3.bf16.msra.mxu1 %v741_v13  ;;  %v777_v49 = vld [vmem:[%s1016_s1 + $0x88] sm:$0xff]   ;;  %v780_v53 = vld [vmem:[%s1016_s1 + $0x80] sm:$0xff]   ;;  %v792_v57 = vld [vmem:[%s1017_s0 + $0x38] ss:$24 sps:$4 sm:$0xff]  }
  0x14   :  { %684 = vmatprep.subr.bf16.mxu1 %v743_v14  ;;  %566 = vmatpush1.bf16.msra.mxu0 %v751_v18  ;;  %v614_v6 = vld [vmem:[%s1018_s2] ss:$0 sm:$0xff] }
  0x15   :  { %567 = vmatprep.subr.bf16.mxu0 %v794_v1 }
  0x17   :  { %685 = vmatpush3.bf16.msra.mxu1 %v744_v16 }
  0x18   :  { %686 = vmatprep.subr.bf16.mxu1 %v746_v17  ;;  %568 = vmatpush1.bf16.msra.mxu0 %v757_v22 }
  0x19   :  { %569 = vmatprep.subr.bf16.mxu0 %v794_v1 }
  0x1b   :  { %687 = vmatpush3.bf16.msra.mxu1 %v747_v20 }
  0x1c   :  { %688 = vmatprep.subr.bf16.mxu1 %v749_v21  ;;  %570 = vmatpush1.bf16.msra.mxu0 %v760_v26 }
  0x1d   :  { %571 = vmatprep.subr.bf16.mxu0 %v794_v1 }
  0x1f   :  { %689 = vmatpush3.bf16.msra.mxu1 %v750_v23 }
  0x20   :  { %702 = vmatprep.subr.bf16.mxu1 %v755_v24  ;;  %572 = vmatpush1.bf16.msra.mxu0 %v763_v30 }
  0x21   :  { %579 = vmatprep.subr.bf16.mxu0 %v794_v1 }
  0x22   :  { %492 = vmatmul.mubr.bf16.vlgmr.msra.gmra.mxu1 %v752_v25 }
  0x23   :  { %703 = vmatpush3.bf16.msra.mxu1 %v756_v27  ;;  %499 = vmatprep.mubr.bf16.mxu1 %v768_v32 }
  0x24   :  { %704 = vmatprep.subr.bf16.mxu1 %v758_v28  ;;  %580 = vmatpush2.bf16.msra.mxu0 %v766_v33 }
  0x25   :  { %581 = vmatprep.subr.bf16.mxu0 %v794_v1 }
  0x27   :  { %705 = vmatpush3.bf16.msra.mxu1 %v759_v29 }
  0x28   :  { %706 = vmatprep.subr.bf16.mxu1 %v761_v31  ;;  %582 = vmatpush2.bf16.msra.mxu0 %v771_v37 }
  0x29   :  { %583 = vmatprep.subr.bf16.mxu0 %v794_v1 }
  0x2a   :  { %500 = vmatmul.mubr.bf16.gmra.mxu1 %v772_v34 }
  0x2b   :  { %707 = vmatpush3.bf16.msra.mxu1 %v762_v35  ;;  %540 = vmatprep.mubr.bf16.mxu1 %v784_v43 }
  0x2c   :  { %708 = vmatprep.subr.bf16.mxu1 %v764_v36  ;;  %584 = vmatpush2.bf16.msra.mxu0 %v775_v40 }
  0x2d   :  { %585 = vmatprep.subr.bf16.mxu0 %v794_v1 }
  0x2f   :  { %709 = vmatpush3.bf16.msra.mxu1 %v765_v38 }
  0x30   :  { %710 = vmatprep.subr.bf16.mxu1 %v767_v39  ;;  %586 = vmatpush2.bf16.msra.mxu0 %v778_v44 }
  0x31   :  { %587 = vmatprep.subr.bf16.mxu0 %v794_v1 }
  0x33   :  { %711 = vmatpush3.bf16.msra.mxu1 %v770_v41 }
  0x34   :  { %712 = vmatprep.subr.bf16.mxu1 %v773_v42  ;;  %588 = vmatpush2.bf16.msra.mxu0 %v781_v48 }
  0x37   :  { %713 = vmatpush3.bf16.msra.mxu1 %v774_v46  ;;  %590 = vmatmul.mubr.bf16.vlgmr.msra.gmra.mxu0 %v785_v51 }
  0x38   :  { %714 = vmatprep.subr.bf16.mxu1 %v776_v47  ;;  %673 = vmatprep.mubr.msk.bf16.mxu0 %vm452_vm0, %v790_v52 }
  0x3b   :  { %715 = vmatpush3.bf16.msra.mxu1 %v777_v49 }
  0x3c   :  { %716 = vmatprep.subr.bf16.mxu1 %v779_v50 }
  0x3f   :  { %717 = vmatpush3.bf16.msra.mxu1 %v780_v53  ;;  %598 = vmatmul.mubr.bf16.gmra.mxu0 %v793_v56 }
  0x42   :  { %541 = vmatmul.mubr.bf16.vlgmr.msra.gmra.mxu1 %v782_v54 }
  0x43   :  { %548 = vmatprep.mubr.bf16.mxu1 %v788_v55 }
  0x4a   :  { %549 = vmatmul.mubr.bf16.gmra.mxu1 %v792_v57 }
  0xe2   :  { %v690_v58 = vpop.f32.mrf.mxu1 }
  0xe4   :  { %v691_v59 = vpop.f32.mrf.mxu1 }
  0xe5   :  { %v692_v4 = vadd.f32 %v691_v59, %v690_v58 }
  0xe6   :  { %v693_v60 = vpop.f32.mrf.mxu1 }
  0xe7   :  { %v494_v10 = vadd.f32 %v692_v4, %v614_v6 }
  0xe8   :  { %v694_v61 = vpop.f32.mrf.mxu1 }
  0xe9   :  { %v695_v11 = vadd.f32 %v694_v61, %v693_v60 }
  0xea   :  { %v696_v62 = vpop.f32.mrf.mxu1 }
  0xeb   :  { %v497_v18 = vadd.f32 %v695_v11, %v614_v6 }
  0xec   :  { %v697_v63 = vpop.f32.mrf.mxu1 }
  0xed   :  { %v698_v19 = vadd.f32 %v697_v63, %v696_v62 }
  0xee   :  { %v699_v0 = vpop.f32.mrf.mxu1 }
  0xef   :  { %v502_v27 = vadd.f32 %v698_v19, %v614_v6 }
  0xf0   :  { %v700_v3 = vpop.f32.mrf.mxu1 }
  0xf1   :  { %v701_v28 = vadd.f32 %v700_v3, %v699_v0 }
  0xf3   :  { %v505_v34 = vadd.f32 %v701_v28, %v614_v6 }
  0xf7   :  { %v591_v1 = vpop.f32.mrf.mxu0 }
  0xf9   :  { %v593_v2 = vpop.f32.mrf.mxu0 }
  0xfb   :  { %v594_v5 = vpop.f32.mrf.mxu0 }
  0xfd   :  { %v596_v8 = vpop.f32.mrf.mxu0 }
  0xff   :  { %v599_v13 = vpop.f32.mrf.mxu0 }
 0x101   :  { %v601_v16 = vpop.f32.mrf.mxu0 }
 0x102   :  { %v718_v7 = vpop.f32.mrf.mxu1 }
 0x103   :  { %v602_v22 = vpop.f32.mrf.mxu0 }
 0x104   :  { %v719_v9 = vpop.f32.mrf.mxu1 }
 0x105   :  { %v720_v12 = vadd.f32 %v719_v9, %v718_v7  ;;  %v604_v25 = vpop.f32.mrf.mxu0 }
 0x106   :  { %v721_v14 = vpop.f32.mrf.mxu1 }
 0x107   :  { %v543_v15 = vadd.f32 %v720_v12, %v494_v10 }
 0x108   :  { %v722_v17 = vpop.f32.mrf.mxu1 }
 0x109   :  { %v592_v20 = vadd.f32 %v591_v1, %v543_v15  ;;  %v723_v21 = vadd.f32 %v722_v17, %v721_v14 }
 0x10a   :  { %v724_v23 = vpop.f32.mrf.mxu1 }
 0x10b   :  { %606 = vst [vmem:[%s1019_s3] sm:$0xff] %v592_v20  ;;  %v546_v24 = vadd.f32 %v723_v21, %v497_v18 }
 0x10c   :  { %v725_v26 = vpop.f32.mrf.mxu1 }
 0x10d   :  { %v595_v29 = vadd.f32 %v594_v5, %v546_v24  ;;  %v726_v30 = vadd.f32 %v725_v26, %v724_v23 }
 0x10e   :  { %v727_v31 = vpop.f32.mrf.mxu1 }
 0x10f   :  { %607 = vst [vmem:[%s1019_s3 + $0x8] sm:$0xff] %v595_v29  ;;  %v551_v32 = vadd.f32 %v726_v30, %v502_v27 }
 0x110   :  { %v728_v33 = vpop.f32.mrf.mxu1 }
 0x111   :  { %v600_v35 = vadd.f32 %v599_v13, %v551_v32  ;;  %v729_v36 = vadd.f32 %v728_v33, %v727_v31 }
 0x113   :  { %608 = vst [vmem:[%s1019_s3 + $0x10] sm:$0xff] %v600_v35  ;;  %v554_v37 = vadd.f32 %v729_v36, %v505_v34 }
 0x115   :  { %v603_v38 = vadd.f32 %v602_v22, %v554_v37 }
 0x117   :  { %609 = vst [vmem:[%s1019_s3 + $0x18] sm:$0xff] %v603_v38 }

// kernel: generate_a_forward.27
= control target key start
LH: loop header
LB: loop body
LE: loop exit
PB: predicated region body
PF: predicated region fallthrough
CT: control target
= control target key end

     0   :  { %vm804_vm0 = vcmask 130048   ;;  %s1825_s1 = inlined_call_operand.vmem [shape: bf16[1296,128], index: 1, kind: input, shape index: {}]   ;;  %s1826_s0 = inlined_call_operand.vmem [shape: bf16[32,1296], index: 0, kind: input, shape index: {}]   ;;  %s1827_s2 = inlined_call_operand.vmem [shape: f32[1,128], index: 2, kind: input, shape index: {}]   ;;  %s1828_s3 = inlined_call_operand.vmem [shape: f32[32,128], index: 3, kind: output, shape index: {}]  }
   0x1   :  { %v1368_v0 = vld [vmem:[%s1825_s1 + $0x78] sm:$0xff]   ;;  %v1372_v4 = vld [vmem:[%s1825_s1 + $0x70] sm:$0xff]   ;;  %v1376_v8 = vld [vmem:[%s1825_s1 + $0x68] sm:$0xff]  }
   0x2   :  { %v1369_v1 = vld [vmem:[%s1825_s1 + $0x38] sm:$0xff]   ;;  %1219 = vmatprep.subr.bf16.mxu0 %v1368_v0  ;;  %v1373_v5 = vld [vmem:[%s1825_s1 + $0x30] sm:$0xff]   ;;  %v1377_v9 = vld [vmem:[%s1825_s1 + $0x28] sm:$0xff]  }
   0x3   :  { %v1370_v2 = vld [vmem:[%s1825_s1 + $0xf8] sm:$0xff]   ;;  %1220 = vmatpush3.bf16.msra.mxu0 %v1369_v1  ;;  %v1374_v6 = vld [vmem:[%s1825_s1 + $0xf0] sm:$0xff]   ;;  %v1378_v10 = vld [vmem:[%s1825_s1 + $0xe8] sm:$0xff]  }
   0x4   :  { %v1371_v3 = vld [vmem:[%s1825_s1 + $0xb8] sm:$0xff]   ;;  %1247 = vmatprep.subr.bf16.mxu1 %v1370_v2  ;;  %1221 = vmatprep.subr.bf16.mxu0 %v1372_v4  ;;  %v1375_v7 = vld [vmem:[%s1825_s1 + $0xb0] sm:$0xff]   ;;  %v1379_v11 = vld [vmem:[%s1825_s1 + $0xa8] sm:$0xff]  }
   0x5   :  { %1248 = vmatpush3.bf16.msra.mxu1 %v1371_v3  ;;  %v1380_v12 = vld [vmem:[%s1825_s1 + $0x60] sm:$0xff]   ;;  %v1384_v16 = vld [vmem:[%s1825_s1 + $0x58] sm:$0xff]   ;;  %v1388_v20 = vld [vmem:[%s1825_s1 + $0x50] sm:$0xff]  }
   0x6   :  { %1249 = vmatprep.subr.bf16.mxu1 %v1374_v6  ;;  %v1381_v13 = vld [vmem:[%s1825_s1 + $0x20] sm:$0xff]   ;;  %v1385_v17 = vld [vmem:[%s1825_s1 + $0x18] sm:$0xff]   ;;  %v1389_v21 = vld [vmem:[%s1825_s1 + $0x10] sm:$0xff]  }
   0x7   :  { %1222 = vmatpush3.bf16.msra.mxu0 %v1373_v5  ;;  %v1382_v14 = vld [vmem:[%s1825_s1 + $0xe0] sm:$0xff]   ;;  %v1386_v18 = vld [vmem:[%s1825_s1 + $0xd8] sm:$0xff]   ;;  %v1390_v22 = vld [vmem:[%s1825_s1 + $0xd0] sm:$0xff]  }
   0x8   :  { %1223 = vmatprep.subr.bf16.mxu0 %v1376_v8  ;;  %v1383_v15 = vld [vmem:[%s1825_s1 + $0xa0] sm:$0xff]   ;;  %v1387_v19 = vld [vmem:[%s1825_s1 + $0x98] sm:$0xff]   ;;  %v1391_v23 = vld [vmem:[%s1825_s1 + $0x90] sm:$0xff]  }
   0x9   :  { %1250 = vmatpush3.bf16.msra.mxu1 %v1375_v7  ;;  %v1392_v24 = vld [vmem:[%s1825_s1 + $0x48] sm:$0xff]   ;;  %v1396_v28 = vld [vmem:[%s1825_s1 + $0x40] sm:$0xff]   ;;  %v1403_v34 = vld [vmem:[%s1825_s1 + $0x178] sm:$0xff]  }
   0xa   :  { %1251 = vmatprep.subr.bf16.mxu1 %v1378_v10  ;;  %v1393_v25 = vld [vmem:[%s1825_s1 + $0x8] sm:$0xff]   ;;  %v1397_v29 = vld [vmem:[%s1825_s1] sm:$0xff]   ;;  %v1407_v37 = vld [vmem:[%s1825_s1 + $0x138] sm:$0xff]  }
   0xb   :  { %1224 = vmatpush3.bf16.msra.mxu0 %v1377_v9  ;;  %v1394_v26 = vld [vmem:[%s1825_s1 + $0xc8] sm:$0xff]   ;;  %v1398_v30 = vld [vmem:[%s1825_s1 + $0xc0] sm:$0xff]   ;;  %v1408_v38 = vld [vmem:[%s1825_s1 + $0x1f8] sm:$0xff]  }
   0xc   :  { %1225 = vmatprep.subr.bf16.mxu0 %v1380_v12  ;;  %v1395_v27 = vld [vmem:[%s1825_s1 + $0x88] sm:$0xff]   ;;  %v1401_v32 = vld [vmem:[%s1826_s0 + $0x4] ss:$44 sps:$4 sm:$0xff]   ;;  %v1409_v39 = vld [vmem:[%s1825_s1 + $0x1b8] sm:$0xff]  }
   0xd   :  { %1252 = vmatpush3.bf16.msra.mxu1 %v1379_v11  ;;  %v1399_v31 = vld [vmem:[%s1826_s0] ss:$44 sps:$4 sm:$0xff]   ;;  %843 = vmatprep.mubr.bf16.mxu0 %v1401_v32  ;;  %v1404_v35 = vld [vmem:[%s1826_s0 + $0x8] ss:$44 sps:$4 sm:$0xff]   ;;  %v1422_v52 = vld [vmem:[%s1825_s1 + $0x158] sm:$0xff]  }
   0xe   :  { %1253 = vmatprep.subr.bf16.mxu1 %v1382_v14  ;;  %v1402_v33 = vld [vmem:[%s1825_s1 + $0x80] sm:$0xff]   ;;  %v1406_v36 = vld [vmem:[%s1826_s0 + $0xc] ss:$44 sps:$4 sm:$0xff]   ;;  %v1410_v40 = vld [vmem:[%s1825_s1 + $0x170] sm:$0xff]  }
   0xf   :  { %1226 = vmatpush3.bf16.msra.mxu0 %v1381_v13  ;;  %892 = vmatprep.mubr.bf16.mxu1 %v1406_v36  ;;  %v1411_v41 = vld [vmem:[%s1825_s1 + $0x130] sm:$0xff]   ;;  %v1414_v44 = vld [vmem:[%s1825_s1 + $0x168] sm:$0xff]   ;;  %v1418_v48 = vld [vmem:[%s1825_s1 + $0x160] sm:$0xff]  }
  0x10   :  { %1227 = vmatprep.subr.bf16.mxu0 %v1384_v16  ;;  %v1412_v42 = vld [vmem:[%s1825_s1 + $0x1f0] sm:$0xff]   ;;  %v1415_v45 = vld [vmem:[%s1825_s1 + $0x128] sm:$0xff]   ;;  %v1419_v49 = vld [vmem:[%s1825_s1 + $0x120] sm:$0xff]  }
  0x11   :  { %1254 = vmatpush3.bf16.msra.mxu1 %v1383_v15  ;;  %v1413_v43 = vld [vmem:[%s1825_s1 + $0x1b0] sm:$0xff]   ;;  %v1416_v46 = vld [vmem:[%s1825_s1 + $0x1e8] sm:$0xff]   ;;  %v1420_v50 = vld [vmem:[%s1825_s1 + $0x1e0] sm:$0xff]  }
  0x12   :  { %1255 = vmatprep.subr.bf16.mxu1 %v1386_v18  ;;  %v1417_v47 = vld [vmem:[%s1825_s1 + $0x1a8] sm:$0xff]   ;;  %v1421_v51 = vld [vmem:[%s1825_s1 + $0x1a0] sm:$0xff]   ;;  %v1423_v53 = vld [vmem:[%s1825_s1 + $0x118] sm:$0xff]  }
  0x13   :  { %1228 = vmatpush3.bf16.msra.mxu0 %v1385_v17  ;;  %v1424_v54 = vld [vmem:[%s1826_s0 + $0x5c] ss:$44 sps:$4 sm:$0xff]   ;;  %v1427_v56 = vld [vmem:[%s1826_s0 + $0x58] ss:$44 sps:$4 sm:$0xff]   ;;  %v1431_v59 = vld [vmem:[%s1825_s1 + $0x150] sm:$0xff]  }
  0x14   :  { %1229 = vmatprep.subr.bf16.mxu0 %v1388_v20  ;;  %v1426_v55 = vld [vmem:[%s1825_s1 + $0x1d8] sm:$0xff]   ;;  %v1429_v58 = vld [vmem:[%s1826_s0 + $0x64] ss:$44 sps:$4 sm:$0xff]   ;;  %v1432_v60 = vld [vmem:[%s1826_s0 + $0x60] ss:$44 sps:$4 sm:$0xff]  }
  0x15   :  { %1256 = vmatpush3.bf16.msra.mxu1 %v1387_v19  ;;  %v1428_v57 = vld [vmem:[%s1825_s1 + $0x198] sm:$0xff]   ;;  %v1433_v61 = vld [vmem:[%s1825_s1 + $0x110] sm:$0xff]   ;;  %v1436_v0 = vld [vmem:[%s1825_s1 + $0x148] sm:$0xff]  }
  0x16   :  { %1257 = vmatprep.subr.bf16.mxu1 %v1390_v22  ;;  %v1434_v62 = vld [vmem:[%s1825_s1 + $0x1d0] sm:$0xff]   ;;  %v1437_v1 = vld [vmem:[%s1825_s1 + $0x108] sm:$0xff]   ;;  %v1440_v4 = vld [vmem:[%s1825_s1 + $0x140] sm:$0xff]  }
  0x17   :  { %1230 = vmatpush3.bf16.msra.mxu0 %v1389_v21  ;;  %v1435_v63 = vld [vmem:[%s1825_s1 + $0x190] sm:$0xff]   ;;  %v1438_v2 = vld [vmem:[%s1825_s1 + $0x1c8] sm:$0xff]   ;;  %v1441_v5 = vld [vmem:[%s1825_s1 + $0x100] sm:$0xff]  }
  0x18   :  { %1231 = vmatprep.subr.bf16.mxu0 %v1392_v24  ;;  %v1439_v3 = vld [vmem:[%s1825_s1 + $0x188] sm:$0xff]   ;;  %v1442_v6 = vld [vmem:[%s1825_s1 + $0x1c0] sm:$0xff]   ;;  %v1443_v7 = vld [vmem:[%s1826_s0 + $0x10] ss:$44 sps:$4 sm:$0xff]  }
  0x19   :  { %1258 = vmatpush3.bf16.msra.mxu1 %v1391_v23  ;;  %v1445_v8 = vld [vmem:[%s1826_s0 + $0x14] ss:$44 sps:$4 sm:$0xff]   ;;  %v1447_v10 = vld [vmem:[%s1825_s1 + $0x278] sm:$0xff]   ;;  %v1457_v18 = vld [vmem:[%s1825_s1 + $0x268] sm:$0xff]  }
  0x1a   :  { %1259 = vmatprep.subr.bf16.mxu1 %v1394_v26  ;;  %v1446_v9 = vld [vmem:[%s1825_s1 + $0x180] sm:$0xff]   ;;  %v1450_v12 = vld [vmem:[%s1826_s0 + $0x1c] ss:$44 sps:$4 sm:$0xff]   ;;  %v1452_v14 = vld [vmem:[%s1825_s1 + $0x270] sm:$0xff]  }
  0x1b   :  { %1232 = vmatpush3.bf16.msra.mxu0 %v1393_v25  ;;  %v1448_v11 = vld [vmem:[%s1826_s0 + $0x18] ss:$44 sps:$4 sm:$0xff]   ;;  %v1453_v15 = vld [vmem:[%s1825_s1 + $0x230] sm:$0xff]   ;;  %v1460_v20 = vld [vmem:[%s1825_s1 + $0x228] sm:$0xff]  }
  0x1c   :  { %1233 = vmatprep.subr.bf16.mxu0 %v1396_v28  ;;  %v1451_v13 = vld [vmem:[%s1825_s1 + $0x238] sm:$0xff]   ;;  %v1456_v17 = vld [vmem:[%s1826_s0 + $0x68] ss:$44 sps:$4 sm:$0xff]   ;;  %v1462_v22 = vld [vmem:[%s1825_s1 + $0x260] sm:$0xff]  }
  0x1d   :  { %1260 = vmatpush3.bf16.msra.mxu1 %v1395_v27  ;;  %v1454_v16 = vld [vmem:[%s1826_s0 + $0x6c] ss:$44 sps:$4 sm:$0xff]   ;;  %v1458_v19 = vld [vmem:[%s1826_s0 + $0x74] ss:$44 sps:$4 sm:$0xff]   ;;  %v1461_v21 = vld [vmem:[%s1826_s0 + $0x70] ss:$44 sps:$4 sm:$0xff]  }
  0x1e   :  { %1261 = vmatprep.subr.bf16.mxu1 %v1398_v30  ;;  %v1463_v23 = vld [vmem:[%s1825_s1 + $0x220] sm:$0xff]   ;;  %v1464_v24 = vld [vmem:[%s1825_s1 + $0x258] sm:$0xff]   ;;  %v1466_v26 = vld [vmem:[%s1825_s1 + $0x250] sm:$0xff]  }
  0x1f   :  { %1234 = vmatpush3.bf16.msra.mxu0 %v1397_v29  ;;  %v1465_v25 = vld [vmem:[%s1825_s1 + $0x218] sm:$0xff]   ;;  %v1470_v27 = vld [vmem:[%s1825_s1 + $0x280] sm:$0xff]   ;;  %v1467_v28 = vld [vmem:[%s1825_s1 + $0x210] sm:$0xff]  }
  0x20   :  { %1275 = vmatprep.subr.bf16.mxu0 %v1403_v34  ;;  %v1468_v29 = vld [vmem:[%s1825_s1 + $0x248] sm:$0xff]   ;;  %v1475_v30 = vld [vmem:[%s1826_s0 + $0x24] ss:$44 sps:$4 sm:$0xff]  }
  0x21   :  { %1262 = vmatpush3.bf16.msra.mxu1 %v1402_v33  ;;  %v1477_v32 = vld [vmem:[%s1826_s0 + $0x80] ss:$44 sps:$4 sm:$0xff]  }
  0x22   :  { %844 = vmatmul.mubr.bf16.vlgmr.msra.gmra.mxu0 %v1399_v31  ;;  %1303 = vmatprep.subr.bf16.mxu1 %v1408_v38  ;;  %v1476_v31 = vld [vmem:[%s1826_s0 + $0x28] ss:$44 sps:$4 sm:$0xff]   ;;  %v1471_v34 = vld [vmem:[%s1825_s1 + $0x240] sm:$0xff]  }
  0x23   :  { %1276 = vmatpush3.bf16.msra.mxu0 %v1407_v37  ;;  %851 = vmatprep.mubr.bf16.mxu0 %v1424_v54  ;;  %v1469_v33 = vld [vmem:[%s1825_s1 + $0x208] sm:$0xff]   ;;  %v1480_v38 = vld [vmem:[%s1826_s0 + $0x78] ss:$44 sps:$4 sm:$0xff]  }
  0x24   :  { %893 = vmatmul.mubr.bf16.vlgmr.msra.gmra.mxu1 %v1404_v35  ;;  %1277 = vmatprep.subr.bf16.mxu0 %v1410_v40  ;;  %v1472_v35 = vld [vmem:[%s1825_s1 + $0x200] sm:$0xff]   ;;  %v1478_v37 = vld [vmem:[%s1826_s0 + $0x7c] ss:$44 sps:$4 sm:$0xff]  }
  0x25   :  { %1304 = vmatpush3.bf16.msra.mxu1 %v1409_v39  ;;  %900 = vmatprep.mubr.bf16.mxu1 %v1429_v58  ;;  %v1473_v36 = vld [vmem:[%s1826_s0 + $0x20] ss:$44 sps:$4 sm:$0xff]  }
  0x26   :  { %1305 = vmatprep.subr.bf16.mxu1 %v1412_v42 }
  0x27   :  { %1278 = vmatpush3.bf16.msra.mxu0 %v1411_v41 }
  0x28   :  { %1279 = vmatprep.subr.bf16.mxu0 %v1414_v44 }
  0x29   :  { %1306 = vmatpush3.bf16.msra.mxu1 %v1413_v43 }
  0x2a   :  { %1307 = vmatprep.subr.bf16.mxu1 %v1416_v46  ;;  %852 = vmatmul.mubr.bf16.gmra.mxu0 %v1427_v56 }
  0x2b   :  { %1280 = vmatpush3.bf16.msra.mxu0 %v1415_v45  ;;  %941 = vmatprep.mubr.bf16.mxu0 %v1445_v8 }
  0x2c   :  { %1281 = vmatprep.subr.bf16.mxu0 %v1418_v48  ;;  %901 = vmatmul.mubr.bf16.gmra.mxu1 %v1432_v60 }
  0x2d   :  { %1308 = vmatpush3.bf16.msra.mxu1 %v1417_v47  ;;  %990 = vmatprep.mubr.bf16.mxu1 %v1450_v12 }
  0x2e   :  { %1309 = vmatprep.subr.bf16.mxu1 %v1420_v50 }
  0x2f   :  { %1282 = vmatpush3.bf16.msra.mxu0 %v1419_v49 }
  0x30   :  { %1283 = vmatprep.subr.bf16.mxu0 %v1422_v52 }
  0x31   :  { %1310 = vmatpush3.bf16.msra.mxu1 %v1421_v51 }
  0x32   :  { %1311 = vmatprep.subr.bf16.mxu1 %v1426_v55 }
  0x33   :  { %1284 = vmatpush3.bf16.msra.mxu0 %v1423_v53 }
  0x34   :  { %1285 = vmatprep.subr.bf16.mxu0 %v1431_v59 }
  0x35   :  { %1312 = vmatpush3.bf16.msra.mxu1 %v1428_v57 }
  0x36   :  { %1313 = vmatprep.subr.bf16.mxu1 %v1434_v62 }
  0x37   :  { %1286 = vmatpush3.bf16.msra.mxu0 %v1433_v61 }
  0x38   :  { %1287 = vmatprep.subr.bf16.mxu0 %v1436_v0 }
  0x39   :  { %1314 = vmatpush3.bf16.msra.mxu1 %v1435_v63 }
  0x3a   :  { %1315 = vmatprep.subr.bf16.mxu1 %v1438_v2 }
  0x3b   :  { %1288 = vmatpush3.bf16.msra.mxu0 %v1437_v1 }
  0x3c   :  { %1289 = vmatprep.subr.bf16.mxu0 %v1440_v4 }
  0x3d   :  { %1316 = vmatpush3.bf16.msra.mxu1 %v1439_v3  ;;  %v1113_v3 = vld [vmem:[%s1827_s2] ss:$0 sm:$0xff] }
  0x3e   :  { %1317 = vmatprep.subr.bf16.mxu1 %v1442_v6 }
  0x3f   :  { %1290 = vmatpush3.bf16.msra.mxu0 %v1441_v5 }
  0x40   :  { %1331 = vmatprep.subr.bf16.mxu0 %v1447_v10 }
  0x41   :  { %1318 = vmatpush3.bf16.msra.mxu1 %v1446_v9 }
  0x42   :  { %942 = vmatmul.mubr.bf16.vlgmr.msra.gmra.mxu0 %v1443_v7  ;;  %1362 = vmatprep.subr.bf16.mxu1 %v1470_v27 }
  0x43   :  { %1332 = vmatpush3.bf16.msra.mxu0 %v1451_v13  ;;  %949 = vmatprep.mubr.bf16.mxu0 %v1454_v16 }
  0x44   :  { %991 = vmatmul.mubr.bf16.vlgmr.msra.gmra.mxu1 %v1448_v11  ;;  %1333 = vmatprep.subr.bf16.mxu0 %v1452_v14 }
  0x45   :  { %998 = vmatprep.mubr.bf16.mxu1 %v1458_v19  ;;  %1363 = vmatpush3.bf16.msra.mxu1 %v1470_v27 }
  0x47   :  { %1334 = vmatpush3.bf16.msra.mxu0 %v1453_v15 }
  0x48   :  { %1335 = vmatprep.subr.bf16.mxu0 %v1457_v18 }
  0x4a   :  { %950 = vmatmul.mubr.bf16.gmra.mxu0 %v1456_v17 }
  0x4b   :  { %1336 = vmatpush3.bf16.msra.mxu0 %v1460_v20  ;;  %1039 = vmatprep.mubr.bf16.mxu0 %v1475_v30 }
  0x4c   :  { %999 = vmatmul.mubr.bf16.gmra.mxu1 %v1461_v21  ;;  %1337 = vmatprep.subr.bf16.mxu0 %v1462_v22 }
  0x4d   :  { %1364 = vmatprep.mubr.msk.bf16.mxu1 %vm804_vm0, %v1476_v31 }
  0x4f   :  { %1338 = vmatpush3.bf16.msra.mxu0 %v1463_v23 }
  0x50   :  { %1339 = vmatprep.subr.bf16.mxu0 %v1464_v24 }
  0x53   :  { %1340 = vmatpush3.bf16.msra.mxu0 %v1465_v25 }
  0x54   :  { %1341 = vmatprep.subr.bf16.mxu0 %v1466_v26  ;;  %1365 = vmatmul.mubr.msk.bf16.vlgmr.msra.gmra.mxu1 %vm804_vm0, %v1477_v32 }
  0x57   :  { %1342 = vmatpush3.bf16.msra.mxu0 %v1467_v28 }
  0x58   :  { %1343 = vmatprep.subr.bf16.mxu0 %v1468_v29 }
  0x5b   :  { %1344 = vmatpush3.bf16.msra.mxu0 %v1469_v33 }
  0x5c   :  { %1345 = vmatprep.subr.bf16.mxu0 %v1471_v34 }
  0x5f   :  { %1346 = vmatpush3.bf16.msra.mxu0 %v1472_v35 }
  0x62   :  { %1040 = vmatmul.mubr.bf16.vlgmr.msra.gmra.mxu0 %v1473_v36 }
  0x63   :  { %1047 = vmatprep.mubr.bf16.mxu0 %v1478_v37 }
  0x6a   :  { %1048 = vmatmul.mubr.bf16.gmra.mxu0 %v1480_v38 }
  0xe2   :  { %v1235_v40 = vpop.f32.mrf.mxu0 }
  0xe4   :  { %v1263_v39 = vpop.f32.mrf.mxu1  ;;  %v1236_v42 = vpop.f32.mrf.mxu0 }
  0xe5   :  { %v1237_v2 = vadd.f32 %v1236_v42, %v1235_v40 }
  0xe6   :  { %v1264_v41 = vpop.f32.mrf.mxu1  ;;  %v1238_v44 = vpop.f32.mrf.mxu0 }
  0xe7   :  { %v846_v6 = vadd.f32 %v1237_v2, %v1113_v3  ;;  %v1265_v7 = vadd.f32 %v1264_v41, %v1263_v39 }
  0xe8   :  { %v1266_v43 = vpop.f32.mrf.mxu1  ;;  %v1239_v46 = vpop.f32.mrf.mxu0 }
  0xe9   :  { %v1240_v8 = vadd.f32 %v1239_v46, %v1238_v44  ;;  %v895_v14 = vadd.f32 %v1265_v7, %v846_v6 }
  0xea   :  { %v1267_v45 = vpop.f32.mrf.mxu1  ;;  %v1241_v48 = vpop.f32.mrf.mxu0 }
  0xeb   :  { %v849_v15 = vadd.f32 %v1240_v8, %v1113_v3  ;;  %v1268_v16 = vadd.f32 %v1267_v45, %v1266_v43 }
  0xec   :  { %v1269_v47 = vpop.f32.mrf.mxu1  ;;  %v1242_v50 = vpop.f32.mrf.mxu0 }
  0xed   :  { %v1243_v12 = vadd.f32 %v1242_v50, %v1241_v48  ;;  %v898_v25 = vadd.f32 %v1268_v16, %v849_v15 }
  0xee   :  { %v1270_v49 = vpop.f32.mrf.mxu1  ;;  %v1244_v52 = vpop.f32.mrf.mxu0 }
  0xef   :  { %v854_v21 = vadd.f32 %v1243_v12, %v1113_v3  ;;  %v1271_v22 = vadd.f32 %v1270_v49, %v1269_v47 }
  0xf0   :  { %v1272_v51 = vpop.f32.mrf.mxu1  ;;  %v1245_v54 = vpop.f32.mrf.mxu0 }
  0xf1   :  { %v1246_v26 = vadd.f32 %v1245_v54, %v1244_v52  ;;  %v903_v33 = vadd.f32 %v1271_v22, %v854_v21 }
  0xf2   :  { %v1273_v53 = vpop.f32.mrf.mxu1 }
  0xf3   :  { %v857_v36 = vadd.f32 %v1246_v26, %v1113_v3  ;;  %v1274_v37 = vadd.f32 %v1273_v53, %v1272_v51 }
  0xf5   :  { %v906_v48 = vadd.f32 %v1274_v37, %v857_v36 }
 0x102   :  { %v1291_v56 = vpop.f32.mrf.mxu0 }
 0x104   :  { %v1319_v55 = vpop.f32.mrf.mxu1  ;;  %v1292_v58 = vpop.f32.mrf.mxu0 }
 0x105   :  { %v1293_v11 = vadd.f32 %v1292_v58, %v1291_v56 }
 0x106   :  { %v1320_v57 = vpop.f32.mrf.mxu1  ;;  %v1294_v60 = vpop.f32.mrf.mxu0 }
 0x107   :  { %v944_v18 = vadd.f32 %v1293_v11, %v895_v14  ;;  %v1321_v19 = vadd.f32 %v1320_v57, %v1319_v55 }
 0x108   :  { %v1322_v59 = vpop.f32.mrf.mxu1  ;;  %v1295_v62 = vpop.f32.mrf.mxu0 }
 0x109   :  { %v1296_v20 = vadd.f32 %v1295_v62, %v1294_v60  ;;  %v993_v29 = vadd.f32 %v1321_v19, %v944_v18 }
 0x10a   :  { %v1323_v61 = vpop.f32.mrf.mxu1  ;;  %v1297_v0 = vpop.f32.mrf.mxu0 }
 0x10b   :  { %v947_v30 = vadd.f32 %v1296_v20, %v898_v25  ;;  %v1324_v31 = vadd.f32 %v1323_v61, %v1322_v59 }
 0x10c   :  { %v1325_v63 = vpop.f32.mrf.mxu1  ;;  %v1298_v4 = vpop.f32.mrf.mxu0 }
 0x10d   :  { %v1299_v27 = vadd.f32 %v1298_v4, %v1297_v0  ;;  %v996_v42 = vadd.f32 %v1324_v31, %v947_v30 }
 0x10e   :  { %v1326_v1 = vpop.f32.mrf.mxu1  ;;  %v1300_v9 = vpop.f32.mrf.mxu0 }
 0x10f   :  { %v952_v39 = vadd.f32 %v1299_v27, %v903_v33  ;;  %v1327_v40 = vadd.f32 %v1326_v1, %v1325_v63 }
 0x110   :  { %v1328_v5 = vpop.f32.mrf.mxu1  ;;  %v1301_v17 = vpop.f32.mrf.mxu0 }
 0x111   :  { %v1302_v43 = vadd.f32 %v1301_v17, %v1300_v9  ;;  %v1001_v50 = vadd.f32 %v1327_v40, %v952_v39 }
 0x112   :  { %v1329_v10 = vpop.f32.mrf.mxu1 }
 0x113   :  { %v955_v54 = vadd.f32 %v1302_v43, %v906_v48  ;;  %v1330_v51 = vadd.f32 %v1329_v10, %v1328_v5 }
 0x114   :  { %v1366_v13 = vpop.f32.mrf.mxu1 }
 0x115   :  { %v1004_v59 = vadd.f32 %v1330_v51, %v955_v54 }
 0x116   :  { %v1090_v24 = vpop.f32.mrf.mxu1 }
 0x118   :  { %v1367_v35 = vpop.f32.mrf.mxu1 }
 0x11a   :  { %v1093_v47 = vpop.f32.mrf.mxu1 }
 0x122   :  { %v1347_v23 = vpop.f32.mrf.mxu0 }
 0x124   :  { %v1348_v28 = vpop.f32.mrf.mxu0 }
 0x125   :  { %v1349_v32 = vadd.f32 %v1348_v28, %v1347_v23 }
 0x126   :  { %v1350_v34 = vpop.f32.mrf.mxu0 }
 0x127   :  { %v1042_v38 = vadd.f32 %v1349_v32, %v993_v29 }
 0x128   :  { %v1351_v41 = vpop.f32.mrf.mxu0 }
 0x129   :  { %v1352_v44 = vadd.f32 %v1351_v41, %v1350_v34  ;;  %v1091_v45 = vadd.f32 %v1090_v24, %v1042_v38 }
 0x12a   :  { %v1353_v46 = vpop.f32.mrf.mxu0 }
 0x12b   :  { %1105 = vst [vmem:[%s1828_s3] sm:$0xff] %v1091_v45  ;;  %v1045_v49 = vadd.f32 %v1352_v44, %v996_v42 }
 0x12c   :  { %v1354_v52 = vpop.f32.mrf.mxu0 }
 0x12d   :  { %v1355_v53 = vadd.f32 %v1354_v52, %v1353_v46  ;;  %v1094_v55 = vadd.f32 %v1093_v47, %v1045_v49 }
 0x12e   :  { %v1356_v56 = vpop.f32.mrf.mxu0 }
 0x12f   :  { %v1050_v57 = vadd.f32 %v1355_v53, %v1001_v50  ;;  %1106 = vst [vmem:[%s1828_s3 + $0x8] sm:$0xff] %v1094_v55 }
 0x130   :  { %v1357_v58 = vpop.f32.mrf.mxu0 }
 0x131   :  { %v1099_v60 = vadd.f32 %v1366_v13, %v1050_v57  ;;  %v1358_v61 = vadd.f32 %v1357_v58, %v1356_v56 }
 0x133   :  { %1107 = vst [vmem:[%s1828_s3 + $0x10] sm:$0xff] %v1099_v60  ;;  %v1053_v62 = vadd.f32 %v1358_v61, %v1004_v59 }
 0x135   :  { %v1102_v63 = vadd.f32 %v1367_v35, %v1053_v62 }
 0x137   :  { %1108 = vst [vmem:[%s1828_s3 + $0x18] sm:$0xff] %v1102_v63 }

// kernel: generate_a_forward.34
= control target key start
LH: loop header
LB: loop body
LE: loop exit
PB: predicated region body
PF: predicated region fallthrough
CT: control target
= control target key end

     0   :  { %s1019_s1 = inlined_call_operand.vmem [shape: bf16[512,256], index: 1, kind: input, shape index: {}]   ;;  %s1020_s0 = inlined_call_operand.vmem [shape: bf16[32,512], index: 0, kind: input, shape index: {}]   ;;  %s1021_s2 = inlined_call_operand.vmem [shape: f32[1,256], index: 2, kind: input, shape index: {}]   ;;  %s1022_s3 = inlined_call_operand.vmem [shape: f32[32,256], index: 3, kind: output, shape index: {}]  }
   0x1   :  { %v648_v0 = vld [vmem:[%s1019_s1 + $0x74] ss:$8 sps:$4 sm:$0xff]   ;;  %v652_v2 = vld [vmem:[%s1019_s1 + $0x70] ss:$8 sps:$4 sm:$0xff]   ;;  %v654_v4 = vld [vmem:[%s1019_s1 + $0x64] ss:$8 sps:$4 sm:$0xff]  }
   0x2   :  { %v650_v1 = vld [vmem:[%s1019_s1 + $0x174] ss:$8 sps:$4 sm:$0xff]   ;;  %458 = vmatprep.subr.bf16.mxu0 %v648_v0  ;;  %v653_v3 = vld [vmem:[%s1019_s1 + $0x170] ss:$8 sps:$4 sm:$0xff]   ;;  %v656_v5 = vld [vmem:[%s1019_s1 + $0x164] ss:$8 sps:$4 sm:$0xff]  }
   0x3   :  { %511 = vmatprep.subr.bf16.mxu1 %v650_v1  ;;  %459 = vmatpush1.bf16.msra.mxu0 %v652_v2  ;;  %v658_v6 = vld [vmem:[%s1019_s1 + $0x60] ss:$8 sps:$4 sm:$0xff]   ;;  %v660_v8 = vld [vmem:[%s1019_s1 + $0x54] ss:$8 sps:$4 sm:$0xff]   ;;  %v664_v10 = vld [vmem:[%s1019_s1 + $0x50] ss:$8 sps:$4 sm:$0xff]  }
   0x4   :  { %512 = vmatpush1.bf16.msra.mxu1 %v653_v3  ;;  %460 = vmatprep.subr.bf16.mxu0 %v654_v4  ;;  %v659_v7 = vld [vmem:[%s1019_s1 + $0x160] ss:$8 sps:$4 sm:$0xff]   ;;  %v662_v9 = vld [vmem:[%s1019_s1 + $0x154] ss:$8 sps:$4 sm:$0xff]   ;;  %v665_v11 = vld [vmem:[%s1019_s1 + $0x150] ss:$8 sps:$4 sm:$0xff]  }
   0x5   :  { %513 = vmatprep.subr.bf16.mxu1 %v656_v5  ;;  %v666_v12 = vld [vmem:[%s1019_s1 + $0x44] ss:$8 sps:$4 sm:$0xff]   ;;  %v670_v14 = vld [vmem:[%s1019_s1 + $0x40] ss:$8 sps:$4 sm:$0xff]   ;;  %v672_v16 = vld [vmem:[%s1019_s1 + $0x34] ss:$8 sps:$4 sm:$0xff]  }
   0x6   :  { %v668_v13 = vld [vmem:[%s1019_s1 + $0x144] ss:$8 sps:$4 sm:$0xff]   ;;  %v671_v15 = vld [vmem:[%s1019_s1 + $0x140] ss:$8 sps:$4 sm:$0xff]   ;;  %v674_v17 = vld [vmem:[%s1019_s1 + $0x134] ss:$8 sps:$4 sm:$0xff]  }
   0x7   :  { %461 = vmatpush1.bf16.msra.mxu0 %v658_v6  ;;  %v676_v18 = vld [vmem:[%s1019_s1 + $0x30] ss:$8 sps:$4 sm:$0xff]   ;;  %v678_v20 = vld [vmem:[%s1019_s1 + $0x24] ss:$8 sps:$4 sm:$0xff]   ;;  %v682_v22 = vld [vmem:[%s1019_s1 + $0x20] ss:$8 sps:$4 sm:$0xff]  }
   0x8   :  { %514 = vmatpush1.bf16.msra.mxu1 %v659_v7  ;;  %462 = vmatprep.subr.bf16.mxu0 %v660_v8  ;;  %v677_v19 = vld [vmem:[%s1019_s1 + $0x130] ss:$8 sps:$4 sm:$0xff]   ;;  %v680_v21 = vld [vmem:[%s1019_s1 + $0x124] ss:$8 sps:$4 sm:$0xff]   ;;  %v683_v23 = vld [vmem:[%s1019_s1 + $0x120] ss:$8 sps:$4 sm:$0xff]   ;;  %v88_v8 = vlaneseq }
   0x9   :  { %515 = vmatprep.subr.bf16.mxu1 %v662_v9  ;;  %v684_v24 = vld [vmem:[%s1019_s1 + $0x14] ss:$8 sps:$4 sm:$0xff]   ;;  %v688_v26 = vld [vmem:[%s1019_s1 + $0x10] ss:$8 sps:$4 sm:$0xff]   ;;  %v690_v28 = vld [vmem:[%s1019_s1 + $0x4] ss:$8 sps:$4 sm:$0xff]  }
   0xa   :  { %v686_v25 = vld [vmem:[%s1019_s1 + $0x114] ss:$8 sps:$4 sm:$0xff]   ;;  %v689_v27 = vld [vmem:[%s1019_s1 + $0x110] ss:$8 sps:$4 sm:$0xff]   ;;  %v692_v29 = vld [vmem:[%s1019_s1 + $0x104] ss:$8 sps:$4 sm:$0xff]  }
   0xb   :  { %463 = vmatpush1.bf16.msra.mxu0 %v664_v10  ;;  %v694_v30 = vld [vmem:[%s1019_s1] ss:$8 sps:$4 sm:$0xff]   ;;  %v696_v32 = vld [vmem:[%s1019_s1 + $0xf4] ss:$8 sps:$4 sm:$0xff]   ;;  %v700_v34 = vld [vmem:[%s1019_s1 + $0xf0] ss:$8 sps:$4 sm:$0xff]  }
   0xc   :  { %516 = vmatpush1.bf16.msra.mxu1 %v665_v11  ;;  %464 = vmatprep.subr.bf16.mxu0 %v666_v12  ;;  %v695_v31 = vld [vmem:[%s1019_s1 + $0x100] ss:$8 sps:$4 sm:$0xff]   ;;  %v698_v33 = vld [vmem:[%s1019_s1 + $0x1f4] ss:$8 sps:$4 sm:$0xff]   ;;  %v701_v35 = vld [vmem:[%s1019_s1 + $0x1f0] ss:$8 sps:$4 sm:$0xff]  }
   0xd   :  { %517 = vmatprep.subr.bf16.mxu1 %v668_v13  ;;  %v702_v36 = vld [vmem:[%s1019_s1 + $0xe4] ss:$8 sps:$4 sm:$0xff]   ;;  %v706_v38 = vld [vmem:[%s1019_s1 + $0xe0] ss:$8 sps:$4 sm:$0xff]   ;;  %v708_v40 = vld [vmem:[%s1019_s1 + $0xd4] ss:$8 sps:$4 sm:$0xff]  }
   0xe   :  { %v704_v37 = vld [vmem:[%s1019_s1 + $0x1e4] ss:$8 sps:$4 sm:$0xff]   ;;  %v707_v39 = vld [vmem:[%s1019_s1 + $0x1e0] ss:$8 sps:$4 sm:$0xff]   ;;  %v710_v41 = vld [vmem:[%s1019_s1 + $0x1d4] ss:$8 sps:$4 sm:$0xff]  }
   0xf   :  { %465 = vmatpush1.bf16.msra.mxu0 %v670_v14  ;;  %v712_v42 = vld [vmem:[%s1019_s1 + $0xd0] ss:$8 sps:$4 sm:$0xff]   ;;  %v714_v44 = vld [vmem:[%s1019_s1 + $0xc4] ss:$8 sps:$4 sm:$0xff]   ;;  %v718_v46 = vld [vmem:[%s1019_s1 + $0xc0] ss:$8 sps:$4 sm:$0xff]  }
  0x10   :  { %518 = vmatpush1.bf16.msra.mxu1 %v671_v15  ;;  %466 = vmatprep.subr.bf16.mxu0 %v672_v16  ;;  %v713_v43 = vld [vmem:[%s1019_s1 + $0x1d0] ss:$8 sps:$4 sm:$0xff]   ;;  %v716_v45 = vld [vmem:[%s1019_s1 + $0x1c4] ss:$8 sps:$4 sm:$0xff]   ;;  %v719_v47 = vld [vmem:[%s1019_s1 + $0x1c0] ss:$8 sps:$4 sm:$0xff]  }
  0x11   :  { %519 = vmatprep.subr.bf16.mxu1 %v674_v17  ;;  %v720_v48 = vld [vmem:[%s1019_s1 + $0xb4] ss:$8 sps:$4 sm:$0xff]   ;;  %v724_v52 = vld [vmem:[%s1019_s1 + $0xb0] ss:$8 sps:$4 sm:$0xff]   ;;  %v726_v54 = vld [vmem:[%s1019_s1 + $0xa4] ss:$8 sps:$4 sm:$0xff]  }
  0x12   :  { %v746_v49 = vld [vmem:[%s1020_s0 + $0x4] ss:$16 sps:$4 sm:$0xff]   ;;  %v749_v51 = vld [vmem:[%s1020_s0 + $0xc] ss:$16 sps:$4 sm:$0xff]   ;;  %v725_v53 = vld [vmem:[%s1019_s1 + $0x1b0] ss:$8 sps:$4 sm:$0xff]  }
  0x13   :  { %467 = vmatpush1.bf16.msra.mxu0 %v676_v18  ;;  %v722_v50 = vld [vmem:[%s1019_s1 + $0x1b4] ss:$8 sps:$4 sm:$0xff]   ;;  %490 = vmatprep.mubr.bf16.mxu0 %v746_v49  ;;  %v728_v55 = vld [vmem:[%s1019_s1 + $0x1a4] ss:$8 sps:$4 sm:$0xff]   ;;  %v730_v56 = vld [vmem:[%s1019_s1 + $0xa0] ss:$8 sps:$4 sm:$0xff]  }
  0x14   :  { %520 = vmatpush1.bf16.msra.mxu1 %v677_v19  ;;  %468 = vmatprep.subr.bf16.mxu0 %v678_v20  ;;  %v731_v57 = vld [vmem:[%s1019_s1 + $0x1a0] ss:$8 sps:$4 sm:$0xff]   ;;  %v732_v58 = vld [vmem:[%s1019_s1 + $0x94] ss:$8 sps:$4 sm:$0xff]   ;;  %v736_v60 = vld [vmem:[%s1019_s1 + $0x90] ss:$8 sps:$4 sm:$0xff]  }
  0x15   :  { %521 = vmatprep.subr.bf16.mxu1 %v680_v21  ;;  %543 = vmatprep.mubr.bf16.mxu1 %v749_v51  ;;  %v734_v59 = vld [vmem:[%s1019_s1 + $0x194] ss:$8 sps:$4 sm:$0xff]   ;;  %v737_v61 = vld [vmem:[%s1019_s1 + $0x190] ss:$8 sps:$4 sm:$0xff]   ;;  %v738_v62 = vld [vmem:[%s1019_s1 + $0x84] ss:$8 sps:$4 sm:$0xff]  }
  0x16   :  { %v740_v63 = vld [vmem:[%s1019_s1 + $0x184] ss:$8 sps:$4 sm:$0xff]   ;;  %v742_v0 = vld [vmem:[%s1019_s1 + $0x80] ss:$8 sps:$4 sm:$0xff]   ;;  %v89_v9 = vshrl.u32 %v88_v8, 7 }
  0x17   :  { %469 = vmatpush1.bf16.msra.mxu0 %v682_v22  ;;  %v743_v1 = vld [vmem:[%s1019_s1 + $0x180] ss:$8 sps:$4 sm:$0xff]   ;;  %v750_v4 = vld [vmem:[%s1020_s0 + $0x24] ss:$16 sps:$4 sm:$0xff]   ;;  %v752_v5 = vld [vmem:[%s1020_s0 + $0x2c] ss:$16 sps:$4 sm:$0xff]  }
  0x18   :  { %522 = vmatpush1.bf16.msra.mxu1 %v683_v23  ;;  %470 = vmatprep.subr.bf16.mxu0 %v684_v24  ;;  %v744_v2 = vld [vmem:[%s1020_s0] ss:$16 sps:$4 sm:$0xff]   ;;  %v747_v3 = vld [vmem:[%s1020_s0 + $0x8] ss:$16 sps:$4 sm:$0xff]   ;;  %v90_v10 = vsub.s32 0, %v89_v9  ;;  %v94_v12 = vsub.s32 1, %v89_v9 }
  0x19   :  { %523 = vmatprep.subr.bf16.mxu1 %v686_v25  ;;  %v754_v6 = vld [vmem:[%s1020_s0 + $0x20] ss:$16 sps:$4 sm:$0xff]   ;;  %v755_v7 = vld [vmem:[%s1020_s0 + $0x28] ss:$16 sps:$4 sm:$0xff]  }
  0x1a   :  { %v86_v11 = vld [vmem:[%s1021_s2] sm:$0x3] }
  0x1b   :  { %471 = vmatpush1.bf16.msra.mxu0 %v688_v26  ;;  %v91_v13 = vrot.slane %v86_v11, %v90_v10  ;;  %v95_v14 = vrot.slane %v86_v11, %v94_v12 }
  0x1c   :  { %524 = vmatpush1.bf16.msra.mxu1 %v689_v27  ;;  %472 = vmatprep.subr.bf16.mxu0 %v690_v28 }
  0x1d   :  { %525 = vmatprep.subr.bf16.mxu1 %v692_v29 }
  0x1f   :  { %473 = vmatpush1.bf16.msra.mxu0 %v694_v30 }
  0x20   :  { %526 = vmatpush1.bf16.msra.mxu1 %v695_v31  ;;  %474 = vmatprep.subr.bf16.mxu0 %v696_v32 }
  0x21   :  { %527 = vmatprep.subr.bf16.mxu1 %v698_v33 }
  0x23   :  { %475 = vmatpush2.bf16.msra.mxu0 %v700_v34 }
  0x24   :  { %528 = vmatpush2.bf16.msra.mxu1 %v701_v35  ;;  %476 = vmatprep.subr.bf16.mxu0 %v702_v36 }
  0x25   :  { %529 = vmatprep.subr.bf16.mxu1 %v704_v37 }
  0x27   :  { %477 = vmatpush2.bf16.msra.mxu0 %v706_v38 }
  0x28   :  { %530 = vmatpush2.bf16.msra.mxu1 %v707_v39  ;;  %478 = vmatprep.subr.bf16.mxu0 %v708_v40 }
  0x29   :  { %531 = vmatprep.subr.bf16.mxu1 %v710_v41 }
  0x2b   :  { %479 = vmatpush2.bf16.msra.mxu0 %v712_v42 }
  0x2c   :  { %532 = vmatpush2.bf16.msra.mxu1 %v713_v43  ;;  %480 = vmatprep.subr.bf16.mxu0 %v714_v44 }
  0x2d   :  { %533 = vmatprep.subr.bf16.mxu1 %v716_v45 }
  0x2f   :  { %481 = vmatpush2.bf16.msra.mxu0 %v718_v46 }
  0x30   :  { %534 = vmatpush2.bf16.msra.mxu1 %v719_v47  ;;  %482 = vmatprep.subr.bf16.mxu0 %v720_v48 }
  0x31   :  { %535 = vmatprep.subr.bf16.mxu1 %v722_v50 }
  0x33   :  { %483 = vmatpush2.bf16.msra.mxu0 %v724_v52 }
  0x34   :  { %536 = vmatpush2.bf16.msra.mxu1 %v725_v53  ;;  %484 = vmatprep.subr.bf16.mxu0 %v726_v54 }
  0x35   :  { %537 = vmatprep.subr.bf16.mxu1 %v728_v55 }
  0x37   :  { %485 = vmatpush2.bf16.msra.mxu0 %v730_v56 }
  0x38   :  { %538 = vmatpush2.bf16.msra.mxu1 %v731_v57  ;;  %486 = vmatprep.subr.bf16.mxu0 %v732_v58 }
  0x39   :  { %539 = vmatprep.subr.bf16.mxu1 %v734_v59 }
  0x3b   :  { %487 = vmatpush2.bf16.msra.mxu0 %v736_v60 }
  0x3c   :  { %540 = vmatpush2.bf16.msra.mxu1 %v737_v61  ;;  %488 = vmatprep.subr.bf16.mxu0 %v738_v62 }
  0x3d   :  { %541 = vmatprep.subr.bf16.mxu1 %v740_v63 }
  0x3f   :  { %489 = vmatpush2.bf16.msra.mxu0 %v742_v0 }
  0x40   :  { %542 = vmatpush2.bf16.msra.mxu1 %v743_v1 }
  0x42   :  { %491 = vmatmul.mubr.bf16.vlgmr.msra.gmra.mxu0 %v744_v2 }
  0x43   :  { %544 = vmatmul.mubr.bf16.vlgmr.msra.gmra.mxu1 %v747_v3  ;;  %500 = vmatprep.mubr.bf16.mxu0 %v750_v4 }
  0x44   :  { %553 = vmatprep.mubr.bf16.mxu1 %v752_v5 }
  0x4a   :  { %501 = vmatmul.mubr.bf16.gmra.mxu0 %v754_v6 }
  0x4b   :  { %554 = vmatmul.mubr.bf16.gmra.mxu1 %v755_v7 }
 0x102   :  { %v492_v15 = vpop.f32.mrf.mxu0 }
 0x103   :  { %v545_v16 = vpop.f32.mrf.mxu1  ;;  %v493_v17 = vadd.f32 %v492_v15, %v91_v13 }
 0x104   :  { %v494_v18 = vpop.f32.mrf.mxu0 }
 0x105   :  { %v547_v19 = vpop.f32.mrf.mxu1  ;;  %v546_v20 = vadd.f32 %v545_v16, %v493_v17  ;;  %v495_v21 = vadd.f32 %v494_v18, %v95_v14 }
 0x106   :  { %v496_v22 = vpop.f32.mrf.mxu0 }
 0x107   :  { %v549_v23 = vpop.f32.mrf.mxu1  ;;  %564 = vst [vmem:[%s1022_s3] sm:$0xff] %v546_v20  ;;  %v548_v24 = vadd.f32 %v547_v19, %v495_v21  ;;  %v497_v25 = vadd.f32 %v496_v22, %v91_v13 }
 0x108   :  { %v498_v26 = vpop.f32.mrf.mxu0 }
 0x109   :  { %v551_v27 = vpop.f32.mrf.mxu1  ;;  %565 = vst [vmem:[%s1022_s3 + $0x8] sm:$0xff] %v548_v24  ;;  %v550_v28 = vadd.f32 %v549_v23, %v497_v25  ;;  %v499_v29 = vadd.f32 %v498_v26, %v95_v14 }
 0x10a   :  { %v502_v30 = vpop.f32.mrf.mxu0 }
 0x10b   :  { %v555_v31 = vpop.f32.mrf.mxu1  ;;  %566 = vst [vmem:[%s1022_s3 + $0x10] sm:$0xff] %v550_v28  ;;  %v552_v32 = vadd.f32 %v551_v27, %v499_v29  ;;  %v503_v33 = vadd.f32 %v502_v30, %v91_v13 }
 0x10c   :  { %v504_v34 = vpop.f32.mrf.mxu0 }
 0x10d   :  { %v557_v35 = vpop.f32.mrf.mxu1  ;;  %567 = vst [vmem:[%s1022_s3 + $0x18] sm:$0xff] %v552_v32  ;;  %v556_v36 = vadd.f32 %v555_v31, %v503_v33  ;;  %v505_v37 = vadd.f32 %v504_v34, %v95_v14 }
 0x10e   :  { %v506_v38 = vpop.f32.mrf.mxu0 }
 0x10f   :  { %v559_v39 = vpop.f32.mrf.mxu1  ;;  %568 = vst [vmem:[%s1022_s3 + $0x20] sm:$0xff] %v556_v36  ;;  %v558_v40 = vadd.f32 %v557_v35, %v505_v37  ;;  %v507_v41 = vadd.f32 %v506_v38, %v91_v13 }
 0x110   :  { %v508_v42 = vpop.f32.mrf.mxu0 }
 0x111   :  { %569 = vst [vmem:[%s1022_s3 + $0x28] sm:$0xff] %v558_v40  ;;  %v560_v43 = vadd.f32 %v559_v39, %v507_v41  ;;  %v509_v44 = vadd.f32 %v508_v42, %v95_v14  ;;  %v561_v45 = vpop.f32.mrf.mxu1 }
 0x113   :  { %570 = vst [vmem:[%s1022_s3 + $0x30] sm:$0xff] %v560_v43  ;;  %v562_v46 = vadd.f32 %v561_v45, %v509_v44 }
 0x115   :  { %571 = vst [vmem:[%s1022_s3 + $0x38] sm:$0xff] %v562_v46 }

// kernel: generate_a_forward.35
= control target key start
LH: loop header
LB: loop body
LE: loop exit
PB: predicated region body
PF: predicated region fallthrough
CT: control target
= control target key end

     0   :  { %s701_s1 = inlined_call_operand.vmem [shape: bf16[256,128], index: 1, kind: input, shape index: {}]   ;;  %s702_s0 = inlined_call_operand.vmem [shape: bf16[128,256], index: 0, kind: input, shape index: {}]   ;;  %s703_s2 = inlined_call_operand.vmem [shape: f32[1,128], index: 2, kind: input, shape index: {}]   ;;  %s704_s3 = inlined_call_operand.vmem [shape: f32[128,128], index: 3, kind: output, shape index: {}]  }
   0x1   :  { %v476_v0 = vld [vmem:[%s701_s1 + $0x78] sm:$0xff]   ;;  %v478_v2 = vld [vmem:[%s701_s1 + $0x70] sm:$0xff]   ;;  %v480_v4 = vld [vmem:[%s701_s1 + $0x68] sm:$0xff]  }
   0x2   :  { %v477_v1 = vld [vmem:[%s701_s1 + $0x38] sm:$0xff]   ;;  %396 = vmatprep.subr.bf16.mxu0 %v476_v0  ;;  %460 = vmatprep.subr.bf16.mxu1 %v476_v0  ;;  %v479_v3 = vld [vmem:[%s701_s1 + $0x30] sm:$0xff]   ;;  %v481_v5 = vld [vmem:[%s701_s1 + $0x28] sm:$0xff]  }
   0x3   :  { %397 = vmatpush3.bf16.msra.mxu0 %v477_v1  ;;  %468 = vmatpush3.bf16.msra.mxu1 %v477_v1  ;;  %v482_v6 = vld [vmem:[%s701_s1 + $0x60] sm:$0xff]   ;;  %v484_v8 = vld [vmem:[%s701_s1 + $0x58] sm:$0xff]   ;;  %v486_v10 = vld [vmem:[%s701_s1 + $0x50] sm:$0xff]  }
   0x4   :  { %398 = vmatprep.subr.bf16.mxu0 %v478_v2  ;;  %461 = vmatprep.subr.bf16.mxu1 %v478_v2  ;;  %v483_v7 = vld [vmem:[%s701_s1 + $0x20] sm:$0xff]   ;;  %v485_v9 = vld [vmem:[%s701_s1 + $0x18] sm:$0xff]   ;;  %v487_v13 = vld [vmem:[%s701_s1 + $0x10] sm:$0xff]  }
   0x5   :  { %v494_v11 = vld [vmem:[%s702_s0 + $0x4] ss:$8 sps:$4 sm:$0xff]   ;;  %v492_v18 = vld [vmem:[%s702_s0] ss:$8 sps:$4 sm:$0xff]   ;;  %v498_v20 = vld [vmem:[%s702_s0 + $0x14] ss:$8 sps:$4 sm:$0xff]  }
   0x6   :  { %v497_v12 = vld [vmem:[%s702_s0 + $0x44] ss:$8 sps:$4 sm:$0xff]   ;;  %278 = vmatprep.mubr.bf16.mxu0 %v494_v11  ;;  %v495_v19 = vld [vmem:[%s702_s0 + $0x40] ss:$8 sps:$4 sm:$0xff]   ;;  %v500_v21 = vld [vmem:[%s702_s0 + $0x54] ss:$8 sps:$4 sm:$0xff]  }
   0x7   :  { %399 = vmatpush3.bf16.msra.mxu0 %v479_v3  ;;  %469 = vmatpush3.bf16.msra.mxu1 %v479_v3  ;;  %v488_v14 = vld [vmem:[%s701_s1 + $0x48] sm:$0xff]   ;;  %v490_v16 = vld [vmem:[%s701_s1 + $0x40] sm:$0xff]   ;;  %v502_v22 = vld [vmem:[%s702_s0 + $0x10] ss:$8 sps:$4 sm:$0xff]  }
   0x8   :  { %400 = vmatprep.subr.bf16.mxu0 %v480_v4  ;;  %462 = vmatprep.subr.bf16.mxu1 %v480_v4  ;;  %v489_v15 = vld [vmem:[%s701_s1 + $0x8] sm:$0xff]   ;;  %v491_v17 = vld [vmem:[%s701_s1] sm:$0xff]   ;;  %v503_v23 = vld [vmem:[%s702_s0 + $0x50] ss:$8 sps:$4 sm:$0xff]  }
   0x9   :  { %310 = vmatprep.mubr.bf16.mxu1 %v497_v12  ;;  %v504_v24 = vld [vmem:[%s702_s0 + $0x24] ss:$8 sps:$4 sm:$0xff]   ;;  %v508_v26 = vld [vmem:[%s702_s0 + $0x20] ss:$8 sps:$4 sm:$0xff]   ;;  %v510_v28 = vld [vmem:[%s702_s0 + $0x34] ss:$8 sps:$4 sm:$0xff]  }
   0xa   :  { %v506_v25 = vld [vmem:[%s702_s0 + $0x64] ss:$8 sps:$4 sm:$0xff]   ;;  %v509_v27 = vld [vmem:[%s702_s0 + $0x60] ss:$8 sps:$4 sm:$0xff]   ;;  %v512_v29 = vld [vmem:[%s702_s0 + $0x74] ss:$8 sps:$4 sm:$0xff]  }
   0xb   :  { %401 = vmatpush3.bf16.msra.mxu0 %v481_v5  ;;  %470 = vmatpush3.bf16.msra.mxu1 %v481_v5  ;;  %v514_v30 = vld [vmem:[%s702_s0 + $0x30] ss:$8 sps:$4 sm:$0xff]   ;;  %v635_v34 = vld [vmem:[%s703_s2] ss:$0 sm:$0xff] }
   0xc   :  { %402 = vmatprep.subr.bf16.mxu0 %v482_v6  ;;  %463 = vmatprep.subr.bf16.mxu1 %v482_v6  ;;  %v515_v31 = vld [vmem:[%s702_s0 + $0x70] ss:$8 sps:$4 sm:$0xff]  }
   0xf   :  { %403 = vmatpush3.bf16.msra.mxu0 %v483_v7  ;;  %471 = vmatpush3.bf16.msra.mxu1 %v483_v7 }
  0x10   :  { %404 = vmatprep.subr.bf16.mxu0 %v484_v8  ;;  %464 = vmatprep.subr.bf16.mxu1 %v484_v8 }
  0x13   :  { %405 = vmatpush3.bf16.msra.mxu0 %v485_v9  ;;  %472 = vmatpush3.bf16.msra.mxu1 %v485_v9 }
  0x14   :  { %406 = vmatprep.subr.bf16.mxu0 %v486_v10  ;;  %465 = vmatprep.subr.bf16.mxu1 %v486_v10 }
  0x17   :  { %407 = vmatpush3.bf16.msra.mxu0 %v487_v13  ;;  %473 = vmatpush3.bf16.msra.mxu1 %v487_v13 }
  0x18   :  { %408 = vmatprep.subr.bf16.mxu0 %v488_v14  ;;  %466 = vmatprep.subr.bf16.mxu1 %v488_v14 }
  0x1b   :  { %409 = vmatpush3.bf16.msra.mxu0 %v489_v15  ;;  %474 = vmatpush3.bf16.msra.mxu1 %v489_v15 }
  0x1c   :  { %410 = vmatprep.subr.bf16.mxu0 %v490_v16  ;;  %467 = vmatprep.subr.bf16.mxu1 %v490_v16 }
  0x1f   :  { %411 = vmatpush3.bf16.msra.mxu0 %v491_v17  ;;  %475 = vmatpush3.bf16.msra.mxu1 %v491_v17 }
  0x22   :  { %279 = vmatmul.mubr.bf16.vlgmr.msra.gmra.mxu0 %v492_v18  ;;  %311 = vmatmul.mubr.bf16.vlgmr.msra.gmra.mxu1 %v495_v19 }
  0x23   :  { %286 = vmatprep.mubr.bf16.mxu0 %v498_v20  ;;  %318 = vmatprep.mubr.bf16.mxu1 %v500_v21 }
  0x2a   :  { %287 = vmatmul.mubr.bf16.gmra.mxu0 %v502_v22  ;;  %319 = vmatmul.mubr.bf16.gmra.mxu1 %v503_v23 }
  0x2b   :  { %294 = vmatprep.mubr.bf16.mxu0 %v504_v24  ;;  %326 = vmatprep.mubr.bf16.mxu1 %v506_v25 }
  0x32   :  { %295 = vmatmul.mubr.bf16.gmra.mxu0 %v508_v26  ;;  %327 = vmatmul.mubr.bf16.gmra.mxu1 %v509_v27 }
  0x33   :  { %302 = vmatprep.mubr.bf16.mxu0 %v510_v28  ;;  %334 = vmatprep.mubr.bf16.mxu1 %v512_v29 }
  0x3a   :  { %303 = vmatmul.mubr.bf16.gmra.mxu0 %v514_v30  ;;  %335 = vmatmul.mubr.bf16.gmra.mxu1 %v515_v31 }
  0xe2   :  { %v412_v32 = vpop.f32.mrf.mxu0  ;;  %v436_v33 = vpop.f32.mrf.mxu1 }
  0xe4   :  { %v413_v35 = vpop.f32.mrf.mxu0  ;;  %v437_v36 = vpop.f32.mrf.mxu1 }
  0xe5   :  { %v414_v37 = vadd.f32 %v413_v35, %v412_v32  ;;  %v438_v38 = vadd.f32 %v437_v36, %v436_v33 }
  0xe6   :  { %v415_v39 = vpop.f32.mrf.mxu0  ;;  %v439_v40 = vpop.f32.mrf.mxu1 }
  0xe7   :  { %v281_v41 = vadd.f32 %v414_v37, %v635_v34  ;;  %v313_v42 = vadd.f32 %v438_v38, %v635_v34 }
  0xe8   :  { %v416_v43 = vpop.f32.mrf.mxu0  ;;  %v440_v44 = vpop.f32.mrf.mxu1 }
  0xe9   :  { %343 = vst [vmem:[%s704_s3] sm:$0xff] %v281_v41  ;;  %351 = vst [vmem:[%s704_s3 + $0x40] sm:$0xff] %v313_v42  ;;  %v417_v45 = vadd.f32 %v416_v43, %v415_v39  ;;  %v441_v46 = vadd.f32 %v440_v44, %v439_v40 }
  0xea   :  { %v418_v47 = vpop.f32.mrf.mxu0  ;;  %v442_v48 = vpop.f32.mrf.mxu1 }
  0xeb   :  { %v284_v49 = vadd.f32 %v417_v45, %v635_v34  ;;  %v316_v50 = vadd.f32 %v441_v46, %v635_v34 }
  0xec   :  { %v419_v51 = vpop.f32.mrf.mxu0  ;;  %v443_v52 = vpop.f32.mrf.mxu1 }
  0xed   :  { %344 = vst [vmem:[%s704_s3 + $0x8] sm:$0xff] %v284_v49  ;;  %352 = vst [vmem:[%s704_s3 + $0x48] sm:$0xff] %v316_v50  ;;  %v420_v53 = vadd.f32 %v419_v51, %v418_v47  ;;  %v444_v54 = vadd.f32 %v443_v52, %v442_v48 }
  0xee   :  { %v421_v55 = vpop.f32.mrf.mxu0  ;;  %v445_v56 = vpop.f32.mrf.mxu1 }
  0xef   :  { %v289_v57 = vadd.f32 %v420_v53, %v635_v34  ;;  %v321_v58 = vadd.f32 %v444_v54, %v635_v34 }
  0xf0   :  { %v422_v59 = vpop.f32.mrf.mxu0  ;;  %v446_v60 = vpop.f32.mrf.mxu1 }
  0xf1   :  { %345 = vst [vmem:[%s704_s3 + $0x10] sm:$0xff] %v289_v57  ;;  %353 = vst [vmem:[%s704_s3 + $0x50] sm:$0xff] %v321_v58  ;;  %v423_v61 = vadd.f32 %v422_v59, %v421_v55  ;;  %v447_v62 = vadd.f32 %v446_v60, %v445_v56 }
  0xf2   :  { %v424_v63 = vpop.f32.mrf.mxu0  ;;  %v448_v0 = vpop.f32.mrf.mxu1 }
  0xf3   :  { %v292_v1 = vadd.f32 %v423_v61, %v635_v34  ;;  %v324_v2 = vadd.f32 %v447_v62, %v635_v34 }
  0xf4   :  { %v425_v3 = vpop.f32.mrf.mxu0  ;;  %v449_v4 = vpop.f32.mrf.mxu1 }
  0xf5   :  { %346 = vst [vmem:[%s704_s3 + $0x18] sm:$0xff] %v292_v1  ;;  %354 = vst [vmem:[%s704_s3 + $0x58] sm:$0xff] %v324_v2  ;;  %v426_v5 = vadd.f32 %v425_v3, %v424_v63  ;;  %v450_v6 = vadd.f32 %v449_v4, %v448_v0 }
  0xf6   :  { %v427_v7 = vpop.f32.mrf.mxu0  ;;  %v451_v8 = vpop.f32.mrf.mxu1 }
  0xf7   :  { %v297_v9 = vadd.f32 %v426_v5, %v635_v34  ;;  %v329_v10 = vadd.f32 %v450_v6, %v635_v34 }
  0xf8   :  { %v428_v11 = vpop.f32.mrf.mxu0  ;;  %v452_v12 = vpop.f32.mrf.mxu1 }
  0xf9   :  { %347 = vst [vmem:[%s704_s3 + $0x20] sm:$0xff] %v297_v9  ;;  %355 = vst [vmem:[%s704_s3 + $0x60] sm:$0xff] %v329_v10  ;;  %v429_v13 = vadd.f32 %v428_v11, %v427_v7  ;;  %v453_v14 = vadd.f32 %v452_v12, %v451_v8 }
  0xfa   :  { %v430_v15 = vpop.f32.mrf.mxu0  ;;  %v454_v16 = vpop.f32.mrf.mxu1 }
  0xfb   :  { %v300_v17 = vadd.f32 %v429_v13, %v635_v34  ;;  %v332_v18 = vadd.f32 %v453_v14, %v635_v34 }
  0xfc   :  { %v431_v19 = vpop.f32.mrf.mxu0  ;;  %v455_v20 = vpop.f32.mrf.mxu1 }
  0xfd   :  { %348 = vst [vmem:[%s704_s3 + $0x28] sm:$0xff] %v300_v17  ;;  %356 = vst [vmem:[%s704_s3 + $0x68] sm:$0xff] %v332_v18  ;;  %v432_v21 = vadd.f32 %v431_v19, %v430_v15  ;;  %v456_v22 = vadd.f32 %v455_v20, %v454_v16 }
  0xfe   :  { %v433_v23 = vpop.f32.mrf.mxu0  ;;  %v457_v24 = vpop.f32.mrf.mxu1 }
  0xff   :  { %v305_v25 = vadd.f32 %v432_v21, %v635_v34  ;;  %v337_v26 = vadd.f32 %v456_v22, %v635_v34 }
 0x100   :  { %v434_v27 = vpop.f32.mrf.mxu0  ;;  %v458_v28 = vpop.f32.mrf.mxu1 }
 0x101   :  { %349 = vst [vmem:[%s704_s3 + $0x30] sm:$0xff] %v305_v25  ;;  %357 = vst [vmem:[%s704_s3 + $0x70] sm:$0xff] %v337_v26  ;;  %v435_v29 = vadd.f32 %v434_v27, %v433_v23  ;;  %v459_v30 = vadd.f32 %v458_v28, %v457_v24 }
 0x103   :  { %v308_v31 = vadd.f32 %v435_v29, %v635_v34  ;;  %v340_v32 = vadd.f32 %v459_v30, %v635_v34 }
 0x105   :  { %350 = vst [vmem:[%s704_s3 + $0x38] sm:$0xff] %v308_v31  ;;  %358 = vst [vmem:[%s704_s3 + $0x78] sm:$0xff] %v340_v32 }

// kernel: generate_a_forward.36
= control target key start
LH: loop header
LB: loop body
LE: loop exit
PB: predicated region body
PF: predicated region fallthrough
CT: control target
= control target key end

     0   :  { %s938_s12 = smov 0   ;;  %s940_s13 = smov 0   ;;  %s1088_s0 = inlined_call_operand.vmem [shape: bf16[512,128], index: 0, kind: input, shape index: {}]   ;;  %s1089_s1 = inlined_call_operand.vmem [shape: bf16[128,128], index: 1, kind: input, shape index: {}]   ;;  %s1090_s2 = inlined_call_operand.vmem [shape: f32[1,128], index: 2, kind: input, shape index: {}]   ;;  %s1091_s3 = inlined_call_operand.vmem [shape: f32[512,128], index: 3, kind: output, shape index: {}]  }
   0x1   :  { %s942_s14 = smov 0  }
   0x2 LB: > { %s25_s15 = sadd.s32 1, %s912_s13  ;;  %p726_p0 = scmp.ge.s32.totalorder %s916_s14, 1  ;;  %s916_s14 = sphi %s942_s14, %s13_s14   ;;  %s912_s13 = sphi %s940_s13, %s1093_s13   ;;  %s908_s12 = sphi %s938_s12, %s1092_s12  }
   0x3   : > { %p27_p1 = scmp.ge.s32.totalorder %s25_s15, 2  ;;  %p169_p2 = scmp.lt.s32.totalorder %s916_s14, 3 }
   0x5   : > { %s1095_s15 = smov (%p27_p1, %s25_s15), 0  ;;  %p170_p3 = pnand %p726_p0, %p169_p2 }
   0x6   : > { %s727_s18 = sshll.u32 (!%p170_p3), %s908_s12, 5 }
   0x7   : > { %173 = sbr.rel (%p170_p3) target bundleno = 271 (0x10f), region = 32  ;;  %p204_p4 = scmp.lt.s32.totalorder (!%p170_p3), %s727_s18, 63 }
   0xc   : > { %v870_v0 = vld [vmem:[%s1089_s1 + $0x38] sm:$0xff]   ;;  %v871_v1 = vld [vmem:[%s1089_s1 + $0x30] sm:$0xff]   ;;  %s1097_s18 = smov (!%p204_p4, %s727_s18), 63  ;;  %v872_v2 = vld [vmem:[%s1089_s1 + $0x28] sm:$0xff]  }
   0xd   : > { %782 = vmatprep.subr.bf16.mxu0 %v870_v0  ;;  %830 = vmatprep.subr.bf16.mxu1 %v870_v0  ;;  %s728_s23 = sshll.u32 %s1097_s18, 2  ;;  %v873_v3 = vld [vmem:[%s1089_s1 + $0x20] sm:$0xff]   ;;  %v874_v6 = vld [vmem:[%s1089_s1 + $0x18] sm:$0xff]   ;;  %v875_v7 = vld [vmem:[%s1089_s1 + $0x10] sm:$0xff]   ;;  %s730_s10 = sshll.u32 %s1097_s18, 3 }
   0xe   : > { %783 = vmatpush3.bf16.msra.mxu0 %v870_v0  ;;  %838 = vmatpush3.bf16.msra.mxu1 %v870_v0  ;;  %s971_s26 = scalar_lea.vmem %s1088_s0, %s728_s23  ;;  %v876_v8 = vld [vmem:[%s1089_s1 + $0x8] sm:$0xff]   ;;  %v877_v9 = vld [vmem:[%s1089_s1] sm:$0xff]   ;;  %s1013_s19 = scalar_lea.vmem %s1091_s3, %s730_s10 }
   0xf   : > { %784 = vmatprep.subr.bf16.mxu0 %v871_v1  ;;  %831 = vmatprep.subr.bf16.mxu1 %v871_v1  ;;  %v878_v4 = vld [vmem:[%s971_s26] sm:$0xff]   ;;  %v880_v10 = vld [vmem:[%s971_s26 + $0x8] sm:$0xff]   ;;  %v882_v12 = vld [vmem:[%s971_s26 + $0x10] sm:$0xff]  }
  0x10   : > { %v879_v5 = vld [vmem:[%s971_s26 + $0x40] sm:$0xff]   ;;  %798 = vmatprep.mubr.bf16.mxu0 %v878_v4  ;;  %v881_v11 = vld [vmem:[%s971_s26 + $0x48] sm:$0xff]   ;;  %v883_v13 = vld [vmem:[%s971_s26 + $0x50] sm:$0xff]  }
  0x11   : > { %814 = vmatprep.mubr.bf16.mxu1 %v879_v5  ;;  %v884_v14 = vld [vmem:[%s971_s26 + $0x18] sm:$0xff]   ;;  %v886_v16 = vld [vmem:[%s971_s26 + $0x20] sm:$0xff]   ;;  %v888_v18 = vld [vmem:[%s971_s26 + $0x28] sm:$0xff]  }
  0x12   : > { %785 = vmatpush3.bf16.msra.mxu0 %v871_v1  ;;  %839 = vmatpush3.bf16.msra.mxu1 %v871_v1  ;;  %v885_v15 = vld [vmem:[%s971_s26 + $0x58] sm:$0xff]   ;;  %v887_v17 = vld [vmem:[%s971_s26 + $0x60] sm:$0xff]   ;;  %v889_v19 = vld [vmem:[%s971_s26 + $0x68] sm:$0xff]  }
  0x13   : > { %786 = vmatprep.subr.bf16.mxu0 %v872_v2  ;;  %832 = vmatprep.subr.bf16.mxu1 %v872_v2  ;;  %v890_v20 = vld [vmem:[%s971_s26 + $0x30] sm:$0xff]   ;;  %v892_v22 = vld [vmem:[%s971_s26 + $0x38] sm:$0xff]   ;;  %v1008_v24 = vld [vmem:[%s1090_s2] ss:$0 sm:$0xff] }
  0x14   : > { %v891_v21 = vld [vmem:[%s971_s26 + $0x70] sm:$0xff]   ;;  %v893_v23 = vld [vmem:[%s971_s26 + $0x78] sm:$0xff]  }
  0x16   : > { %787 = vmatpush3.bf16.msra.mxu0 %v872_v2  ;;  %840 = vmatpush3.bf16.msra.mxu1 %v872_v2 }
  0x17   : > { %788 = vmatprep.subr.bf16.mxu0 %v873_v3  ;;  %833 = vmatprep.subr.bf16.mxu1 %v873_v3 }
  0x1a   : > { %789 = vmatpush3.bf16.msra.mxu0 %v873_v3  ;;  %841 = vmatpush3.bf16.msra.mxu1 %v873_v3 }
  0x1b   : > { %790 = vmatprep.subr.bf16.mxu0 %v874_v6  ;;  %834 = vmatprep.subr.bf16.mxu1 %v874_v6 }
  0x1e   : > { %791 = vmatpush3.bf16.msra.mxu0 %v874_v6  ;;  %842 = vmatpush3.bf16.msra.mxu1 %v874_v6 }
  0x1f   : > { %792 = vmatprep.subr.bf16.mxu0 %v875_v7  ;;  %835 = vmatprep.subr.bf16.mxu1 %v875_v7 }
  0x22   : > { %793 = vmatpush3.bf16.msra.mxu0 %v875_v7  ;;  %843 = vmatpush3.bf16.msra.mxu1 %v875_v7 }
  0x23   : > { %794 = vmatprep.subr.bf16.mxu0 %v876_v8  ;;  %836 = vmatprep.subr.bf16.mxu1 %v876_v8 }
  0x26   : > { %795 = vmatpush3.bf16.msra.mxu0 %v876_v8  ;;  %844 = vmatpush3.bf16.msra.mxu1 %v876_v8 }
  0x27   : > { %796 = vmatprep.subr.bf16.mxu0 %v877_v9  ;;  %837 = vmatprep.subr.bf16.mxu1 %v877_v9 }
  0x2a   : > { %797 = vmatpush3.bf16.msra.mxu0 %v877_v9  ;;  %845 = vmatpush3.bf16.msra.mxu1 %v877_v9 }
  0x2d   : > { %799 = vmatmul.mubr.bf16.vlgmr.msra.gmra.mxu0 %v880_v10  ;;  %815 = vmatmul.mubr.bf16.vlgmr.msra.gmra.mxu1 %v881_v11 }
  0x2e   : > { %802 = vmatprep.mubr.bf16.mxu0 %v882_v12  ;;  %818 = vmatprep.mubr.bf16.mxu1 %v883_v13 }
  0x35   : > { %803 = vmatmul.mubr.bf16.gmra.mxu0 %v884_v14  ;;  %819 = vmatmul.mubr.bf16.gmra.mxu1 %v885_v15 }
  0x36   : > { %806 = vmatprep.mubr.bf16.mxu0 %v886_v16  ;;  %822 = vmatprep.mubr.bf16.mxu1 %v887_v17 }
  0x3d   : > { %807 = vmatmul.mubr.bf16.gmra.mxu0 %v888_v18  ;;  %823 = vmatmul.mubr.bf16.gmra.mxu1 %v889_v19 }
  0x3e   : > { %810 = vmatprep.mubr.bf16.mxu0 %v890_v20  ;;  %826 = vmatprep.mubr.bf16.mxu1 %v891_v21 }
  0x45   : > { %811 = vmatmul.mubr.bf16.gmra.mxu0 %v892_v22  ;;  %827 = vmatmul.mubr.bf16.gmra.mxu1 %v893_v23 }
  0xed   : > { %v800_v25 = vpop.f32.mrf.mxu0  ;;  %v816_v26 = vpop.f32.mrf.mxu1 }
  0xee   : > { %v468_v27 = vadd.f32 %v800_v25, %v1008_v24  ;;  %v532_v28 = vadd.f32 %v816_v26, %v1008_v24 }
  0xef   : > { %v459_v29 = vpop.f32.mrf.mxu0  ;;  %v523_v30 = vpop.f32.mrf.mxu1 }
  0xf0   : > { %588 = vst [vmem:[%s1013_s19 + $0x10] sm:$0xff] %v468_v27  ;;  %604 = vst [vmem:[%s1013_s19 + $0x90] sm:$0xff] %v532_v28  ;;  %v460_v31 = vadd.f32 %v1008_v24, %v459_v29  ;;  %v524_v32 = vadd.f32 %v1008_v24, %v523_v30 }
  0xf1   : > { %v801_v33 = vpop.f32.mrf.mxu0  ;;  %v817_v34 = vpop.f32.mrf.mxu1 }
  0xf2   : > { %586 = vst [vmem:[%s1013_s19] sm:$0xff] %v460_v31  ;;  %602 = vst [vmem:[%s1013_s19 + $0x80] sm:$0xff] %v524_v32  ;;  %v471_v35 = vadd.f32 %v801_v33, %v1008_v24  ;;  %v535_v36 = vadd.f32 %v817_v34, %v1008_v24 }
  0xf3   : > { %v462_v37 = vpop.f32.mrf.mxu0  ;;  %v526_v38 = vpop.f32.mrf.mxu1 }
  0xf4   : > { %589 = vst [vmem:[%s1013_s19 + $0x18] sm:$0xff] %v471_v35  ;;  %605 = vst [vmem:[%s1013_s19 + $0x98] sm:$0xff] %v535_v36  ;;  %v463_v39 = vadd.f32 %v1008_v24, %v462_v37  ;;  %v527_v40 = vadd.f32 %v1008_v24, %v526_v38 }
  0xf5   : > { %v804_v41 = vpop.f32.mrf.mxu0  ;;  %v820_v42 = vpop.f32.mrf.mxu1 }
  0xf6   : > { %587 = vst [vmem:[%s1013_s19 + $0x8] sm:$0xff] %v463_v39  ;;  %603 = vst [vmem:[%s1013_s19 + $0x88] sm:$0xff] %v527_v40  ;;  %v484_v43 = vadd.f32 %v804_v41, %v1008_v24  ;;  %v548_v44 = vadd.f32 %v820_v42, %v1008_v24 }
  0xf7   : > { %v475_v45 = vpop.f32.mrf.mxu0  ;;  %v539_v46 = vpop.f32.mrf.mxu1 }
  0xf8   : > { %592 = vst [vmem:[%s1013_s19 + $0x30] sm:$0xff] %v484_v43  ;;  %608 = vst [vmem:[%s1013_s19 + $0xb0] sm:$0xff] %v548_v44  ;;  %v476_v47 = vadd.f32 %v1008_v24, %v475_v45  ;;  %v540_v48 = vadd.f32 %v1008_v24, %v539_v46 }
  0xf9   : > { %v805_v49 = vpop.f32.mrf.mxu0  ;;  %v821_v50 = vpop.f32.mrf.mxu1 }
  0xfa   : > { %590 = vst [vmem:[%s1013_s19 + $0x20] sm:$0xff] %v476_v47  ;;  %606 = vst [vmem:[%s1013_s19 + $0xa0] sm:$0xff] %v540_v48  ;;  %v487_v51 = vadd.f32 %v805_v49, %v1008_v24  ;;  %v551_v52 = vadd.f32 %v821_v50, %v1008_v24 }
  0xfb   : > { %v478_v53 = vpop.f32.mrf.mxu0  ;;  %v542_v54 = vpop.f32.mrf.mxu1 }
  0xfc   : > { %593 = vst [vmem:[%s1013_s19 + $0x38] sm:$0xff] %v487_v51  ;;  %609 = vst [vmem:[%s1013_s19 + $0xb8] sm:$0xff] %v551_v52  ;;  %v479_v55 = vadd.f32 %v1008_v24, %v478_v53  ;;  %v543_v56 = vadd.f32 %v1008_v24, %v542_v54 }
  0xfd   : > { %v808_v57 = vpop.f32.mrf.mxu0  ;;  %v824_v58 = vpop.f32.mrf.mxu1 }
  0xfe   : > { %591 = vst [vmem:[%s1013_s19 + $0x28] sm:$0xff] %v479_v55  ;;  %607 = vst [vmem:[%s1013_s19 + $0xa8] sm:$0xff] %v543_v56  ;;  %v500_v59 = vadd.f32 %v808_v57, %v1008_v24  ;;  %v564_v60 = vadd.f32 %v824_v58, %v1008_v24 }
  0xff   : > { %v491_v61 = vpop.f32.mrf.mxu0  ;;  %v555_v62 = vpop.f32.mrf.mxu1 }
 0x100   : > { %596 = vst [vmem:[%s1013_s19 + $0x50] sm:$0xff] %v500_v59  ;;  %612 = vst [vmem:[%s1013_s19 + $0xd0] sm:$0xff] %v564_v60  ;;  %v492_v63 = vadd.f32 %v1008_v24, %v491_v61  ;;  %v556_v0 = vadd.f32 %v1008_v24, %v555_v62 }
 0x101   : > { %v809_v1 = vpop.f32.mrf.mxu0  ;;  %v825_v2 = vpop.f32.mrf.mxu1 }
 0x102   : > { %594 = vst [vmem:[%s1013_s19 + $0x40] sm:$0xff] %v492_v63  ;;  %610 = vst [vmem:[%s1013_s19 + $0xc0] sm:$0xff] %v556_v0  ;;  %v503_v3 = vadd.f32 %v809_v1, %v1008_v24  ;;  %v567_v4 = vadd.f32 %v825_v2, %v1008_v24 }
 0x103   : > { %v494_v5 = vpop.f32.mrf.mxu0  ;;  %v558_v6 = vpop.f32.mrf.mxu1 }
 0x104   : > { %597 = vst [vmem:[%s1013_s19 + $0x58] sm:$0xff] %v503_v3  ;;  %613 = vst [vmem:[%s1013_s19 + $0xd8] sm:$0xff] %v567_v4  ;;  %v495_v7 = vadd.f32 %v1008_v24, %v494_v5  ;;  %v559_v8 = vadd.f32 %v1008_v24, %v558_v6 }
 0x105   : > { %v812_v9 = vpop.f32.mrf.mxu0  ;;  %v828_v10 = vpop.f32.mrf.mxu1 }
 0x106   : > { %595 = vst [vmem:[%s1013_s19 + $0x48] sm:$0xff] %v495_v7  ;;  %611 = vst [vmem:[%s1013_s19 + $0xc8] sm:$0xff] %v559_v8  ;;  %v516_v11 = vadd.f32 %v812_v9, %v1008_v24  ;;  %v580_v12 = vadd.f32 %v828_v10, %v1008_v24 }
 0x107   : > { %v507_v13 = vpop.f32.mrf.mxu0  ;;  %v571_v14 = vpop.f32.mrf.mxu1 }
 0x108   : > { %600 = vst [vmem:[%s1013_s19 + $0x70] sm:$0xff] %v516_v11  ;;  %616 = vst [vmem:[%s1013_s19 + $0xf0] sm:$0xff] %v580_v12  ;;  %v508_v15 = vadd.f32 %v1008_v24, %v507_v13  ;;  %v572_v16 = vadd.f32 %v1008_v24, %v571_v14 }
 0x109   : > { %v813_v17 = vpop.f32.mrf.mxu0  ;;  %v829_v18 = vpop.f32.mrf.mxu1 }
 0x10a   : > { %598 = vst [vmem:[%s1013_s19 + $0x60] sm:$0xff] %v508_v15  ;;  %614 = vst [vmem:[%s1013_s19 + $0xe0] sm:$0xff] %v572_v16  ;;  %v519_v19 = vadd.f32 %v813_v17, %v1008_v24  ;;  %v583_v20 = vadd.f32 %v829_v18, %v1008_v24 }
 0x10b   : > { %v510_v21 = vpop.f32.mrf.mxu0  ;;  %v574_v22 = vpop.f32.mrf.mxu1 }
 0x10c   : > { %601 = vst [vmem:[%s1013_s19 + $0x78] sm:$0xff] %v519_v19  ;;  %617 = vst [vmem:[%s1013_s19 + $0xf8] sm:$0xff] %v583_v20  ;;  %v511_v23 = vadd.f32 %v1008_v24, %v510_v21  ;;  %v575_v25 = vadd.f32 %v1008_v24, %v574_v22 }
 0x10e   : > { %599 = vst [vmem:[%s1013_s19 + $0x68] sm:$0xff] %v511_v23  ;;  %615 = vst [vmem:[%s1013_s19 + $0xe8] sm:$0xff] %v575_v25 }
 0x10f PF: > { %s13_s14 = sadd.s32 1, %s916_s14   ;;  %s1092_s12 = smov %s912_s13 }
 0x110   : > { %p10_p5 = scmp.ge.s32.totalorder %s13_s14, 4   ;;  %s1093_s13 = smov %s1095_s15 }
 0x112   :  { %12 = sbr.rel (!%p10_p5) target bundleno = 2 (0x2), region = 68 }

// kernel: generate_a_forward.37
= control target key start
LH: loop header
LB: loop body
LE: loop exit
PB: predicated region body
PF: predicated region fallthrough
CT: control target
= control target key end

     0   :  { %s3015_s12 = smov 0   ;;  %s3017_s13 = smov 0   ;;  %s3670_s0 = inlined_call_operand.vmem [shape: bf16[2048,784], index: 0, kind: input, shape index: {}]   ;;  %s3671_s1 = inlined_call_operand.vmem [shape: bf16[784,128], index: 1, kind: input, shape index: {}]   ;;  %s3672_s2 = inlined_call_operand.vmem [shape: f32[1,128], index: 2, kind: input, shape index: {}]   ;;  %s3673_s3 = inlined_call_operand.vmem [shape: f32[2048,128], index: 3, kind: output, shape index: {}]  }
   0x1   :  { %s3019_s14 = smov 0  }
   0x2 LB: > { %s25_s15 = sadd.s32 1, %s2989_s13  ;;  %p2149_p0 = scmp.ge.s32.totalorder %s2993_s14, 1  ;;  %s2993_s14 = sphi %s3019_s14, %s13_s14   ;;  %s2989_s13 = sphi %s3017_s13, %s3697_s13   ;;  %s2985_s12 = sphi %s3015_s12, %s3696_s12  }
   0x3   : > { %p27_p1 = scmp.ge.s32.totalorder %s25_s15, 8  ;;  %p170_p2 = scmp.lt.s32.totalorder %s2993_s14, 9 }
   0x5   : > { %s3699_s15 = smov (%p27_p1, %s25_s15), 0  ;;  %p171_p3 = pnand %p2149_p0, %p170_p2 }
   0x7   : > { %174 = sbr.rel (%p171_p3) target bundleno = 467 (0x1d3), region = 32 }
   0xc   : > { %v2762_v0 = vld [vmem:[%s3671_s1 + $0x78] sm:$0xff]   ;;  %s2150_s18 = sshll.u32 %s2985_s12, 5  ;;  %v2764_v2 = vld [vmem:[%s3671_s1 + $0x70] sm:$0xff]   ;;  %v2766_v4 = vld [vmem:[%s3671_s1 + $0x68] sm:$0xff]   ;;  %vm1316_vm0 = vcmask 130048  }
   0xd   : > { %v2763_v1 = vld [vmem:[%s3671_s1 + $0x38] sm:$0xff]   ;;  %2334 = vmatprep.subr.bf16.mxu0 %v2762_v0  ;;  %2721 = vmatprep.subr.bf16.mxu1 %v2762_v0  ;;  %p206_p4 = scmp.lt.s32.totalorder %s2150_s18, 255  ;;  %v2765_v3 = vld [vmem:[%s3671_s1 + $0x30] sm:$0xff]   ;;  %v2767_v5 = vld [vmem:[%s3671_s1 + $0x28] sm:$0xff]  }
   0xe   : > { %2335 = vmatpush3.bf16.msra.mxu0 %v2763_v1  ;;  %2729 = vmatpush3.bf16.msra.mxu1 %v2763_v1  ;;  %v2768_v6 = vld [vmem:[%s3671_s1 + $0x60] sm:$0xff]   ;;  %v2770_v8 = vld [vmem:[%s3671_s1 + $0x58] sm:$0xff]   ;;  %v2772_v10 = vld [vmem:[%s3671_s1 + $0x50] sm:$0xff]  }
   0xf   : > { %2336 = vmatprep.subr.bf16.mxu0 %v2764_v2  ;;  %2722 = vmatprep.subr.bf16.mxu1 %v2764_v2  ;;  %s3701_s18 = smov (!%p206_p4, %s2150_s18), 255  ;;  %v2769_v7 = vld [vmem:[%s3671_s1 + $0x20] sm:$0xff]   ;;  %v2771_v9 = vld [vmem:[%s3671_s1 + $0x18] sm:$0xff]   ;;  %v2773_v13 = vld [vmem:[%s3671_s1 + $0x10] sm:$0xff]  }
  0x10   : > { %s2737_s4 = smul.u32 28, %s3701_s18  ;;  %v2774_v14 = vld [vmem:[%s3671_s1 + $0x48] sm:$0xff]   ;;  %v2776_v16 = vld [vmem:[%s3671_s1 + $0x40] sm:$0xff]   ;;  %v2784_v18 = vld [vmem:[%s3671_s1 + $0xf8] sm:$0xff]  }
  0x11   : > { %v2775_v15 = vld [vmem:[%s3671_s1 + $0x8] sm:$0xff]   ;;  %v2777_v17 = vld [vmem:[%s3671_s1] sm:$0xff]   ;;  %v2785_v21 = vld [vmem:[%s3671_s1 + $0x178] sm:$0xff]  }
  0x12   : > { %2337 = vmatpush3.bf16.msra.mxu0 %v2765_v3  ;;  %2730 = vmatpush3.bf16.msra.mxu1 %v2765_v3  ;;  %s3066_s11 = scalar_lea.vmem %s3670_s0, %s2737_s4  ;;  %v2786_v22 = vld [vmem:[%s3671_s1 + $0xb8] sm:$0xff]   ;;  %v2788_v24 = vld [vmem:[%s3671_s1 + $0xf0] sm:$0xff]   ;;  %v2796_v32 = vld [vmem:[%s3671_s1 + $0xe8] sm:$0xff]   ;;  %s2153_s4 = sshll.u32 %s3701_s18, 3 }
  0x13   : > { %2338 = vmatprep.subr.bf16.mxu0 %v2766_v4  ;;  %2723 = vmatprep.subr.bf16.mxu1 %v2766_v4  ;;  %v2780_v11 = vld [vmem:[%s3066_s11 + $0x4] ss:$28 sps:$4 sm:$0xff]   ;;  %v2787_v23 = vld [vmem:[%s3671_s1 + $0x138] sm:$0xff]   ;;  %v2799_v27 = vld [vmem:[%s3671_s1 + $0x170] sm:$0xff]   ;;  %s3558_s7 = scalar_lea.vmem %s3673_s3, %s2153_s4 }
  0x14   : > { %v2783_v12 = vld [vmem:[%s3066_s11 + $0x2a4] ss:$28 sps:$4 sm:$0xff]   ;;  %1397 = vmatprep.mubr.bf16.mxu0 %v2780_v11  ;;  %v2790_v25 = vld [vmem:[%s3066_s11 + $0x3c] ss:$28 sps:$4 sm:$0xff]   ;;  %v2789_v28 = vld [vmem:[%s3671_s1 + $0xb0] sm:$0xff]  }
  0x15   : > { %1493 = vmatprep.mubr.bf16.mxu1 %v2783_v12  ;;  %v2778_v19 = vld [vmem:[%s3066_s11] ss:$28 sps:$4 sm:$0xff]   ;;  %v2801_v29 = vld [vmem:[%s3671_s1 + $0x130] sm:$0xff]   ;;  %v2797_v33 = vld [vmem:[%s3671_s1 + $0xa8] sm:$0xff]  }
  0x16   : > { %2339 = vmatpush3.bf16.msra.mxu0 %v2767_v5  ;;  %2731 = vmatpush3.bf16.msra.mxu1 %v2767_v5  ;;  %v2781_v20 = vld [vmem:[%s3066_s11 + $0x2a0] ss:$28 sps:$4 sm:$0xff]   ;;  %v2794_v30 = vld [vmem:[%s3066_s11 + $0x38] ss:$28 sps:$4 sm:$0xff]   ;;  %v2806_v39 = vld [vmem:[%s3066_s11 + $0x70] ss:$28 sps:$4 sm:$0xff]  }
  0x17   : > { %2340 = vmatprep.subr.bf16.mxu0 %v2768_v6  ;;  %2724 = vmatprep.subr.bf16.mxu1 %v2768_v6  ;;  %v2792_v26 = vld [vmem:[%s3066_s11 + $0x2dc] ss:$28 sps:$4 sm:$0xff]   ;;  %v2798_v34 = vld [vmem:[%s3671_s1 + $0xe0] sm:$0xff]   ;;  %v2802_v35 = vld [vmem:[%s3066_s11 + $0x74] ss:$28 sps:$4 sm:$0xff]  }
  0x18   : > { %v2795_v31 = vld [vmem:[%s3066_s11 + $0x2d8] ss:$28 sps:$4 sm:$0xff]   ;;  %v2800_v37 = vld [vmem:[%s3671_s1 + $0xa0] sm:$0xff]   ;;  %v2807_v40 = vld [vmem:[%s3066_s11 + $0x310] ss:$28 sps:$4 sm:$0xff]  }
  0x19   : > { %v2804_v36 = vld [vmem:[%s3066_s11 + $0x314] ss:$28 sps:$4 sm:$0xff]   ;;  %v2808_v38 = vld [vmem:[%s3671_s1 + $0xd8] sm:$0xff]   ;;  %v2819_v41 = vld [vmem:[%s3671_s1 + $0x168] sm:$0xff]  }
  0x1a   : > { %2341 = vmatpush3.bf16.msra.mxu0 %v2769_v7  ;;  %2732 = vmatpush3.bf16.msra.mxu1 %v2769_v7  ;;  %v2809_v42 = vld [vmem:[%s3671_s1 + $0x98] sm:$0xff]   ;;  %v2810_v43 = vld [vmem:[%s3671_s1 + $0xd0] sm:$0xff]   ;;  %v2821_v44 = vld [vmem:[%s3671_s1 + $0x128] sm:$0xff]  }
  0x1b   : > { %2342 = vmatprep.subr.bf16.mxu0 %v2770_v8  ;;  %2725 = vmatprep.subr.bf16.mxu1 %v2770_v8  ;;  %v2812_v45 = vld [vmem:[%s3066_s11 + $0xac] ss:$28 sps:$4 sm:$0xff]   ;;  %v2811_v47 = vld [vmem:[%s3671_s1 + $0x90] sm:$0xff]   ;;  %v2830_v51 = vld [vmem:[%s3671_s1 + $0x160] sm:$0xff]  }
  0x1c   : > { %v2814_v46 = vld [vmem:[%s3066_s11 + $0x34c] ss:$28 sps:$4 sm:$0xff]   ;;  %v2832_v53 = vld [vmem:[%s3671_s1 + $0x120] sm:$0xff]   ;;  %v2845_v60 = vld [vmem:[%s3671_s1 + $0x158] sm:$0xff]  }
  0x1d   : > { %v2818_v48 = vld [vmem:[%s3671_s1 + $0xc8] sm:$0xff]   ;;  %v2824_v54 = vld [vmem:[%s3066_s11 + $0xe4] ss:$28 sps:$4 sm:$0xff]   ;;  %v2846_v61 = vld [vmem:[%s3671_s1 + $0x118] sm:$0xff]  }
  0x1e   : > { %2343 = vmatpush3.bf16.msra.mxu0 %v2771_v9  ;;  %2733 = vmatpush3.bf16.msra.mxu1 %v2771_v9  ;;  %v2816_v49 = vld [vmem:[%s3066_s11 + $0xa8] ss:$28 sps:$4 sm:$0xff]   ;;  %v2829_v62 = vld [vmem:[%s3066_s11 + $0xe0] ss:$28 sps:$4 sm:$0xff]   ;;  %v2853_v1 = vld [vmem:[%s3671_s1 + $0x150] sm:$0xff]  }
  0x1f   : > { %2344 = vmatprep.subr.bf16.mxu0 %v2772_v10  ;;  %2726 = vmatprep.subr.bf16.mxu1 %v2772_v10  ;;  %v2817_v50 = vld [vmem:[%s3066_s11 + $0x348] ss:$28 sps:$4 sm:$0xff]   ;;  %v2833_v63 = vld [vmem:[%s3066_s11 + $0x11c] ss:$28 sps:$4 sm:$0xff]   ;;  %v2854_v2 = vld [vmem:[%s3671_s1 + $0x110] sm:$0xff]  }
  0x20   : > { %v2820_v52 = vld [vmem:[%s3671_s1 + $0x88] sm:$0xff]   ;;  %v2822_v55 = vld [vmem:[%s3671_s1 + $0xc0] sm:$0xff]   ;;  %v2837_v3 = vld [vmem:[%s3066_s11 + $0x118] ss:$28 sps:$4 sm:$0xff]  }
  0x21   : > { %v2828_v56 = vld [vmem:[%s3066_s11 + $0xc] ss:$28 sps:$4 sm:$0xff]   ;;  %v2823_v57 = vld [vmem:[%s3671_s1 + $0x80] sm:$0xff]   ;;  %v2839_v5 = vld [vmem:[%s3066_s11 + $0x154] ss:$28 sps:$4 sm:$0xff]  }
  0x22   : > { %2345 = vmatpush3.bf16.msra.mxu0 %v2773_v13  ;;  %2734 = vmatpush3.bf16.msra.mxu1 %v2773_v13  ;;  %v2831_v58 = vld [vmem:[%s3671_s1 + $0x180] sm:$0xff]   ;;  %v2841_v6 = vld [vmem:[%s3066_s11 + $0x7c] ss:$28 sps:$4 sm:$0xff]   ;;  %v2867_v7 = vld [vmem:[%s3671_s1 + $0x148] sm:$0xff]  }
  0x23   : > { %2346 = vmatprep.subr.bf16.mxu0 %v2774_v14  ;;  %2727 = vmatprep.subr.bf16.mxu1 %v2774_v14  ;;  %v2826_v59 = vld [vmem:[%s3066_s11 + $0x8] ss:$28 sps:$4 sm:$0xff]   ;;  %v2838_v4 = vld [vmem:[%s3066_s11 + $0x40] ss:$28 sps:$4 sm:$0xff]   ;;  %v2843_v9 = vld [vmem:[%s3066_s11 + $0x150] ss:$28 sps:$4 sm:$0xff]  }
  0x24   : > { %v2835_v0 = vld [vmem:[%s3066_s11 + $0x44] ss:$28 sps:$4 sm:$0xff]   ;;  %v2868_v8 = vld [vmem:[%s3671_s1 + $0x108] sm:$0xff]   ;;  %v2844_v10 = vld [vmem:[%s3066_s11 + $0x78] ss:$28 sps:$4 sm:$0xff]  }
  0x25   : > { %v2847_v11 = vld [vmem:[%s3066_s11 + $0x18c] ss:$28 sps:$4 sm:$0xff]   ;;  %v2875_v12 = vld [vmem:[%s3671_s1 + $0x140] sm:$0xff]   ;;  %v2849_v14 = vld [vmem:[%s3066_s11 + $0xb4] ss:$28 sps:$4 sm:$0xff]  }
  0x26   : > { %2347 = vmatpush3.bf16.msra.mxu0 %v2775_v15  ;;  %2735 = vmatpush3.bf16.msra.mxu1 %v2775_v15  ;;  %v2876_v13 = vld [vmem:[%s3671_s1 + $0x100] sm:$0xff]  }
  0x27   : > { %2348 = vmatprep.subr.bf16.mxu0 %v2776_v16  ;;  %2728 = vmatprep.subr.bf16.mxu1 %v2776_v16  ;;  %v2851_v15 = vld [vmem:[%s3066_s11 + $0x188] ss:$28 sps:$4 sm:$0xff]   ;;  %v2852_v16 = vld [vmem:[%s3066_s11 + $0xb0] ss:$28 sps:$4 sm:$0xff]  }
  0x2a   : > { %2349 = vmatpush3.bf16.msra.mxu0 %v2777_v17  ;;  %2736 = vmatpush3.bf16.msra.mxu1 %v2777_v17  ;;  %v2855_v17 = vld [vmem:[%s3066_s11 + $0x1c4] ss:$28 sps:$4 sm:$0xff]  }
  0x2b   : > { %2446 = vmatprep.subr.bf16.mxu1 %v2784_v18  ;;  %2558 = vmatprep.subr.bf16.mxu0 %v2785_v21  ;;  %v2857_v18 = vld [vmem:[%s3066_s11 + $0xec] ss:$28 sps:$4 sm:$0xff]   ;;  %v2861_v21 = vld [vmem:[%s3066_s11 + $0x1fc] ss:$28 sps:$4 sm:$0xff]  }
  0x2d   : > { %1398 = vmatmul.mubr.bf16.vlgmr.msra.gmra.mxu0 %v2778_v19  ;;  %1494 = vmatmul.mubr.bf16.vlgmr.msra.gmra.mxu1 %v2781_v20  ;;  %v2859_v19 = vld [vmem:[%s3066_s11 + $0x1c0] ss:$28 sps:$4 sm:$0xff]   ;;  %v2860_v20 = vld [vmem:[%s3066_s11 + $0xe8] ss:$28 sps:$4 sm:$0xff]  }
  0x2e   : > { %2447 = vmatpush3.bf16.msra.mxu1 %v2786_v22  ;;  %2559 = vmatpush3.bf16.msra.mxu0 %v2787_v23  ;;  %v2863_v22 = vld [vmem:[%s3066_s11 + $0x124] ss:$28 sps:$4 sm:$0xff]   ;;  %v2865_v23 = vld [vmem:[%s3066_s11 + $0x1f8] ss:$28 sps:$4 sm:$0xff]  }
  0x2f   : > { %2448 = vmatprep.subr.bf16.mxu1 %v2788_v24  ;;  %1405 = vmatprep.mubr.bf16.mxu0 %v2790_v25  ;;  %v2866_v24 = vld [vmem:[%s3066_s11 + $0x120] ss:$28 sps:$4 sm:$0xff]   ;;  %v2869_v25 = vld [vmem:[%s3066_s11 + $0x234] ss:$28 sps:$4 sm:$0xff]  }
  0x30   : > { %1501 = vmatprep.mubr.bf16.mxu1 %v2792_v26  ;;  %2560 = vmatprep.subr.bf16.mxu0 %v2799_v27  ;;  %v2871_v26 = vld [vmem:[%s3066_s11 + $0x15c] ss:$28 sps:$4 sm:$0xff]   ;;  %v2873_v27 = vld [vmem:[%s3066_s11 + $0x230] ss:$28 sps:$4 sm:$0xff]  }
  0x32   : > { %2449 = vmatpush3.bf16.msra.mxu1 %v2789_v28  ;;  %2561 = vmatpush3.bf16.msra.mxu0 %v2801_v29  ;;  %v2874_v28 = vld [vmem:[%s3066_s11 + $0x158] ss:$28 sps:$4 sm:$0xff]   ;;  %v2877_v29 = vld [vmem:[%s3066_s11 + $0x26c] ss:$28 sps:$4 sm:$0xff]  }
  0x33   : > { %2450 = vmatprep.subr.bf16.mxu1 %v2796_v32  ;;  %2562 = vmatprep.subr.bf16.mxu0 %v2819_v41  ;;  %v2882_v32 = vld [vmem:[%s3066_s11 + $0x190] ss:$28 sps:$4 sm:$0xff]   ;;  %v2895_v41 = vld [vmem:[%s3066_s11 + $0x23c] ss:$28 sps:$4 sm:$0xff]  }
  0x35   : > { %1406 = vmatmul.mubr.bf16.gmra.mxu0 %v2794_v30  ;;  %1502 = vmatmul.mubr.bf16.gmra.mxu1 %v2795_v31  ;;  %v2879_v30 = vld [vmem:[%s3066_s11 + $0x194] ss:$28 sps:$4 sm:$0xff]   ;;  %v2881_v31 = vld [vmem:[%s3066_s11 + $0x268] ss:$28 sps:$4 sm:$0xff]  }
  0x36   : > { %2451 = vmatpush3.bf16.msra.mxu1 %v2797_v33  ;;  %1413 = vmatprep.mubr.bf16.mxu0 %v2802_v35  ;;  %v2883_v33 = vld [vmem:[%s3066_s11 + $0x1cc] ss:$28 sps:$4 sm:$0xff]  }
  0x37   : > { %2452 = vmatprep.subr.bf16.mxu1 %v2798_v34  ;;  %1509 = vmatprep.mubr.bf16.mxu1 %v2804_v36  ;;  %v2887_v34 = vld [vmem:[%s3066_s11 + $0x14] ss:$28 sps:$4 sm:$0xff]   ;;  %v2888_v36 = vld [vmem:[%s3066_s11 + $0x1c8] ss:$28 sps:$4 sm:$0xff]  }
  0x38   : > { %2563 = vmatpush3.bf16.msra.mxu0 %v2821_v44  ;;  %v2885_v35 = vld [vmem:[%s3066_s11 + $0x10] ss:$28 sps:$4 sm:$0xff]   ;;  %v2900_v44 = vld [vmem:[%s3066_s11 + $0x80] ss:$28 sps:$4 sm:$0xff]  }
  0x39   : > { %2564 = vmatprep.subr.bf16.mxu0 %v2830_v51  ;;  %v2911_v51 = vld [vmem:[%s3066_s11 + $0x2a8] ss:$28 sps:$4 sm:$0xff]  }
  0x3a   : > { %2453 = vmatpush3.bf16.msra.mxu1 %v2800_v37  ;;  %v2889_v37 = vld [vmem:[%s3066_s11 + $0x204] ss:$28 sps:$4 sm:$0xff]  }
  0x3b   : > { %2454 = vmatprep.subr.bf16.mxu1 %v2808_v38  ;;  %v2891_v38 = vld [vmem:[%s3066_s11 + $0x4c] ss:$28 sps:$4 sm:$0xff]  }
  0x3c   : > { %2565 = vmatpush3.bf16.msra.mxu0 %v2832_v53  ;;  %v2913_v53 = vld [vmem:[%s3066_s11 + $0x2e4] ss:$28 sps:$4 sm:$0xff]  }
  0x3d   : > { %1414 = vmatmul.mubr.bf16.gmra.mxu0 %v2806_v39  ;;  %1510 = vmatmul.mubr.bf16.gmra.mxu1 %v2807_v40  ;;  %v2893_v39 = vld [vmem:[%s3066_s11 + $0x200] ss:$28 sps:$4 sm:$0xff]   ;;  %v2894_v40 = vld [vmem:[%s3066_s11 + $0x48] ss:$28 sps:$4 sm:$0xff]  }
  0x3e   : > { %2455 = vmatpush3.bf16.msra.mxu1 %v2809_v42  ;;  %1421 = vmatprep.mubr.bf16.mxu0 %v2812_v45  ;;  %v2897_v42 = vld [vmem:[%s3066_s11 + $0x84] ss:$28 sps:$4 sm:$0xff]   ;;  %v2901_v45 = vld [vmem:[%s3066_s11 + $0x274] ss:$28 sps:$4 sm:$0xff]  }
  0x3f   : > { %2456 = vmatprep.subr.bf16.mxu1 %v2810_v43  ;;  %1517 = vmatprep.mubr.bf16.mxu1 %v2814_v46  ;;  %v2899_v43 = vld [vmem:[%s3066_s11 + $0x238] ss:$28 sps:$4 sm:$0xff]  }
  0x40   : > { %2566 = vmatprep.subr.bf16.mxu0 %v2845_v60  ;;  %v2903_v46 = vld [vmem:[%s3066_s11 + $0xbc] ss:$28 sps:$4 sm:$0xff]  }
  0x41   : > { %2567 = vmatpush3.bf16.msra.mxu0 %v2846_v61  ;;  %v2924_v60 = vld [vmem:[%s3066_s11 + $0x160] ss:$28 sps:$4 sm:$0xff]   ;;  %v2925_v61 = vld [vmem:[%s3066_s11 + $0x354] ss:$28 sps:$4 sm:$0xff]  }
  0x42   : > { %2457 = vmatpush3.bf16.msra.mxu1 %v2811_v47  ;;  %2568 = vmatprep.subr.bf16.mxu0 %v2853_v1  ;;  %v2905_v47 = vld [vmem:[%s3066_s11 + $0x270] ss:$28 sps:$4 sm:$0xff]  }
  0x43   : > { %2458 = vmatprep.subr.bf16.mxu1 %v2818_v48  ;;  %v2906_v48 = vld [vmem:[%s3066_s11 + $0xb8] ss:$28 sps:$4 sm:$0xff]  }
  0x44   : > { %v2931_v1 = vld [vmem:[%s3066_s11 + $0x1d4] ss:$28 sps:$4 sm:$0xff]  }
  0x45   : > { %1422 = vmatmul.mubr.bf16.gmra.mxu0 %v2816_v49  ;;  %1518 = vmatmul.mubr.bf16.gmra.mxu1 %v2817_v50  ;;  %v2907_v49 = vld [vmem:[%s3066_s11 + $0x2ac] ss:$28 sps:$4 sm:$0xff]   ;;  %v2909_v50 = vld [vmem:[%s3066_s11 + $0xf4] ss:$28 sps:$4 sm:$0xff]  }
  0x46   : > { %2459 = vmatpush3.bf16.msra.mxu1 %v2820_v52  ;;  %1429 = vmatprep.mubr.bf16.mxu0 %v2824_v54  ;;  %v2912_v52 = vld [vmem:[%s3066_s11 + $0xf0] ss:$28 sps:$4 sm:$0xff]  }
  0x47   : > { %2460 = vmatprep.subr.bf16.mxu1 %v2822_v55  ;;  %1558 = vmatprep.mubr.bf16.mxu1 %v2828_v56  ;;  %v2915_v54 = vld [vmem:[%s3066_s11 + $0x12c] ss:$28 sps:$4 sm:$0xff]   ;;  %v2917_v55 = vld [vmem:[%s3066_s11 + $0x2e0] ss:$28 sps:$4 sm:$0xff]  }
  0x48   : > { %2569 = vmatpush3.bf16.msra.mxu0 %v2854_v2  ;;  %v2918_v56 = vld [vmem:[%s3066_s11 + $0x128] ss:$28 sps:$4 sm:$0xff]   ;;  %v2933_v2 = vld [vmem:[%s3066_s11 + $0x18] ss:$28 sps:$4 sm:$0xff]  }
  0x49   : > { %2570 = vmatprep.subr.bf16.mxu0 %v2867_v7  ;;  %v2939_v7 = vld [vmem:[%s3066_s11 + $0x208] ss:$28 sps:$4 sm:$0xff]  }
  0x4a   : > { %2461 = vmatpush3.bf16.msra.mxu1 %v2823_v57  ;;  %v2919_v57 = vld [vmem:[%s3066_s11 + $0x31c] ss:$28 sps:$4 sm:$0xff]  }
  0x4b   : > { %2687 = vmatprep.subr.bf16.mxu1 %v2831_v58 }
  0x4c   : > { %2571 = vmatpush3.bf16.msra.mxu0 %v2868_v8  ;;  %v2940_v8 = vld [vmem:[%s3066_s11 + $0xc0] ss:$28 sps:$4 sm:$0xff]  }
  0x4d   : > { %1430 = vmatmul.mubr.bf16.gmra.mxu0 %v2829_v62  ;;  %1559 = vmatmul.mubr.bf16.vlgmr.msra.gmra.mxu1 %v2826_v59  ;;  %v2923_v59 = vld [vmem:[%s3066_s11 + $0x318] ss:$28 sps:$4 sm:$0xff]  }
  0x4e   : > { %2688 = vmatpush3.bf16.msra.mxu1 %v2831_v58  ;;  %1437 = vmatprep.mubr.bf16.mxu0 %v2833_v63  ;;  %v2921_v58 = vld [vmem:[%s3066_s11 + $0x164] ss:$28 sps:$4 sm:$0xff]   ;;  %v2927_v62 = vld [vmem:[%s3066_s11 + $0x19c] ss:$28 sps:$4 sm:$0xff]   ;;  %v2929_v63 = vld [vmem:[%s3066_s11 + $0x350] ss:$28 sps:$4 sm:$0xff]  }
  0x4f   : > { %1566 = vmatprep.mubr.bf16.mxu1 %v2835_v0  ;;  %2572 = vmatprep.subr.bf16.mxu0 %v2875_v12  ;;  %v2930_v0 = vld [vmem:[%s3066_s11 + $0x198] ss:$28 sps:$4 sm:$0xff]   ;;  %v2945_v12 = vld [vmem:[%s3066_s11 + $0x130] ss:$28 sps:$4 sm:$0xff]  }
  0x50   : > { %2573 = vmatpush3.bf16.msra.mxu0 %v2876_v13  ;;  %v2946_v13 = vld [vmem:[%s3066_s11 + $0x27c] ss:$28 sps:$4 sm:$0xff]  }
  0x55   : > { %1438 = vmatmul.mubr.bf16.gmra.mxu0 %v2837_v3  ;;  %1567 = vmatmul.mubr.bf16.gmra.mxu1 %v2838_v4  ;;  %v2934_v3 = vld [vmem:[%s3066_s11 + $0x1d0] ss:$28 sps:$4 sm:$0xff]  }
  0x56   : > { %1445 = vmatprep.mubr.bf16.mxu0 %v2839_v5  ;;  %1574 = vmatprep.mubr.bf16.mxu1 %v2841_v6  ;;  %v2935_v4 = vld [vmem:[%s3066_s11 + $0x50] ss:$28 sps:$4 sm:$0xff]   ;;  %v2938_v6 = vld [vmem:[%s3066_s11 + $0x88] ss:$28 sps:$4 sm:$0xff]  }
  0x57   : > { %v2936_v5 = vld [vmem:[%s3066_s11 + $0x20c] ss:$28 sps:$4 sm:$0xff]  }
  0x5d   : > { %1446 = vmatmul.mubr.bf16.gmra.mxu0 %v2843_v9  ;;  %1575 = vmatmul.mubr.bf16.gmra.mxu1 %v2844_v10  ;;  %v2941_v9 = vld [vmem:[%s3066_s11 + $0x244] ss:$28 sps:$4 sm:$0xff]   ;;  %v2943_v10 = vld [vmem:[%s3066_s11 + $0xf8] ss:$28 sps:$4 sm:$0xff]  }
  0x5e   : > { %1453 = vmatprep.mubr.bf16.mxu0 %v2847_v11  ;;  %1582 = vmatprep.mubr.bf16.mxu1 %v2849_v14  ;;  %v2944_v11 = vld [vmem:[%s3066_s11 + $0x240] ss:$28 sps:$4 sm:$0xff]   ;;  %v2948_v14 = vld [vmem:[%s3066_s11 + $0x168] ss:$28 sps:$4 sm:$0xff]  }
  0x65   : > { %1454 = vmatmul.mubr.bf16.gmra.mxu0 %v2851_v15  ;;  %1583 = vmatmul.mubr.bf16.gmra.mxu1 %v2852_v16  ;;  %v2949_v15 = vld [vmem:[%s3066_s11 + $0x278] ss:$28 sps:$4 sm:$0xff]   ;;  %v2950_v16 = vld [vmem:[%s3066_s11 + $0x1a0] ss:$28 sps:$4 sm:$0xff]  }
  0x66   : > { %1461 = vmatprep.mubr.bf16.mxu0 %v2855_v17  ;;  %1590 = vmatprep.mubr.bf16.mxu1 %v2857_v18  ;;  %v2951_v17 = vld [vmem:[%s3066_s11 + $0x2b4] ss:$28 sps:$4 sm:$0xff]  }
  0x67   : > { %v2953_v18 = vld [vmem:[%s3066_s11 + $0x1d8] ss:$28 sps:$4 sm:$0xff]  }
  0x6d   : > { %1462 = vmatmul.mubr.bf16.gmra.mxu0 %v2859_v19  ;;  %1591 = vmatmul.mubr.bf16.gmra.mxu1 %v2860_v20  ;;  %v2954_v19 = vld [vmem:[%s3066_s11 + $0x2b0] ss:$28 sps:$4 sm:$0xff]  }
  0x6e   : > { %1469 = vmatprep.mubr.bf16.mxu0 %v2861_v21  ;;  %1598 = vmatprep.mubr.bf16.mxu1 %v2863_v22  ;;  %v2955_v20 = vld [vmem:[%s3066_s11 + $0x210] ss:$28 sps:$4 sm:$0xff]   ;;  %v2958_v22 = vld [vmem:[%s3066_s11 + $0x248] ss:$28 sps:$4 sm:$0xff]  }
  0x6f   : > { %v2956_v21 = vld [vmem:[%s3066_s11 + $0x2ec] ss:$28 sps:$4 sm:$0xff]  }
  0x75   : > { %1470 = vmatmul.mubr.bf16.gmra.mxu0 %v2865_v23  ;;  %1599 = vmatmul.mubr.bf16.gmra.mxu1 %v2866_v24 }
  0x76   : > { %1477 = vmatprep.mubr.bf16.mxu0 %v2869_v25  ;;  %1606 = vmatprep.mubr.bf16.mxu1 %v2871_v26 }
  0x7d   : > { %1478 = vmatmul.mubr.bf16.gmra.mxu0 %v2873_v27  ;;  %1607 = vmatmul.mubr.bf16.gmra.mxu1 %v2874_v28 }
  0x7e   : > { %1485 = vmatprep.mubr.bf16.mxu0 %v2877_v29  ;;  %1614 = vmatprep.mubr.bf16.mxu1 %v2879_v30 }
  0x85   : > { %1486 = vmatmul.mubr.bf16.gmra.mxu0 %v2881_v31  ;;  %1615 = vmatmul.mubr.bf16.gmra.mxu1 %v2882_v32  ;;  %v2959_v31 = vld [vmem:[%s3066_s11 + $0x2e8] ss:$28 sps:$4 sm:$0xff]   ;;  %v2960_v32 = vld [vmem:[%s3066_s11 + $0x280] ss:$28 sps:$4 sm:$0xff]  }
  0x86   : > { %1622 = vmatprep.mubr.bf16.mxu1 %v2883_v33  ;;  %1719 = vmatprep.mubr.bf16.mxu0 %v2887_v34  ;;  %v2961_v33 = vld [vmem:[%s3066_s11 + $0x324] ss:$28 sps:$4 sm:$0xff]   ;;  %v2963_v34 = vld [vmem:[%s3066_s11 + $0x2b8] ss:$28 sps:$4 sm:$0xff]  }
  0x8d   : > { %1623 = vmatmul.mubr.bf16.gmra.mxu1 %v2888_v36  ;;  %1720 = vmatmul.mubr.bf16.vlgmr.msra.gmra.mxu0 %v2885_v35 }
  0x8e   : > { %1630 = vmatprep.mubr.bf16.mxu1 %v2889_v37  ;;  %1727 = vmatprep.mubr.bf16.mxu0 %v2891_v38 }
  0x95   : > { %1631 = vmatmul.mubr.bf16.gmra.mxu1 %v2893_v39  ;;  %1728 = vmatmul.mubr.bf16.gmra.mxu0 %v2894_v40 }
  0x96   : > { %1638 = vmatprep.mubr.bf16.mxu1 %v2895_v41  ;;  %1735 = vmatprep.mubr.bf16.mxu0 %v2897_v42 }
  0x9d   : > { %1639 = vmatmul.mubr.bf16.gmra.mxu1 %v2899_v43  ;;  %1736 = vmatmul.mubr.bf16.gmra.mxu0 %v2900_v44 }
  0x9e   : > { %1646 = vmatprep.mubr.bf16.mxu1 %v2901_v45  ;;  %1743 = vmatprep.mubr.bf16.mxu0 %v2903_v46 }
  0xa5   : > { %1647 = vmatmul.mubr.bf16.gmra.mxu1 %v2905_v47  ;;  %1744 = vmatmul.mubr.bf16.gmra.mxu0 %v2906_v48  ;;  %v2964_v47 = vld [vmem:[%s3066_s11 + $0x320] ss:$28 sps:$4 sm:$0xff]   ;;  %v2965_v48 = vld [vmem:[%s3066_s11 + $0x2f0] ss:$28 sps:$4 sm:$0xff]  }
  0xa6   : > { %1654 = vmatprep.mubr.bf16.mxu1 %v2907_v49  ;;  %1751 = vmatprep.mubr.bf16.mxu0 %v2909_v50  ;;  %v2966_v49 = vld [vmem:[%s3066_s11 + $0x35c] ss:$28 sps:$4 sm:$0xff]   ;;  %v2968_v50 = vld [vmem:[%s3066_s11 + $0x328] ss:$28 sps:$4 sm:$0xff]  }
  0xad   : > { %1655 = vmatmul.mubr.bf16.gmra.mxu1 %v2911_v51  ;;  %1752 = vmatmul.mubr.bf16.gmra.mxu0 %v2912_v52 }
  0xae   : > { %1662 = vmatprep.mubr.bf16.mxu1 %v2913_v53  ;;  %1759 = vmatprep.mubr.bf16.mxu0 %v2915_v54 }
  0xb5   : > { %1663 = vmatmul.mubr.bf16.gmra.mxu1 %v2917_v55  ;;  %1760 = vmatmul.mubr.bf16.gmra.mxu0 %v2918_v56 }
  0xb6   : > { %1670 = vmatprep.mubr.bf16.mxu1 %v2919_v57  ;;  %1767 = vmatprep.mubr.bf16.mxu0 %v2921_v58 }
  0xbd   : > { %1671 = vmatmul.mubr.bf16.gmra.mxu1 %v2923_v59  ;;  %1768 = vmatmul.mubr.bf16.gmra.mxu0 %v2924_v60 }
  0xbe   : > { %1678 = vmatprep.mubr.bf16.mxu1 %v2925_v61  ;;  %1775 = vmatprep.mubr.bf16.mxu0 %v2927_v62 }
  0xc5   : > { %1679 = vmatmul.mubr.bf16.gmra.mxu1 %v2929_v63  ;;  %1776 = vmatmul.mubr.bf16.gmra.mxu0 %v2930_v0  ;;  %v2969_v63 = vld [vmem:[%s3066_s11 + $0x358] ss:$28 sps:$4 sm:$0xff]   ;;  %v2970_v0 = vld [vmem:[%s3066_s11 + $0x360] ss:$28 sps:$4 sm:$0xff]  }
  0xc6   : > { %1783 = vmatprep.mubr.bf16.mxu0 %v2931_v1  ;;  %2689 = vmatprep.mubr.msk.bf16.mxu1 %vm1316_vm0, %v2933_v2 }
  0xcd   : > { %1784 = vmatmul.mubr.bf16.gmra.mxu0 %v2934_v3  ;;  %2690 = vmatmul.mubr.msk.bf16.vlgmr.msra.gmra.mxu1 %vm1316_vm0, %v2935_v4 }
  0xce   : > { %1791 = vmatprep.mubr.bf16.mxu0 %v2936_v5  ;;  %2693 = vmatprep.mubr.msk.bf16.mxu1 %vm1316_vm0, %v2938_v6 }
  0xd5   : > { %1792 = vmatmul.mubr.bf16.gmra.mxu0 %v2939_v7  ;;  %2694 = vmatmul.mubr.msk.bf16.gmra.mxu1 %vm1316_vm0, %v2940_v8 }
  0xd6   : > { %1799 = vmatprep.mubr.bf16.mxu0 %v2941_v9  ;;  %2697 = vmatprep.mubr.msk.bf16.mxu1 %vm1316_vm0, %v2943_v10 }
  0xdd   : > { %1800 = vmatmul.mubr.bf16.gmra.mxu0 %v2944_v11  ;;  %2698 = vmatmul.mubr.msk.bf16.gmra.mxu1 %vm1316_vm0, %v2945_v12 }
  0xde   : > { %1807 = vmatprep.mubr.bf16.mxu0 %v2946_v13  ;;  %2701 = vmatprep.mubr.msk.bf16.mxu1 %vm1316_vm0, %v2948_v14 }
  0xe5   : > { %1808 = vmatmul.mubr.bf16.gmra.mxu0 %v2949_v15  ;;  %2702 = vmatmul.mubr.msk.bf16.gmra.mxu1 %vm1316_vm0, %v2950_v16 }
  0xe6   : > { %1815 = vmatprep.mubr.bf16.mxu0 %v2951_v17  ;;  %2705 = vmatprep.mubr.msk.bf16.mxu1 %vm1316_vm0, %v2953_v18  ;;  %v3345_v17 = vld [vmem:[%s3672_s2] ss:$0 sm:$0xff] }
  0xed   : > { %v2350_v23 = vpop.f32.mrf.mxu0  ;;  %v2422_v24 = vpop.f32.mrf.mxu1  ;;  %1816 = vmatmul.mubr.bf16.gmra.mxu0 %v2954_v19  ;;  %2706 = vmatmul.mubr.msk.bf16.gmra.mxu1 %vm1316_vm0, %v2955_v20 }
  0xee   : > { %1823 = vmatprep.mubr.bf16.mxu0 %v2956_v21  ;;  %2709 = vmatprep.mubr.msk.bf16.mxu1 %vm1316_vm0, %v2958_v22 }
  0xef   : > { %v2351_v25 = vpop.f32.mrf.mxu0  ;;  %v2423_v26 = vpop.f32.mrf.mxu1 }
  0xf0   : > { %v3301_v27 = vadd.f32 %v2351_v25, %v2350_v23  ;;  %v3303_v28 = vadd.f32 %v2423_v26, %v2422_v24 }
  0xf1   : > { %v2353_v29 = vpop.f32.mrf.mxu0  ;;  %v2425_v30 = vpop.f32.mrf.mxu1 }
  0xf2   : > { %v1400_v22 = vadd.f32 %v3301_v27, %v3345_v17 }
  0xf3   : > { %v2354_v35 = vpop.f32.mrf.mxu0  ;;  %v2426_v36 = vpop.f32.mrf.mxu1 }
  0xf4   : > { %v3309_v37 = vadd.f32 %v2354_v35, %v2353_v29  ;;  %v3311_v38 = vadd.f32 %v2426_v36, %v2425_v30 }
  0xf5   : > { %v2356_v39 = vpop.f32.mrf.mxu0  ;;  %v2428_v40 = vpop.f32.mrf.mxu1  ;;  %1824 = vmatmul.mubr.bf16.gmra.mxu0 %v2959_v31  ;;  %2710 = vmatmul.mubr.msk.bf16.gmra.mxu1 %vm1316_vm0, %v2960_v32 }
  0xf6   : > { %1831 = vmatprep.mubr.bf16.mxu0 %v2961_v33  ;;  %2713 = vmatprep.mubr.msk.bf16.mxu1 %vm1316_vm0, %v2963_v34  ;;  %v1403_v32 = vadd.f32 %v3309_v37, %v3345_v17 }
  0xf7   : > { %v2357_v41 = vpop.f32.mrf.mxu0  ;;  %v2429_v42 = vpop.f32.mrf.mxu1 }
  0xf8   : > { %v3315_v43 = vadd.f32 %v2357_v41, %v2356_v39  ;;  %v3317_v44 = vadd.f32 %v2429_v42, %v2428_v40 }
  0xf9   : > { %v2359_v45 = vpop.f32.mrf.mxu0  ;;  %v2431_v46 = vpop.f32.mrf.mxu1 }
  0xfa   : > { %v1408_v41 = vadd.f32 %v3315_v43, %v3345_v17 }
  0xfb   : > { %v2360_v51 = vpop.f32.mrf.mxu0  ;;  %v2432_v52 = vpop.f32.mrf.mxu1 }
  0xfc   : > { %v3323_v53 = vadd.f32 %v2360_v51, %v2359_v45  ;;  %v3325_v54 = vadd.f32 %v2432_v52, %v2431_v46 }
  0xfd   : > { %v2362_v55 = vpop.f32.mrf.mxu0  ;;  %v2434_v56 = vpop.f32.mrf.mxu1  ;;  %1832 = vmatmul.mubr.bf16.gmra.mxu0 %v2964_v47  ;;  %2714 = vmatmul.mubr.msk.bf16.gmra.mxu1 %vm1316_vm0, %v2965_v48 }
  0xfe   : > { %1839 = vmatprep.mubr.bf16.mxu0 %v2966_v49  ;;  %2717 = vmatprep.mubr.msk.bf16.mxu1 %vm1316_vm0, %v2968_v50  ;;  %v1411_v50 = vadd.f32 %v3323_v53, %v3345_v17 }
  0xff   : > { %v2363_v57 = vpop.f32.mrf.mxu0  ;;  %v2435_v58 = vpop.f32.mrf.mxu1 }
 0x100   : > { %v2364_v59 = vadd.f32 %v2363_v57, %v2362_v55  ;;  %v3329_v60 = vadd.f32 %v2435_v58, %v2434_v56 }
 0x101   : > { %v2365_v61 = vpop.f32.mrf.mxu0  ;;  %v2437_v62 = vpop.f32.mrf.mxu1 }
 0x103   : > { %v2366_v1 = vpop.f32.mrf.mxu0  ;;  %v2438_v2 = vpop.f32.mrf.mxu1 }
 0x104   : > { %v2367_v3 = vadd.f32 %v2366_v1, %v2365_v61  ;;  %v3333_v4 = vadd.f32 %v2438_v2, %v2437_v62  ;;  %v1416_v61 = vadd.f32 %v2364_v59, %v3345_v17 }
 0x105   : > { %v2368_v5 = vpop.f32.mrf.mxu0  ;;  %v2440_v6 = vpop.f32.mrf.mxu1  ;;  %1840 = vmatmul.mubr.bf16.gmra.mxu0 %v2969_v63  ;;  %2718 = vmatmul.mubr.msk.bf16.gmra.mxu1 %vm1316_vm0, %v2970_v0 }
 0x107   : > { %v2369_v7 = vpop.f32.mrf.mxu0  ;;  %v2441_v8 = vpop.f32.mrf.mxu1 }
 0x108   : > { %v2370_v9 = vadd.f32 %v2369_v7, %v2368_v5  ;;  %v3336_v10 = vadd.f32 %v2441_v8, %v2440_v6  ;;  %v1419_v6 = vadd.f32 %v2367_v3, %v3345_v17 }
 0x109   : > { %v2371_v11 = vpop.f32.mrf.mxu0  ;;  %v2443_v12 = vpop.f32.mrf.mxu1 }
 0x10b   : > { %v2372_v13 = vpop.f32.mrf.mxu0  ;;  %v2444_v14 = vpop.f32.mrf.mxu1 }
 0x10c   : > { %v3338_v15 = vadd.f32 %v2372_v13, %v2371_v11  ;;  %v3340_v16 = vadd.f32 %v2444_v14, %v2443_v12 }
 0x10d   : > { %v2374_v18 = vpop.f32.mrf.mxu0  ;;  %v2462_v19 = vpop.f32.mrf.mxu1 }
 0x10f   : > { %v2375_v20 = vpop.f32.mrf.mxu0  ;;  %v2463_v21 = vpop.f32.mrf.mxu1 }
 0x110   : > { %v3349_v23 = vadd.f32 %v2375_v20, %v2374_v18  ;;  %v2464_v24 = vadd.f32 %v2463_v21, %v2462_v19  ;;  %v1424_v18 = vadd.f32 %v2370_v9, %v3345_v17 }
 0x111   : > { %v2377_v25 = vpop.f32.mrf.mxu0  ;;  %v2465_v26 = vpop.f32.mrf.mxu1 }
 0x112   : > { %v3351_v29 = vadd.f32 %v2464_v24, %v1400_v22 }
 0x113   : > { %v2378_v30 = vpop.f32.mrf.mxu0  ;;  %v2466_v31 = vpop.f32.mrf.mxu1 }
 0x114   : > { %v3355_v33 = vadd.f32 %v2378_v30, %v2377_v25  ;;  %v2467_v34 = vadd.f32 %v2466_v31, %v2465_v26  ;;  %v1427_v26 = vadd.f32 %v3338_v15, %v3345_v17 }
 0x115   : > { %v2380_v35 = vpop.f32.mrf.mxu0  ;;  %v2468_v36 = vpop.f32.mrf.mxu1 }
 0x116   : > { %v3357_v39 = vadd.f32 %v2467_v34, %v1403_v32 }
 0x117   : > { %v2381_v27 = vpop.f32.mrf.mxu0  ;;  %v2469_v40 = vpop.f32.mrf.mxu1 }
 0x118   : > { %v3361_v42 = vadd.f32 %v2381_v27, %v2380_v35  ;;  %v2470_v45 = vadd.f32 %v2469_v40, %v2468_v36  ;;  %v1432_v27 = vadd.f32 %v3349_v23, %v3345_v17 }
 0x119   : > { %v2383_v46 = vpop.f32.mrf.mxu0  ;;  %v2471_v47 = vpop.f32.mrf.mxu1 }
 0x11a   : > { %v3363_v48 = vadd.f32 %v2470_v45, %v1408_v41 }
 0x11b   : > { %v2384_v37 = vpop.f32.mrf.mxu0  ;;  %v2472_v49 = vpop.f32.mrf.mxu1 }
 0x11c   : > { %v3367_v51 = vadd.f32 %v2384_v37, %v2383_v46  ;;  %v2473_v52 = vadd.f32 %v2472_v49, %v2471_v47  ;;  %v1435_v49 = vadd.f32 %v3355_v33, %v3345_v17 }
 0x11d   : > { %v2386_v55 = vpop.f32.mrf.mxu0  ;;  %v2474_v56 = vpop.f32.mrf.mxu1 }
 0x11e   : > { %v3369_v57 = vadd.f32 %v2473_v52, %v1411_v50  ;;  %v1443_v33 = vadd.f32 %v3367_v51, %v3345_v17 }
 0x11f   : > { %v2387_v43 = vpop.f32.mrf.mxu0  ;;  %v2475_v58 = vpop.f32.mrf.mxu1 }
 0x120   : > { %v3372_v62 = vadd.f32 %v2387_v43, %v2386_v55  ;;  %v2476_v63 = vadd.f32 %v2475_v58, %v2474_v56 }
 0x121   : > { %v2389_v0 = vpop.f32.mrf.mxu0  ;;  %v2477_v1 = vpop.f32.mrf.mxu1 }
 0x122   : > { %v3374_v2 = vadd.f32 %v2476_v63, %v1416_v61  ;;  %v1440_v61 = vadd.f32 %v3361_v42, %v3345_v17  ;;  %v1448_v42 = vadd.f32 %v3372_v62, %v3345_v17 }
 0x123   : > { %v2390_v5 = vpop.f32.mrf.mxu0  ;;  %v2478_v53 = vpop.f32.mrf.mxu1 }
 0x124   : > { %v3377_v7 = vadd.f32 %v2390_v5, %v2389_v0  ;;  %v2479_v8 = vadd.f32 %v2478_v53, %v2477_v1 }
 0x125   : > { %v2392_v11 = vpop.f32.mrf.mxu0  ;;  %v2480_v12 = vpop.f32.mrf.mxu1 }
 0x126   : > { %v3379_v13 = vadd.f32 %v2479_v8, %v1419_v6  ;;  %v1451_v51 = vadd.f32 %v3377_v7, %v3345_v17 }
 0x127   : > { %v2393_v14 = vpop.f32.mrf.mxu0  ;;  %v2481_v59 = vpop.f32.mrf.mxu1 }
 0x128   : > { %v3382_v19 = vadd.f32 %v2393_v14, %v2392_v11  ;;  %v2482_v20 = vadd.f32 %v2481_v59, %v2480_v12 }
 0x129   : > { %v2395_v21 = vpop.f32.mrf.mxu0  ;;  %v2483_v22 = vpop.f32.mrf.mxu1 }
 0x12a   : > { %v3384_v24 = vadd.f32 %v2482_v20, %v1424_v18  ;;  %v1456_v62 = vadd.f32 %v3382_v19, %v3345_v17 }
 0x12b   : > { %v2396_v25 = vpop.f32.mrf.mxu0  ;;  %v2484_v3 = vpop.f32.mrf.mxu1 }
 0x12c   : > { %v3388_v30 = vadd.f32 %v2396_v25, %v2395_v21  ;;  %v2485_v31 = vadd.f32 %v2484_v3, %v2483_v22 }
 0x12d   : > { %v2398_v32 = vpop.f32.mrf.mxu0  ;;  %v2486_v34 = vpop.f32.mrf.mxu1 }
 0x12e   : > { %v3390_v35 = vadd.f32 %v2485_v31, %v1427_v26  ;;  %v1459_v7 = vadd.f32 %v3388_v30, %v3345_v17 }
 0x12f   : > { %v2399_v9 = vpop.f32.mrf.mxu0  ;;  %v2487_v36 = vpop.f32.mrf.mxu1 }
 0x130   : > { %v3394_v40 = vadd.f32 %v2399_v9, %v2398_v32  ;;  %v2488_v41 = vadd.f32 %v2487_v36, %v2486_v34 }
 0x131   : > { %v2401_v45 = vpop.f32.mrf.mxu0  ;;  %v2489_v46 = vpop.f32.mrf.mxu1 }
 0x132   : > { %v3396_v47 = vadd.f32 %v2488_v41, %v1432_v27 }
 0x133   : > { %v2402_v15 = vpop.f32.mrf.mxu0  ;;  %v2490_v37 = vpop.f32.mrf.mxu1 }
 0x134   : > { %v2403_v50 = vadd.f32 %v2402_v15, %v2401_v45  ;;  %v2491_v52 = vadd.f32 %v2490_v37, %v2489_v46 }
 0x135   : > { %v2404_v55 = vpop.f32.mrf.mxu0  ;;  %v2492_v56 = vpop.f32.mrf.mxu1 }
 0x136   : > { %v3400_v43 = vadd.f32 %v2491_v52, %v1435_v49 }
 0x137   : > { %v2405_v58 = vpop.f32.mrf.mxu0  ;;  %v2493_v23 = vpop.f32.mrf.mxu1 }
 0x138   : > { %v2406_v63 = vadd.f32 %v2405_v58, %v2404_v55  ;;  %v2494_v0 = vadd.f32 %v2493_v23, %v2492_v56 }
 0x139   : > { %v2407_v1 = vpop.f32.mrf.mxu0  ;;  %v2495_v5 = vpop.f32.mrf.mxu1 }
 0x13a   : > { %v3404_v53 = vadd.f32 %v2494_v0, %v1440_v61 }
 0x13b   : > { %v2408_v6 = vpop.f32.mrf.mxu0  ;;  %v2496_v8 = vpop.f32.mrf.mxu1 }
 0x13c   : > { %v2409_v11 = vadd.f32 %v2408_v6, %v2407_v1  ;;  %v2497_v12 = vadd.f32 %v2496_v8, %v2495_v5 }
 0x13d   : > { %v2410_v14 = vpop.f32.mrf.mxu0  ;;  %v2498_v59 = vpop.f32.mrf.mxu1 }
 0x13e   : > { %v3408_v18 = vadd.f32 %v2497_v12, %v1443_v33  ;;  %v1464_v33 = vadd.f32 %v3394_v40, %v3345_v17  ;;  %v1472_v40 = vadd.f32 %v2406_v63, %v3345_v17 }
 0x13f   : > { %v2411_v20 = vpop.f32.mrf.mxu0  ;;  %v2499_v21 = vpop.f32.mrf.mxu1 }
 0x140   : > { %v2412_v22 = vadd.f32 %v2411_v20, %v2410_v14  ;;  %v2500_v25 = vadd.f32 %v2499_v21, %v2498_v59 }
 0x141   : > { %v2413_v3 = vpop.f32.mrf.mxu0  ;;  %v2501_v26 = vpop.f32.mrf.mxu1 }
 0x142   : > { %v3412_v31 = vadd.f32 %v2500_v25, %v1448_v42  ;;  %v1467_v42 = vadd.f32 %v2403_v50, %v3345_v17  ;;  %v1475_v50 = vadd.f32 %v2409_v11, %v3345_v17  ;;  %v1480_v63 = vadd.f32 %v2412_v22, %v3345_v17 }
 0x143   : > { %v2414_v32 = vpop.f32.mrf.mxu0  ;;  %v2502_v34 = vpop.f32.mrf.mxu1 }
 0x144   : > { %v2415_v9 = vadd.f32 %v2414_v32, %v2413_v3  ;;  %v2503_v36 = vadd.f32 %v2502_v34, %v2501_v26 }
 0x145   : > { %v2416_v27 = vpop.f32.mrf.mxu0  ;;  %v2504_v41 = vpop.f32.mrf.mxu1 }
 0x146   : > { %v3416_v45 = vadd.f32 %v2503_v36, %v1451_v51  ;;  %v1483_v11 = vadd.f32 %v2415_v9, %v3345_v17 }
 0x147   : > { %v2417_v46 = vpop.f32.mrf.mxu0  ;;  %v2505_v15 = vpop.f32.mrf.mxu1 }
 0x148   : > { %v2418_v37 = vadd.f32 %v2417_v46, %v2416_v27  ;;  %v2506_v49 = vadd.f32 %v2505_v15, %v2504_v41 }
 0x149   : > { %v2419_v52 = vpop.f32.mrf.mxu0  ;;  %v2507_v55 = vpop.f32.mrf.mxu1 }
 0x14a   : > { %v3420_v56 = vadd.f32 %v2506_v49, %v1456_v62  ;;  %v1488_v22 = vadd.f32 %v2418_v37, %v3345_v17  ;;  %v1496_v37 = vadd.f32 %v3303_v28, %v3345_v17 }
 0x14b   : > { %v2420_v58 = vpop.f32.mrf.mxu0  ;;  %v2508_v23 = vpop.f32.mrf.mxu1 }
 0x14c   : > { %v2421_v61 = vadd.f32 %v2420_v58, %v2419_v52  ;;  %v2509_v0 = vadd.f32 %v2508_v23, %v2507_v55 }
 0x14d   : > { %v2510_v1 = vpop.f32.mrf.mxu1  ;;  %v3424_v5 = vpop.f32.mrf.mxu0 }
 0x14e   : > { %v3426_v6 = vadd.f32 %v2509_v0, %v1459_v7  ;;  %v1491_v9 = vadd.f32 %v2421_v61, %v3345_v17 }
 0x14f   : > { %v2511_v8 = vpop.f32.mrf.mxu1  ;;  %v3428_v19 = vpop.f32.mrf.mxu0 }
 0x150   : > { %v2512_v12 = vadd.f32 %v2511_v8, %v2510_v1 }
 0x151   : > { %v2513_v14 = vpop.f32.mrf.mxu1  ;;  %v3432_v59 = vpop.f32.mrf.mxu0 }
 0x152   : > { %v3434_v20 = vadd.f32 %v2512_v12, %v1464_v33 }
 0x153   : > { %v2514_v30 = vpop.f32.mrf.mxu1  ;;  %v3436_v21 = vpop.f32.mrf.mxu0 }
 0x154   : > { %v2515_v25 = vadd.f32 %v2514_v30, %v2513_v14 }
 0x155   : > { %v2516_v3 = vpop.f32.mrf.mxu1  ;;  %v3439_v26 = vpop.f32.mrf.mxu0 }
 0x156   : > { %v3441_v32 = vadd.f32 %v2515_v25, %v1467_v42 }
 0x157   : > { %v2517_v34 = vpop.f32.mrf.mxu1  ;;  %v3443_v51 = vpop.f32.mrf.mxu0 }
 0x158   : > { %3674 = vst [vmem:[#allocation2_spill] sm:$0xff] %v3441_v32  ;;  %v2518_v36 = vadd.f32 %v2517_v34, %v2516_v3 }
 0x159   : > { %v2519_v27 = vpop.f32.mrf.mxu1  ;;  %v3446_v41 = vpop.f32.mrf.mxu0 }
 0x15a   : > { %v3448_v46 = vadd.f32 %v2518_v36, %v1472_v40 }
 0x15b   : > { %v2520_v15 = vpop.f32.mrf.mxu1  ;;  %v3450_v62 = vpop.f32.mrf.mxu0 }
 0x15c   : > { %v2521_v49 = vadd.f32 %v2520_v15, %v2519_v27 }
 0x15d   : > { %v2522_v52 = vpop.f32.mrf.mxu1  ;;  %v3453_v55 = vpop.f32.mrf.mxu0 }
 0x15e   : > { %v3455_v58 = vadd.f32 %v2521_v49, %v1475_v50 }
 0x15f   : > { %v2523_v23 = vpop.f32.mrf.mxu1  ;;  %v3457_v7 = vpop.f32.mrf.mxu0 }
 0x160   : > { %3675 = vst [vmem:[#allocation3_spill] sm:$0xff] %v3455_v58  ;;  %v2524_v0 = vadd.f32 %v2523_v23, %v2522_v52 }
 0x161   : > { %v2525_v1 = vpop.f32.mrf.mxu1  ;;  %v3460_v8 = vpop.f32.mrf.mxu0 }
 0x162   : > { %v3462_v33 = vadd.f32 %v2524_v0, %v1480_v63 }
 0x163   : > { %v2526_v12 = vpop.f32.mrf.mxu1  ;;  %v3464_v14 = vpop.f32.mrf.mxu0 }
 0x164   : > { %3676 = vst [vmem:[#allocation4_spill] sm:$0xff] %v3462_v33  ;;  %v2527_v30 = vadd.f32 %v2526_v12, %v2525_v1 }
 0x165   : > { %v2528_v42 = vpop.f32.mrf.mxu1  ;;  %v3467_v25 = vpop.f32.mrf.mxu0 }
 0x166   : > { %v3469_v3 = vadd.f32 %v2527_v30, %v1483_v11 }
 0x167   : > { %v2529_v34 = vpop.f32.mrf.mxu1  ;;  %v3471_v40 = vpop.f32.mrf.mxu0 }
 0x168   : > { %3677 = vst [vmem:[#allocation5_spill] sm:$0xff] %v3469_v3  ;;  %v2530_v36 = vadd.f32 %v2529_v34, %v2528_v42 }
 0x169   : > { %v2531_v27 = vpop.f32.mrf.mxu1  ;;  %v3474_v15 = vpop.f32.mrf.mxu0 }
 0x16a   : > { %v3476_v50 = vadd.f32 %v2530_v36, %v1488_v22 }
 0x16b   : > { %v2532_v49 = vpop.f32.mrf.mxu1  ;;  %v3478_v52 = vpop.f32.mrf.mxu0 }
 0x16c   : > { %3678 = vst [vmem:[#allocation6_spill] sm:$0xff] %v3476_v50  ;;  %v2533_v23 = vadd.f32 %v2532_v49, %v2531_v27  ;;  %v1499_v27 = vadd.f32 %v3311_v38, %v3345_v17 }
 0x16d   : > { %v2534_v63 = vpop.f32.mrf.mxu1  ;;  %v3481_v0 = vpop.f32.mrf.mxu0 }
 0x16e   : > { %v3483_v1 = vadd.f32 %v2533_v23, %v1491_v9 }
 0x16f   : > { %v2535_v12 = vpop.f32.mrf.mxu1  ;;  %v3485_v11 = vpop.f32.mrf.mxu0 }
 0x170   : > { %3679 = vst [vmem:[#allocation7_spill] sm:$0xff] %v3483_v1  ;;  %v2536_v30 = vadd.f32 %v2535_v12, %v2534_v63  ;;  %v1504_v63 = vadd.f32 %v3317_v44, %v3345_v17 }
 0x171   : > { %v2537_v42 = vpop.f32.mrf.mxu1  ;;  %v3489_v34 = vpop.f32.mrf.mxu0 }
 0x172   : > { %v3491_v22 = vadd.f32 %v2536_v30, %v1496_v37 }
 0x173   : > { %v2538_v36 = vpop.f32.mrf.mxu1  ;;  %v3493_v61 = vpop.f32.mrf.mxu0 }
 0x174   : > { %3680 = vst [vmem:[#allocation8_spill] sm:$0xff] %v3491_v22  ;;  %v2539_v49 = vadd.f32 %v2538_v36, %v2537_v42  ;;  %v1507_v42 = vadd.f32 %v3325_v54, %v3345_v17 }
 0x175   : > { %v2540_v9 = vpop.f32.mrf.mxu1  ;;  %v3497_v23 = vpop.f32.mrf.mxu0 }
 0x176   : > { %v3499_v3 = vadd.f32 %v2539_v49, %v1499_v27 }
 0x177   : > { %v2541_v1 = vpop.f32.mrf.mxu1  ;;  %v3501_v28 = vpop.f32.mrf.mxu0 }
 0x178   : > { %3681 = vst [vmem:[#allocation9_spill] sm:$0xff] %v3499_v3  ;;  %v2542_v12 = vadd.f32 %v2541_v1, %v2540_v9  ;;  %v1512_v1 = vadd.f32 %v3329_v60, %v3345_v17 }
 0x179   : > { %v2543_v37 = vpop.f32.mrf.mxu1  ;;  %v3505_v30 = vpop.f32.mrf.mxu0 }
 0x17a   : > { %v3507_v22 = vadd.f32 %v2542_v12, %v1504_v63 }
 0x17b   : > { %v2544_v33 = vpop.f32.mrf.mxu1  ;;  %v3509_v38 = vpop.f32.mrf.mxu0 }
 0x17c   : > { %3682 = vst [vmem:[#allocation10_spill] sm:$0xff] %v3507_v22  ;;  %v2545_v36 = vadd.f32 %v2544_v33, %v2543_v37  ;;  %v1515_v33 = vadd.f32 %v3333_v4, %v3345_v17  ;;  %v2576_v4 = vadd.f32 %v3428_v19, %v3424_v5  ;;  %v2579_v19 = vadd.f32 %v3436_v21, %v3432_v59 }
 0x17d   : > { %v2546_v27 = vpop.f32.mrf.mxu1  ;;  %v3513_v49 = vpop.f32.mrf.mxu0  ;;  %v2588_v21 = vadd.f32 %v3457_v7, %v3453_v55  ;;  %v2591_v55 = vadd.f32 %v3464_v14, %v3460_v8  ;;  %v2600_v8 = vadd.f32 %v3485_v11, %v3481_v0  ;;  %v2603_v0 = vadd.f32 %v3493_v61, %v3489_v34 }
 0x17e   : > { %v3515_v3 = vadd.f32 %v2545_v36, %v1507_v42 }
 0x17f   : > { %v2547_v50 = vpop.f32.mrf.mxu1  ;;  %v3517_v44 = vpop.f32.mrf.mxu0 }
 0x180   : > { %3683 = vst [vmem:[#allocation11_spill] sm:$0xff] %v3515_v3  ;;  %v2548_v9 = vadd.f32 %v2547_v50, %v2546_v27  ;;  %v1520_v27 = vadd.f32 %v3336_v10, %v3345_v17  ;;  %v2585_v10 = vadd.f32 %v3450_v62, %v3446_v41  ;;  %v1722_v41 = vadd.f32 %v2576_v4, %v3351_v29 }
 0x181   : > { %v2549_v63 = vpop.f32.mrf.mxu1  ;;  %v3521_v12 = vpop.f32.mrf.mxu0  ;;  %v2612_v34 = vadd.f32 %v3517_v44, %v3513_v49 }
 0x182   : > { %v3523_v22 = vadd.f32 %v2548_v9, %v1512_v1  ;;  %v2582_v1 = vadd.f32 %v3443_v51, %v3439_v26 }
 0x183   : > { %v2550_v32 = vpop.f32.mrf.mxu1  ;;  %v3525_v54 = vpop.f32.mrf.mxu0 }
 0x184   : > { %3684 = vst [vmem:[#allocation12_spill] sm:$0xff] %v3523_v22  ;;  %v2551_v37 = vadd.f32 %v2550_v32, %v2549_v63  ;;  %v1730_v51 = vadd.f32 %v2582_v1, %v3363_v48  ;;  %v2615_v49 = vadd.f32 %v3525_v54, %v3521_v12 }
 0x185   : > { %v2552_v42 = vpop.f32.mrf.mxu1  ;;  %v3529_v36 = vpop.f32.mrf.mxu0 }
 0x186   : > { %v3531_v3 = vadd.f32 %v2551_v37, %v1515_v33  ;;  %v1523_v37 = vadd.f32 %v3340_v16, %v3345_v17  ;;  %v1773_v54 = vadd.f32 %v2615_v49, %v3416_v45 }
 0x187   : > { %v2553_v60 = vpop.f32.mrf.mxu1  ;;  %v3533_v50 = vpop.f32.mrf.mxu0 }
 0x188   : > { %v2554_v9 = vadd.f32 %v2553_v60, %v2552_v42 }
 0x189   : > { %v2555_v22 = vpop.f32.mrf.mxu1  ;;  %v3539_v58 = vpop.f32.mrf.mxu0 }
 0x18a   : > { %v3543_v32 = vadd.f32 %v2554_v9, %v1520_v27  ;;  %v1733_v27 = vadd.f32 %v2585_v10, %v3369_v57  ;;  %v1725_v9 = vadd.f32 %v2579_v19, %v3357_v39  ;;  %v1738_v39 = vadd.f32 %v2588_v21, %v3374_v2 }
 0x18b   : > { %v2556_v63 = vpop.f32.mrf.mxu1  ;;  %v3546_v33 = vpop.f32.mrf.mxu0  ;;  %v1741_v2 = vadd.f32 %v2591_v55, %v3379_v13  ;;  %v1754_v13 = vadd.f32 %v2600_v8, %v3396_v47  ;;  %v1757_v47 = vadd.f32 %v2603_v0, %v3400_v43  ;;  %v1770_v43 = vadd.f32 %v2612_v34, %v3412_v31  ;;  %v3685_v8 = vld [vmem:[#allocation3_spill] sm:$0xff] }
 0x18c   : > { %v2557_v26 = vadd.f32 %v2556_v63, %v2555_v22  ;;  %v2594_v22 = vadd.f32 %v3471_v40, %v3467_v25  ;;  %v2597_v25 = vadd.f32 %v3478_v52, %v3474_v15  ;;  %v2606_v15 = vadd.f32 %v3501_v28, %v3497_v23 }
 0x18d   : > { %v3553_v42 = vpop.f32.mrf.mxu0  ;;  %v2691_v5 = vpop.f32.mrf.mxu1  ;;  %v2609_v23 = vadd.f32 %v3509_v38, %v3505_v30  ;;  %v2618_v30 = vadd.f32 %v3533_v50, %v3529_v36  ;;  %v2621_v36 = vadd.f32 %v3546_v33, %v3539_v58 }
 0x18e   : > { %v3562_v16 = vadd.f32 %v2557_v26, %v1523_v37  ;;  %v1891_v17 = vadd.f32 %v2691_v5, %v1730_v51  ;;  %v1746_v40 = vadd.f32 %v2594_v22, %v3384_v24  ;;  %v1749_v24 = vadd.f32 %v2597_v25, %v3390_v35 }
 0x18f   : > { %v3565_v48 = vpop.f32.mrf.mxu0  ;;  %v1882_v62 = vpop.f32.mrf.mxu1  ;;  %v1762_v35 = vadd.f32 %v2606_v15, %v3404_v53  ;;  %v1765_v53 = vadd.f32 %v2609_v23, %v3408_v18  ;;  %v1778_v18 = vadd.f32 %v2618_v30, %v3420_v56  ;;  %v1781_v33 = vadd.f32 %v2621_v36, %v3426_v6  ;;  %v3686_v23 = vld [vmem:[#allocation2_spill] sm:$0xff] }
 0x190   : > { %2011 = vst [vmem:[%s3558_s7 + $0x10] sm:$0xff] %v1891_v17  ;;  %v1883_v60 = vadd.f32 %v1882_v62, %v1722_v41 }
 0x191   : > { %v3571_v1 = vpop.f32.mrf.mxu0  ;;  %v2692_v59 = vpop.f32.mrf.mxu1 }
 0x192   : > { %2009 = vst [vmem:[%s3558_s7] sm:$0xff] %v1883_v60  ;;  %v1894_v29 = vadd.f32 %v2692_v59, %v1733_v27 }
 0x193   : > { %v3577_v4 = vpop.f32.mrf.mxu0  ;;  %v1885_v63 = vpop.f32.mrf.mxu1 }
 0x194   : > { %2012 = vst [vmem:[%s3558_s7 + $0x18] sm:$0xff] %v1894_v29  ;;  %v1886_v57 = vadd.f32 %v1885_v63, %v1725_v9 }
 0x195   : > { %v2628_v37 = vpop.f32.mrf.mxu0  ;;  %v2695_v10 = vpop.f32.mrf.mxu1 }
 0x196   : > { %2010 = vst [vmem:[%s3558_s7 + $0x8] sm:$0xff] %v1886_v57  ;;  %v1907_v7 = vadd.f32 %v2695_v10, %v1746_v40 }
 0x197   : > { %v2629_v26 = vpop.f32.mrf.mxu0  ;;  %v1898_v51 = vpop.f32.mrf.mxu1 }
 0x198   : > { %2015 = vst [vmem:[%s3558_s7 + $0x30] sm:$0xff] %v1907_v7  ;;  %v1899_v52 = vadd.f32 %v1898_v51, %v1738_v39  ;;  %v2630_v10 = vadd.f32 %v2629_v26, %v2628_v37  ;;  %v2624_v7 = vadd.f32 %v3565_v48, %v3553_v42 }
 0x199   : > { %v2631_v5 = vpop.f32.mrf.mxu0  ;;  %v2696_v19 = vpop.f32.mrf.mxu1 }
 0x19a   : > { %2013 = vst [vmem:[%s3558_s7 + $0x20] sm:$0xff] %v1899_v52  ;;  %v1910_v14 = vadd.f32 %v2696_v19, %v1749_v24  ;;  %v1794_v26 = vadd.f32 %v2630_v10, %v3448_v46  ;;  %v2627_v52 = vadd.f32 %v3577_v4, %v3571_v1  ;;  %v1786_v48 = vadd.f32 %v2624_v7, %v3434_v20 }
 0x19b   : > { %v2632_v17 = vpop.f32.mrf.mxu0  ;;  %v1901_v41 = vpop.f32.mrf.mxu1 }
 0x19c   : > { %2016 = vst [vmem:[%s3558_s7 + $0x38] sm:$0xff] %v1910_v14  ;;  %v1902_v28 = vadd.f32 %v1901_v41, %v1741_v2  ;;  %v2633_v51 = vadd.f32 %v2632_v17, %v2631_v5  ;;  %v1789_v1 = vadd.f32 %v2627_v52, %v3686_v23 }
 0x19d   : > { %v2634_v62 = vpop.f32.mrf.mxu0  ;;  %v2699_v22 = vpop.f32.mrf.mxu1 }
 0x19e   : > { %2014 = vst [vmem:[%s3558_s7 + $0x28] sm:$0xff] %v1902_v28  ;;  %v1923_v11 = vadd.f32 %v2699_v22, %v1762_v35  ;;  %v1797_v14 = vadd.f32 %v2633_v51, %v3685_v8  ;;  %v3687_v22 = vld [vmem:[#allocation6_spill] sm:$0xff]  ;;  %v3695_v8 = vld [vmem:[#allocation12_spill] sm:$0xff] }
 0x19f   : > { %v2635_v60 = vpop.f32.mrf.mxu0  ;;  %v1914_v27 = vpop.f32.mrf.mxu1 }
 0x1a0   : > { %2019 = vst [vmem:[%s3558_s7 + $0x50] sm:$0xff] %v1923_v11  ;;  %v1915_v38 = vadd.f32 %v1914_v27, %v1754_v13  ;;  %v2636_v17 = vadd.f32 %v2635_v60, %v2634_v62 }
 0x1a1   : > { %v2637_v59 = vpop.f32.mrf.mxu0  ;;  %v2700_v21 = vpop.f32.mrf.mxu1 }
 0x1a2   : > { %2017 = vst [vmem:[%s3558_s7 + $0x40] sm:$0xff] %v1915_v38  ;;  %v1926_v61 = vadd.f32 %v2700_v21, %v1765_v53  ;;  %v3688_v38 = vld [vmem:[#allocation4_spill] sm:$0xff] }
 0x1a3   : > { %v2638_v29 = vpop.f32.mrf.mxu0  ;;  %v1917_v9 = vpop.f32.mrf.mxu1  ;;  %v1802_v62 = vadd.f32 %v2636_v17, %v3688_v38 }
 0x1a4   : > { %2020 = vst [vmem:[%s3558_s7 + $0x58] sm:$0xff] %v1926_v61  ;;  %v1918_v50 = vadd.f32 %v1917_v9, %v1757_v47  ;;  %v2639_v27 = vadd.f32 %v2638_v29, %v2637_v59  ;;  %v3689_v61 = vld [vmem:[#allocation7_spill] sm:$0xff] }
 0x1a5   : > { %v2640_v63 = vpop.f32.mrf.mxu0  ;;  %v2703_v25 = vpop.f32.mrf.mxu1 }
 0x1a6   : > { %2018 = vst [vmem:[%s3558_s7 + $0x48] sm:$0xff] %v1918_v50  ;;  %v1939_v44 = vadd.f32 %v2703_v25, %v1778_v18 }
 0x1a7   : > { %v2641_v57 = vpop.f32.mrf.mxu0  ;;  %v1930_v40 = vpop.f32.mrf.mxu1 }
 0x1a8   : > { %2023 = vst [vmem:[%s3558_s7 + $0x70] sm:$0xff] %v1939_v44  ;;  %v1931_v58 = vadd.f32 %v1930_v40, %v1770_v43  ;;  %v2642_v19 = vadd.f32 %v2641_v57, %v2640_v63  ;;  %v3690_v63 = vld [vmem:[#allocation5_spill] sm:$0xff]  ;;  %v3691_v43 = vld [vmem:[#allocation10_spill] sm:$0xff] }
 0x1a9   : > { %v2643_v56 = vpop.f32.mrf.mxu0  ;;  %v2704_v55 = vpop.f32.mrf.mxu1  ;;  %v1805_v59 = vadd.f32 %v2639_v27, %v3690_v63 }
 0x1aa   : > { %2021 = vst [vmem:[%s3558_s7 + $0x60] sm:$0xff] %v1931_v58  ;;  %v1942_v12 = vadd.f32 %v2704_v55, %v1781_v33  ;;  %v1810_v0 = vadd.f32 %v2642_v19, %v3687_v22 }
 0x1ab   : > { %v2644_v31 = vpop.f32.mrf.mxu0  ;;  %v1933_v39 = vpop.f32.mrf.mxu1 }
 0x1ac   : > { %2024 = vst [vmem:[%s3558_s7 + $0x78] sm:$0xff] %v1942_v12  ;;  %v1934_v37 = vadd.f32 %v1933_v39, %v1773_v54  ;;  %v2645_v20 = vadd.f32 %v2644_v31, %v2643_v56  ;;  %v3692_v56 = vld [vmem:[#allocation8_spill] sm:$0xff]  ;;  %v3693_v31 = vld [vmem:[#allocation11_spill] sm:$0xff] }
 0x1ad   : > { %v2646_v6 = vpop.f32.mrf.mxu0  ;;  %v2707_v15 = vpop.f32.mrf.mxu1 }
 0x1ae   : > { %2022 = vst [vmem:[%s3558_s7 + $0x68] sm:$0xff] %v1934_v37  ;;  %v1955_v42 = vadd.f32 %v2707_v15, %v1794_v26  ;;  %v1813_v47 = vadd.f32 %v2645_v20, %v3689_v61  ;;  %v3694_v15 = vld [vmem:[#allocation9_spill] sm:$0xff] }
 0x1af   : > { %v2647_v45 = vpop.f32.mrf.mxu0  ;;  %v1946_v24 = vpop.f32.mrf.mxu1 }
 0x1b0   : > { %2027 = vst [vmem:[%s3558_s7 + $0x90] sm:$0xff] %v1955_v42  ;;  %v1947_v5 = vadd.f32 %v1946_v24, %v1786_v48  ;;  %v2648_v50 = vadd.f32 %v2647_v45, %v2646_v6 }
 0x1b1   : > { %v2649_v46 = vpop.f32.mrf.mxu0  ;;  %v2708_v2 = vpop.f32.mrf.mxu1 }
 0x1b2   : > { %2025 = vst [vmem:[%s3558_s7 + $0x80] sm:$0xff] %v1947_v5  ;;  %v1958_v41 = vadd.f32 %v2708_v2, %v1797_v14  ;;  %v1818_v55 = vadd.f32 %v2648_v50, %v3692_v56 }
 0x1b3   : > { %v2650_v4 = vpop.f32.mrf.mxu0  ;;  %v1949_v28 = vpop.f32.mrf.mxu1 }
 0x1b4   : > { %2028 = vst [vmem:[%s3558_s7 + $0x98] sm:$0xff] %v1958_v41  ;;  %v1950_v35 = vadd.f32 %v1949_v28, %v1789_v1  ;;  %v2651_v58 = vadd.f32 %v2650_v4, %v2649_v46 }
 0x1b5   : > { %v2652_v11 = vpop.f32.mrf.mxu0  ;;  %v2711_v13 = vpop.f32.mrf.mxu1 }
 0x1b6   : > { %2026 = vst [vmem:[%s3558_s7 + $0x88] sm:$0xff] %v1950_v35  ;;  %v1971_v30 = vadd.f32 %v2711_v13, %v1810_v0  ;;  %v1821_v52 = vadd.f32 %v2651_v58, %v3694_v15 }
 0x1b7   : > { %v2653_v60 = vpop.f32.mrf.mxu0  ;;  %v1962_v53 = vpop.f32.mrf.mxu1 }
 0x1b8   : > { %2031 = vst [vmem:[%s3558_s7 + $0xb0] sm:$0xff] %v1971_v30  ;;  %v2654_v21 = vadd.f32 %v2653_v60, %v2652_v11  ;;  %v1963_v34 = vadd.f32 %v1962_v53, %v1802_v62 }
 0x1b9   : > { %v2655_v9 = vpop.f32.mrf.mxu0  ;;  %v2712_v36 = vpop.f32.mrf.mxu1 }
 0x1ba   : > { %2029 = vst [vmem:[%s3558_s7 + $0xa0] sm:$0xff] %v1963_v34  ;;  %v1974_v18 = vadd.f32 %v2712_v36, %v1813_v47  ;;  %v1826_v57 = vadd.f32 %v2654_v21, %v3691_v43 }
 0x1bb   : > { %v2656_v29 = vpop.f32.mrf.mxu0  ;;  %v1965_v25 = vpop.f32.mrf.mxu1 }
 0x1bc   : > { %2032 = vst [vmem:[%s3558_s7 + $0xb8] sm:$0xff] %v1974_v18  ;;  %v2657_v49 = vadd.f32 %v2656_v29, %v2655_v9  ;;  %v1966_v44 = vadd.f32 %v1965_v25, %v1805_v59 }
 0x1bd   : > { %v2658_v40 = vpop.f32.mrf.mxu0  ;;  %v2715_v10 = vpop.f32.mrf.mxu1 }
 0x1be   : > { %2030 = vst [vmem:[%s3558_s7 + $0xa8] sm:$0xff] %v1966_v44  ;;  %v1987_v33 = vadd.f32 %v2715_v10, %v1826_v57  ;;  %v1829_v39 = vadd.f32 %v2657_v49, %v3693_v31 }
 0x1bf   : > { %v2659_v7 = vpop.f32.mrf.mxu0  ;;  %v1978_v12 = vpop.f32.mrf.mxu1 }
 0x1c0   : > { %2035 = vst [vmem:[%s3558_s7 + $0xd0] sm:$0xff] %v1987_v33  ;;  %v1979_v54 = vadd.f32 %v1978_v12, %v1818_v55  ;;  %v2660_v26 = vadd.f32 %v2659_v7, %v2658_v40 }
 0x1c1   : > { %v2661_v51 = vpop.f32.mrf.mxu0  ;;  %v2716_v37 = vpop.f32.mrf.mxu1 }
 0x1c2   : > { %2033 = vst [vmem:[%s3558_s7 + $0xc0] sm:$0xff] %v1979_v54  ;;  %v1990_v6 = vadd.f32 %v2716_v37, %v1829_v39  ;;  %v1834_v14 = vadd.f32 %v2660_v26, %v3695_v8 }
 0x1c3   : > { %v2662_v42 = vpop.f32.mrf.mxu0  ;;  %v1981_v48 = vpop.f32.mrf.mxu1 }
 0x1c4   : > { %2036 = vst [vmem:[%s3558_s7 + $0xd8] sm:$0xff] %v1990_v6  ;;  %v1982_v45 = vadd.f32 %v1981_v48, %v1821_v52  ;;  %v2663_v5 = vadd.f32 %v2662_v42, %v2661_v51 }
 0x1c5   : > { %v2664_v24 = vpop.f32.mrf.mxu0  ;;  %v2719_v19 = vpop.f32.mrf.mxu1 }
 0x1c6   : > { %2034 = vst [vmem:[%s3558_s7 + $0xc8] sm:$0xff] %v1982_v45  ;;  %v1837_v28 = vadd.f32 %v2663_v5, %v3531_v3 }
 0x1c7   : > { %v2665_v46 = vpop.f32.mrf.mxu0  ;;  %v1994_v2 = vpop.f32.mrf.mxu1 }
 0x1c8   : > { %v2666_v17 = vadd.f32 %v2665_v46, %v2664_v24  ;;  %v1995_v41 = vadd.f32 %v1994_v2, %v1834_v14 }
 0x1c9   : > { %v2667_v23 = vpop.f32.mrf.mxu0  ;;  %v2720_v1 = vpop.f32.mrf.mxu1 }
 0x1ca   : > { %v1842_v4 = vadd.f32 %v2666_v17, %v3543_v32  ;;  %2037 = vst [vmem:[%s3558_s7 + $0xe0] sm:$0xff] %v1995_v41 }
 0x1cb   : > { %v2668_v20 = vpop.f32.mrf.mxu0  ;;  %v1997_v35 = vpop.f32.mrf.mxu1 }
 0x1cc   : > { %v2003_v22 = vadd.f32 %v2719_v19, %v1842_v4  ;;  %v2669_v0 = vadd.f32 %v2668_v20, %v2667_v23  ;;  %v1998_v11 = vadd.f32 %v1997_v35, %v1837_v28 }
 0x1ce   : > { %2039 = vst [vmem:[%s3558_s7 + $0xf0] sm:$0xff] %v2003_v22  ;;  %v1845_v13 = vadd.f32 %v2669_v0, %v3562_v16  ;;  %2038 = vst [vmem:[%s3558_s7 + $0xe8] sm:$0xff] %v1998_v11 }
 0x1d0   : > { %v2006_v27 = vadd.f32 %v2720_v1, %v1845_v13 }
 0x1d2   : > { %2040 = vst [vmem:[%s3558_s7 + $0xf8] sm:$0xff] %v2006_v27 }
 0x1d3 PF: > { %s13_s14 = sadd.s32 1, %s2993_s14   ;;  %s3696_s12 = smov %s2989_s13 }
 0x1d4   : > { %p10_p5 = scmp.ge.s32.totalorder %s13_s14, 10   ;;  %s3697_s13 = smov %s3699_s15 }
 0x1d6   :  { %12 = sbr.rel (!%p10_p5) target bundleno = 2 (0x2), region = 68 }

</bundles_post_ra>
